<compile_context>
chip_gen: v7x
topology: tpu7x:2x2x1
jax: 0.10.0
libtpu: 0.0.40
codegen_flags: <defaults>
</compile_context>

<pallas_src>
import math
import functools
import numpy as np
import jax
import jax.numpy as jnp
from jax.experimental import pallas as pl
from jax.experimental.pallas import tpu as pltpu

# ------------------------- small synthetic config --------------------------
N_CLS = 4            # number of class prompts
N_CTX = 4            # number of context tokens
CTX_DIM = 128        # text transformer width   (512 in real CLIP, 128-multiple)
VIS_DIM = 128        # vision transformer width (768 in real CLIP, 128-multiple)
EMBED_DIM = 128      # joint embedding dim
SEQ_LEN = 16         # text context length (77 in real CLIP)
MPG_HEADS = 8        # heads inside MutualPromptGeneration MHAs
ENC_HEADS = 4        # heads inside text / vision transformers
TXT_LAYERS = 2
VIS_LAYERS = 2
PROMPT_DEPTH = 2     # -> 1 level of deep ("compound") prompts
IMG_SIZE = 16
PATCH = 8
IN_CH = 3
N_PATCH = (IMG_SIZE // PATCH) ** 2

DTYPE = jnp.bfloat16        # inter-kernel activation dtype (fp16 in the original)
WDTYPE = jnp.bfloat16       # weight storage dtype (halves DMA + VMEM residency)
MXU_DTYPE = jnp.bfloat16    # MXU operand dtype (accumulate in f32)
LN_EPS = 1e-5

# The fused MPG launch stacks the t2i / i2t branches (and their deep-prompt
# projections) on a 2-wide "parallel" grid axis, which requires equal widths.
assert CTX_DIM == VIS_DIM


# --------------------------- in-kernel helpers ------------------------------
def _mxu(a, w):
    """MXU matmul: bf16 operands, f32 accumulation (weights are already bf16)."""
    return jnp.dot(a.astype(MXU_DTYPE), w.astype(MXU_DTYPE),
                   preferred_element_type=jnp.float32)


def _ln_f32(x, g, b):
    """LayerNorm in f32 (matches the fp16-safe LayerNorm subclass), eps=1e-5."""
    g = g.astype(jnp.float32)
    b = b.astype(jnp.float32)
    mu = jnp.mean(x, axis=-1, keepdims=True)
    xc = x - mu
    var = jnp.mean(xc * xc, axis=-1, keepdims=True)
    return xc * jax.lax.rsqrt(var + LN_EPS) * g + b


def _quick_gelu(h):
    # x * sigmoid(1.702 x) == 0.5 * x * (1 + tanh(0.851 x)): a single EUP push.
    return 0.5 * h * (1.0 + jnp.tanh(0.851 * h))


def _sdpa_concat(qkv, num_heads):
    """Per-head SDPA on a fused (S, 3E) QKV tensor -> concat of heads, (S, E).

    The caller applies ONE output-projection matmul on the concatenated result
    (no per-head accumulation / w_out row slices).  q/k/v splits are 128-lane
    aligned; the remaining per-head Dh-lane slices are unavoidable without a
    head-major relayout and are tiny.
    """
    S, E3 = qkv.shape
    E = E3 // 3
    Dh = E // num_heads
    scale = 1.0 / math.sqrt(Dh)
    q = qkv[:, 0 * E:1 * E]     # lane-aligned (E is a multiple of 128)
    k = qkv[:, 1 * E:2 * E]
    v = qkv[:, 2 * E:3 * E]
    heads = []
    for h in range(num_heads):
        sl = slice(h * Dh, (h + 1) * Dh)
        qh = q[:, sl].astype(MXU_DTYPE)
        kh = k[:, sl].astype(MXU_DTYPE)
        vh = v[:, sl].astype(MXU_DTYPE)
        s = jax.lax.dot_general(qh, kh, (((1,), (1,)), ((), ())),
                                preferred_element_type=jnp.float32) * scale
        s = s - jnp.max(s, axis=-1, keepdims=True)
        p = jnp.exp(s)
        p = p / jnp.sum(p, axis=-1, keepdims=True)      # exact softmax denominator
        heads.append(jax.lax.dot_general(p.astype(MXU_DTYPE), vh,
                                         (((1,), (0,)), ((), ())),
                                         preferred_element_type=jnp.float32))
    return jnp.concatenate(heads, axis=-1)              # (S, E)


# ------------------------------ Pallas kernels ------------------------------
def _encoder_kernel(x_ref, dp_ref, g1_ref, b1_ref, wqkv_ref, bqkv_ref,
                    wo_ref, bo_ref, g2_ref, b2_ref, w1_ref, bb1_ref,
                    w2_ref, bb2_ref, o_ref,
                    *, batch, seq, num_heads, splice_start, n_splice, n_deep):
    """One fused CLIP transformer: grid=(L,) over layers, activations resident.

    Activations are flat (B*S, E) so batch is folded into the matmul M dim for
    LN / fused-QKV / out-proj / MLP; the deep-prompt splice happens in-kernel.
    """
    layer = pl.program_id(0)

    @pl.when(layer == 0)
    def _init():
        o_ref[...] = x_ref[...]

    if n_deep > 0:
        @pl.when((layer > 0) & (layer <= n_deep))
        def _splice():
            dp = dp_ref[0].astype(o_ref.dtype)           # (n_splice, E)
            for b in range(batch):
                r0 = b * seq + splice_start
                o_ref[r0:r0 + n_splice, :] = dp

    x = o_ref[...].astype(jnp.float32)                   # (B*S, E), resident

    # --- attention sub-block: x = x + out_proj(concat_heads(SDPA(ln1(x)))) ---
    y = _ln_f32(x, g1_ref[0], b1_ref[0])
    qkv = _mxu(y, wqkv_ref[0]) + bqkv_ref[0].astype(jnp.float32)       # (B*S, 3E)
    per_batch = [_sdpa_concat(qkv[b * seq:(b + 1) * seq, :], num_heads)
                 for b in range(batch)]
    a = jnp.concatenate(per_batch, axis=0)                             # (B*S, E)
    x = x + _mxu(a, wo_ref[0]) + bo_ref[0].astype(jnp.float32)

    # --- MLP sub-block: x = x + c_proj(QuickGELU(c_fc(ln2(x)))) ---
    y = _ln_f32(x, g2_ref[0], b2_ref[0])
    h = _quick_gelu(_mxu(y, w1_ref[0]) + bb1_ref[0].astype(jnp.float32))
    x = x + _mxu(h, w2_ref[0]) + bb2_ref[0].astype(jnp.float32)

    o_ref[...] = x.astype(o_ref.dtype)


def _mpg_kernel(x_ref, wqkv_ref, bqkv_ref, wod_ref, bod_ref,
                w1_ref, b1_ref, w2_ref, b2_ref,
                din_ref, wd_ref, bd_ref,
                ctx_ref, deep_ref, *, num_heads):
    """One MutualPromptGeneration branch (grid=(2,) parallel over branches):
    fused-QKV MHA -> (out_proj o out_dim folded) -> residual QuickGELU MLP,
    plus the compound-prompt linear projection for that branch."""
    x = x_ref[0].astype(jnp.float32)                                   # (n_ctx, E)
    qkv = _mxu(x, wqkv_ref[0]) + bqkv_ref[0].astype(jnp.float32)       # (n_ctx, 3E)
    a = _sdpa_concat(qkv, num_heads)                                   # (n_ctx, E)
    y = _mxu(a, wod_ref[0]) + bod_ref[0].astype(jnp.float32)           # folded out_proj@out_dim
    h = _quick_gelu(_mxu(y, w1_ref[0]) + b1_ref[0].astype(jnp.float32))
    y = y + _mxu(h, w2_ref[0]) + b2_ref[0].astype(jnp.float32)         # y + mlp(y)
    ctx_ref[0] = y.astype(ctx_ref.dtype)
    d = _mxu(din_ref[0], wd_ref[0]) + bd_ref[0].astype(jnp.float32)
    deep_ref[0] = d.astype(deep_ref.dtype)
    # TODO(synk): stateful pre_ctx / pre_ctx_v EMA buffers are empty on the first
    # call and have no effect within a single forward; not modeled.


def _vision_stem_kernel(p_ref, pw_ref, pb_ref, cls_ref, pos_ref, g_ref, b_ref,
                        vpt_ref, o_ref, *, batch, n_patch):
    """Patch-embed + cls + pos + ln_pre + visual-prompt append; one dense store."""
    patches = p_ref[...].astype(jnp.float32)                           # (B*NP, C*ph*pw)
    emb = _mxu(patches, pw_ref[...]) + pb_ref[...].astype(jnp.float32) # (B*NP, VIS)
    pos = pos_ref[...].astype(jnp.float32)                             # (1+NP, VIS)
    g, b = g_ref[...], b_ref[...]
    cls_ln = _ln_f32(cls_ref[...].astype(jnp.float32) + pos[0:1, :], g, b)   # (1, VIS)
    vpt = vpt_ref[...].astype(jnp.float32)                             # (2*n_ctx, VIS)
    pieces = []
    for bi in range(batch):
        rows = emb[bi * n_patch:(bi + 1) * n_patch, :] + pos[1:, :]
        pieces.append(cls_ln)
        pieces.append(_ln_f32(rows, g, b))
        pieces.append(vpt)
    o_ref[...] = jnp.concatenate(pieces, axis=0).astype(o_ref.dtype)   # (B*S_out, VIS)


def _head_kernel(img_ref, lpg_ref, lpb_ref, projw_ref,
                 txt_ref, lfg_ref, lfb_ref, tproj_ref, scale_ref, o_ref):
    """ln_post/ln_final + both projections + L2 normalize + cosine sim + scale."""
    img = _ln_f32(img_ref[...].astype(jnp.float32), lpg_ref[...], lpb_ref[...])
    imf = _mxu(img, projw_ref[...])                                    # (B, EMBED)
    txt = _ln_f32(txt_ref[...].astype(jnp.float32), lfg_ref[...], lfb_ref[...])
    txf = _mxu(txt, tproj_ref[...])                                    # (C, EMBED)
    imf = imf * jax.lax.rsqrt(jnp.sum(imf * imf, axis=-1, keepdims=True))
    txf = txf * jax.lax.rsqrt(jnp.sum(txf * txf, axis=-1, keepdims=True))
    sim = jax.lax.dot_general(imf.astype(MXU_DTYPE), txf.astype(MXU_DTYPE),
                              (((1,), (1,)), ((), ())),
                              preferred_element_type=jnp.float32)
    o_ref[...] = (sim * scale_ref[0]).astype(o_ref.dtype)


# ------------------------------ kernel wrappers ------------------------------
def encoder_forward(x_flat, batch, seq, deep_prompts, blocks, num_heads,
                    *, splice_start, n_splice):
    """Whole transformer in one pallas_call: grid over layers ('arbitrary'),
    per-layer weights streamed via BlockSpec, activations resident in the
    output block across layers."""
    M, E = x_flat.shape
    L = blocks["wqkv"].shape[0]
    n_deep = min(len(deep_prompts), L - 1)

    # Deep-prompt table, indexed by layer (entry 0 unused; gated by pl.when).
    dp_list = [jnp.zeros((n_splice, E), DTYPE)]
    for i in range(L - 1):
        dp_list.append(deep_prompts[i].astype(DTYPE) if i < n_deep
                       else jnp.zeros((n_splice, E), DTYPE))
    dp = jnp.stack(dp_list, axis=0)                       # (L, n_splice, E)

    def per_layer(shape):
        return pl.BlockSpec((1,) + shape, lambda l: (l,) + (0,) * len(shape))

    kernel = functools.partial(
        _encoder_kernel, batch=batch, seq=seq, num_heads=num_heads,
        splice_start=splice_start, n_splice=n_splice, n_deep=n_deep)

    return pl.pallas_call(
        kernel,
        out_shape=jax.ShapeDtypeStruct((M, E), DTYPE),
        grid=(L,),
        in_specs=[
            pl.BlockSpec((M, E), lambda l: (0, 0)),        # x (read only at layer 0)
            per_layer((n_splice, E)),                      # deep prompt for layer l
            per_layer((1, E)), per_layer((1, E)),          # ln1 gamma / beta
            per_layer((E, 3 * E)), per_layer((1, 3 * E)),  # fused QKV
            per_layer((E, E)), per_layer((1, E)),          # attention out proj
            per_layer((1, E)), per_layer((1, E)),          # ln2 gamma / beta
            per_layer((E, 4 * E)), per_layer((1, 4 * E)),  # mlp c_fc
            per_layer((4 * E, E)), per_layer((1, E)),      # mlp c_proj
        ],
        out_specs=pl.BlockSpec((M, E), lambda l: (0, 0)),  # resident accumulator
        compiler_params=pltpu.CompilerParams(
            dimension_semantics=("arbitrary",)),
    )(x_flat, dp,
      blocks["ln1_g"], blocks["ln1_b"], blocks["wqkv"], blocks["bqkv"],
      blocks["wo"], blocks["bo"], blocks["ln2_g"], blocks["ln2_b"],
      blocks["mlp_w1"], blocks["mlp_b1"], blocks["mlp_w2"], blocks["mlp_b2"])


def mpg_and_deep_proj(ctx, ctx_v, deep_txt, deep_img, p):
    """Both MPG branches + both compound-prompt projections, one launch,
    branch axis of 2 marked 'parallel' (keeps both TCs busy on v7x)."""
    E = CTX_DIM
    S = N_CTX
    x = jnp.stack([ctx.astype(DTYPE), ctx_v.astype(DTYPE)], axis=0)     # (2, n_ctx, E)
    din = jnp.stack([deep_txt.astype(DTYPE), deep_img.astype(DTYPE)], axis=0)

    def spec(shape):
        return pl.BlockSpec((1,) + shape, lambda b: (b,) + (0,) * len(shape))

    kernel = functools.partial(_mpg_kernel, num_heads=MPG_HEADS)
    ctx_out, deep_out = pl.pallas_call(
        kernel,
        out_shape=(jax.ShapeDtypeStruct((2, S, E), DTYPE),
                   jax.ShapeDtypeStruct((2, S, E), DTYPE)),
        grid=(2,),
        in_specs=[spec((S, E)),
                  spec((E, 3 * E)), spec((1, 3 * E)),
                  spec((E, E)), spec((1, E)),
                  spec((E, 4 * E)), spec((1, 4 * E)),
                  spec((4 * E, E)), spec((1, E)),
                  spec((S, E)), spec((E, E)), spec((1, E))],
        out_specs=(spec((S, E)), spec((S, E))),
        compiler_params=pltpu.CompilerParams(
            dimension_semantics=("parallel",)),
    )(x, p["wqkv"], p["bqkv"], p["w_od"], p["b_od"],
      p["mlp_w1"], p["mlp_b1"], p["mlp_w2"], p["mlp_b2"],
      din, p["deep_w"], p["deep_b"])
    return ctx_out, deep_out


def vision_stem(patches_flat, vpt, batch, p):
    BNP, _ = patches_flat.shape
    n_patch = BNP // batch
    s_out = 1 + n_patch + vpt.shape[0]
    vm = pl.BlockSpec(memory_space=pltpu.MemorySpace.VMEM)
    kernel = functools.partial(_vision_stem_kernel, batch=batch, n_patch=n_patch)
    return pl.pallas_call(
        kernel,
        out_shape=jax.ShapeDtypeStruct((batch * s_out, VIS_DIM), DTYPE),
        in_specs=[vm] * 8,
        out_specs=vm,
    )(patches_flat, p["patch_w"], p["patch_b"], p["cls_emb"], p["pos_emb"],
      p["ln_pre_g"], p["ln_pre_b"], vpt)


def clip_head(img_tok, txt_tok, scale, te, ie):
    B, C = img_tok.shape[0], txt_tok.shape[0]
    vm = pl.BlockSpec(memory_space=pltpu.MemorySpace.VMEM)
    sm = pl.BlockSpec(memory_space=pltpu.MemorySpace.SMEM)
    return pl.pallas_call(
        _head_kernel,
        out_shape=jax.ShapeDtypeStruct((B, C), jnp.float32),
        in_specs=[vm, vm, vm, vm, vm, vm, vm, vm, sm],
        out_specs=vm,
    )(img_tok, ie["ln_post_g"], ie["ln_post_b"], ie["proj_w"],
      txt_tok, te["ln_final_g"], te["ln_final_b"], te["text_projection"], scale)


# ------------------------------- model pieces -------------------------------
def prompt_learner(p):
    if PROMPT_DEPTH > 1:
        deep_txt = p["compound_prompts_text"][0]
        deep_img = p["compound_prompts_image"][0]
    else:
        deep_txt = jnp.zeros((N_CTX, CTX_DIM), DTYPE)
        deep_img = jnp.zeros((N_CTX, VIS_DIM), DTYPE)

    # ctx is expanded to (n_cls, ...) in PyTorch but the rows are identical and
    # only row 0 of ctx_t2i is consumed -> compute once and broadcast.
    ctx_out, deep_out = mpg_and_deep_proj(p["ctx"], p["ctx_v"],
                                          deep_txt, deep_img, p["mpg"])
    ctx_t2i = ctx_out[0]                     # (n_ctx, VIS) appended to visual ctx
    ctx_i2t = ctx_out[1]                     # (n_ctx, CTX) appended to text ctx

    ctx_t = jnp.broadcast_to(p["ctx"][None].astype(DTYPE), (N_CLS, N_CTX, CTX_DIM))
    ctx_i2t_b = jnp.broadcast_to(ctx_i2t[None], (N_CLS, N_CTX, CTX_DIM))
    ctx_t_l0 = jnp.concatenate([ctx_t, ctx_i2t_b], axis=1)          # (n_cls, 2*n_ctx, CTX)
    ctx_v_l0 = jnp.concatenate([p["ctx_v"].astype(DTYPE), ctx_t2i], axis=0)

    prompts = jnp.concatenate(
        [p["token_prefix"], ctx_t_l0, p["token_suffix"]], axis=1)    # (n_cls, SEQ, CTX)

    textual_deep, visual_deep = [], []
    for i in range(PROMPT_DEPTH - 1):
        # TODO(synk): the fused MPG launch projects only the first compound-prompt level
        # (PROMPT_DEPTH == 2 here); deeper levels would need their own projections.
        tp = p["compound_prompts_text"][i].astype(DTYPE)
        vp = p["compound_prompts_image"][i].astype(DTYPE)
        visual_deep.append(jnp.concatenate([vp, deep_out[0]], axis=0))
        textual_deep.append(jnp.concatenate([tp, deep_out[1]], axis=0))
    return prompts, ctx_v_l0, textual_deep, visual_deep


def text_encoder(prompts, tokenized_prompts, deep_text, p):
    n_cls, S, E = prompts.shape
    x = (prompts + p["pos_emb"][None]).astype(DTYPE).reshape(n_cls * S, E)
    x = encoder_forward(x, n_cls, S, deep_text, p["blocks"], ENC_HEADS,
                        splice_start=1, n_splice=2 * N_CTX)
    # EOT token = argmax of token ids (synthetic tokens force 49407 as the max,
    # matching CLIP's convention).
    eot = jnp.argmax(tokenized_prompts, axis=-1)
    rows = jnp.arange(n_cls) * S + eot
    return x[rows]                                   # (n_cls, CTX), pre-ln_final


def image_encoder(image, shared_ctx, deep_vis, p):
    B, C, H, W = image.shape
    gh, gw = H // PATCH, W // PATCH
    patches = image.reshape(B, C, gh, PATCH, gw, PATCH)
    patches = patches.transpose(0, 2, 4, 1, 3, 5).reshape(
        B * gh * gw, C * PATCH * PATCH).astype(DTYPE)            # XLA-side im2col
    S = 1 + N_PATCH + shared_ctx.shape[0]
    x = vision_stem(patches, shared_ctx.astype(DTYPE), B, p)     # (B*S, VIS), flat
    x = encoder_forward(x, B, S, deep_vis, p["blocks"], ENC_HEADS,
                        splice_start=1 + N_PATCH, n_splice=2 * N_CTX)
    return x[jnp.arange(B) * S]                                  # (B, VIS) cls rows, pre-ln_post


def custom_clip_forward(params, image):
    """CustomCLIP.forward (eval path -> logits)."""
    scale = jnp.exp(params["logit_scale"].astype(jnp.float32)).reshape(1)
    prompts, ctx_v_l0, deep_text, deep_vis = prompt_learner(params["prompt_learner"])
    txt_tok = text_encoder(prompts, params["tokenized_prompts"],
                           deep_text, params["text_encoder"])
    img_tok = image_encoder(image, ctx_v_l0, deep_vis, params["image_encoder"])
    return clip_head(img_tok, txt_tok, scale,
                     params["text_encoder"], params["image_encoder"])


# ---------------------------- parameter creation ----------------------------
def _normal(key, shape, std=0.02):
    return (jax.random.normal(key, shape, dtype=jnp.float32) * std).astype(WDTYPE)


def init_linear(key, din, dout, std=0.02):
    kw, kb = jax.random.split(key)
    return _normal(kw, (din, dout), std), _normal(kb, (1, dout), std)


def init_block_stack(key, dim, n_layers):
    """Per-layer weights pre-stacked along a leading layer axis (streamed by
    the fused encoder's layer grid)."""
    layers = []
    ks = jax.random.split(key, n_layers)
    for l in range(n_layers):
        k = jax.random.split(ks[l], 6)
        wq, bq = init_linear(k[0], dim, dim)
        wk, bk = init_linear(k[1], dim, dim)
        wv, bv = init_linear(k[2], dim, dim)
        wo, bo = init_linear(k[3], dim, dim)
        w1, b1 = init_linear(k[4], dim, 4 * dim)
        w2, b2 = init_linear(k[5], 4 * dim, dim)
        layers.append(dict(
            ln1_g=jnp.ones((1, dim), WDTYPE), ln1_b=jnp.zeros((1, dim), WDTYPE),
            ln2_g=jnp.ones((1, dim), WDTYPE), ln2_b=jnp.zeros((1, dim), WDTYPE),
            wqkv=jnp.concatenate([wq, wk, wv], axis=1),
            bqkv=jnp.concatenate([bq, bk, bv], axis=1),
            wo=wo, bo=bo,
            mlp_w1=w1, mlp_b1=b1, mlp_w2=w2, mlp_b2=b2))
    return {name: jnp.stack([lay[name] for lay in layers], axis=0)
            for name in layers[0]}


def init_mha_folded(key, embed_dim, output_dim):
    ks = jax.random.split(key, 5)
    wq, bq = init_linear(ks[0], embed_dim, embed_dim)
    wk, bk = init_linear(ks[1], embed_dim, embed_dim)
    wv, bv = init_linear(ks[2], embed_dim, embed_dim)
    wo, bo = init_linear(ks[3], embed_dim, embed_dim)
    wd, bd = init_linear(ks[4], embed_dim, output_dim)
    # Fold out_proj followed by out_dim into one weight (exact algebra):
    # (x@wo+bo)@wd+bd = x@(wo@wd) + (bo@wd + bd).
    w_od = (wo.astype(jnp.float32) @ wd.astype(jnp.float32)).astype(WDTYPE)
    b_od = (bo.astype(jnp.float32) @ wd.astype(jnp.float32)
            + bd.astype(jnp.float32)).astype(WDTYPE)
    return dict(wqkv=jnp.concatenate([wq, wk, wv], axis=1),
                bqkv=jnp.concatenate([bq, bk, bv], axis=1),
                w_od=w_od, b_od=b_od)


def init_mpg_stack(key):
    """Branch-stacked MutualPromptGeneration params: index 0 = t2i, 1 = i2t."""
    k = jax.random.split(key, 6)
    t2i = init_mha_folded(k[0], CTX_DIM, VIS_DIM)
    i2t = init_mha_folded(k[1], VIS_DIM, CTX_DIM)
    v_w1, v_b1 = init_linear(jax.random.fold_in(k[2], 0), VIS_DIM, 4 * VIS_DIM)
    v_w2, v_b2 = init_linear(jax.random.fold_in(k[2], 1), 4 * VIS_DIM, VIS_DIM)
    t_w1, t_b1 = init_linear(jax.random.fold_in(k[3], 0), CTX_DIM, 4 * CTX_DIM)
    t_w2, t_b2 = init_linear(jax.random.fold_in(k[3], 1), 4 * CTX_DIM, CTX_DIM)
    dw_t2i, db_t2i = init_linear(k[4], CTX_DIM, VIS_DIM)
    dw_i2t, db_i2t = init_linear(k[5], VIS_DIM, CTX_DIM)

    def st(a, b):
        return jnp.stack([a, b], axis=0)

    return dict(
        wqkv=st(t2i["wqkv"], i2t["wqkv"]), bqkv=st(t2i["bqkv"], i2t["bqkv"]),
        w_od=st(t2i["w_od"], i2t["w_od"]), b_od=st(t2i["b_od"], i2t["b_od"]),
        mlp_w1=st(v_w1, t_w1), mlp_b1=st(v_b1, t_b1),
        mlp_w2=st(v_w2, t_w2), mlp_b2=st(v_b2, t_b2),
        deep_w=st(dw_t2i, dw_i2t), deep_b=st(db_t2i, db_i2t))


def init_params(key):
    keys = jax.random.split(key, 24)
    suffix_len = SEQ_LEN - 1 - 2 * N_CTX

    pl_p = {
        "ctx": _normal(keys[0], (N_CTX, CTX_DIM)),
        "ctx_v": _normal(keys[1], (N_CTX, VIS_DIM)),
        "mpg": init_mpg_stack(keys[2]),
        "token_prefix": _normal(keys[3], (N_CLS, 1, CTX_DIM)),
        "token_suffix": _normal(keys[4], (N_CLS, suffix_len, CTX_DIM)),
        "compound_prompts_text": [_normal(keys[5 + i], (N_CTX, CTX_DIM))
                                  for i in range(PROMPT_DEPTH - 1)],
        "compound_prompts_image": [_normal(keys[7 + i], (N_CTX, VIS_DIM))
                                   for i in range(PROMPT_DEPTH - 1)],
    }

    te = {
        "pos_emb": _normal(keys[9], (SEQ_LEN, CTX_DIM), 0.01),
        "blocks": init_block_stack(keys[10], CTX_DIM, TXT_LAYERS),
        "ln_final_g": jnp.ones((1, CTX_DIM), WDTYPE),
        "ln_final_b": jnp.zeros((1, CTX_DIM), WDTYPE),
        "text_projection": _normal(keys[11], (CTX_DIM, EMBED_DIM)),
    }

    pw, pb = init_linear(keys[12], IN_CH * PATCH * PATCH, VIS_DIM)
    ie = {
        "patch_w": pw, "patch_b": pb,
        "cls_emb": _normal(keys[13], (1, VIS_DIM)),
        "pos_emb": _normal(keys[14], (1 + N_PATCH, VIS_DIM), 0.01),
        "ln_pre_g": jnp.ones((1, VIS_DIM), WDTYPE),
        "ln_pre_b": jnp.zeros((1, VIS_DIM), WDTYPE),
        "blocks": init_block_stack(keys[15], VIS_DIM, VIS_LAYERS),
        "ln_post_g": jnp.ones((1, VIS_DIM), WDTYPE),
        "ln_post_b": jnp.zeros((1, VIS_DIM), WDTYPE),
        "proj_w": _normal(keys[16], (VIS_DIM, EMBED_DIM)),
    }

    # synthetic tokenized prompts with a max-valued EOT token per class
    tokens = jax.random.randint(keys[17], (N_CLS, SEQ_LEN), 1, 400)
    eot_pos = jnp.arange(N_CLS) % suffix_len + 1 + 2 * N_CTX
    tokens = tokens.at[jnp.arange(N_CLS), eot_pos].set(49407)

    return {
        "prompt_learner": pl_p,
        "text_encoder": te,
        "image_encoder": ie,
        "tokenized_prompts": tokens.astype(jnp.int32),
        "logit_scale": jnp.asarray(np.log(1.0 / 0.07), jnp.float32),
    }


# ------------------------------------ main -----------------------------------
if __name__ == "__main__":
    key = jax.random.PRNGKey(0)
    kp, ki = jax.random.split(key)
    params = init_params(kp)
    # layout: image is NCHW, matching the PyTorch module's input convention.
    image = jax.random.normal(ki, (2, IN_CH, IMG_SIZE, IMG_SIZE), dtype=jnp.float32)

    forward = jax.jit(custom_clip_forward)
    logits = jax.block_until_ready(forward(params, image))

    assert logits.shape == (2, N_CLS), logits.shape
    assert bool(jnp.all(jnp.isfinite(logits.astype(jnp.float32))))
    print("KERNEL_OK")
</pallas_src>

<mosaic_0001>
module attributes {stable_mosaic.version = 11 : i64} {
  func.func @_vision_stem_kernel(%arg0: memref<8x192xbf16, #tpu.memory_space<vmem>>, %arg1: memref<192x128xbf16, #tpu.memory_space<vmem>>, %arg2: memref<1x128xbf16, #tpu.memory_space<vmem>>, %arg3: memref<1x128xbf16, #tpu.memory_space<vmem>>, %arg4: memref<5x128xbf16, #tpu.memory_space<vmem>>, %arg5: memref<1x128xbf16, #tpu.memory_space<vmem>>, %arg6: memref<1x128xbf16, #tpu.memory_space<vmem>>, %arg7: memref<8x128xbf16, #tpu.memory_space<vmem>>, %arg8: memref<26x128xbf16, #tpu.memory_space<vmem>>) attributes {dimension_semantics = [], scalar_prefetch = 0 : i64, scratch_operands = 0 : i64, tpu.core_type = #tpu.core_type<tc>} {
    %c0 = arith.constant 0 : index
    %c0_0 = arith.constant 0 : index
    %0 = vector.load %arg0[%c0, %c0_0] : memref<8x192xbf16, #tpu.memory_space<vmem>>, vector<8x192xbf16>
    %1 = arith.extf %0 : vector<8x192xbf16> to vector<8x192xf32>
    %c0_1 = arith.constant 0 : index
    %c0_2 = arith.constant 0 : index
    %2 = vector.load %arg1[%c0_1, %c0_2] : memref<192x128xbf16, #tpu.memory_space<vmem>>, vector<192x128xbf16>
    %3 = arith.truncf %1 : vector<8x192xf32> to vector<8x192xbf16>
    %cst = arith.constant dense<0.000000e+00> : vector<8x128xf32>
    %4 = tpu.matmul %3, %2, %cst {dimension_numbers = #tpu.dot_dimension_numbers<[1], [0], [0], [1], [0, 0, 1, 1], [], []>} : vector<8x192xbf16>, vector<192x128xbf16>, vector<8x128xf32> -> vector<8x128xf32>
    %c0_3 = arith.constant 0 : index
    %c0_4 = arith.constant 0 : index
    %5 = vector.load %arg2[%c0_3, %c0_4] : memref<1x128xbf16, #tpu.memory_space<vmem>>, vector<1x128xbf16>
    %6 = arith.extf %5 : vector<1x128xbf16> to vector<1x128xf32>
    %7 = vector.broadcast %6 : vector<1x128xf32> to vector<8x128xf32>
    %8 = arith.addf %4, %7 : vector<8x128xf32>
    %c0_5 = arith.constant 0 : index
    %c0_6 = arith.constant 0 : index
    %9 = vector.load %arg4[%c0_5, %c0_6] : memref<5x128xbf16, #tpu.memory_space<vmem>>, vector<5x128xbf16>
    %10 = arith.extf %9 : vector<5x128xbf16> to vector<5x128xf32>
    %c0_7 = arith.constant 0 : index
    %c0_8 = arith.constant 0 : index
    %11 = vector.load %arg5[%c0_7, %c0_8] : memref<1x128xbf16, #tpu.memory_space<vmem>>, vector<1x128xbf16>
    %c0_9 = arith.constant 0 : index
    %c0_10 = arith.constant 0 : index
    %12 = vector.load %arg6[%c0_9, %c0_10] : memref<1x128xbf16, #tpu.memory_space<vmem>>, vector<1x128xbf16>
    %c0_11 = arith.constant 0 : index
    %c0_12 = arith.constant 0 : index
    %13 = vector.load %arg3[%c0_11, %c0_12] : memref<1x128xbf16, #tpu.memory_space<vmem>>, vector<1x128xbf16>
    %14 = arith.extf %13 : vector<1x128xbf16> to vector<1x128xf32>
    %15 = vector.extract_strided_slice %10 {offsets = [0, 0], sizes = [1, 128], strides = [1, 1]} : vector<5x128xf32> to vector<1x128xf32>
    %16 = arith.addf %14, %15 : vector<1x128xf32>
    %17 = arith.extf %11 : vector<1x128xbf16> to vector<1x128xf32>
    %18 = arith.extf %12 : vector<1x128xbf16> to vector<1x128xf32>
    %cst_13 = arith.constant dense<0.000000e+00> : vector<1xf32>
    %19 = vector.multi_reduction <add>, %16, %cst_13 [1] : vector<1x128xf32> to vector<1xf32>
    %20 = vector.shape_cast %19 : vector<1xf32> to vector<1x1xf32>
    %cst_14 = arith.constant 1.280000e+02 : f32
    %21 = vector.broadcast %cst_14 : f32 to vector<1x1xf32>
    %22 = arith.divf %20, %21 : vector<1x1xf32>
    %23 = vector.broadcast %22 : vector<1x1xf32> to vector<1x128xf32>
    %24 = arith.subf %16, %23 : vector<1x128xf32>
    %25 = arith.mulf %24, %24 : vector<1x128xf32>
    %cst_15 = arith.constant dense<0.000000e+00> : vector<1xf32>
    %26 = vector.multi_reduction <add>, %25, %cst_15 [1] : vector<1x128xf32> to vector<1xf32>
    %27 = vector.shape_cast %26 : vector<1xf32> to vector<1x1xf32>
    %cst_16 = arith.constant 1.280000e+02 : f32
    %28 = vector.broadcast %cst_16 : f32 to vector<1x1xf32>
    %29 = arith.divf %27, %28 : vector<1x1xf32>
    %cst_17 = arith.constant 9.99999974E-6 : f32
    %30 = vector.broadcast %cst_17 : f32 to vector<1x1xf32>
    %31 = arith.addf %29, %30 : vector<1x1xf32>
    %32 = math.rsqrt %31 : vector<1x1xf32>
    %33 = vector.broadcast %32 : vector<1x1xf32> to vector<1x128xf32>
    %34 = arith.mulf %24, %33 : vector<1x128xf32>
    %35 = arith.mulf %34, %17 : vector<1x128xf32>
    %36 = arith.addf %35, %18 : vector<1x128xf32>
    %c0_18 = arith.constant 0 : index
    %c0_19 = arith.constant 0 : index
    %37 = vector.load %arg7[%c0_18, %c0_19] : memref<8x128xbf16, #tpu.memory_space<vmem>>, vector<8x128xbf16>
    %38 = arith.extf %37 : vector<8x128xbf16> to vector<8x128xf32>
    %39 = vector.extract_strided_slice %8 {offsets = [0, 0], sizes = [4, 128], strides = [1, 1]} : vector<8x128xf32> to vector<4x128xf32>
    %40 = vector.extract_strided_slice %10 {offsets = [1, 0], sizes = [4, 128], strides = [1, 1]} : vector<5x128xf32> to vector<4x128xf32>
    %41 = arith.addf %39, %40 : vector<4x128xf32>
    %42 = arith.extf %11 : vector<1x128xbf16> to vector<1x128xf32>
    %43 = arith.extf %12 : vector<1x128xbf16> to vector<1x128xf32>
    %cst_20 = arith.constant dense<0.000000e+00> : vector<4xf32>
    %44 = vector.multi_reduction <add>, %41, %cst_20 [1] : vector<4x128xf32> to vector<4xf32>
    %45 = vector.shape_cast %44 : vector<4xf32> to vector<4x1xf32>
    %cst_21 = arith.constant 1.280000e+02 : f32
    %46 = vector.broadcast %cst_21 : f32 to vector<4x1xf32>
    %47 = arith.divf %45, %46 : vector<4x1xf32>
    %48 = vector.broadcast %47 : vector<4x1xf32> to vector<4x128xf32>
    %49 = arith.subf %41, %48 : vector<4x128xf32>
    %50 = arith.mulf %49, %49 : vector<4x128xf32>
    %cst_22 = arith.constant dense<0.000000e+00> : vector<4xf32>
    %51 = vector.multi_reduction <add>, %50, %cst_22 [1] : vector<4x128xf32> to vector<4xf32>
    %52 = vector.shape_cast %51 : vector<4xf32> to vector<4x1xf32>
    %cst_23 = arith.constant 1.280000e+02 : f32
    %53 = vector.broadcast %cst_23 : f32 to vector<4x1xf32>
    %54 = arith.divf %52, %53 : vector<4x1xf32>
    %cst_24 = arith.constant 9.99999974E-6 : f32
    %55 = vector.broadcast %cst_24 : f32 to vector<4x1xf32>
    %56 = arith.addf %54, %55 : vector<4x1xf32>
    %57 = math.rsqrt %56 : vector<4x1xf32>
    %58 = vector.broadcast %57 : vector<4x1xf32> to vector<4x128xf32>
    %59 = arith.mulf %49, %58 : vector<4x128xf32>
    %60 = vector.broadcast %42 : vector<1x128xf32> to vector<4x128xf32>
    %61 = arith.mulf %59, %60 : vector<4x128xf32>
    %62 = vector.broadcast %43 : vector<1x128xf32> to vector<4x128xf32>
    %63 = arith.addf %61, %62 : vector<4x128xf32>
    %64 = vector.extract_strided_slice %8 {offsets = [4, 0], sizes = [4, 128], strides = [1, 1]} : vector<8x128xf32> to vector<4x128xf32>
    %65 = vector.extract_strided_slice %10 {offsets = [1, 0], sizes = [4, 128], strides = [1, 1]} : vector<5x128xf32> to vector<4x128xf32>
    %66 = arith.addf %64, %65 : vector<4x128xf32>
    %67 = arith.extf %11 : vector<1x128xbf16> to vector<1x128xf32>
    %68 = arith.extf %12 : vector<1x128xbf16> to vector<1x128xf32>
    %cst_25 = arith.constant dense<0.000000e+00> : vector<4xf32>
    %69 = vector.multi_reduction <add>, %66, %cst_25 [1] : vector<4x128xf32> to vector<4xf32>
    %70 = vector.shape_cast %69 : vector<4xf32> to vector<4x1xf32>
    %cst_26 = arith.constant 1.280000e+02 : f32
    %71 = vector.broadcast %cst_26 : f32 to vector<4x1xf32>
    %72 = arith.divf %70, %71 : vector<4x1xf32>
    %73 = vector.broadcast %72 : vector<4x1xf32> to vector<4x128xf32>
    %74 = arith.subf %66, %73 : vector<4x128xf32>
    %75 = arith.mulf %74, %74 : vector<4x128xf32>
    %cst_27 = arith.constant dense<0.000000e+00> : vector<4xf32>
    %76 = vector.multi_reduction <add>, %75, %cst_27 [1] : vector<4x128xf32> to vector<4xf32>
    %77 = vector.shape_cast %76 : vector<4xf32> to vector<4x1xf32>
    %cst_28 = arith.constant 1.280000e+02 : f32
    %78 = vector.broadcast %cst_28 : f32 to vector<4x1xf32>
    %79 = arith.divf %77, %78 : vector<4x1xf32>
    %cst_29 = arith.constant 9.99999974E-6 : f32
    %80 = vector.broadcast %cst_29 : f32 to vector<4x1xf32>
    %81 = arith.addf %79, %80 : vector<4x1xf32>
    %82 = math.rsqrt %81 : vector<4x1xf32>
    %83 = vector.broadcast %82 : vector<4x1xf32> to vector<4x128xf32>
    %84 = arith.mulf %74, %83 : vector<4x128xf32>
    %85 = vector.broadcast %67 : vector<1x128xf32> to vector<4x128xf32>
    %86 = arith.mulf %84, %85 : vector<4x128xf32>
    %87 = vector.broadcast %68 : vector<1x128xf32> to vector<4x128xf32>
    %88 = arith.addf %86, %87 : vector<4x128xf32>
    %89 = tpu.concatenate %36, %63, %38, %36, %88, %38 in 0 : vector<1x128xf32>, vector<4x128xf32>, vector<8x128xf32>, vector<1x128xf32>, vector<4x128xf32>, vector<8x128xf32> -> vector<26x128xf32>
    %90 = arith.truncf %89 : vector<26x128xf32> to vector<26x128xbf16>
    %c0_30 = arith.constant 0 : index
    %c0_31 = arith.constant 0 : index
    %91 = vector.load %arg8[%c0_30, %c0_31] : memref<26x128xbf16, #tpu.memory_space<vmem>>, vector<26x128xbf16>
    tpu.vector_store %arg8[%c0_30, %c0_31], %90 {strides = array<i32>} : memref<26x128xbf16, #tpu.memory_space<vmem>>, vector<26x128xbf16>,
    return
  }
}

module attributes {stable_mosaic.version = 11 : i64} {
  func.func @_encoder_kernel(%arg0: i32, %arg1: memref<26x128xbf16, #tpu.memory_space<vmem>>, %arg2: memref<1x8x128xbf16, #tpu.memory_space<vmem>>, %arg3: memref<1x1x128xbf16, #tpu.memory_space<vmem>>, %arg4: memref<1x1x128xbf16, #tpu.memory_space<vmem>>, %arg5: memref<1x128x384xbf16, #tpu.memory_space<vmem>>, %arg6: memref<1x1x384xbf16, #tpu.memory_space<vmem>>, %arg7: memref<1x128x128xbf16, #tpu.memory_space<vmem>>, %arg8: memref<1x1x128xbf16, #tpu.memory_space<vmem>>, %arg9: memref<1x1x128xbf16, #tpu.memory_space<vmem>>, %arg10: memref<1x1x128xbf16, #tpu.memory_space<vmem>>, %arg11: memref<1x128x512xbf16, #tpu.memory_space<vmem>>, %arg12: memref<1x1x512xbf16, #tpu.memory_space<vmem>>, %arg13: memref<1x512x128xbf16, #tpu.memory_space<vmem>>, %arg14: memref<1x1x128xbf16, #tpu.memory_space<vmem>>, %arg15: memref<26x128xbf16, #tpu.memory_space<vmem>>) attributes {dimension_semantics = [#tpu.dimension_semantics<arbitrary>], iteration_bounds = array<i64: 2>, scalar_prefetch = 0 : i64, scratch_operands = 0 : i64, tpu.core_type = #tpu.core_type<tc>, window_params = [{pipeline_mode = #tpu.pipeline_mode<synchronous>, transform_indices = @transform_0, window_bounds = array<i64: 26, 128>}, {transform_indices = @transform_1, window_bounds = array<i64: 1, 8, 128>}, {transform_indices = @transform_2, window_bounds = array<i64: 1, 1, 128>}, {transform_indices = @transform_3, window_bounds = array<i64: 1, 1, 128>}, {transform_indices = @transform_4, window_bounds = array<i64: 1, 128, 384>}, {transform_indices = @transform_5, window_bounds = array<i64: 1, 1, 384>}, {transform_indices = @transform_6, window_bounds = array<i64: 1, 128, 128>}, {transform_indices = @transform_7, window_bounds = array<i64: 1, 1, 128>}, {transform_indices = @transform_8, window_bounds = array<i64: 1, 1, 128>}, {transform_indices = @transform_9, window_bounds = array<i64: 1, 1, 128>}, {transform_indices = @transform_10, window_bounds = array<i64: 1, 128, 512>}, {transform_indices = @transform_11, window_bounds = array<i64: 1, 1, 512>}, {transform_indices = @transform_12, window_bounds = array<i64: 1, 512, 128>}, {transform_indices = @transform_13, window_bounds = array<i64: 1, 1, 128>}, {pipeline_mode = #tpu.pipeline_mode<synchronous>, transform_indices = @transform_14, window_bounds = array<i64: 26, 128>}]} {
    %c0_i32 = arith.constant 0 : i32
    %0 = arith.cmpi eq, %arg0, %c0_i32 : i32
    %1 = arith.extui %0 : i1 to i32
    %c0_i32_0 = arith.constant 0 : i32
    %2 = arith.cmpi ne, %1, %c0_i32_0 : i32
    scf.if %2 {
      %c0_98 = arith.constant 0 : index
      %c0_99 = arith.constant 0 : index
      %281 = vector.load %arg1[%c0_98, %c0_99] : memref<26x128xbf16, #tpu.memory_space<vmem>>, vector<26x128xbf16>
      %c0_100 = arith.constant 0 : index
      %c0_101 = arith.constant 0 : index
      %282 = vector.load %arg15[%c0_100, %c0_101] : memref<26x128xbf16, #tpu.memory_space<vmem>>, vector<26x128xbf16>
      tpu.vector_store %arg15[%c0_100, %c0_101], %281 {strides = array<i32>} : memref<26x128xbf16, #tpu.memory_space<vmem>>, vector<26x128xbf16>,
    } else {
    }
    %c0_i32_1 = arith.constant 0 : i32
    %3 = arith.cmpi sgt, %arg0, %c0_i32_1 : i32
    %c1_i32 = arith.constant 1 : i32
    %4 = arith.cmpi sle, %arg0, %c1_i32 : i32
    %5 = arith.andi %3, %4 : i1
    %6 = arith.extui %5 : i1 to i32
    %c0_i32_2 = arith.constant 0 : i32
    %7 = arith.cmpi ne, %6, %c0_i32_2 : i32
    scf.if %7 {
      %c0_98 = arith.constant 0 : index
      %c0_99 = arith.constant 0 : index
      %c0_100 = arith.constant 0 : index
      %281 = vector.load %arg2[%c0_98, %c0_99, %c0_100] : memref<1x8x128xbf16, #tpu.memory_space<vmem>>, vector<1x8x128xbf16>
      %282 = vector.shape_cast %281 : vector<1x8x128xbf16> to vector<8x128xbf16>
      %c5 = arith.constant 5 : index
      %c0_101 = arith.constant 0 : index
      %283 = vector.load %arg15[%c5, %c0_101] : memref<26x128xbf16, #tpu.memory_space<vmem>>, vector<8x128xbf16>
      tpu.vector_store %arg15[%c5, %c0_101], %282 {strides = array<i32>} : memref<26x128xbf16, #tpu.memory_space<vmem>>, vector<8x128xbf16>,
      %c18 = arith.constant 18 : index
      %c0_102 = arith.constant 0 : index
      %284 = vector.load %arg15[%c18, %c0_102] : memref<26x128xbf16, #tpu.memory_space<vmem>>, vector<8x128xbf16>
      tpu.vector_store %arg15[%c18, %c0_102], %282 {strides = array<i32>} : memref<26x128xbf16, #tpu.memory_space<vmem>>, vector<8x128xbf16>,
    } else {
    }
    %c0 = arith.constant 0 : index
    %c0_3 = arith.constant 0 : index
    %8 = vector.load %arg15[%c0, %c0_3] : memref<26x128xbf16, #tpu.memory_space<vmem>>, vector<26x128xbf16>
    %9 = arith.extf %8 : vector<26x128xbf16> to vector<26x128xf32>
    %c0_4 = arith.constant 0 : index
    %c0_5 = arith.constant 0 : index
    %c0_6 = arith.constant 0 : index
    %10 = vector.load %arg3[%c0_4, %c0_5, %c0_6] : memref<1x1x128xbf16, #tpu.memory_space<vmem>>, vector<1x1x128xbf16>
    %11 = vector.shape_cast %10 : vector<1x1x128xbf16> to vector<1x128xbf16>
    %c0_7 = arith.constant 0 : index
    %c0_8 = arith.constant 0 : index
    %c0_9 = arith.constant 0 : index
    %12 = vector.load %arg4[%c0_7, %c0_8, %c0_9] : memref<1x1x128xbf16, #tpu.memory_space<vmem>>, vector<1x1x128xbf16>
    %13 = vector.shape_cast %12 : vector<1x1x128xbf16> to vector<1x128xbf16>
    %14 = arith.extf %11 : vector<1x128xbf16> to vector<1x128xf32>
    %15 = arith.extf %13 : vector<1x128xbf16> to vector<1x128xf32>
    %cst = arith.constant dense<0.000000e+00> : vector<26xf32>
    %16 = vector.multi_reduction <add>, %9, %cst [1] : vector<26x128xf32> to vector<26xf32>
    %17 = vector.shape_cast %16 : vector<26xf32> to vector<26x1xf32>
    %cst_10 = arith.constant 1.280000e+02 : f32
    %18 = vector.broadcast %cst_10 : f32 to vector<26x1xf32>
    %19 = arith.divf %17, %18 : vector<26x1xf32>
    %20 = vector.broadcast %19 : vector<26x1xf32> to vector<26x128xf32>
    %21 = arith.subf %9, %20 : vector<26x128xf32>
    %22 = arith.mulf %21, %21 : vector<26x128xf32>
    %cst_11 = arith.constant dense<0.000000e+00> : vector<26xf32>
    %23 = vector.multi_reduction <add>, %22, %cst_11 [1] : vector<26x128xf32> to vector<26xf32>
    %24 = vector.shape_cast %23 : vector<26xf32> to vector<26x1xf32>
    %cst_12 = arith.constant 1.280000e+02 : f32
    %25 = vector.broadcast %cst_12 : f32 to vector<26x1xf32>
    %26 = arith.divf %24, %25 : vector<26x1xf32>
    %cst_13 = arith.constant 9.99999974E-6 : f32
    %27 = vector.broadcast %cst_13 : f32 to vector<26x1xf32>
    %28 = arith.addf %26, %27 : vector<26x1xf32>
    %29 = math.rsqrt %28 : vector<26x1xf32>
    %30 = vector.broadcast %29 : vector<26x1xf32> to vector<26x128xf32>
    %31 = arith.mulf %21, %30 : vector<26x128xf32>
    %32 = vector.broadcast %14 : vector<1x128xf32> to vector<26x128xf32>
    %33 = arith.mulf %31, %32 : vector<26x128xf32>
    %34 = vector.broadcast %15 : vector<1x128xf32> to vector<26x128xf32>
    %35 = arith.addf %33, %34 : vector<26x128xf32>
    %c0_14 = arith.constant 0 : index
    %c0_15 = arith.constant 0 : index
    %c0_16 = arith.constant 0 : index
    %36 = vector.load %arg5[%c0_14, %c0_15, %c0_16] : memref<1x128x384xbf16, #tpu.memory_space<vmem>>, vector<1x128x384xbf16>
    %37 = vector.shape_cast %36 : vector<1x128x384xbf16> to vector<128x384xbf16>
    %38 = arith.truncf %35 : vector<26x128xf32> to vector<26x128xbf16>
    %cst_17 = arith.constant dense<0.000000e+00> : vector<26x384xf32>
    %39 = tpu.matmul %38, %37, %cst_17 {dimension_numbers = #tpu.dot_dimension_numbers<[1], [0], [0], [1], [0, 0, 1, 1], [], []>} : vector<26x128xbf16>, vector<128x384xbf16>, vector<26x384xf32> -> vector<26x384xf32>
    %c0_18 = arith.constant 0 : index
    %c0_19 = arith.constant 0 : index
    %c0_20 = arith.constant 0 : index
    %40 = vector.load %arg6[%c0_18, %c0_19, %c0_20] : memref<1x1x384xbf16, #tpu.memory_space<vmem>>, vector<1x1x384xbf16>
    %41 = vector.shape_cast %40 : vector<1x1x384xbf16> to vector<1x384xbf16>
    %42 = arith.extf %41 : vector<1x384xbf16> to vector<1x384xf32>
    %43 = vector.broadcast %42 : vector<1x384xf32> to vector<26x384xf32>
    %44 = arith.addf %39, %43 : vector<26x384xf32>
    %45 = vector.extract_strided_slice %44 {offsets = [0, 0], sizes = [13, 384], strides = [1, 1]} : vector<26x384xf32> to vector<13x384xf32>
    %46 = vector.extract_strided_slice %45 {offsets = [0, 0], sizes = [13, 128], strides = [1, 1]} : vector<13x384xf32> to vector<13x128xf32>
    %47 = vector.extract_strided_slice %45 {offsets = [0, 128], sizes = [13, 128], strides = [1, 1]} : vector<13x384xf32> to vector<13x128xf32>
    %48 = vector.extract_strided_slice %45 {offsets = [0, 256], sizes = [13, 128], strides = [1, 1]} : vector<13x384xf32> to vector<13x128xf32>
    %49 = vector.extract_strided_slice %46 {offsets = [0, 0], sizes = [13, 32], strides = [1, 1]} : vector<13x128xf32> to vector<13x32xf32>
    %50 = arith.truncf %49 : vector<13x32xf32> to vector<13x32xbf16>
    %51 = vector.extract_strided_slice %47 {offsets = [0, 0], sizes = [13, 32], strides = [1, 1]} : vector<13x128xf32> to vector<13x32xf32>
    %52 = arith.truncf %51 : vector<13x32xf32> to vector<13x32xbf16>
    %53 = vector.extract_strided_slice %48 {offsets = [0, 0], sizes = [13, 32], strides = [1, 1]} : vector<13x128xf32> to vector<13x32xf32>
    %54 = arith.truncf %53 : vector<13x32xf32> to vector<13x32xbf16>
    %cst_21 = arith.constant dense<0.000000e+00> : vector<13x13xf32>
    %55 = tpu.matmul %50, %52, %cst_21 {dimension_numbers = #tpu.dot_dimension_numbers<[1], [1], [0], [0], [0, 0, 1, 0], [], []>} : vector<13x32xbf16>, vector<13x32xbf16>, vector<13x13xf32> -> vector<13x13xf32>
    %cst_22 = arith.constant 0.176776692 : f32
    %56 = vector.broadcast %cst_22 : f32 to vector<13x13xf32>
    %57 = arith.mulf %55, %56 : vector<13x13xf32>
    %cst_23 = arith.constant dense<0xFF800000> : vector<13xf32>
    %58 = vector.multi_reduction <maximumf>, %57, %cst_23 [1] : vector<13x13xf32> to vector<13xf32>
    %59 = vector.shape_cast %58 : vector<13xf32> to vector<13x1xf32>
    %60 = vector.broadcast %59 : vector<13x1xf32> to vector<13x13xf32>
    %61 = arith.subf %57, %60 : vector<13x13xf32>
    %62 = math.exp %61 : vector<13x13xf32>
    %cst_24 = arith.constant dense<0.000000e+00> : vector<13xf32>
    %63 = vector.multi_reduction <add>, %62, %cst_24 [1] : vector<13x13xf32> to vector<13xf32>
    %64 = vector.shape_cast %63 : vector<13xf32> to vector<13x1xf32>
    %65 = vector.broadcast %64 : vector<13x1xf32> to vector<13x13xf32>
    %66 = arith.divf %62, %65 : vector<13x13xf32>
    %67 = arith.truncf %66 : vector<13x13xf32> to vector<13x13xbf16>
    %cst_25 = arith.constant dense<0.000000e+00> : vector<13x32xf32>
    %68 = tpu.matmul %67, %54, %cst_25 {dimension_numbers = #tpu.dot_dimension_numbers<[1], [0], [0], [1], [0, 0, 1, 1], [], []>} : vector<13x13xbf16>, vector<13x32xbf16>, vector<13x32xf32> -> vector<13x32xf32>
    %69 = vector.extract_strided_slice %46 {offsets = [0, 32], sizes = [13, 32], strides = [1, 1]} : vector<13x128xf32> to vector<13x32xf32>
    %70 = arith.truncf %69 : vector<13x32xf32> to vector<13x32xbf16>
    %71 = vector.extract_strided_slice %47 {offsets = [0, 32], sizes = [13, 32], strides = [1, 1]} : vector<13x128xf32> to vector<13x32xf32>
    %72 = arith.truncf %71 : vector<13x32xf32> to vector<13x32xbf16>
    %73 = vector.extract_strided_slice %48 {offsets = [0, 32], sizes = [13, 32], strides = [1, 1]} : vector<13x128xf32> to vector<13x32xf32>
    %74 = arith.truncf %73 : vector<13x32xf32> to vector<13x32xbf16>
    %cst_26 = arith.constant dense<0.000000e+00> : vector<13x13xf32>
    %75 = tpu.matmul %70, %72, %cst_26 {dimension_numbers = #tpu.dot_dimension_numbers<[1], [1], [0], [0], [0, 0, 1, 0], [], []>} : vector<13x32xbf16>, vector<13x32xbf16>, vector<13x13xf32> -> vector<13x13xf32>
    %cst_27 = arith.constant 0.176776692 : f32
    %76 = vector.broadcast %cst_27 : f32 to vector<13x13xf32>
    %77 = arith.mulf %75, %76 : vector<13x13xf32>
    %cst_28 = arith.constant dense<0xFF800000> : vector<13xf32>
    %78 = vector.multi_reduction <maximumf>, %77, %cst_28 [1] : vector<13x13xf32> to vector<13xf32>
    %79 = vector.shape_cast %78 : vector<13xf32> to vector<13x1xf32>
    %80 = vector.broadcast %79 : vector<13x1xf32> to vector<13x13xf32>
    %81 = arith.subf %77, %80 : vector<13x13xf32>
    %82 = math.exp %81 : vector<13x13xf32>
    %cst_29 = arith.constant dense<0.000000e+00> : vector<13xf32>
    %83 = vector.multi_reduction <add>, %82, %cst_29 [1] : vector<13x13xf32> to vector<13xf32>
    %84 = vector.shape_cast %83 : vector<13xf32> to vector<13x1xf32>
    %85 = vector.broadcast %84 : vector<13x1xf32> to vector<13x13xf32>
    %86 = arith.divf %82, %85 : vector<13x13xf32>
    %87 = arith.truncf %86 : vector<13x13xf32> to vector<13x13xbf16>
    %cst_30 = arith.constant dense<0.000000e+00> : vector<13x32xf32>
    %88 = tpu.matmul %87, %74, %cst_30 {dimension_numbers = #tpu.dot_dimension_numbers<[1], [0], [0], [1], [0, 0, 1, 1], [], []>} : vector<13x13xbf16>, vector<13x32xbf16>, vector<13x32xf32> -> vector<13x32xf32>
    %89 = vector.extract_strided_slice %46 {offsets = [0, 64], sizes = [13, 32], strides = [1, 1]} : vector<13x128xf32> to vector<13x32xf32>
    %90 = arith.truncf %89 : vector<13x32xf32> to vector<13x32xbf16>
    %91 = vector.extract_strided_slice %47 {offsets = [0, 64], sizes = [13, 32], strides = [1, 1]} : vector<13x128xf32> to vector<13x32xf32>
    %92 = arith.truncf %91 : vector<13x32xf32> to vector<13x32xbf16>
    %93 = vector.extract_strided_slice %48 {offsets = [0, 64], sizes = [13, 32], strides = [1, 1]} : vector<13x128xf32> to vector<13x32xf32>
    %94 = arith.truncf %93 : vector<13x32xf32> to vector<13x32xbf16>
    %cst_31 = arith.constant dense<0.000000e+00> : vector<13x13xf32>
    %95 = tpu.matmul %90, %92, %cst_31 {dimension_numbers = #tpu.dot_dimension_numbers<[1], [1], [0], [0], [0, 0, 1, 0], [], []>} : vector<13x32xbf16>, vector<13x32xbf16>, vector<13x13xf32> -> vector<13x13xf32>
    %cst_32 = arith.constant 0.176776692 : f32
    %96 = vector.broadcast %cst_32 : f32 to vector<13x13xf32>
    %97 = arith.mulf %95, %96 : vector<13x13xf32>
    %cst_33 = arith.constant dense<0xFF800000> : vector<13xf32>
    %98 = vector.multi_reduction <maximumf>, %97, %cst_33 [1] : vector<13x13xf32> to vector<13xf32>
    %99 = vector.shape_cast %98 : vector<13xf32> to vector<13x1xf32>
    %100 = vector.broadcast %99 : vector<13x1xf32> to vector<13x13xf32>
    %101 = arith.subf %97, %100 : vector<13x13xf32>
    %102 = math.exp %101 : vector<13x13xf32>
    %cst_34 = arith.constant dense<0.000000e+00> : vector<13xf32>
    %103 = vector.multi_reduction <add>, %102, %cst_34 [1] : vector<13x13xf32> to vector<13xf32>
    %104 = vector.shape_cast %103 : vector<13xf32> to vector<13x1xf32>
    %105 = vector.broadcast %104 : vector<13x1xf32> to vector<13x13xf32>
    %106 = arith.divf %102, %105 : vector<13x13xf32>
    %107 = arith.truncf %106 : vector<13x13xf32> to vector<13x13xbf16>
    %cst_35 = arith.constant dense<0.000000e+00> : vector<13x32xf32>
    %108 = tpu.matmul %107, %94, %cst_35 {dimension_numbers = #tpu.dot_dimension_numbers<[1], [0], [0], [1], [0, 0, 1, 1], [], []>} : vector<13x13xbf16>, vector<13x32xbf16>, vector<13x32xf32> -> vector<13x32xf32>
    %109 = vector.extract_strided_slice %46 {offsets = [0, 96], sizes = [13, 32], strides = [1, 1]} : vector<13x128xf32> to vector<13x32xf32>
    %110 = arith.truncf %109 : vector<13x32xf32> to vector<13x32xbf16>
    %111 = vector.extract_strided_slice %47 {offsets = [0, 96], sizes = [13, 32], strides = [1, 1]} : vector<13x128xf32> to vector<13x32xf32>
    %112 = arith.truncf %111 : vector<13x32xf32> to vector<13x32xbf16>
    %113 = vector.extract_strided_slice %48 {offsets = [0, 96], sizes = [13, 32], strides = [1, 1]} : vector<13x128xf32> to vector<13x32xf32>
    %114 = arith.truncf %113 : vector<13x32xf32> to vector<13x32xbf16>
    %cst_36 = arith.constant dense<0.000000e+00> : vector<13x13xf32>
    %115 = tpu.matmul %110, %112, %cst_36 {dimension_numbers = #tpu.dot_dimension_numbers<[1], [1], [0], [0], [0, 0, 1, 0], [], []>} : vector<13x32xbf16>, vector<13x32xbf16>, vector<13x13xf32> -> vector<13x13xf32>
    %cst_37 = arith.constant 0.176776692 : f32
    %116 = vector.broadcast %cst_37 : f32 to vector<13x13xf32>
    %117 = arith.mulf %115, %116 : vector<13x13xf32>
    %cst_38 = arith.constant dense<0xFF800000> : vector<13xf32>
    %118 = vector.multi_reduction <maximumf>, %117, %cst_38 [1] : vector<13x13xf32> to vector<13xf32>
    %119 = vector.shape_cast %118 : vector<13xf32> to vector<13x1xf32>
    %120 = vector.broadcast %119 : vector<13x1xf32> to vector<13x13xf32>
    %121 = arith.subf %117, %120 : vector<13x13xf32>
    %122 = math.exp %121 : vector<13x13xf32>
    %cst_39 = arith.constant dense<0.000000e+00> : vector<13xf32>
    %123 = vector.multi_reduction <add>, %122, %cst_39 [1] : vector<13x13xf32> to vector<13xf32>
    %124 = vector.shape_cast %123 : vector<13xf32> to vector<13x1xf32>
    %125 = vector.broadcast %124 : vector<13x1xf32> to vector<13x13xf32>
    %126 = arith.divf %122, %125 : vector<13x13xf32>
    %127 = arith.truncf %126 : vector<13x13xf32> to vector<13x13xbf16>
    %cst_40 = arith.constant dense<0.000000e+00> : vector<13x32xf32>
    %128 = tpu.matmul %127, %114, %cst_40 {dimension_numbers = #tpu.dot_dimension_numbers<[1], [0], [0], [1], [0, 0, 1, 1], [], []>} : vector<13x13xbf16>, vector<13x32xbf16>, vector<13x32xf32> -> vector<13x32xf32>
    %129 = tpu.concatenate %68, %88, %108, %128 in 1 : vector<13x32xf32>, vector<13x32xf32>, vector<13x32xf32>, vector<13x32xf32> -> vector<13x128xf32>
    %130 = vector.extract_strided_slice %44 {offsets = [13, 0], sizes = [13, 384], strides = [1, 1]} : vector<26x384xf32> to vector<13x384xf32>
    %131 = vector.extract_strided_slice %130 {offsets = [0, 0], sizes = [13, 128], strides = [1, 1]} : vector<13x384xf32> to vector<13x128xf32>
    %132 = vector.extract_strided_slice %130 {offsets = [0, 128], sizes = [13, 128], strides = [1, 1]} : vector<13x384xf32> to vector<13x128xf32>
    %133 = vector.extract_strided_slice %130 {offsets = [0, 256], sizes = [13, 128], strides = [1, 1]} : vector<13x384xf32> to vector<13x128xf32>
    %134 = vector.extract_strided_slice %131 {offsets = [0, 0], sizes = [13, 32], strides = [1, 1]} : vector<13x128xf32> to vector<13x32xf32>
    %135 = arith.truncf %134 : vector<13x32xf32> to vector<13x32xbf16>
    %136 = vector.extract_strided_slice %132 {offsets = [0, 0], sizes = [13, 32], strides = [1, 1]} : vector<13x128xf32> to vector<13x32xf32>
    %137 = arith.truncf %136 : vector<13x32xf32> to vector<13x32xbf16>
    %138 = vector.extract_strided_slice %133 {offsets = [0, 0], sizes = [13, 32], strides = [1, 1]} : vector<13x128xf32> to vector<13x32xf32>
    %139 = arith.truncf %138 : vector<13x32xf32> to vector<13x32xbf16>
    %cst_41 = arith.constant dense<0.000000e+00> : vector<13x13xf32>
    %140 = tpu.matmul %135, %137, %cst_41 {dimension_numbers = #tpu.dot_dimension_numbers<[1], [1], [0], [0], [0, 0, 1, 0], [], []>} : vector<13x32xbf16>, vector<13x32xbf16>, vector<13x13xf32> -> vector<13x13xf32>
    %cst_42 = arith.constant 0.176776692 : f32
    %141 = vector.broadcast %cst_42 : f32 to vector<13x13xf32>
    %142 = arith.mulf %140, %141 : vector<13x13xf32>
    %cst_43 = arith.constant dense<0xFF800000> : vector<13xf32>
    %143 = vector.multi_reduction <maximumf>, %142, %cst_43 [1] : vector<13x13xf32> to vector<13xf32>
    %144 = vector.shape_cast %143 : vector<13xf32> to vector<13x1xf32>
    %145 = vector.broadcast %144 : vector<13x1xf32> to vector<13x13xf32>
    %146 = arith.subf %142, %145 : vector<13x13xf32>
    %147 = math.exp %146 : vector<13x13xf32>
    %cst_44 = arith.constant dense<0.000000e+00> : vector<13xf32>
    %148 = vector.multi_reduction <add>, %147, %cst_44 [1] : vector<13x13xf32> to vector<13xf32>
    %149 = vector.shape_cast %148 : vector<13xf32> to vector<13x1xf32>
    %150 = vector.broadcast %149 : vector<13x1xf32> to vector<13x13xf32>
    %151 = arith.divf %147, %150 : vector<13x13xf32>
    %152 = arith.truncf %151 : vector<13x13xf32> to vector<13x13xbf16>
    %cst_45 = arith.constant dense<0.000000e+00> : vector<13x32xf32>
    %153 = tpu.matmul %152, %139, %cst_45 {dimension_numbers = #tpu.dot_dimension_numbers<[1], [0], [0], [1], [0, 0, 1, 1], [], []>} : vector<13x13xbf16>, vector<13x32xbf16>, vector<13x32xf32> -> vector<13x32xf32>
    %154 = vector.extract_strided_slice %131 {offsets = [0, 32], sizes = [13, 32], strides = [1, 1]} : vector<13x128xf32> to vector<13x32xf32>
    %155 = arith.truncf %154 : vector<13x32xf32> to vector<13x32xbf16>
    %156 = vector.extract_strided_slice %132 {offsets = [0, 32], sizes = [13, 32], strides = [1, 1]} : vector<13x128xf32> to vector<13x32xf32>
    %157 = arith.truncf %156 : vector<13x32xf32> to vector<13x32xbf16>
    %158 = vector.extract_strided_slice %133 {offsets = [0, 32], sizes = [13, 32], strides = [1, 1]} : vector<13x128xf32> to vector<13x32xf32>
    %159 = arith.truncf %158 : vector<13x32xf32> to vector<13x32xbf16>
    %cst_46 = arith.constant dense<0.000000e+00> : vector<13x13xf32>
    %160 = tpu.matmul %155, %157, %cst_46 {dimension_numbers = #tpu.dot_dimension_numbers<[1], [1], [0], [0], [0, 0, 1, 0], [], []>} : vector<13x32xbf16>, vector<13x32xbf16>, vector<13x13xf32> -> vector<13x13xf32>
    %cst_47 = arith.constant 0.176776692 : f32
    %161 = vector.broadcast %cst_47 : f32 to vector<13x13xf32>
    %162 = arith.mulf %160, %161 : vector<13x13xf32>
    %cst_48 = arith.constant dense<0xFF800000> : vector<13xf32>
    %163 = vector.multi_reduction <maximumf>, %162, %cst_48 [1] : vector<13x13xf32> to vector<13xf32>
    %164 = vector.shape_cast %163 : vector<13xf32> to vector<13x1xf32>
    %165 = vector.broadcast %164 : vector<13x1xf32> to vector<13x13xf32>
    %166 = arith.subf %162, %165 : vector<13x13xf32>
    %167 = math.exp %166 : vector<13x13xf32>
    %cst_49 = arith.constant dense<0.000000e+00> : vector<13xf32>
    %168 = vector.multi_reduction <add>, %167, %cst_49 [1] : vector<13x13xf32> to vector<13xf32>
    %169 = vector.shape_cast %168 : vector<13xf32> to vector<13x1xf32>
    %170 = vector.broadcast %169 : vector<13x1xf32> to vector<13x13xf32>
    %171 = arith.divf %167, %170 : vector<13x13xf32>
    %172 = arith.truncf %171 : vector<13x13xf32> to vector<13x13xbf16>
    %cst_50 = arith.constant dense<0.000000e+00> : vector<13x32xf32>
    %173 = tpu.matmul %172, %159, %cst_50 {dimension_numbers = #tpu.dot_dimension_numbers<[1], [0], [0], [1], [0, 0, 1, 1], [], []>} : vector<13x13xbf16>, vector<13x32xbf16>, vector<13x32xf32> -> vector<13x32xf32>
    %174 = vector.extract_strided_slice %131 {offsets = [0, 64], sizes = [13, 32], strides = [1, 1]} : vector<13x128xf32> to vector<13x32xf32>
    %175 = arith.truncf %174 : vector<13x32xf32> to vector<13x32xbf16>
    %176 = vector.extract_strided_slice %132 {offsets = [0, 64], sizes = [13, 32], strides = [1, 1]} : vector<13x128xf32> to vector<13x32xf32>
    %177 = arith.truncf %176 : vector<13x32xf32> to vector<13x32xbf16>
    %178 = vector.extract_strided_slice %133 {offsets = [0, 64], sizes = [13, 32], strides = [1, 1]} : vector<13x128xf32> to vector<13x32xf32>
    %179 = arith.truncf %178 : vector<13x32xf32> to vector<13x32xbf16>
    %cst_51 = arith.constant dense<0.000000e+00> : vector<13x13xf32>
    %180 = tpu.matmul %175, %177, %cst_51 {dimension_numbers = #tpu.dot_dimension_numbers<[1], [1], [0], [0], [0, 0, 1, 0], [], []>} : vector<13x32xbf16>, vector<13x32xbf16>, vector<13x13xf32> -> vector<13x13xf32>
    %cst_52 = arith.constant 0.176776692 : f32
    %181 = vector.broadcast %cst_52 : f32 to vector<13x13xf32>
    %182 = arith.mulf %180, %181 : vector<13x13xf32>
    %cst_53 = arith.constant dense<0xFF800000> : vector<13xf32>
    %183 = vector.multi_reduction <maximumf>, %182, %cst_53 [1] : vector<13x13xf32> to vector<13xf32>
    %184 = vector.shape_cast %183 : vector<13xf32> to vector<13x1xf32>
    %185 = vector.broadcast %184 : vector<13x1xf32> to vector<13x13xf32>
    %186 = arith.subf %182, %185 : vector<13x13xf32>
    %187 = math.exp %186 : vector<13x13xf32>
    %cst_54 = arith.constant dense<0.000000e+00> : vector<13xf32>
    %188 = vector.multi_reduction <add>, %187, %cst_54 [1] : vector<13x13xf32> to vector<13xf32>
    %189 = vector.shape_cast %188 : vector<13xf32> to vector<13x1xf32>
    %190 = vector.broadcast %189 : vector<13x1xf32> to vector<13x13xf32>
    %191 = arith.divf %187, %190 : vector<13x13xf32>
    %192 = arith.truncf %191 : vector<13x13xf32> to vector<13x13xbf16>
    %cst_55 = arith.constant dense<0.000000e+00> : vector<13x32xf32>
    %193 = tpu.matmul %192, %179, %cst_55 {dimension_numbers = #tpu.dot_dimension_numbers<[1], [0], [0], [1], [0, 0, 1, 1], [], []>} : vector<13x13xbf16>, vector<13x32xbf16>, vector<13x32xf32> -> vector<13x32xf32>
    %194 = vector.extract_strided_slice %131 {offsets = [0, 96], sizes = [13, 32], strides = [1, 1]} : vector<13x128xf32> to vector<13x32xf32>
    %195 = arith.truncf %194 : vector<13x32xf32> to vector<13x32xbf16>
    %196 = vector.extract_strided_slice %132 {offsets = [0, 96], sizes = [13, 32], strides = [1, 1]} : vector<13x128xf32> to vector<13x32xf32>
    %197 = arith.truncf %196 : vector<13x32xf32> to vector<13x32xbf16>
    %198 = vector.extract_strided_slice %133 {offsets = [0, 96], sizes = [13, 32], strides = [1, 1]} : vector<13x128xf32> to vector<13x32xf32>
    %199 = arith.truncf %198 : vector<13x32xf32> to vector<13x32xbf16>
    %cst_56 = arith.constant dense<0.000000e+00> : vector<13x13xf32>
    %200 = tpu.matmul %195, %197, %cst_56 {dimension_numbers = #tpu.dot_dimension_numbers<[1], [1], [0], [0], [0, 0, 1, 0], [], []>} : vector<13x32xbf16>, vector<13x32xbf16>, vector<13x13xf32> -> vector<13x13xf32>
    %cst_57 = arith.constant 0.176776692 : f32
    %201 = vector.broadcast %cst_57 : f32 to vector<13x13xf32>
    %202 = arith.mulf %200, %201 : vector<13x13xf32>
    %cst_58 = arith.constant dense<0xFF800000> : vector<13xf32>
    %203 = vector.multi_reduction <maximumf>, %202, %cst_58 [1] : vector<13x13xf32> to vector<13xf32>
    %204 = vector.shape_cast %203 : vector<13xf32> to vector<13x1xf32>
    %205 = vector.broadcast %204 : vector<13x1xf32> to vector<13x13xf32>
    %206 = arith.subf %202, %205 : vector<13x13xf32>
    %207 = math.exp %206 : vector<13x13xf32>
    %cst_59 = arith.constant dense<0.000000e+00> : vector<13xf32>
    %208 = vector.multi_reduction <add>, %207, %cst_59 [1] : vector<13x13xf32> to vector<13xf32>
    %209 = vector.shape_cast %208 : vector<13xf32> to vector<13x1xf32>
    %210 = vector.broadcast %209 : vector<13x1xf32> to vector<13x13xf32>
    %211 = arith.divf %207, %210 : vector<13x13xf32>
    %212 = arith.truncf %211 : vector<13x13xf32> to vector<13x13xbf16>
    %cst_60 = arith.constant dense<0.000000e+00> : vector<13x32xf32>
    %213 = tpu.matmul %212, %199, %cst_60 {dimension_numbers = #tpu.dot_dimension_numbers<[1], [0], [0], [1], [0, 0, 1, 1], [], []>} : vector<13x13xbf16>, vector<13x32xbf16>, vector<13x32xf32> -> vector<13x32xf32>
    %214 = tpu.concatenate %153, %173, %193, %213 in 1 : vector<13x32xf32>, vector<13x32xf32>, vector<13x32xf32>, vector<13x32xf32> -> vector<13x128xf32>
    %215 = tpu.concatenate %129, %214 in 0 : vector<13x128xf32>, vector<13x128xf32> -> vector<26x128xf32>
    %c0_61 = arith.constant 0 : index
    %c0_62 = arith.constant 0 : index
    %c0_63 = arith.constant 0 : index
    %216 = vector.load %arg7[%c0_61, %c0_62, %c0_63] : memref<1x128x128xbf16, #tpu.memory_space<vmem>>, vector<1x128x128xbf16>
    %217 = vector.shape_cast %216 : vector<1x128x128xbf16> to vector<128x128xbf16>
    %218 = arith.truncf %215 : vector<26x128xf32> to vector<26x128xbf16>
    %cst_64 = arith.constant dense<0.000000e+00> : vector<26x128xf32>
    %219 = tpu.matmul %218, %217, %cst_64 {dimension_numbers = #tpu.dot_dimension_numbers<[1], [0], [0], [1], [0, 0, 1, 1], [], []>} : vector<26x128xbf16>, vector<128x128xbf16>, vector<26x128xf32> -> vector<26x128xf32>
    %220 = arith.addf %9, %219 : vector<26x128xf32>
    %c0_65 = arith.constant 0 : index
    %c0_66 = arith.constant 0 : index
    %c0_67 = arith.constant 0 : index
    %221 = vector.load %arg8[%c0_65, %c0_66, %c0_67] : memref<1x1x128xbf16, #tpu.memory_space<vmem>>, vector<1x1x128xbf16>
    %222 = vector.shape_cast %221 : vector<1x1x128xbf16> to vector<1x128xbf16>
    %223 = arith.extf %222 : vector<1x128xbf16> to vector<1x128xf32>
    %224 = vector.broadcast %223 : vector<1x128xf32> to vector<26x128xf32>
    %225 = arith.addf %220, %224 : vector<26x128xf32>
    %c0_68 = arith.constant 0 : index
    %c0_69 = arith.constant 0 : index
    %c0_70 = arith.constant 0 : index
    %226 = vector.load %arg9[%c0_68, %c0_69, %c0_70] : memref<1x1x128xbf16, #tpu.memory_space<vmem>>, vector<1x1x128xbf16>
    %227 = vector.shape_cast %226 : vector<1x1x128xbf16> to vector<1x128xbf16>
    %c0_71 = arith.constant 0 : index
    %c0_72 = arith.constant 0 : index
    %c0_73 = arith.constant 0 : index
    %228 = vector.load %arg10[%c0_71, %c0_72, %c0_73] : memref<1x1x128xbf16, #tpu.memory_space<vmem>>, vector<1x1x128xbf16>
    %229 = vector.shape_cast %228 : vector<1x1x128xbf16> to vector<1x128xbf16>
    %230 = arith.extf %227 : vector<1x128xbf16> to vector<1x128xf32>
    %231 = arith.extf %229 : vector<1x128xbf16> to vector<1x128xf32>
    %cst_74 = arith.constant dense<0.000000e+00> : vector<26xf32>
    %232 = vector.multi_reduction <add>, %225, %cst_74 [1] : vector<26x128xf32> to vector<26xf32>
    %233 = vector.shape_cast %232 : vector<26xf32> to vector<26x1xf32>
    %cst_75 = arith.constant 1.280000e+02 : f32
    %234 = vector.broadcast %cst_75 : f32 to vector<26x1xf32>
    %235 = arith.divf %233, %234 : vector<26x1xf32>
    %236 = vector.broadcast %235 : vector<26x1xf32> to vector<26x128xf32>
    %237 = arith.subf %225, %236 : vector<26x128xf32>
    %238 = arith.mulf %237, %237 : vector<26x128xf32>
    %cst_76 = arith.constant dense<0.000000e+00> : vector<26xf32>
    %239 = vector.multi_reduction <add>, %238, %cst_76 [1] : vector<26x128xf32> to vector<26xf32>
    %240 = vector.shape_cast %239 : vector<26xf32> to vector<26x1xf32>
    %cst_77 = arith.constant 1.280000e+02 : f32
    %241 = vector.broadcast %cst_77 : f32 to vector<26x1xf32>
    %242 = arith.divf %240, %241 : vector<26x1xf32>
    %cst_78 = arith.constant 9.99999974E-6 : f32
    %243 = vector.broadcast %cst_78 : f32 to vector<26x1xf32>
    %244 = arith.addf %242, %243 : vector<26x1xf32>
    %245 = math.rsqrt %244 : vector<26x1xf32>
    %246 = vector.broadcast %245 : vector<26x1xf32> to vector<26x128xf32>
    %247 = arith.mulf %237, %246 : vector<26x128xf32>
    %248 = vector.broadcast %230 : vector<1x128xf32> to vector<26x128xf32>
    %249 = arith.mulf %247, %248 : vector<26x128xf32>
    %250 = vector.broadcast %231 : vector<1x128xf32> to vector<26x128xf32>
    %251 = arith.addf %249, %250 : vector<26x128xf32>
    %c0_79 = arith.constant 0 : index
    %c0_80 = arith.constant 0 : index
    %c0_81 = arith.constant 0 : index
    %252 = vector.load %arg11[%c0_79, %c0_80, %c0_81] : memref<1x128x512xbf16, #tpu.memory_space<vmem>>, vector<1x128x512xbf16>
    %253 = vector.shape_cast %252 : vector<1x128x512xbf16> to vector<128x512xbf16>
    %254 = arith.truncf %251 : vector<26x128xf32> to vector<26x128xbf16>
    %cst_82 = arith.constant dense<0.000000e+00> : vector<26x512xf32>
    %255 = tpu.matmul %254, %253, %cst_82 {dimension_numbers = #tpu.dot_dimension_numbers<[1], [0], [0], [1], [0, 0, 1, 1], [], []>} : vector<26x128xbf16>, vector<128x512xbf16>, vector<26x512xf32> -> vector<26x512xf32>
    %c0_83 = arith.constant 0 : index
    %c0_84 = arith.constant 0 : index
    %c0_85 = arith.constant 0 : index
    %256 = vector.load %arg12[%c0_83, %c0_84, %c0_85] : memref<1x1x512xbf16, #tpu.memory_space<vmem>>, vector<1x1x512xbf16>
    %257 = vector.shape_cast %256 : vector<1x1x512xbf16> to vector<1x512xbf16>
    %258 = arith.extf %257 : vector<1x512xbf16> to vector<1x512xf32>
    %259 = vector.broadcast %258 : vector<1x512xf32> to vector<26x512xf32>
    %260 = arith.addf %255, %259 : vector<26x512xf32>
    %cst_86 = arith.constant 5.000000e-01 : f32
    %261 = vector.broadcast %cst_86 : f32 to vector<26x512xf32>
    %262 = arith.mulf %261, %260 : vector<26x512xf32>
    %cst_87 = arith.constant 8.510000e-01 : f32
    %263 = vector.broadcast %cst_87 : f32 to vector<26x512xf32>
    %264 = arith.mulf %263, %260 : vector<26x512xf32>
    %265 = math.tanh %264 : vector<26x512xf32>
    %cst_88 = arith.constant 1.000000e+00 : f32
    %266 = vector.broadcast %cst_88 : f32 to vector<26x512xf32>
    %267 = arith.addf %266, %265 : vector<26x512xf32>
    %268 = arith.mulf %262, %267 : vector<26x512xf32>
    %c0_89 = arith.constant 0 : index
    %c0_90 = arith.constant 0 : index
    %c0_91 = arith.constant 0 : index
    %269 = vector.load %arg13[%c0_89, %c0_90, %c0_91] : memref<1x512x128xbf16, #tpu.memory_space<vmem>>, vector<1x512x128xbf16>
    %270 = vector.shape_cast %269 : vector<1x512x128xbf16> to vector<512x128xbf16>
    %271 = arith.truncf %268 : vector<26x512xf32> to vector<26x512xbf16>
    %cst_92 = arith.constant dense<0.000000e+00> : vector<26x128xf32>
    %272 = tpu.matmul %271, %270, %cst_92 {dimension_numbers = #tpu.dot_dimension_numbers<[1], [0], [0], [1], [0, 0, 1, 1], [], []>} : vector<26x512xbf16>, vector<512x128xbf16>, vector<26x128xf32> -> vector<26x128xf32>
    %273 = arith.addf %225, %272 : vector<26x128xf32>
    %c0_93 = arith.constant 0 : index
    %c0_94 = arith.constant 0 : index
    %c0_95 = arith.constant 0 : index
    %274 = vector.load %arg14[%c0_93, %c0_94, %c0_95] : memref<1x1x128xbf16, #tpu.memory_space<vmem>>, vector<1x1x128xbf16>
    %275 = vector.shape_cast %274 : vector<1x1x128xbf16> to vector<1x128xbf16>
    %276 = arith.extf %275 : vector<1x128xbf16> to vector<1x128xf32>
    %277 = vector.broadcast %276 : vector<1x128xf32> to vector<26x128xf32>
    %278 = arith.addf %273, %277 : vector<26x128xf32>
    %279 = arith.truncf %278 : vector<26x128xf32> to vector<26x128xbf16>
    %c0_96 = arith.constant 0 : index
    %c0_97 = arith.constant 0 : index
    %280 = vector.load %arg15[%c0_96, %c0_97] : memref<26x128xbf16, #tpu.memory_space<vmem>>, vector<26x128xbf16>
    tpu.vector_store %arg15[%c0_96, %c0_97], %279 {strides = array<i32>} : memref<26x128xbf16, #tpu.memory_space<vmem>>, vector<26x128xbf16>,
    return
  }
  func.func @transform_0(%arg0: i32) -> (i32, i32) {
    %c0_i32 = arith.constant 0 : i32
    %c0_i32_0 = arith.constant 0 : i32
    %c0_i32_1 = arith.constant 0 : i32
    return %c0_i32, %c0_i32_0 : i32, i32
  }
  func.func @transform_1(%arg0: i32) -> (i32, i32, i32) {
    %c0_i32 = arith.constant 0 : i32
    %c0_i32_0 = arith.constant 0 : i32
    %c0_i32_1 = arith.constant 0 : i32
    return %arg0, %c0_i32, %c0_i32_0 : i32, i32, i32
  }
  func.func @transform_2(%arg0: i32) -> (i32, i32, i32) {
    %c0_i32 = arith.constant 0 : i32
    %c0_i32_0 = arith.constant 0 : i32
    %c0_i32_1 = arith.constant 0 : i32
    return %arg0, %c0_i32, %c0_i32_0 : i32, i32, i32
  }
  func.func @transform_3(%arg0: i32) -> (i32, i32, i32) {
    %c0_i32 = arith.constant 0 : i32
    %c0_i32_0 = arith.constant 0 : i32
    %c0_i32_1 = arith.constant 0 : i32
    return %arg0, %c0_i32, %c0_i32_0 : i32, i32, i32
  }
  func.func @transform_4(%arg0: i32) -> (i32, i32, i32) {
    %c0_i32 = arith.constant 0 : i32
    %c0_i32_0 = arith.constant 0 : i32
    %c0_i32_1 = arith.constant 0 : i32
    return %arg0, %c0_i32, %c0_i32_0 : i32, i32, i32
  }
  func.func @transform_5(%arg0: i32) -> (i32, i32, i32) {
    %c0_i32 = arith.constant 0 : i32
    %c0_i32_0 = arith.constant 0 : i32
    %c0_i32_1 = arith.constant 0 : i32
    return %arg0, %c0_i32, %c0_i32_0 : i32, i32, i32
  }
  func.func @transform_6(%arg0: i32) -> (i32, i32, i32) {
    %c0_i32 = arith.constant 0 : i32
    %c0_i32_0 = arith.constant 0 : i32
    %c0_i32_1 = arith.constant 0 : i32
    return %arg0, %c0_i32, %c0_i32_0 : i32, i32, i32
  }
  func.func @transform_7(%arg0: i32) -> (i32, i32, i32) {
    %c0_i32 = arith.constant 0 : i32
    %c0_i32_0 = arith.constant 0 : i32
    %c0_i32_1 = arith.constant 0 : i32
    return %arg0, %c0_i32, %c0_i32_0 : i32, i32, i32
  }
  func.func @transform_8(%arg0: i32) -> (i32, i32, i32) {
    %c0_i32 = arith.constant 0 : i32
    %c0_i32_0 = arith.constant 0 : i32
    %c0_i32_1 = arith.constant 0 : i32
    return %arg0, %c0_i32, %c0_i32_0 : i32, i32, i32
  }
  func.func @transform_9(%arg0: i32) -> (i32, i32, i32) {
    %c0_i32 = arith.constant 0 : i32
    %c0_i32_0 = arith.constant 0 : i32
    %c0_i32_1 = arith.constant 0 : i32
    return %arg0, %c0_i32, %c0_i32_0 : i32, i32, i32
  }
  func.func @transform_10(%arg0: i32) -> (i32, i32, i32) {
    %c0_i32 = arith.constant 0 : i32
    %c0_i32_0 = arith.constant 0 : i32
    %c0_i32_1 = arith.constant 0 : i32
    return %arg0, %c0_i32, %c0_i32_0 : i32, i32, i32
  }
  func.func @transform_11(%arg0: i32) -> (i32, i32, i32) {
    %c0_i32 = arith.constant 0 : i32
    %c0_i32_0 = arith.constant 0 : i32
    %c0_i32_1 = arith.constant 0 : i32
    return %arg0, %c0_i32, %c0_i32_0 : i32, i32, i32
  }
  func.func @transform_12(%arg0: i32) -> (i32, i32, i32) {
    %c0_i32 = arith.constant 0 : i32
    %c0_i32_0 = arith.constant 0 : i32
    %c0_i32_1 = arith.constant 0 : i32
    return %arg0, %c0_i32, %c0_i32_0 : i32, i32, i32
  }
  func.func @transform_13(%arg0: i32) -> (i32, i32, i32) {
    %c0_i32 = arith.constant 0 : i32
    %c0_i32_0 = arith.constant 0 : i32
    %c0_i32_1 = arith.constant 0 : i32
    return %arg0, %c0_i32, %c0_i32_0 : i32, i32, i32
  }
  func.func @transform_14(%arg0: i32) -> (i32, i32) {
    %c0_i32 = arith.constant 0 : i32
    %c0_i32_0 = arith.constant 0 : i32
    %c0_i32_1 = arith.constant 0 : i32
    return %c0_i32, %c0_i32_0 : i32, i32
  }
}

module attributes {stable_mosaic.version = 11 : i64} {
  func.func @_mpg_kernel(%arg0: i32, %arg1: memref<1x4x128xbf16, #tpu.memory_space<vmem>>, %arg2: memref<1x128x384xbf16, #tpu.memory_space<vmem>>, %arg3: memref<1x1x384xbf16, #tpu.memory_space<vmem>>, %arg4: memref<1x128x128xbf16, #tpu.memory_space<vmem>>, %arg5: memref<1x1x128xbf16, #tpu.memory_space<vmem>>, %arg6: memref<1x128x512xbf16, #tpu.memory_space<vmem>>, %arg7: memref<1x1x512xbf16, #tpu.memory_space<vmem>>, %arg8: memref<1x512x128xbf16, #tpu.memory_space<vmem>>, %arg9: memref<1x1x128xbf16, #tpu.memory_space<vmem>>, %arg10: memref<1x4x128xbf16, #tpu.memory_space<vmem>>, %arg11: memref<1x128x128xbf16, #tpu.memory_space<vmem>>, %arg12: memref<1x1x128xbf16, #tpu.memory_space<vmem>>, %arg13: memref<1x4x128xbf16, #tpu.memory_space<vmem>>, %arg14: memref<1x4x128xbf16, #tpu.memory_space<vmem>>) attributes {dimension_semantics = [#tpu.dimension_semantics<parallel>], iteration_bounds = array<i64: 2>, scalar_prefetch = 0 : i64, scratch_operands = 0 : i64, tpu.core_type = #tpu.core_type<tc>, window_params = [{transform_indices = @transform_0, window_bounds = array<i64: 1, 4, 128>}, {transform_indices = @transform_1, window_bounds = array<i64: 1, 128, 384>}, {transform_indices = @transform_2, window_bounds = array<i64: 1, 1, 384>}, {transform_indices = @transform_3, window_bounds = array<i64: 1, 128, 128>}, {transform_indices = @transform_4, window_bounds = array<i64: 1, 1, 128>}, {transform_indices = @transform_5, window_bounds = array<i64: 1, 128, 512>}, {transform_indices = @transform_6, window_bounds = array<i64: 1, 1, 512>}, {transform_indices = @transform_7, window_bounds = array<i64: 1, 512, 128>}, {transform_indices = @transform_8, window_bounds = array<i64: 1, 1, 128>}, {transform_indices = @transform_9, window_bounds = array<i64: 1, 4, 128>}, {transform_indices = @transform_10, window_bounds = array<i64: 1, 128, 128>}, {transform_indices = @transform_11, window_bounds = array<i64: 1, 1, 128>}, {transform_indices = @transform_12, window_bounds = array<i64: 1, 4, 128>}, {transform_indices = @transform_13, window_bounds = array<i64: 1, 4, 128>}]} {
    %c0 = arith.constant 0 : index
    %c0_0 = arith.constant 0 : index
    %c0_1 = arith.constant 0 : index
    %0 = vector.load %arg1[%c0, %c0_0, %c0_1] : memref<1x4x128xbf16, #tpu.memory_space<vmem>>, vector<1x4x128xbf16>
    %1 = vector.shape_cast %0 : vector<1x4x128xbf16> to vector<4x128xbf16>
    %2 = arith.extf %1 : vector<4x128xbf16> to vector<4x128xf32>
    %c0_2 = arith.constant 0 : index
    %c0_3 = arith.constant 0 : index
    %c0_4 = arith.constant 0 : index
    %3 = vector.load %arg2[%c0_2, %c0_3, %c0_4] : memref<1x128x384xbf16, #tpu.memory_space<vmem>>, vector<1x128x384xbf16>
    %4 = vector.shape_cast %3 : vector<1x128x384xbf16> to vector<128x384xbf16>
    %5 = arith.truncf %2 : vector<4x128xf32> to vector<4x128xbf16>
    %cst = arith.constant dense<0.000000e+00> : vector<4x384xf32>
    %6 = tpu.matmul %5, %4, %cst {dimension_numbers = #tpu.dot_dimension_numbers<[1], [0], [0], [1], [0, 0, 1, 1], [], []>} : vector<4x128xbf16>, vector<128x384xbf16>, vector<4x384xf32> -> vector<4x384xf32>
    %c0_5 = arith.constant 0 : index
    %c0_6 = arith.constant 0 : index
    %c0_7 = arith.constant 0 : index
    %7 = vector.load %arg3[%c0_5, %c0_6, %c0_7] : memref<1x1x384xbf16, #tpu.memory_space<vmem>>, vector<1x1x384xbf16>
    %8 = vector.shape_cast %7 : vector<1x1x384xbf16> to vector<1x384xbf16>
    %9 = arith.extf %8 : vector<1x384xbf16> to vector<1x384xf32>
    %10 = vector.broadcast %9 : vector<1x384xf32> to vector<4x384xf32>
    %11 = arith.addf %6, %10 : vector<4x384xf32>
    %12 = vector.extract_strided_slice %11 {offsets = [0, 0], sizes = [4, 128], strides = [1, 1]} : vector<4x384xf32> to vector<4x128xf32>
    %13 = vector.extract_strided_slice %11 {offsets = [0, 128], sizes = [4, 128], strides = [1, 1]} : vector<4x384xf32> to vector<4x128xf32>
    %14 = vector.extract_strided_slice %11 {offsets = [0, 256], sizes = [4, 128], strides = [1, 1]} : vector<4x384xf32> to vector<4x128xf32>
    %15 = vector.extract_strided_slice %12 {offsets = [0, 0], sizes = [4, 16], strides = [1, 1]} : vector<4x128xf32> to vector<4x16xf32>
    %16 = arith.truncf %15 : vector<4x16xf32> to vector<4x16xbf16>
    %17 = vector.extract_strided_slice %13 {offsets = [0, 0], sizes = [4, 16], strides = [1, 1]} : vector<4x128xf32> to vector<4x16xf32>
    %18 = arith.truncf %17 : vector<4x16xf32> to vector<4x16xbf16>
    %19 = vector.extract_strided_slice %14 {offsets = [0, 0], sizes = [4, 16], strides = [1, 1]} : vector<4x128xf32> to vector<4x16xf32>
    %20 = arith.truncf %19 : vector<4x16xf32> to vector<4x16xbf16>
    %cst_8 = arith.constant dense<0.000000e+00> : vector<4x4xf32>
    %21 = tpu.matmul %16, %18, %cst_8 {dimension_numbers = #tpu.dot_dimension_numbers<[1], [1], [0], [0], [0, 0, 1, 0], [], []>} : vector<4x16xbf16>, vector<4x16xbf16>, vector<4x4xf32> -> vector<4x4xf32>
    %cst_9 = arith.constant 2.500000e-01 : f32
    %22 = vector.broadcast %cst_9 : f32 to vector<4x4xf32>
    %23 = arith.mulf %21, %22 : vector<4x4xf32>
    %cst_10 = arith.constant dense<0xFF800000> : vector<4xf32>
    %24 = vector.multi_reduction <maximumf>, %23, %cst_10 [1] : vector<4x4xf32> to vector<4xf32>
    %25 = vector.shape_cast %24 : vector<4xf32> to vector<4x1xf32>
    %26 = vector.broadcast %25 : vector<4x1xf32> to vector<4x4xf32>
    %27 = arith.subf %23, %26 : vector<4x4xf32>
    %28 = math.exp %27 : vector<4x4xf32>
    %cst_11 = arith.constant dense<0.000000e+00> : vector<4xf32>
    %29 = vector.multi_reduction <add>, %28, %cst_11 [1] : vector<4x4xf32> to vector<4xf32>
    %30 = vector.shape_cast %29 : vector<4xf32> to vector<4x1xf32>
    %31 = vector.broadcast %30 : vector<4x1xf32> to vector<4x4xf32>
    %32 = arith.divf %28, %31 : vector<4x4xf32>
    %33 = arith.truncf %32 : vector<4x4xf32> to vector<4x4xbf16>
    %cst_12 = arith.constant dense<0.000000e+00> : vector<4x16xf32>
    %34 = tpu.matmul %33, %20, %cst_12 {dimension_numbers = #tpu.dot_dimension_numbers<[1], [0], [0], [1], [0, 0, 1, 1], [], []>} : vector<4x4xbf16>, vector<4x16xbf16>, vector<4x16xf32> -> vector<4x16xf32>
    %35 = vector.extract_strided_slice %12 {offsets = [0, 16], sizes = [4, 16], strides = [1, 1]} : vector<4x128xf32> to vector<4x16xf32>
    %36 = arith.truncf %35 : vector<4x16xf32> to vector<4x16xbf16>
    %37 = vector.extract_strided_slice %13 {offsets = [0, 16], sizes = [4, 16], strides = [1, 1]} : vector<4x128xf32> to vector<4x16xf32>
    %38 = arith.truncf %37 : vector<4x16xf32> to vector<4x16xbf16>
    %39 = vector.extract_strided_slice %14 {offsets = [0, 16], sizes = [4, 16], strides = [1, 1]} : vector<4x128xf32> to vector<4x16xf32>
    %40 = arith.truncf %39 : vector<4x16xf32> to vector<4x16xbf16>
    %cst_13 = arith.constant dense<0.000000e+00> : vector<4x4xf32>
    %41 = tpu.matmul %36, %38, %cst_13 {dimension_numbers = #tpu.dot_dimension_numbers<[1], [1], [0], [0], [0, 0, 1, 0], [], []>} : vector<4x16xbf16>, vector<4x16xbf16>, vector<4x4xf32> -> vector<4x4xf32>
    %cst_14 = arith.constant 2.500000e-01 : f32
    %42 = vector.broadcast %cst_14 : f32 to vector<4x4xf32>
    %43 = arith.mulf %41, %42 : vector<4x4xf32>
    %cst_15 = arith.constant dense<0xFF800000> : vector<4xf32>
    %44 = vector.multi_reduction <maximumf>, %43, %cst_15 [1] : vector<4x4xf32> to vector<4xf32>
    %45 = vector.shape_cast %44 : vector<4xf32> to vector<4x1xf32>
    %46 = vector.broadcast %45 : vector<4x1xf32> to vector<4x4xf32>
    %47 = arith.subf %43, %46 : vector<4x4xf32>
    %48 = math.exp %47 : vector<4x4xf32>
    %cst_16 = arith.constant dense<0.000000e+00> : vector<4xf32>
    %49 = vector.multi_reduction <add>, %48, %cst_16 [1] : vector<4x4xf32> to vector<4xf32>
    %50 = vector.shape_cast %49 : vector<4xf32> to vector<4x1xf32>
    %51 = vector.broadcast %50 : vector<4x1xf32> to vector<4x4xf32>
    %52 = arith.divf %48, %51 : vector<4x4xf32>
    %53 = arith.truncf %52 : vector<4x4xf32> to vector<4x4xbf16>
    %cst_17 = arith.constant dense<0.000000e+00> : vector<4x16xf32>
    %54 = tpu.matmul %53, %40, %cst_17 {dimension_numbers = #tpu.dot_dimension_numbers<[1], [0], [0], [1], [0, 0, 1, 1], [], []>} : vector<4x4xbf16>, vector<4x16xbf16>, vector<4x16xf32> -> vector<4x16xf32>
    %55 = vector.extract_strided_slice %12 {offsets = [0, 32], sizes = [4, 16], strides = [1, 1]} : vector<4x128xf32> to vector<4x16xf32>
    %56 = arith.truncf %55 : vector<4x16xf32> to vector<4x16xbf16>
    %57 = vector.extract_strided_slice %13 {offsets = [0, 32], sizes = [4, 16], strides = [1, 1]} : vector<4x128xf32> to vector<4x16xf32>
    %58 = arith.truncf %57 : vector<4x16xf32> to vector<4x16xbf16>
    %59 = vector.extract_strided_slice %14 {offsets = [0, 32], sizes = [4, 16], strides = [1, 1]} : vector<4x128xf32> to vector<4x16xf32>
    %60 = arith.truncf %59 : vector<4x16xf32> to vector<4x16xbf16>
    %cst_18 = arith.constant dense<0.000000e+00> : vector<4x4xf32>
    %61 = tpu.matmul %56, %58, %cst_18 {dimension_numbers = #tpu.dot_dimension_numbers<[1], [1], [0], [0], [0, 0, 1, 0], [], []>} : vector<4x16xbf16>, vector<4x16xbf16>, vector<4x4xf32> -> vector<4x4xf32>
    %cst_19 = arith.constant 2.500000e-01 : f32
    %62 = vector.broadcast %cst_19 : f32 to vector<4x4xf32>
    %63 = arith.mulf %61, %62 : vector<4x4xf32>
    %cst_20 = arith.constant dense<0xFF800000> : vector<4xf32>
    %64 = vector.multi_reduction <maximumf>, %63, %cst_20 [1] : vector<4x4xf32> to vector<4xf32>
    %65 = vector.shape_cast %64 : vector<4xf32> to vector<4x1xf32>
    %66 = vector.broadcast %65 : vector<4x1xf32> to vector<4x4xf32>
    %67 = arith.subf %63, %66 : vector<4x4xf32>
    %68 = math.exp %67 : vector<4x4xf32>
    %cst_21 = arith.constant dense<0.000000e+00> : vector<4xf32>
    %69 = vector.multi_reduction <add>, %68, %cst_21 [1] : vector<4x4xf32> to vector<4xf32>
    %70 = vector.shape_cast %69 : vector<4xf32> to vector<4x1xf32>
    %71 = vector.broadcast %70 : vector<4x1xf32> to vector<4x4xf32>
    %72 = arith.divf %68, %71 : vector<4x4xf32>
    %73 = arith.truncf %72 : vector<4x4xf32> to vector<4x4xbf16>
    %cst_22 = arith.constant dense<0.000000e+00> : vector<4x16xf32>
    %74 = tpu.matmul %73, %60, %cst_22 {dimension_numbers = #tpu.dot_dimension_numbers<[1], [0], [0], [1], [0, 0, 1, 1], [], []>} : vector<4x4xbf16>, vector<4x16xbf16>, vector<4x16xf32> -> vector<4x16xf32>
    %75 = vector.extract_strided_slice %12 {offsets = [0, 48], sizes = [4, 16], strides = [1, 1]} : vector<4x128xf32> to vector<4x16xf32>
    %76 = arith.truncf %75 : vector<4x16xf32> to vector<4x16xbf16>
    %77 = vector.extract_strided_slice %13 {offsets = [0, 48], sizes = [4, 16], strides = [1, 1]} : vector<4x128xf32> to vector<4x16xf32>
    %78 = arith.truncf %77 : vector<4x16xf32> to vector<4x16xbf16>
    %79 = vector.extract_strided_slice %14 {offsets = [0, 48], sizes = [4, 16], strides = [1, 1]} : vector<4x128xf32> to vector<4x16xf32>
    %80 = arith.truncf %79 : vector<4x16xf32> to vector<4x16xbf16>
    %cst_23 = arith.constant dense<0.000000e+00> : vector<4x4xf32>
    %81 = tpu.matmul %76, %78, %cst_23 {dimension_numbers = #tpu.dot_dimension_numbers<[1], [1], [0], [0], [0, 0, 1, 0], [], []>} : vector<4x16xbf16>, vector<4x16xbf16>, vector<4x4xf32> -> vector<4x4xf32>
    %cst_24 = arith.constant 2.500000e-01 : f32
    %82 = vector.broadcast %cst_24 : f32 to vector<4x4xf32>
    %83 = arith.mulf %81, %82 : vector<4x4xf32>
    %cst_25 = arith.constant dense<0xFF800000> : vector<4xf32>
    %84 = vector.multi_reduction <maximumf>, %83, %cst_25 [1] : vector<4x4xf32> to vector<4xf32>
    %85 = vector.shape_cast %84 : vector<4xf32> to vector<4x1xf32>
    %86 = vector.broadcast %85 : vector<4x1xf32> to vector<4x4xf32>
    %87 = arith.subf %83, %86 : vector<4x4xf32>
    %88 = math.exp %87 : vector<4x4xf32>
    %cst_26 = arith.constant dense<0.000000e+00> : vector<4xf32>
    %89 = vector.multi_reduction <add>, %88, %cst_26 [1] : vector<4x4xf32> to vector<4xf32>
    %90 = vector.shape_cast %89 : vector<4xf32> to vector<4x1xf32>
    %91 = vector.broadcast %90 : vector<4x1xf32> to vector<4x4xf32>
    %92 = arith.divf %88, %91 : vector<4x4xf32>
    %93 = arith.truncf %92 : vector<4x4xf32> to vector<4x4xbf16>
    %cst_27 = arith.constant dense<0.000000e+00> : vector<4x16xf32>
    %94 = tpu.matmul %93, %80, %cst_27 {dimension_numbers = #tpu.dot_dimension_numbers<[1], [0], [0], [1], [0, 0, 1, 1], [], []>} : vector<4x4xbf16>, vector<4x16xbf16>, vector<4x16xf32> -> vector<4x16xf32>
    %95 = vector.extract_strided_slice %12 {offsets = [0, 64], sizes = [4, 16], strides = [1, 1]} : vector<4x128xf32> to vector<4x16xf32>
    %96 = arith.truncf %95 : vector<4x16xf32> to vector<4x16xbf16>
    %97 = vector.extract_strided_slice %13 {offsets = [0, 64], sizes = [4, 16], strides = [1, 1]} : vector<4x128xf32> to vector<4x16xf32>
    %98 = arith.truncf %97 : vector<4x16xf32> to vector<4x16xbf16>
    %99 = vector.extract_strided_slice %14 {offsets = [0, 64], sizes = [4, 16], strides = [1, 1]} : vector<4x128xf32> to vector<4x16xf32>
    %100 = arith.truncf %99 : vector<4x16xf32> to vector<4x16xbf16>
    %cst_28 = arith.constant dense<0.000000e+00> : vector<4x4xf32>
    %101 = tpu.matmul %96, %98, %cst_28 {dimension_numbers = #tpu.dot_dimension_numbers<[1], [1], [0], [0], [0, 0, 1, 0], [], []>} : vector<4x16xbf16>, vector<4x16xbf16>, vector<4x4xf32> -> vector<4x4xf32>
    %cst_29 = arith.constant 2.500000e-01 : f32
    %102 = vector.broadcast %cst_29 : f32 to vector<4x4xf32>
    %103 = arith.mulf %101, %102 : vector<4x4xf32>
    %cst_30 = arith.constant dense<0xFF800000> : vector<4xf32>
    %104 = vector.multi_reduction <maximumf>, %103, %cst_30 [1] : vector<4x4xf32> to vector<4xf32>
    %105 = vector.shape_cast %104 : vector<4xf32> to vector<4x1xf32>
    %106 = vector.broadcast %105 : vector<4x1xf32> to vector<4x4xf32>
    %107 = arith.subf %103, %106 : vector<4x4xf32>
    %108 = math.exp %107 : vector<4x4xf32>
    %cst_31 = arith.constant dense<0.000000e+00> : vector<4xf32>
    %109 = vector.multi_reduction <add>, %108, %cst_31 [1] : vector<4x4xf32> to vector<4xf32>
    %110 = vector.shape_cast %109 : vector<4xf32> to vector<4x1xf32>
    %111 = vector.broadcast %110 : vector<4x1xf32> to vector<4x4xf32>
    %112 = arith.divf %108, %111 : vector<4x4xf32>
    %113 = arith.truncf %112 : vector<4x4xf32> to vector<4x4xbf16>
    %cst_32 = arith.constant dense<0.000000e+00> : vector<4x16xf32>
    %114 = tpu.matmul %113, %100, %cst_32 {dimension_numbers = #tpu.dot_dimension_numbers<[1], [0], [0], [1], [0, 0, 1, 1], [], []>} : vector<4x4xbf16>, vector<4x16xbf16>, vector<4x16xf32> -> vector<4x16xf32>
    %115 = vector.extract_strided_slice %12 {offsets = [0, 80], sizes = [4, 16], strides = [1, 1]} : vector<4x128xf32> to vector<4x16xf32>
    %116 = arith.truncf %115 : vector<4x16xf32> to vector<4x16xbf16>
    %117 = vector.extract_strided_slice %13 {offsets = [0, 80], sizes = [4, 16], strides = [1, 1]} : vector<4x128xf32> to vector<4x16xf32>
    %118 = arith.truncf %117 : vector<4x16xf32> to vector<4x16xbf16>
    %119 = vector.extract_strided_slice %14 {offsets = [0, 80], sizes = [4, 16], strides = [1, 1]} : vector<4x128xf32> to vector<4x16xf32>
    %120 = arith.truncf %119 : vector<4x16xf32> to vector<4x16xbf16>
    %cst_33 = arith.constant dense<0.000000e+00> : vector<4x4xf32>
    %121 = tpu.matmul %116, %118, %cst_33 {dimension_numbers = #tpu.dot_dimension_numbers<[1], [1], [0], [0], [0, 0, 1, 0], [], []>} : vector<4x16xbf16>, vector<4x16xbf16>, vector<4x4xf32> -> vector<4x4xf32>
    %cst_34 = arith.constant 2.500000e-01 : f32
    %122 = vector.broadcast %cst_34 : f32 to vector<4x4xf32>
    %123 = arith.mulf %121, %122 : vector<4x4xf32>
    %cst_35 = arith.constant dense<0xFF800000> : vector<4xf32>
    %124 = vector.multi_reduction <maximumf>, %123, %cst_35 [1] : vector<4x4xf32> to vector<4xf32>
    %125 = vector.shape_cast %124 : vector<4xf32> to vector<4x1xf32>
    %126 = vector.broadcast %125 : vector<4x1xf32> to vector<4x4xf32>
    %127 = arith.subf %123, %126 : vector<4x4xf32>
    %128 = math.exp %127 : vector<4x4xf32>
    %cst_36 = arith.constant dense<0.000000e+00> : vector<4xf32>
    %129 = vector.multi_reduction <add>, %128, %cst_36 [1] : vector<4x4xf32> to vector<4xf32>
    %130 = vector.shape_cast %129 : vector<4xf32> to vector<4x1xf32>
    %131 = vector.broadcast %130 : vector<4x1xf32> to vector<4x4xf32>
    %132 = arith.divf %128, %131 : vector<4x4xf32>
    %133 = arith.truncf %132 : vector<4x4xf32> to vector<4x4xbf16>
    %cst_37 = arith.constant dense<0.000000e+00> : vector<4x16xf32>
    %134 = tpu.matmul %133, %120, %cst_37 {dimension_numbers = #tpu.dot_dimension_numbers<[1], [0], [0], [1], [0, 0, 1, 1], [], []>} : vector<4x4xbf16>, vector<4x16xbf16>, vector<4x16xf32> -> vector<4x16xf32>
    %135 = vector.extract_strided_slice %12 {offsets = [0, 96], sizes = [4, 16], strides = [1, 1]} : vector<4x128xf32> to vector<4x16xf32>
    %136 = arith.truncf %135 : vector<4x16xf32> to vector<4x16xbf16>
    %137 = vector.extract_strided_slice %13 {offsets = [0, 96], sizes = [4, 16], strides = [1, 1]} : vector<4x128xf32> to vector<4x16xf32>
    %138 = arith.truncf %137 : vector<4x16xf32> to vector<4x16xbf16>
    %139 = vector.extract_strided_slice %14 {offsets = [0, 96], sizes = [4, 16], strides = [1, 1]} : vector<4x128xf32> to vector<4x16xf32>
    %140 = arith.truncf %139 : vector<4x16xf32> to vector<4x16xbf16>
    %cst_38 = arith.constant dense<0.000000e+00> : vector<4x4xf32>
    %141 = tpu.matmul %136, %138, %cst_38 {dimension_numbers = #tpu.dot_dimension_numbers<[1], [1], [0], [0], [0, 0, 1, 0], [], []>} : vector<4x16xbf16>, vector<4x16xbf16>, vector<4x4xf32> -> vector<4x4xf32>
    %cst_39 = arith.constant 2.500000e-01 : f32
    %142 = vector.broadcast %cst_39 : f32 to vector<4x4xf32>
    %143 = arith.mulf %141, %142 : vector<4x4xf32>
    %cst_40 = arith.constant dense<0xFF800000> : vector<4xf32>
    %144 = vector.multi_reduction <maximumf>, %143, %cst_40 [1] : vector<4x4xf32> to vector<4xf32>
    %145 = vector.shape_cast %144 : vector<4xf32> to vector<4x1xf32>
    %146 = vector.broadcast %145 : vector<4x1xf32> to vector<4x4xf32>
    %147 = arith.subf %143, %146 : vector<4x4xf32>
    %148 = math.exp %147 : vector<4x4xf32>
    %cst_41 = arith.constant dense<0.000000e+00> : vector<4xf32>
    %149 = vector.multi_reduction <add>, %148, %cst_41 [1] : vector<4x4xf32> to vector<4xf32>
    %150 = vector.shape_cast %149 : vector<4xf32> to vector<4x1xf32>
    %151 = vector.broadcast %150 : vector<4x1xf32> to vector<4x4xf32>
    %152 = arith.divf %148, %151 : vector<4x4xf32>
    %153 = arith.truncf %152 : vector<4x4xf32> to vector<4x4xbf16>
    %cst_42 = arith.constant dense<0.000000e+00> : vector<4x16xf32>
    %154 = tpu.matmul %153, %140, %cst_42 {dimension_numbers = #tpu.dot_dimension_numbers<[1], [0], [0], [1], [0, 0, 1, 1], [], []>} : vector<4x4xbf16>, vector<4x16xbf16>, vector<4x16xf32> -> vector<4x16xf32>
    %155 = vector.extract_strided_slice %12 {offsets = [0, 112], sizes = [4, 16], strides = [1, 1]} : vector<4x128xf32> to vector<4x16xf32>
    %156 = arith.truncf %155 : vector<4x16xf32> to vector<4x16xbf16>
    %157 = vector.extract_strided_slice %13 {offsets = [0, 112], sizes = [4, 16], strides = [1, 1]} : vector<4x128xf32> to vector<4x16xf32>
    %158 = arith.truncf %157 : vector<4x16xf32> to vector<4x16xbf16>
    %159 = vector.extract_strided_slice %14 {offsets = [0, 112], sizes = [4, 16], strides = [1, 1]} : vector<4x128xf32> to vector<4x16xf32>
    %160 = arith.truncf %159 : vector<4x16xf32> to vector<4x16xbf16>
    %cst_43 = arith.constant dense<0.000000e+00> : vector<4x4xf32>
    %161 = tpu.matmul %156, %158, %cst_43 {dimension_numbers = #tpu.dot_dimension_numbers<[1], [1], [0], [0], [0, 0, 1, 0], [], []>} : vector<4x16xbf16>, vector<4x16xbf16>, vector<4x4xf32> -> vector<4x4xf32>
    %cst_44 = arith.constant 2.500000e-01 : f32
    %162 = vector.broadcast %cst_44 : f32 to vector<4x4xf32>
    %163 = arith.mulf %161, %162 : vector<4x4xf32>
    %cst_45 = arith.constant dense<0xFF800000> : vector<4xf32>
    %164 = vector.multi_reduction <maximumf>, %163, %cst_45 [1] : vector<4x4xf32> to vector<4xf32>
    %165 = vector.shape_cast %164 : vector<4xf32> to vector<4x1xf32>
    %166 = vector.broadcast %165 : vector<4x1xf32> to vector<4x4xf32>
    %167 = arith.subf %163, %166 : vector<4x4xf32>
    %168 = math.exp %167 : vector<4x4xf32>
    %cst_46 = arith.constant dense<0.000000e+00> : vector<4xf32>
    %169 = vector.multi_reduction <add>, %168, %cst_46 [1] : vector<4x4xf32> to vector<4xf32>
    %170 = vector.shape_cast %169 : vector<4xf32> to vector<4x1xf32>
    %171 = vector.broadcast %170 : vector<4x1xf32> to vector<4x4xf32>
    %172 = arith.divf %168, %171 : vector<4x4xf32>
    %173 = arith.truncf %172 : vector<4x4xf32> to vector<4x4xbf16>
    %cst_47 = arith.constant dense<0.000000e+00> : vector<4x16xf32>
    %174 = tpu.matmul %173, %160, %cst_47 {dimension_numbers = #tpu.dot_dimension_numbers<[1], [0], [0], [1], [0, 0, 1, 1], [], []>} : vector<4x4xbf16>, vector<4x16xbf16>, vector<4x16xf32> -> vector<4x16xf32>
    %175 = tpu.concatenate %34, %54, %74, %94, %114, %134, %154, %174 in 1 : vector<4x16xf32>, vector<4x16xf32>, vector<4x16xf32>, vector<4x16xf32>, vector<4x16xf32>, vector<4x16xf32>, vector<4x16xf32>, vector<4x16xf32> -> vector<4x128xf32>
    %c0_48 = arith.constant 0 : index
    %c0_49 = arith.constant 0 : index
    %c0_50 = arith.constant 0 : index
    %176 = vector.load %arg4[%c0_48, %c0_49, %c0_50] : memref<1x128x128xbf16, #tpu.memory_space<vmem>>, vector<1x128x128xbf16>
    %177 = vector.shape_cast %176 : vector<1x128x128xbf16> to vector<128x128xbf16>
    %178 = arith.truncf %175 : vector<4x128xf32> to vector<4x128xbf16>
    %cst_51 = arith.constant dense<0.000000e+00> : vector<4x128xf32>
    %179 = tpu.matmul %178, %177, %cst_51 {dimension_numbers = #tpu.dot_dimension_numbers<[1], [0], [0], [1], [0, 0, 1, 1], [], []>} : vector<4x128xbf16>, vector<128x128xbf16>, vector<4x128xf32> -> vector<4x128xf32>
    %c0_52 = arith.constant 0 : index
    %c0_53 = arith.constant 0 : index
    %c0_54 = arith.constant 0 : index
    %180 = vector.load %arg5[%c0_52, %c0_53, %c0_54] : memref<1x1x128xbf16, #tpu.memory_space<vmem>>, vector<1x1x128xbf16>
    %181 = vector.shape_cast %180 : vector<1x1x128xbf16> to vector<1x128xbf16>
    %182 = arith.extf %181 : vector<1x128xbf16> to vector<1x128xf32>
    %183 = vector.broadcast %182 : vector<1x128xf32> to vector<4x128xf32>
    %184 = arith.addf %179, %183 : vector<4x128xf32>
    %c0_55 = arith.constant 0 : index
    %c0_56 = arith.constant 0 : index
    %c0_57 = arith.constant 0 : index
    %185 = vector.load %arg6[%c0_55, %c0_56, %c0_57] : memref<1x128x512xbf16, #tpu.memory_space<vmem>>, vector<1x128x512xbf16>
    %186 = vector.shape_cast %185 : vector<1x128x512xbf16> to vector<128x512xbf16>
    %187 = arith.truncf %184 : vector<4x128xf32> to vector<4x128xbf16>
    %cst_58 = arith.constant dense<0.000000e+00> : vector<4x512xf32>
    %188 = tpu.matmul %187, %186, %cst_58 {dimension_numbers = #tpu.dot_dimension_numbers<[1], [0], [0], [1], [0, 0, 1, 1], [], []>} : vector<4x128xbf16>, vector<128x512xbf16>, vector<4x512xf32> -> vector<4x512xf32>
    %c0_59 = arith.constant 0 : index
    %c0_60 = arith.constant 0 : index
    %c0_61 = arith.constant 0 : index
    %189 = vector.load %arg7[%c0_59, %c0_60, %c0_61] : memref<1x1x512xbf16, #tpu.memory_space<vmem>>, vector<1x1x512xbf16>
    %190 = vector.shape_cast %189 : vector<1x1x512xbf16> to vector<1x512xbf16>
    %191 = arith.extf %190 : vector<1x512xbf16> to vector<1x512xf32>
    %192 = vector.broadcast %191 : vector<1x512xf32> to vector<4x512xf32>
    %193 = arith.addf %188, %192 : vector<4x512xf32>
    %cst_62 = arith.constant 5.000000e-01 : f32
    %194 = vector.broadcast %cst_62 : f32 to vector<4x512xf32>
    %195 = arith.mulf %194, %193 : vector<4x512xf32>
    %cst_63 = arith.constant 8.510000e-01 : f32
    %196 = vector.broadcast %cst_63 : f32 to vector<4x512xf32>
    %197 = arith.mulf %196, %193 : vector<4x512xf32>
    %198 = math.tanh %197 : vector<4x512xf32>
    %cst_64 = arith.constant 1.000000e+00 : f32
    %199 = vector.broadcast %cst_64 : f32 to vector<4x512xf32>
    %200 = arith.addf %199, %198 : vector<4x512xf32>
    %201 = arith.mulf %195, %200 : vector<4x512xf32>
    %c0_65 = arith.constant 0 : index
    %c0_66 = arith.constant 0 : index
    %c0_67 = arith.constant 0 : index
    %202 = vector.load %arg8[%c0_65, %c0_66, %c0_67] : memref<1x512x128xbf16, #tpu.memory_space<vmem>>, vector<1x512x128xbf16>
    %203 = vector.shape_cast %202 : vector<1x512x128xbf16> to vector<512x128xbf16>
    %204 = arith.truncf %201 : vector<4x512xf32> to vector<4x512xbf16>
    %cst_68 = arith.constant dense<0.000000e+00> : vector<4x128xf32>
    %205 = tpu.matmul %204, %203, %cst_68 {dimension_numbers = #tpu.dot_dimension_numbers<[1], [0], [0], [1], [0, 0, 1, 1], [], []>} : vector<4x512xbf16>, vector<512x128xbf16>, vector<4x128xf32> -> vector<4x128xf32>
    %206 = arith.addf %184, %205 : vector<4x128xf32>
    %c0_69 = arith.constant 0 : index
    %c0_70 = arith.constant 0 : index
    %c0_71 = arith.constant 0 : index
    %207 = vector.load %arg9[%c0_69, %c0_70, %c0_71] : memref<1x1x128xbf16, #tpu.memory_space<vmem>>, vector<1x1x128xbf16>
    %208 = vector.shape_cast %207 : vector<1x1x128xbf16> to vector<1x128xbf16>
    %209 = arith.extf %208 : vector<1x128xbf16> to vector<1x128xf32>
    %210 = vector.broadcast %209 : vector<1x128xf32> to vector<4x128xf32>
    %211 = arith.addf %206, %210 : vector<4x128xf32>
    %212 = arith.truncf %211 : vector<4x128xf32> to vector<4x128xbf16>
    %c0_72 = arith.constant 0 : index
    %c0_73 = arith.constant 0 : index
    %c0_74 = arith.constant 0 : index
    %213 = vector.load %arg13[%c0_72, %c0_73, %c0_74] : memref<1x4x128xbf16, #tpu.memory_space<vmem>>, vector<1x4x128xbf16>
    %214 = vector.shape_cast %213 : vector<1x4x128xbf16> to vector<4x128xbf16>
    %215 = vector.shape_cast %212 : vector<4x128xbf16> to vector<1x4x128xbf16>
    tpu.vector_store %arg13[%c0_72, %c0_73, %c0_74], %215 {strides = array<i32>} : memref<1x4x128xbf16, #tpu.memory_space<vmem>>, vector<1x4x128xbf16>,
    %c0_75 = arith.constant 0 : index
    %c0_76 = arith.constant 0 : index
    %c0_77 = arith.constant 0 : index
    %216 = vector.load %arg10[%c0_75, %c0_76, %c0_77] : memref<1x4x128xbf16, #tpu.memory_space<vmem>>, vector<1x4x128xbf16>
    %217 = vector.shape_cast %216 : vector<1x4x128xbf16> to vector<4x128xbf16>
    %c0_78 = arith.constant 0 : index
    %c0_79 = arith.constant 0 : index
    %c0_80 = arith.constant 0 : index
    %218 = vector.load %arg11[%c0_78, %c0_79, %c0_80] : memref<1x128x128xbf16, #tpu.memory_space<vmem>>, vector<1x128x128xbf16>
    %219 = vector.shape_cast %218 : vector<1x128x128xbf16> to vector<128x128xbf16>
    %cst_81 = arith.constant dense<0.000000e+00> : vector<4x128xf32>
    %220 = tpu.matmul %217, %219, %cst_81 {dimension_numbers = #tpu.dot_dimension_numbers<[1], [0], [0], [1], [0, 0, 1, 1], [], []>} : vector<4x128xbf16>, vector<128x128xbf16>, vector<4x128xf32> -> vector<4x128xf32>
    %c0_82 = arith.constant 0 : index
    %c0_83 = arith.constant 0 : index
    %c0_84 = arith.constant 0 : index
    %221 = vector.load %arg12[%c0_82, %c0_83, %c0_84] : memref<1x1x128xbf16, #tpu.memory_space<vmem>>, vector<1x1x128xbf16>
    %222 = vector.shape_cast %221 : vector<1x1x128xbf16> to vector<1x128xbf16>
    %223 = arith.extf %222 : vector<1x128xbf16> to vector<1x128xf32>
    %224 = vector.broadcast %223 : vector<1x128xf32> to vector<4x128xf32>
    %225 = arith.addf %220, %224 : vector<4x128xf32>
    %226 = arith.truncf %225 : vector<4x128xf32> to vector<4x128xbf16>
    %c0_85 = arith.constant 0 : index
    %c0_86 = arith.constant 0 : index
    %c0_87 = arith.constant 0 : index
    %227 = vector.load %arg14[%c0_85, %c0_86, %c0_87] : memref<1x4x128xbf16, #tpu.memory_space<vmem>>, vector<1x4x128xbf16>
    %228 = vector.shape_cast %227 : vector<1x4x128xbf16> to vector<4x128xbf16>
    %229 = vector.shape_cast %226 : vector<4x128xbf16> to vector<1x4x128xbf16>
    tpu.vector_store %arg14[%c0_85, %c0_86, %c0_87], %229 {strides = array<i32>} : memref<1x4x128xbf16, #tpu.memory_space<vmem>>, vector<1x4x128xbf16>,
    return
  }
  func.func @transform_0(%arg0: i32) -> (i32, i32, i32) {
    %c0_i32 = arith.constant 0 : i32
    %c0_i32_0 = arith.constant 0 : i32
    %c0_i32_1 = arith.constant 0 : i32
    return %arg0, %c0_i32, %c0_i32_0 : i32, i32, i32
  }
  func.func @transform_1(%arg0: i32) -> (i32, i32, i32) {
    %c0_i32 = arith.constant 0 : i32
    %c0_i32_0 = arith.constant 0 : i32
    %c0_i32_1 = arith.constant 0 : i32
    return %arg0, %c0_i32, %c0_i32_0 : i32, i32, i32
  }
  func.func @transform_2(%arg0: i32) -> (i32, i32, i32) {
    %c0_i32 = arith.constant 0 : i32
    %c0_i32_0 = arith.constant 0 : i32
    %c0_i32_1 = arith.constant 0 : i32
    return %arg0, %c0_i32, %c0_i32_0 : i32, i32, i32
  }
  func.func @transform_3(%arg0: i32) -> (i32, i32, i32) {
    %c0_i32 = arith.constant 0 : i32
    %c0_i32_0 = arith.constant 0 : i32
    %c0_i32_1 = arith.constant 0 : i32
    return %arg0, %c0_i32, %c0_i32_0 : i32, i32, i32
  }
  func.func @transform_4(%arg0: i32) -> (i32, i32, i32) {
    %c0_i32 = arith.constant 0 : i32
    %c0_i32_0 = arith.constant 0 : i32
    %c0_i32_1 = arith.constant 0 : i32
    return %arg0, %c0_i32, %c0_i32_0 : i32, i32, i32
  }
  func.func @transform_5(%arg0: i32) -> (i32, i32, i32) {
    %c0_i32 = arith.constant 0 : i32
    %c0_i32_0 = arith.constant 0 : i32
    %c0_i32_1 = arith.constant 0 : i32
    return %arg0, %c0_i32, %c0_i32_0 : i32, i32, i32
  }
  func.func @transform_6(%arg0: i32) -> (i32, i32, i32) {
    %c0_i32 = arith.constant 0 : i32
    %c0_i32_0 = arith.constant 0 : i32
    %c0_i32_1 = arith.constant 0 : i32
    return %arg0, %c0_i32, %c0_i32_0 : i32, i32, i32
  }
  func.func @transform_7(%arg0: i32) -> (i32, i32, i32) {
    %c0_i32 = arith.constant 0 : i32
    %c0_i32_0 = arith.constant 0 : i32
    %c0_i32_1 = arith.constant 0 : i32
    return %arg0, %c0_i32, %c0_i32_0 : i32, i32, i32
  }
  func.func @transform_8(%arg0: i32) -> (i32, i32, i32) {
    %c0_i32 = arith.constant 0 : i32
    %c0_i32_0 = arith.constant 0 : i32
    %c0_i32_1 = arith.constant 0 : i32
    return %arg0, %c0_i32, %c0_i32_0 : i32, i32, i32
  }
  func.func @transform_9(%arg0: i32) -> (i32, i32, i32) {
    %c0_i32 = arith.constant 0 : i32
    %c0_i32_0 = arith.constant 0 : i32
    %c0_i32_1 = arith.constant 0 : i32
    return %arg0, %c0_i32, %c0_i32_0 : i32, i32, i32
  }
  func.func @transform_10(%arg0: i32) -> (i32, i32, i32) {
    %c0_i32 = arith.constant 0 : i32
    %c0_i32_0 = arith.constant 0 : i32
    %c0_i32_1 = arith.constant 0 : i32
    return %arg0, %c0_i32, %c0_i32_0 : i32, i32, i32
  }
  func.func @transform_11(%arg0: i32) -> (i32, i32, i32) {
    %c0_i32 = arith.constant 0 : i32
    %c0_i32_0 = arith.constant 0 : i32
    %c0_i32_1 = arith.constant 0 : i32
    return %arg0, %c0_i32, %c0_i32_0 : i32, i32, i32
  }
  func.func @transform_12(%arg0: i32) -> (i32, i32, i32) {
    %c0_i32 = arith.constant 0 : i32
    %c0_i32_0 = arith.constant 0 : i32
    %c0_i32_1 = arith.constant 0 : i32
    return %arg0, %c0_i32, %c0_i32_0 : i32, i32, i32
  }
  func.func @transform_13(%arg0: i32) -> (i32, i32, i32) {
    %c0_i32 = arith.constant 0 : i32
    %c0_i32_0 = arith.constant 0 : i32
    %c0_i32_1 = arith.constant 0 : i32
    return %arg0, %c0_i32, %c0_i32_0 : i32, i32, i32
  }
}

module attributes {stable_mosaic.version = 11 : i64} {
  func.func @_encoder_kernel(%arg0: i32, %arg1: memref<64x128xbf16, #tpu.memory_space<vmem>>, %arg2: memref<1x8x128xbf16, #tpu.memory_space<vmem>>, %arg3: memref<1x1x128xbf16, #tpu.memory_space<vmem>>, %arg4: memref<1x1x128xbf16, #tpu.memory_space<vmem>>, %arg5: memref<1x128x384xbf16, #tpu.memory_space<vmem>>, %arg6: memref<1x1x384xbf16, #tpu.memory_space<vmem>>, %arg7: memref<1x128x128xbf16, #tpu.memory_space<vmem>>, %arg8: memref<1x1x128xbf16, #tpu.memory_space<vmem>>, %arg9: memref<1x1x128xbf16, #tpu.memory_space<vmem>>, %arg10: memref<1x1x128xbf16, #tpu.memory_space<vmem>>, %arg11: memref<1x128x512xbf16, #tpu.memory_space<vmem>>, %arg12: memref<1x1x512xbf16, #tpu.memory_space<vmem>>, %arg13: memref<1x512x128xbf16, #tpu.memory_space<vmem>>, %arg14: memref<1x1x128xbf16, #tpu.memory_space<vmem>>, %arg15: memref<64x128xbf16, #tpu.memory_space<vmem>>) attributes {dimension_semantics = [#tpu.dimension_semantics<arbitrary>], iteration_bounds = array<i64: 2>, scalar_prefetch = 0 : i64, scratch_operands = 0 : i64, tpu.core_type = #tpu.core_type<tc>, window_params = [{pipeline_mode = #tpu.pipeline_mode<synchronous>, transform_indices = @transform_0, window_bounds = array<i64: 64, 128>}, {transform_indices = @transform_1, window_bounds = array<i64: 1, 8, 128>}, {transform_indices = @transform_2, window_bounds = array<i64: 1, 1, 128>}, {transform_indices = @transform_3, window_bounds = array<i64: 1, 1, 128>}, {transform_indices = @transform_4, window_bounds = array<i64: 1, 128, 384>}, {transform_indices = @transform_5, window_bounds = array<i64: 1, 1, 384>}, {transform_indices = @transform_6, window_bounds = array<i64: 1, 128, 128>}, {transform_indices = @transform_7, window_bounds = array<i64: 1, 1, 128>}, {transform_indices = @transform_8, window_bounds = array<i64: 1, 1, 128>}, {transform_indices = @transform_9, window_bounds = array<i64: 1, 1, 128>}, {transform_indices = @transform_10, window_bounds = array<i64: 1, 128, 512>}, {transform_indices = @transform_11, window_bounds = array<i64: 1, 1, 512>}, {transform_indices = @transform_12, window_bounds = array<i64: 1, 512, 128>}, {transform_indices = @transform_13, window_bounds = array<i64: 1, 1, 128>}, {pipeline_mode = #tpu.pipeline_mode<synchronous>, transform_indices = @transform_14, window_bounds = array<i64: 64, 128>}]} {
    %c0_i32 = arith.constant 0 : i32
    %0 = arith.cmpi eq, %arg0, %c0_i32 : i32
    %1 = arith.extui %0 : i1 to i32
    %c0_i32_0 = arith.constant 0 : i32
    %2 = arith.cmpi ne, %1, %c0_i32_0 : i32
    scf.if %2 {
      %c0_138 = arith.constant 0 : index
      %c0_139 = arith.constant 0 : index
      %451 = vector.load %arg1[%c0_138, %c0_139] : memref<64x128xbf16, #tpu.memory_space<vmem>>, vector<64x128xbf16>
      %c0_140 = arith.constant 0 : index
      %c0_141 = arith.constant 0 : index
      %452 = vector.load %arg15[%c0_140, %c0_141] : memref<64x128xbf16, #tpu.memory_space<vmem>>, vector<64x128xbf16>
      tpu.vector_store %arg15[%c0_140, %c0_141], %451 {strides = array<i32>} : memref<64x128xbf16, #tpu.memory_space<vmem>>, vector<64x128xbf16>,
    } else {
    }
    %c0_i32_1 = arith.constant 0 : i32
    %3 = arith.cmpi sgt, %arg0, %c0_i32_1 : i32
    %c1_i32 = arith.constant 1 : i32
    %4 = arith.cmpi sle, %arg0, %c1_i32 : i32
    %5 = arith.andi %3, %4 : i1
    %6 = arith.extui %5 : i1 to i32
    %c0_i32_2 = arith.constant 0 : i32
    %7 = arith.cmpi ne, %6, %c0_i32_2 : i32
    scf.if %7 {
      %c0_138 = arith.constant 0 : index
      %c0_139 = arith.constant 0 : index
      %c0_140 = arith.constant 0 : index
      %451 = vector.load %arg2[%c0_138, %c0_139, %c0_140] : memref<1x8x128xbf16, #tpu.memory_space<vmem>>, vector<1x8x128xbf16>
      %452 = vector.shape_cast %451 : vector<1x8x128xbf16> to vector<8x128xbf16>
      %c1 = arith.constant 1 : index
      %c0_141 = arith.constant 0 : index
      %453 = vector.load %arg15[%c1, %c0_141] : memref<64x128xbf16, #tpu.memory_space<vmem>>, vector<8x128xbf16>
      tpu.vector_store %arg15[%c1, %c0_141], %452 {strides = array<i32>} : memref<64x128xbf16, #tpu.memory_space<vmem>>, vector<8x128xbf16>,
      %c17 = arith.constant 17 : index
      %c0_142 = arith.constant 0 : index
      %454 = vector.load %arg15[%c17, %c0_142] : memref<64x128xbf16, #tpu.memory_space<vmem>>, vector<8x128xbf16>
      tpu.vector_store %arg15[%c17, %c0_142], %452 {strides = array<i32>} : memref<64x128xbf16, #tpu.memory_space<vmem>>, vector<8x128xbf16>,
      %c33 = arith.constant 33 : index
      %c0_143 = arith.constant 0 : index
      %455 = vector.load %arg15[%c33, %c0_143] : memref<64x128xbf16, #tpu.memory_space<vmem>>, vector<8x128xbf16>
      tpu.vector_store %arg15[%c33, %c0_143], %452 {strides = array<i32>} : memref<64x128xbf16, #tpu.memory_space<vmem>>, vector<8x128xbf16>,
      %c49 = arith.constant 49 : index
      %c0_144 = arith.constant 0 : index
      %456 = vector.load %arg15[%c49, %c0_144] : memref<64x128xbf16, #tpu.memory_space<vmem>>, vector<8x128xbf16>
      tpu.vector_store %arg15[%c49, %c0_144], %452 {strides = array<i32>} : memref<64x128xbf16, #tpu.memory_space<vmem>>, vector<8x128xbf16>,
    } else {
    }
    %c0 = arith.constant 0 : index
    %c0_3 = arith.constant 0 : index
    %8 = vector.load %arg15[%c0, %c0_3] : memref<64x128xbf16, #tpu.memory_space<vmem>>, vector<64x128xbf16>
    %9 = arith.extf %8 : vector<64x128xbf16> to vector<64x128xf32>
    %c0_4 = arith.constant 0 : index
    %c0_5 = arith.constant 0 : index
    %c0_6 = arith.constant 0 : index
    %10 = vector.load %arg3[%c0_4, %c0_5, %c0_6] : memref<1x1x128xbf16, #tpu.memory_space<vmem>>, vector<1x1x128xbf16>
    %11 = vector.shape_cast %10 : vector<1x1x128xbf16> to vector<1x128xbf16>
    %c0_7 = arith.constant 0 : index
    %c0_8 = arith.constant 0 : index
    %c0_9 = arith.constant 0 : index
    %12 = vector.load %arg4[%c0_7, %c0_8, %c0_9] : memref<1x1x128xbf16, #tpu.memory_space<vmem>>, vector<1x1x128xbf16>
    %13 = vector.shape_cast %12 : vector<1x1x128xbf16> to vector<1x128xbf16>
    %14 = arith.extf %11 : vector<1x128xbf16> to vector<1x128xf32>
    %15 = arith.extf %13 : vector<1x128xbf16> to vector<1x128xf32>
    %cst = arith.constant dense<0.000000e+00> : vector<64xf32>
    %16 = vector.multi_reduction <add>, %9, %cst [1] : vector<64x128xf32> to vector<64xf32>
    %17 = vector.shape_cast %16 : vector<64xf32> to vector<64x1xf32>
    %cst_10 = arith.constant 1.280000e+02 : f32
    %18 = vector.broadcast %cst_10 : f32 to vector<64x1xf32>
    %19 = arith.divf %17, %18 : vector<64x1xf32>
    %20 = vector.broadcast %19 : vector<64x1xf32> to vector<64x128xf32>
    %21 = arith.subf %9, %20 : vector<64x128xf32>
    %22 = arith.mulf %21, %21 : vector<64x128xf32>
    %cst_11 = arith.constant dense<0.000000e+00> : vector<64xf32>
    %23 = vector.multi_reduction <add>, %22, %cst_11 [1] : vector<64x128xf32> to vector<64xf32>
    %24 = vector.shape_cast %23 : vector<64xf32> to vector<64x1xf32>
    %cst_12 = arith.constant 1.280000e+02 : f32
    %25 = vector.broadcast %cst_12 : f32 to vector<64x1xf32>
    %26 = arith.divf %24, %25 : vector<64x1xf32>
    %cst_13 = arith.constant 9.99999974E-6 : f32
    %27 = vector.broadcast %cst_13 : f32 to vector<64x1xf32>
    %28 = arith.addf %26, %27 : vector<64x1xf32>
    %29 = math.rsqrt %28 : vector<64x1xf32>
    %30 = vector.broadcast %29 : vector<64x1xf32> to vector<64x128xf32>
    %31 = arith.mulf %21, %30 : vector<64x128xf32>
    %32 = vector.broadcast %14 : vector<1x128xf32> to vector<64x128xf32>
    %33 = arith.mulf %31, %32 : vector<64x128xf32>
    %34 = vector.broadcast %15 : vector<1x128xf32> to vector<64x128xf32>
    %35 = arith.addf %33, %34 : vector<64x128xf32>
    %c0_14 = arith.constant 0 : index
    %c0_15 = arith.constant 0 : index
    %c0_16 = arith.constant 0 : index
    %36 = vector.load %arg5[%c0_14, %c0_15, %c0_16] : memref<1x128x384xbf16, #tpu.memory_space<vmem>>, vector<1x128x384xbf16>
    %37 = vector.shape_cast %36 : vector<1x128x384xbf16> to vector<128x384xbf16>
    %38 = arith.truncf %35 : vector<64x128xf32> to vector<64x128xbf16>
    %cst_17 = arith.constant dense<0.000000e+00> : vector<64x384xf32>
    %39 = tpu.matmul %38, %37, %cst_17 {dimension_numbers = #tpu.dot_dimension_numbers<[1], [0], [0], [1], [0, 0, 1, 1], [], []>} : vector<64x128xbf16>, vector<128x384xbf16>, vector<64x384xf32> -> vector<64x384xf32>
    %c0_18 = arith.constant 0 : index
    %c0_19 = arith.constant 0 : index
    %c0_20 = arith.constant 0 : index
    %40 = vector.load %arg6[%c0_18, %c0_19, %c0_20] : memref<1x1x384xbf16, #tpu.memory_space<vmem>>, vector<1x1x384xbf16>
    %41 = vector.shape_cast %40 : vector<1x1x384xbf16> to vector<1x384xbf16>
    %42 = arith.extf %41 : vector<1x384xbf16> to vector<1x384xf32>
    %43 = vector.broadcast %42 : vector<1x384xf32> to vector<64x384xf32>
    %44 = arith.addf %39, %43 : vector<64x384xf32>
    %45 = vector.extract_strided_slice %44 {offsets = [0, 0], sizes = [16, 384], strides = [1, 1]} : vector<64x384xf32> to vector<16x384xf32>
    %46 = vector.extract_strided_slice %45 {offsets = [0, 0], sizes = [16, 128], strides = [1, 1]} : vector<16x384xf32> to vector<16x128xf32>
    %47 = vector.extract_strided_slice %45 {offsets = [0, 128], sizes = [16, 128], strides = [1, 1]} : vector<16x384xf32> to vector<16x128xf32>
    %48 = vector.extract_strided_slice %45 {offsets = [0, 256], sizes = [16, 128], strides = [1, 1]} : vector<16x384xf32> to vector<16x128xf32>
    %49 = vector.extract_strided_slice %46 {offsets = [0, 0], sizes = [16, 32], strides = [1, 1]} : vector<16x128xf32> to vector<16x32xf32>
    %50 = arith.truncf %49 : vector<16x32xf32> to vector<16x32xbf16>
    %51 = vector.extract_strided_slice %47 {offsets = [0, 0], sizes = [16, 32], strides = [1, 1]} : vector<16x128xf32> to vector<16x32xf32>
    %52 = arith.truncf %51 : vector<16x32xf32> to vector<16x32xbf16>
    %53 = vector.extract_strided_slice %48 {offsets = [0, 0], sizes = [16, 32], strides = [1, 1]} : vector<16x128xf32> to vector<16x32xf32>
    %54 = arith.truncf %53 : vector<16x32xf32> to vector<16x32xbf16>
    %cst_21 = arith.constant dense<0.000000e+00> : vector<16x16xf32>
    %55 = tpu.matmul %50, %52, %cst_21 {dimension_numbers = #tpu.dot_dimension_numbers<[1], [1], [0], [0], [0, 0, 1, 0], [], []>} : vector<16x32xbf16>, vector<16x32xbf16>, vector<16x16xf32> -> vector<16x16xf32>
    %cst_22 = arith.constant 0.176776692 : f32
    %56 = vector.broadcast %cst_22 : f32 to vector<16x16xf32>
    %57 = arith.mulf %55, %56 : vector<16x16xf32>
    %cst_23 = arith.constant dense<0xFF800000> : vector<16xf32>
    %58 = vector.multi_reduction <maximumf>, %57, %cst_23 [1] : vector<16x16xf32> to vector<16xf32>
    %59 = vector.shape_cast %58 : vector<16xf32> to vector<16x1xf32>
    %60 = vector.broadcast %59 : vector<16x1xf32> to vector<16x16xf32>
    %61 = arith.subf %57, %60 : vector<16x16xf32>
    %62 = math.exp %61 : vector<16x16xf32>
    %cst_24 = arith.constant dense<0.000000e+00> : vector<16xf32>
    %63 = vector.multi_reduction <add>, %62, %cst_24 [1] : vector<16x16xf32> to vector<16xf32>
    %64 = vector.shape_cast %63 : vector<16xf32> to vector<16x1xf32>
    %65 = vector.broadcast %64 : vector<16x1xf32> to vector<16x16xf32>
    %66 = arith.divf %62, %65 : vector<16x16xf32>
    %67 = arith.truncf %66 : vector<16x16xf32> to vector<16x16xbf16>
    %cst_25 = arith.constant dense<0.000000e+00> : vector<16x32xf32>
    %68 = tpu.matmul %67, %54, %cst_25 {dimension_numbers = #tpu.dot_dimension_numbers<[1], [0], [0], [1], [0, 0, 1, 1], [], []>} : vector<16x16xbf16>, vector<16x32xbf16>, vector<16x32xf32> -> vector<16x32xf32>
    %69 = vector.extract_strided_slice %46 {offsets = [0, 32], sizes = [16, 32], strides = [1, 1]} : vector<16x128xf32> to vector<16x32xf32>
    %70 = arith.truncf %69 : vector<16x32xf32> to vector<16x32xbf16>
    %71 = vector.extract_strided_slice %47 {offsets = [0, 32], sizes = [16, 32], strides = [1, 1]} : vector<16x128xf32> to vector<16x32xf32>
    %72 = arith.truncf %71 : vector<16x32xf32> to vector<16x32xbf16>
    %73 = vector.extract_strided_slice %48 {offsets = [0, 32], sizes = [16, 32], strides = [1, 1]} : vector<16x128xf32> to vector<16x32xf32>
    %74 = arith.truncf %73 : vector<16x32xf32> to vector<16x32xbf16>
    %cst_26 = arith.constant dense<0.000000e+00> : vector<16x16xf32>
    %75 = tpu.matmul %70, %72, %cst_26 {dimension_numbers = #tpu.dot_dimension_numbers<[1], [1], [0], [0], [0, 0, 1, 0], [], []>} : vector<16x32xbf16>, vector<16x32xbf16>, vector<16x16xf32> -> vector<16x16xf32>
    %cst_27 = arith.constant 0.176776692 : f32
    %76 = vector.broadcast %cst_27 : f32 to vector<16x16xf32>
    %77 = arith.mulf %75, %76 : vector<16x16xf32>
    %cst_28 = arith.constant dense<0xFF800000> : vector<16xf32>
    %78 = vector.multi_reduction <maximumf>, %77, %cst_28 [1] : vector<16x16xf32> to vector<16xf32>
    %79 = vector.shape_cast %78 : vector<16xf32> to vector<16x1xf32>
    %80 = vector.broadcast %79 : vector<16x1xf32> to vector<16x16xf32>
    %81 = arith.subf %77, %80 : vector<16x16xf32>
    %82 = math.exp %81 : vector<16x16xf32>
    %cst_29 = arith.constant dense<0.000000e+00> : vector<16xf32>
    %83 = vector.multi_reduction <add>, %82, %cst_29 [1] : vector<16x16xf32> to vector<16xf32>
    %84 = vector.shape_cast %83 : vector<16xf32> to vector<16x1xf32>
    %85 = vector.broadcast %84 : vector<16x1xf32> to vector<16x16xf32>
    %86 = arith.divf %82, %85 : vector<16x16xf32>
    %87 = arith.truncf %86 : vector<16x16xf32> to vector<16x16xbf16>
    %cst_30 = arith.constant dense<0.000000e+00> : vector<16x32xf32>
    %88 = tpu.matmul %87, %74, %cst_30 {dimension_numbers = #tpu.dot_dimension_numbers<[1], [0], [0], [1], [0, 0, 1, 1], [], []>} : vector<16x16xbf16>, vector<16x32xbf16>, vector<16x32xf32> -> vector<16x32xf32>
    %89 = vector.extract_strided_slice %46 {offsets = [0, 64], sizes = [16, 32], strides = [1, 1]} : vector<16x128xf32> to vector<16x32xf32>
    %90 = arith.truncf %89 : vector<16x32xf32> to vector<16x32xbf16>
    %91 = vector.extract_strided_slice %47 {offsets = [0, 64], sizes = [16, 32], strides = [1, 1]} : vector<16x128xf32> to vector<16x32xf32>
    %92 = arith.truncf %91 : vector<16x32xf32> to vector<16x32xbf16>
    %93 = vector.extract_strided_slice %48 {offsets = [0, 64], sizes = [16, 32], strides = [1, 1]} : vector<16x128xf32> to vector<16x32xf32>
    %94 = arith.truncf %93 : vector<16x32xf32> to vector<16x32xbf16>
    %cst_31 = arith.constant dense<0.000000e+00> : vector<16x16xf32>
    %95 = tpu.matmul %90, %92, %cst_31 {dimension_numbers = #tpu.dot_dimension_numbers<[1], [1], [0], [0], [0, 0, 1, 0], [], []>} : vector<16x32xbf16>, vector<16x32xbf16>, vector<16x16xf32> -> vector<16x16xf32>
    %cst_32 = arith.constant 0.176776692 : f32
    %96 = vector.broadcast %cst_32 : f32 to vector<16x16xf32>
    %97 = arith.mulf %95, %96 : vector<16x16xf32>
    %cst_33 = arith.constant dense<0xFF800000> : vector<16xf32>
    %98 = vector.multi_reduction <maximumf>, %97, %cst_33 [1] : vector<16x16xf32> to vector<16xf32>
    %99 = vector.shape_cast %98 : vector<16xf32> to vector<16x1xf32>
    %100 = vector.broadcast %99 : vector<16x1xf32> to vector<16x16xf32>
    %101 = arith.subf %97, %100 : vector<16x16xf32>
    %102 = math.exp %101 : vector<16x16xf32>
    %cst_34 = arith.constant dense<0.000000e+00> : vector<16xf32>
    %103 = vector.multi_reduction <add>, %102, %cst_34 [1] : vector<16x16xf32> to vector<16xf32>
    %104 = vector.shape_cast %103 : vector<16xf32> to vector<16x1xf32>
    %105 = vector.broadcast %104 : vector<16x1xf32> to vector<16x16xf32>
    %106 = arith.divf %102, %105 : vector<16x16xf32>
    %107 = arith.truncf %106 : vector<16x16xf32> to vector<16x16xbf16>
    %cst_35 = arith.constant dense<0.000000e+00> : vector<16x32xf32>
    %108 = tpu.matmul %107, %94, %cst_35 {dimension_numbers = #tpu.dot_dimension_numbers<[1], [0], [0], [1], [0, 0, 1, 1], [], []>} : vector<16x16xbf16>, vector<16x32xbf16>, vector<16x32xf32> -> vector<16x32xf32>
    %109 = vector.extract_strided_slice %46 {offsets = [0, 96], sizes = [16, 32], strides = [1, 1]} : vector<16x128xf32> to vector<16x32xf32>
    %110 = arith.truncf %109 : vector<16x32xf32> to vector<16x32xbf16>
    %111 = vector.extract_strided_slice %47 {offsets = [0, 96], sizes = [16, 32], strides = [1, 1]} : vector<16x128xf32> to vector<16x32xf32>
    %112 = arith.truncf %111 : vector<16x32xf32> to vector<16x32xbf16>
    %113 = vector.extract_strided_slice %48 {offsets = [0, 96], sizes = [16, 32], strides = [1, 1]} : vector<16x128xf32> to vector<16x32xf32>
    %114 = arith.truncf %113 : vector<16x32xf32> to vector<16x32xbf16>
    %cst_36 = arith.constant dense<0.000000e+00> : vector<16x16xf32>
    %115 = tpu.matmul %110, %112, %cst_36 {dimension_numbers = #tpu.dot_dimension_numbers<[1], [1], [0], [0], [0, 0, 1, 0], [], []>} : vector<16x32xbf16>, vector<16x32xbf16>, vector<16x16xf32> -> vector<16x16xf32>
    %cst_37 = arith.constant 0.176776692 : f32
    %116 = vector.broadcast %cst_37 : f32 to vector<16x16xf32>
    %117 = arith.mulf %115, %116 : vector<16x16xf32>
    %cst_38 = arith.constant dense<0xFF800000> : vector<16xf32>
    %118 = vector.multi_reduction <maximumf>, %117, %cst_38 [1] : vector<16x16xf32> to vector<16xf32>
    %119 = vector.shape_cast %118 : vector<16xf32> to vector<16x1xf32>
    %120 = vector.broadcast %119 : vector<16x1xf32> to vector<16x16xf32>
    %121 = arith.subf %117, %120 : vector<16x16xf32>
    %122 = math.exp %121 : vector<16x16xf32>
    %cst_39 = arith.constant dense<0.000000e+00> : vector<16xf32>
    %123 = vector.multi_reduction <add>, %122, %cst_39 [1] : vector<16x16xf32> to vector<16xf32>
    %124 = vector.shape_cast %123 : vector<16xf32> to vector<16x1xf32>
    %125 = vector.broadcast %124 : vector<16x1xf32> to vector<16x16xf32>
    %126 = arith.divf %122, %125 : vector<16x16xf32>
    %127 = arith.truncf %126 : vector<16x16xf32> to vector<16x16xbf16>
    %cst_40 = arith.constant dense<0.000000e+00> : vector<16x32xf32>
    %128 = tpu.matmul %127, %114, %cst_40 {dimension_numbers = #tpu.dot_dimension_numbers<[1], [0], [0], [1], [0, 0, 1, 1], [], []>} : vector<16x16xbf16>, vector<16x32xbf16>, vector<16x32xf32> -> vector<16x32xf32>
    %129 = tpu.concatenate %68, %88, %108, %128 in 1 : vector<16x32xf32>, vector<16x32xf32>, vector<16x32xf32>, vector<16x32xf32> -> vector<16x128xf32>
    %130 = vector.extract_strided_slice %44 {offsets = [16, 0], sizes = [16, 384], strides = [1, 1]} : vector<64x384xf32> to vector<16x384xf32>
    %131 = vector.extract_strided_slice %130 {offsets = [0, 0], sizes = [16, 128], strides = [1, 1]} : vector<16x384xf32> to vector<16x128xf32>
    %132 = vector.extract_strided_slice %130 {offsets = [0, 128], sizes = [16, 128], strides = [1, 1]} : vector<16x384xf32> to vector<16x128xf32>
    %133 = vector.extract_strided_slice %130 {offsets = [0, 256], sizes = [16, 128], strides = [1, 1]} : vector<16x384xf32> to vector<16x128xf32>
    %134 = vector.extract_strided_slice %131 {offsets = [0, 0], sizes = [16, 32], strides = [1, 1]} : vector<16x128xf32> to vector<16x32xf32>
    %135 = arith.truncf %134 : vector<16x32xf32> to vector<16x32xbf16>
    %136 = vector.extract_strided_slice %132 {offsets = [0, 0], sizes = [16, 32], strides = [1, 1]} : vector<16x128xf32> to vector<16x32xf32>
    %137 = arith.truncf %136 : vector<16x32xf32> to vector<16x32xbf16>
    %138 = vector.extract_strided_slice %133 {offsets = [0, 0], sizes = [16, 32], strides = [1, 1]} : vector<16x128xf32> to vector<16x32xf32>
    %139 = arith.truncf %138 : vector<16x32xf32> to vector<16x32xbf16>
    %cst_41 = arith.constant dense<0.000000e+00> : vector<16x16xf32>
    %140 = tpu.matmul %135, %137, %cst_41 {dimension_numbers = #tpu.dot_dimension_numbers<[1], [1], [0], [0], [0, 0, 1, 0], [], []>} : vector<16x32xbf16>, vector<16x32xbf16>, vector<16x16xf32> -> vector<16x16xf32>
    %cst_42 = arith.constant 0.176776692 : f32
    %141 = vector.broadcast %cst_42 : f32 to vector<16x16xf32>
    %142 = arith.mulf %140, %141 : vector<16x16xf32>
    %cst_43 = arith.constant dense<0xFF800000> : vector<16xf32>
    %143 = vector.multi_reduction <maximumf>, %142, %cst_43 [1] : vector<16x16xf32> to vector<16xf32>
    %144 = vector.shape_cast %143 : vector<16xf32> to vector<16x1xf32>
    %145 = vector.broadcast %144 : vector<16x1xf32> to vector<16x16xf32>
    %146 = arith.subf %142, %145 : vector<16x16xf32>
    %147 = math.exp %146 : vector<16x16xf32>
    %cst_44 = arith.constant dense<0.000000e+00> : vector<16xf32>
    %148 = vector.multi_reduction <add>, %147, %cst_44 [1] : vector<16x16xf32> to vector<16xf32>
    %149 = vector.shape_cast %148 : vector<16xf32> to vector<16x1xf32>
    %150 = vector.broadcast %149 : vector<16x1xf32> to vector<16x16xf32>
    %151 = arith.divf %147, %150 : vector<16x16xf32>
    %152 = arith.truncf %151 : vector<16x16xf32> to vector<16x16xbf16>
    %cst_45 = arith.constant dense<0.000000e+00> : vector<16x32xf32>
    %153 = tpu.matmul %152, %139, %cst_45 {dimension_numbers = #tpu.dot_dimension_numbers<[1], [0], [0], [1], [0, 0, 1, 1], [], []>} : vector<16x16xbf16>, vector<16x32xbf16>, vector<16x32xf32> -> vector<16x32xf32>
    %154 = vector.extract_strided_slice %131 {offsets = [0, 32], sizes = [16, 32], strides = [1, 1]} : vector<16x128xf32> to vector<16x32xf32>
    %155 = arith.truncf %154 : vector<16x32xf32> to vector<16x32xbf16>
    %156 = vector.extract_strided_slice %132 {offsets = [0, 32], sizes = [16, 32], strides = [1, 1]} : vector<16x128xf32> to vector<16x32xf32>
    %157 = arith.truncf %156 : vector<16x32xf32> to vector<16x32xbf16>
    %158 = vector.extract_strided_slice %133 {offsets = [0, 32], sizes = [16, 32], strides = [1, 1]} : vector<16x128xf32> to vector<16x32xf32>
    %159 = arith.truncf %158 : vector<16x32xf32> to vector<16x32xbf16>
    %cst_46 = arith.constant dense<0.000000e+00> : vector<16x16xf32>
    %160 = tpu.matmul %155, %157, %cst_46 {dimension_numbers = #tpu.dot_dimension_numbers<[1], [1], [0], [0], [0, 0, 1, 0], [], []>} : vector<16x32xbf16>, vector<16x32xbf16>, vector<16x16xf32> -> vector<16x16xf32>
    %cst_47 = arith.constant 0.176776692 : f32
    %161 = vector.broadcast %cst_47 : f32 to vector<16x16xf32>
    %162 = arith.mulf %160, %161 : vector<16x16xf32>
    %cst_48 = arith.constant dense<0xFF800000> : vector<16xf32>
    %163 = vector.multi_reduction <maximumf>, %162, %cst_48 [1] : vector<16x16xf32> to vector<16xf32>
    %164 = vector.shape_cast %163 : vector<16xf32> to vector<16x1xf32>
    %165 = vector.broadcast %164 : vector<16x1xf32> to vector<16x16xf32>
    %166 = arith.subf %162, %165 : vector<16x16xf32>
    %167 = math.exp %166 : vector<16x16xf32>
    %cst_49 = arith.constant dense<0.000000e+00> : vector<16xf32>
    %168 = vector.multi_reduction <add>, %167, %cst_49 [1] : vector<16x16xf32> to vector<16xf32>
    %169 = vector.shape_cast %168 : vector<16xf32> to vector<16x1xf32>
    %170 = vector.broadcast %169 : vector<16x1xf32> to vector<16x16xf32>
    %171 = arith.divf %167, %170 : vector<16x16xf32>
    %172 = arith.truncf %171 : vector<16x16xf32> to vector<16x16xbf16>
    %cst_50 = arith.constant dense<0.000000e+00> : vector<16x32xf32>
    %173 = tpu.matmul %172, %159, %cst_50 {dimension_numbers = #tpu.dot_dimension_numbers<[1], [0], [0], [1], [0, 0, 1, 1], [], []>} : vector<16x16xbf16>, vector<16x32xbf16>, vector<16x32xf32> -> vector<16x32xf32>
    %174 = vector.extract_strided_slice %131 {offsets = [0, 64], sizes = [16, 32], strides = [1, 1]} : vector<16x128xf32> to vector<16x32xf32>
    %175 = arith.truncf %174 : vector<16x32xf32> to vector<16x32xbf16>
    %176 = vector.extract_strided_slice %132 {offsets = [0, 64], sizes = [16, 32], strides = [1, 1]} : vector<16x128xf32> to vector<16x32xf32>
    %177 = arith.truncf %176 : vector<16x32xf32> to vector<16x32xbf16>
    %178 = vector.extract_strided_slice %133 {offsets = [0, 64], sizes = [16, 32], strides = [1, 1]} : vector<16x128xf32> to vector<16x32xf32>
    %179 = arith.truncf %178 : vector<16x32xf32> to vector<16x32xbf16>
    %cst_51 = arith.constant dense<0.000000e+00> : vector<16x16xf32>
    %180 = tpu.matmul %175, %177, %cst_51 {dimension_numbers = #tpu.dot_dimension_numbers<[1], [1], [0], [0], [0, 0, 1, 0], [], []>} : vector<16x32xbf16>, vector<16x32xbf16>, vector<16x16xf32> -> vector<16x16xf32>
    %cst_52 = arith.constant 0.176776692 : f32
    %181 = vector.broadcast %cst_52 : f32 to vector<16x16xf32>
    %182 = arith.mulf %180, %181 : vector<16x16xf32>
    %cst_53 = arith.constant dense<0xFF800000> : vector<16xf32>
    %183 = vector.multi_reduction <maximumf>, %182, %cst_53 [1] : vector<16x16xf32> to vector<16xf32>
    %184 = vector.shape_cast %183 : vector<16xf32> to vector<16x1xf32>
    %185 = vector.broadcast %184 : vector<16x1xf32> to vector<16x16xf32>
    %186 = arith.subf %182, %185 : vector<16x16xf32>
    %187 = math.exp %186 : vector<16x16xf32>
    %cst_54 = arith.constant dense<0.000000e+00> : vector<16xf32>
    %188 = vector.multi_reduction <add>, %187, %cst_54 [1] : vector<16x16xf32> to vector<16xf32>
    %189 = vector.shape_cast %188 : vector<16xf32> to vector<16x1xf32>
    %190 = vector.broadcast %189 : vector<16x1xf32> to vector<16x16xf32>
    %191 = arith.divf %187, %190 : vector<16x16xf32>
    %192 = arith.truncf %191 : vector<16x16xf32> to vector<16x16xbf16>
    %cst_55 = arith.constant dense<0.000000e+00> : vector<16x32xf32>
    %193 = tpu.matmul %192, %179, %cst_55 {dimension_numbers = #tpu.dot_dimension_numbers<[1], [0], [0], [1], [0, 0, 1, 1], [], []>} : vector<16x16xbf16>, vector<16x32xbf16>, vector<16x32xf32> -> vector<16x32xf32>
    %194 = vector.extract_strided_slice %131 {offsets = [0, 96], sizes = [16, 32], strides = [1, 1]} : vector<16x128xf32> to vector<16x32xf32>
    %195 = arith.truncf %194 : vector<16x32xf32> to vector<16x32xbf16>
    %196 = vector.extract_strided_slice %132 {offsets = [0, 96], sizes = [16, 32], strides = [1, 1]} : vector<16x128xf32> to vector<16x32xf32>
    %197 = arith.truncf %196 : vector<16x32xf32> to vector<16x32xbf16>
    %198 = vector.extract_strided_slice %133 {offsets = [0, 96], sizes = [16, 32], strides = [1, 1]} : vector<16x128xf32> to vector<16x32xf32>
    %199 = arith.truncf %198 : vector<16x32xf32> to vector<16x32xbf16>
    %cst_56 = arith.constant dense<0.000000e+00> : vector<16x16xf32>
    %200 = tpu.matmul %195, %197, %cst_56 {dimension_numbers = #tpu.dot_dimension_numbers<[1], [1], [0], [0], [0, 0, 1, 0], [], []>} : vector<16x32xbf16>, vector<16x32xbf16>, vector<16x16xf32> -> vector<16x16xf32>
    %cst_57 = arith.constant 0.176776692 : f32
    %201 = vector.broadcast %cst_57 : f32 to vector<16x16xf32>
    %202 = arith.mulf %200, %201 : vector<16x16xf32>
    %cst_58 = arith.constant dense<0xFF800000> : vector<16xf32>
    %203 = vector.multi_reduction <maximumf>, %202, %cst_58 [1] : vector<16x16xf32> to vector<16xf32>
    %204 = vector.shape_cast %203 : vector<16xf32> to vector<16x1xf32>
    %205 = vector.broadcast %204 : vector<16x1xf32> to vector<16x16xf32>
    %206 = arith.subf %202, %205 : vector<16x16xf32>
    %207 = math.exp %206 : vector<16x16xf32>
    %cst_59 = arith.constant dense<0.000000e+00> : vector<16xf32>
    %208 = vector.multi_reduction <add>, %207, %cst_59 [1] : vector<16x16xf32> to vector<16xf32>
    %209 = vector.shape_cast %208 : vector<16xf32> to vector<16x1xf32>
    %210 = vector.broadcast %209 : vector<16x1xf32> to vector<16x16xf32>
    %211 = arith.divf %207, %210 : vector<16x16xf32>
    %212 = arith.truncf %211 : vector<16x16xf32> to vector<16x16xbf16>
    %cst_60 = arith.constant dense<0.000000e+00> : vector<16x32xf32>
    %213 = tpu.matmul %212, %199, %cst_60 {dimension_numbers = #tpu.dot_dimension_numbers<[1], [0], [0], [1], [0, 0, 1, 1], [], []>} : vector<16x16xbf16>, vector<16x32xbf16>, vector<16x32xf32> -> vector<16x32xf32>
    %214 = tpu.concatenate %153, %173, %193, %213 in 1 : vector<16x32xf32>, vector<16x32xf32>, vector<16x32xf32>, vector<16x32xf32> -> vector<16x128xf32>
    %215 = vector.extract_strided_slice %44 {offsets = [32, 0], sizes = [16, 384], strides = [1, 1]} : vector<64x384xf32> to vector<16x384xf32>
    %216 = vector.extract_strided_slice %215 {offsets = [0, 0], sizes = [16, 128], strides = [1, 1]} : vector<16x384xf32> to vector<16x128xf32>
    %217 = vector.extract_strided_slice %215 {offsets = [0, 128], sizes = [16, 128], strides = [1, 1]} : vector<16x384xf32> to vector<16x128xf32>
    %218 = vector.extract_strided_slice %215 {offsets = [0, 256], sizes = [16, 128], strides = [1, 1]} : vector<16x384xf32> to vector<16x128xf32>
    %219 = vector.extract_strided_slice %216 {offsets = [0, 0], sizes = [16, 32], strides = [1, 1]} : vector<16x128xf32> to vector<16x32xf32>
    %220 = arith.truncf %219 : vector<16x32xf32> to vector<16x32xbf16>
    %221 = vector.extract_strided_slice %217 {offsets = [0, 0], sizes = [16, 32], strides = [1, 1]} : vector<16x128xf32> to vector<16x32xf32>
    %222 = arith.truncf %221 : vector<16x32xf32> to vector<16x32xbf16>
    %223 = vector.extract_strided_slice %218 {offsets = [0, 0], sizes = [16, 32], strides = [1, 1]} : vector<16x128xf32> to vector<16x32xf32>
    %224 = arith.truncf %223 : vector<16x32xf32> to vector<16x32xbf16>
    %cst_61 = arith.constant dense<0.000000e+00> : vector<16x16xf32>
    %225 = tpu.matmul %220, %222, %cst_61 {dimension_numbers = #tpu.dot_dimension_numbers<[1], [1], [0], [0], [0, 0, 1, 0], [], []>} : vector<16x32xbf16>, vector<16x32xbf16>, vector<16x16xf32> -> vector<16x16xf32>
    %cst_62 = arith.constant 0.176776692 : f32
    %226 = vector.broadcast %cst_62 : f32 to vector<16x16xf32>
    %227 = arith.mulf %225, %226 : vector<16x16xf32>
    %cst_63 = arith.constant dense<0xFF800000> : vector<16xf32>
    %228 = vector.multi_reduction <maximumf>, %227, %cst_63 [1] : vector<16x16xf32> to vector<16xf32>
    %229 = vector.shape_cast %228 : vector<16xf32> to vector<16x1xf32>
    %230 = vector.broadcast %229 : vector<16x1xf32> to vector<16x16xf32>
    %231 = arith.subf %227, %230 : vector<16x16xf32>
    %232 = math.exp %231 : vector<16x16xf32>
    %cst_64 = arith.constant dense<0.000000e+00> : vector<16xf32>
    %233 = vector.multi_reduction <add>, %232, %cst_64 [1] : vector<16x16xf32> to vector<16xf32>
    %234 = vector.shape_cast %233 : vector<16xf32> to vector<16x1xf32>
    %235 = vector.broadcast %234 : vector<16x1xf32> to vector<16x16xf32>
    %236 = arith.divf %232, %235 : vector<16x16xf32>
    %237 = arith.truncf %236 : vector<16x16xf32> to vector<16x16xbf16>
    %cst_65 = arith.constant dense<0.000000e+00> : vector<16x32xf32>
    %238 = tpu.matmul %237, %224, %cst_65 {dimension_numbers = #tpu.dot_dimension_numbers<[1], [0], [0], [1], [0, 0, 1, 1], [], []>} : vector<16x16xbf16>, vector<16x32xbf16>, vector<16x32xf32> -> vector<16x32xf32>
    %239 = vector.extract_strided_slice %216 {offsets = [0, 32], sizes = [16, 32], strides = [1, 1]} : vector<16x128xf32> to vector<16x32xf32>
    %240 = arith.truncf %239 : vector<16x32xf32> to vector<16x32xbf16>
    %241 = vector.extract_strided_slice %217 {offsets = [0, 32], sizes = [16, 32], strides = [1, 1]} : vector<16x128xf32> to vector<16x32xf32>
    %242 = arith.truncf %241 : vector<16x32xf32> to vector<16x32xbf16>
    %243 = vector.extract_strided_slice %218 {offsets = [0, 32], sizes = [16, 32], strides = [1, 1]} : vector<16x128xf32> to vector<16x32xf32>
    %244 = arith.truncf %243 : vector<16x32xf32> to vector<16x32xbf16>
    %cst_66 = arith.constant dense<0.000000e+00> : vector<16x16xf32>
    %245 = tpu.matmul %240, %242, %cst_66 {dimension_numbers = #tpu.dot_dimension_numbers<[1], [1], [0], [0], [0, 0, 1, 0], [], []>} : vector<16x32xbf16>, vector<16x32xbf16>, vector<16x16xf32> -> vector<16x16xf32>
    %cst_67 = arith.constant 0.176776692 : f32
    %246 = vector.broadcast %cst_67 : f32 to vector<16x16xf32>
    %247 = arith.mulf %245, %246 : vector<16x16xf32>
    %cst_68 = arith.constant dense<0xFF800000> : vector<16xf32>
    %248 = vector.multi_reduction <maximumf>, %247, %cst_68 [1] : vector<16x16xf32> to vector<16xf32>
    %249 = vector.shape_cast %248 : vector<16xf32> to vector<16x1xf32>
    %250 = vector.broadcast %249 : vector<16x1xf32> to vector<16x16xf32>
    %251 = arith.subf %247, %250 : vector<16x16xf32>
    %252 = math.exp %251 : vector<16x16xf32>
    %cst_69 = arith.constant dense<0.000000e+00> : vector<16xf32>
    %253 = vector.multi_reduction <add>, %252, %cst_69 [1] : vector<16x16xf32> to vector<16xf32>
    %254 = vector.shape_cast %253 : vector<16xf32> to vector<16x1xf32>
    %255 = vector.broadcast %254 : vector<16x1xf32> to vector<16x16xf32>
    %256 = arith.divf %252, %255 : vector<16x16xf32>
    %257 = arith.truncf %256 : vector<16x16xf32> to vector<16x16xbf16>
    %cst_70 = arith.constant dense<0.000000e+00> : vector<16x32xf32>
    %258 = tpu.matmul %257, %244, %cst_70 {dimension_numbers = #tpu.dot_dimension_numbers<[1], [0], [0], [1], [0, 0, 1, 1], [], []>} : vector<16x16xbf16>, vector<16x32xbf16>, vector<16x32xf32> -> vector<16x32xf32>
    %259 = vector.extract_strided_slice %216 {offsets = [0, 64], sizes = [16, 32], strides = [1, 1]} : vector<16x128xf32> to vector<16x32xf32>
    %260 = arith.truncf %259 : vector<16x32xf32> to vector<16x32xbf16>
    %261 = vector.extract_strided_slice %217 {offsets = [0, 64], sizes = [16, 32], strides = [1, 1]} : vector<16x128xf32> to vector<16x32xf32>
    %262 = arith.truncf %261 : vector<16x32xf32> to vector<16x32xbf16>
    %263 = vector.extract_strided_slice %218 {offsets = [0, 64], sizes = [16, 32], strides = [1, 1]} : vector<16x128xf32> to vector<16x32xf32>
    %264 = arith.truncf %263 : vector<16x32xf32> to vector<16x32xbf16>
    %cst_71 = arith.constant dense<0.000000e+00> : vector<16x16xf32>
    %265 = tpu.matmul %260, %262, %cst_71 {dimension_numbers = #tpu.dot_dimension_numbers<[1], [1], [0], [0], [0, 0, 1, 0], [], []>} : vector<16x32xbf16>, vector<16x32xbf16>, vector<16x16xf32> -> vector<16x16xf32>
    %cst_72 = arith.constant 0.176776692 : f32
    %266 = vector.broadcast %cst_72 : f32 to vector<16x16xf32>
    %267 = arith.mulf %265, %266 : vector<16x16xf32>
    %cst_73 = arith.constant dense<0xFF800000> : vector<16xf32>
    %268 = vector.multi_reduction <maximumf>, %267, %cst_73 [1] : vector<16x16xf32> to vector<16xf32>
    %269 = vector.shape_cast %268 : vector<16xf32> to vector<16x1xf32>
    %270 = vector.broadcast %269 : vector<16x1xf32> to vector<16x16xf32>
    %271 = arith.subf %267, %270 : vector<16x16xf32>
    %272 = math.exp %271 : vector<16x16xf32>
    %cst_74 = arith.constant dense<0.000000e+00> : vector<16xf32>
    %273 = vector.multi_reduction <add>, %272, %cst_74 [1] : vector<16x16xf32> to vector<16xf32>
    %274 = vector.shape_cast %273 : vector<16xf32> to vector<16x1xf32>
    %275 = vector.broadcast %274 : vector<16x1xf32> to vector<16x16xf32>
    %276 = arith.divf %272, %275 : vector<16x16xf32>
    %277 = arith.truncf %276 : vector<16x16xf32> to vector<16x16xbf16>
    %cst_75 = arith.constant dense<0.000000e+00> : vector<16x32xf32>
    %278 = tpu.matmul %277, %264, %cst_75 {dimension_numbers = #tpu.dot_dimension_numbers<[1], [0], [0], [1], [0, 0, 1, 1], [], []>} : vector<16x16xbf16>, vector<16x32xbf16>, vector<16x32xf32> -> vector<16x32xf32>
    %279 = vector.extract_strided_slice %216 {offsets = [0, 96], sizes = [16, 32], strides = [1, 1]} : vector<16x128xf32> to vector<16x32xf32>
    %280 = arith.truncf %279 : vector<16x32xf32> to vector<16x32xbf16>
    %281 = vector.extract_strided_slice %217 {offsets = [0, 96], sizes = [16, 32], strides = [1, 1]} : vector<16x128xf32> to vector<16x32xf32>
    %282 = arith.truncf %281 : vector<16x32xf32> to vector<16x32xbf16>
    %283 = vector.extract_strided_slice %218 {offsets = [0, 96], sizes = [16, 32], strides = [1, 1]} : vector<16x128xf32> to vector<16x32xf32>
    %284 = arith.truncf %283 : vector<16x32xf32> to vector<16x32xbf16>
    %cst_76 = arith.constant dense<0.000000e+00> : vector<16x16xf32>
    %285 = tpu.matmul %280, %282, %cst_76 {dimension_numbers = #tpu.dot_dimension_numbers<[1], [1], [0], [0], [0, 0, 1, 0], [], []>} : vector<16x32xbf16>, vector<16x32xbf16>, vector<16x16xf32> -> vector<16x16xf32>
    %cst_77 = arith.constant 0.176776692 : f32
    %286 = vector.broadcast %cst_77 : f32 to vector<16x16xf32>
    %287 = arith.mulf %285, %286 : vector<16x16xf32>
    %cst_78 = arith.constant dense<0xFF800000> : vector<16xf32>
    %288 = vector.multi_reduction <maximumf>, %287, %cst_78 [1] : vector<16x16xf32> to vector<16xf32>
    %289 = vector.shape_cast %288 : vector<16xf32> to vector<16x1xf32>
    %290 = vector.broadcast %289 : vector<16x1xf32> to vector<16x16xf32>
    %291 = arith.subf %287, %290 : vector<16x16xf32>
    %292 = math.exp %291 : vector<16x16xf32>
    %cst_79 = arith.constant dense<0.000000e+00> : vector<16xf32>
    %293 = vector.multi_reduction <add>, %292, %cst_79 [1] : vector<16x16xf32> to vector<16xf32>
    %294 = vector.shape_cast %293 : vector<16xf32> to vector<16x1xf32>
    %295 = vector.broadcast %294 : vector<16x1xf32> to vector<16x16xf32>
    %296 = arith.divf %292, %295 : vector<16x16xf32>
    %297 = arith.truncf %296 : vector<16x16xf32> to vector<16x16xbf16>
    %cst_80 = arith.constant dense<0.000000e+00> : vector<16x32xf32>
    %298 = tpu.matmul %297, %284, %cst_80 {dimension_numbers = #tpu.dot_dimension_numbers<[1], [0], [0], [1], [0, 0, 1, 1], [], []>} : vector<16x16xbf16>, vector<16x32xbf16>, vector<16x32xf32> -> vector<16x32xf32>
    %299 = tpu.concatenate %238, %258, %278, %298 in 1 : vector<16x32xf32>, vector<16x32xf32>, vector<16x32xf32>, vector<16x32xf32> -> vector<16x128xf32>
    %300 = vector.extract_strided_slice %44 {offsets = [48, 0], sizes = [16, 384], strides = [1, 1]} : vector<64x384xf32> to vector<16x384xf32>
    %301 = vector.extract_strided_slice %300 {offsets = [0, 0], sizes = [16, 128], strides = [1, 1]} : vector<16x384xf32> to vector<16x128xf32>
    %302 = vector.extract_strided_slice %300 {offsets = [0, 128], sizes = [16, 128], strides = [1, 1]} : vector<16x384xf32> to vector<16x128xf32>
    %303 = vector.extract_strided_slice %300 {offsets = [0, 256], sizes = [16, 128], strides = [1, 1]} : vector<16x384xf32> to vector<16x128xf32>
    %304 = vector.extract_strided_slice %301 {offsets = [0, 0], sizes = [16, 32], strides = [1, 1]} : vector<16x128xf32> to vector<16x32xf32>
    %305 = arith.truncf %304 : vector<16x32xf32> to vector<16x32xbf16>
    %306 = vector.extract_strided_slice %302 {offsets = [0, 0], sizes = [16, 32], strides = [1, 1]} : vector<16x128xf32> to vector<16x32xf32>
    %307 = arith.truncf %306 : vector<16x32xf32> to vector<16x32xbf16>
    %308 = vector.extract_strided_slice %303 {offsets = [0, 0], sizes = [16, 32], strides = [1, 1]} : vector<16x128xf32> to vector<16x32xf32>
    %309 = arith.truncf %308 : vector<16x32xf32> to vector<16x32xbf16>
    %cst_81 = arith.constant dense<0.000000e+00> : vector<16x16xf32>
    %310 = tpu.matmul %305, %307, %cst_81 {dimension_numbers = #tpu.dot_dimension_numbers<[1], [1], [0], [0], [0, 0, 1, 0], [], []>} : vector<16x32xbf16>, vector<16x32xbf16>, vector<16x16xf32> -> vector<16x16xf32>
    %cst_82 = arith.constant 0.176776692 : f32
    %311 = vector.broadcast %cst_82 : f32 to vector<16x16xf32>
    %312 = arith.mulf %310, %311 : vector<16x16xf32>
    %cst_83 = arith.constant dense<0xFF800000> : vector<16xf32>
    %313 = vector.multi_reduction <maximumf>, %312, %cst_83 [1] : vector<16x16xf32> to vector<16xf32>
    %314 = vector.shape_cast %313 : vector<16xf32> to vector<16x1xf32>
    %315 = vector.broadcast %314 : vector<16x1xf32> to vector<16x16xf32>
    %316 = arith.subf %312, %315 : vector<16x16xf32>
    %317 = math.exp %316 : vector<16x16xf32>
    %cst_84 = arith.constant dense<0.000000e+00> : vector<16xf32>
    %318 = vector.multi_reduction <add>, %317, %cst_84 [1] : vector<16x16xf32> to vector<16xf32>
    %319 = vector.shape_cast %318 : vector<16xf32> to vector<16x1xf32>
    %320 = vector.broadcast %319 : vector<16x1xf32> to vector<16x16xf32>
    %321 = arith.divf %317, %320 : vector<16x16xf32>
    %322 = arith.truncf %321 : vector<16x16xf32> to vector<16x16xbf16>
    %cst_85 = arith.constant dense<0.000000e+00> : vector<16x32xf32>
    %323 = tpu.matmul %322, %309, %cst_85 {dimension_numbers = #tpu.dot_dimension_numbers<[1], [0], [0], [1], [0, 0, 1, 1], [], []>} : vector<16x16xbf16>, vector<16x32xbf16>, vector<16x32xf32> -> vector<16x32xf32>
    %324 = vector.extract_strided_slice %301 {offsets = [0, 32], sizes = [16, 32], strides = [1, 1]} : vector<16x128xf32> to vector<16x32xf32>
    %325 = arith.truncf %324 : vector<16x32xf32> to vector<16x32xbf16>
    %326 = vector.extract_strided_slice %302 {offsets = [0, 32], sizes = [16, 32], strides = [1, 1]} : vector<16x128xf32> to vector<16x32xf32>
    %327 = arith.truncf %326 : vector<16x32xf32> to vector<16x32xbf16>
    %328 = vector.extract_strided_slice %303 {offsets = [0, 32], sizes = [16, 32], strides = [1, 1]} : vector<16x128xf32> to vector<16x32xf32>
    %329 = arith.truncf %328 : vector<16x32xf32> to vector<16x32xbf16>
    %cst_86 = arith.constant dense<0.000000e+00> : vector<16x16xf32>
    %330 = tpu.matmul %325, %327, %cst_86 {dimension_numbers = #tpu.dot_dimension_numbers<[1], [1], [0], [0], [0, 0, 1, 0], [], []>} : vector<16x32xbf16>, vector<16x32xbf16>, vector<16x16xf32> -> vector<16x16xf32>
    %cst_87 = arith.constant 0.176776692 : f32
    %331 = vector.broadcast %cst_87 : f32 to vector<16x16xf32>
    %332 = arith.mulf %330, %331 : vector<16x16xf32>
    %cst_88 = arith.constant dense<0xFF800000> : vector<16xf32>
    %333 = vector.multi_reduction <maximumf>, %332, %cst_88 [1] : vector<16x16xf32> to vector<16xf32>
    %334 = vector.shape_cast %333 : vector<16xf32> to vector<16x1xf32>
    %335 = vector.broadcast %334 : vector<16x1xf32> to vector<16x16xf32>
    %336 = arith.subf %332, %335 : vector<16x16xf32>
    %337 = math.exp %336 : vector<16x16xf32>
    %cst_89 = arith.constant dense<0.000000e+00> : vector<16xf32>
    %338 = vector.multi_reduction <add>, %337, %cst_89 [1] : vector<16x16xf32> to vector<16xf32>
    %339 = vector.shape_cast %338 : vector<16xf32> to vector<16x1xf32>
    %340 = vector.broadcast %339 : vector<16x1xf32> to vector<16x16xf32>
    %341 = arith.divf %337, %340 : vector<16x16xf32>
    %342 = arith.truncf %341 : vector<16x16xf32> to vector<16x16xbf16>
    %cst_90 = arith.constant dense<0.000000e+00> : vector<16x32xf32>
    %343 = tpu.matmul %342, %329, %cst_90 {dimension_numbers = #tpu.dot_dimension_numbers<[1], [0], [0], [1], [0, 0, 1, 1], [], []>} : vector<16x16xbf16>, vector<16x32xbf16>, vector<16x32xf32> -> vector<16x32xf32>
    %344 = vector.extract_strided_slice %301 {offsets = [0, 64], sizes = [16, 32], strides = [1, 1]} : vector<16x128xf32> to vector<16x32xf32>
    %345 = arith.truncf %344 : vector<16x32xf32> to vector<16x32xbf16>
    %346 = vector.extract_strided_slice %302 {offsets = [0, 64], sizes = [16, 32], strides = [1, 1]} : vector<16x128xf32> to vector<16x32xf32>
    %347 = arith.truncf %346 : vector<16x32xf32> to vector<16x32xbf16>
    %348 = vector.extract_strided_slice %303 {offsets = [0, 64], sizes = [16, 32], strides = [1, 1]} : vector<16x128xf32> to vector<16x32xf32>
    %349 = arith.truncf %348 : vector<16x32xf32> to vector<16x32xbf16>
    %cst_91 = arith.constant dense<0.000000e+00> : vector<16x16xf32>
    %350 = tpu.matmul %345, %347, %cst_91 {dimension_numbers = #tpu.dot_dimension_numbers<[1], [1], [0], [0], [0, 0, 1, 0], [], []>} : vector<16x32xbf16>, vector<16x32xbf16>, vector<16x16xf32> -> vector<16x16xf32>
    %cst_92 = arith.constant 0.176776692 : f32
    %351 = vector.broadcast %cst_92 : f32 to vector<16x16xf32>
    %352 = arith.mulf %350, %351 : vector<16x16xf32>
    %cst_93 = arith.constant dense<0xFF800000> : vector<16xf32>
    %353 = vector.multi_reduction <maximumf>, %352, %cst_93 [1] : vector<16x16xf32> to vector<16xf32>
    %354 = vector.shape_cast %353 : vector<16xf32> to vector<16x1xf32>
    %355 = vector.broadcast %354 : vector<16x1xf32> to vector<16x16xf32>
    %356 = arith.subf %352, %355 : vector<16x16xf32>
    %357 = math.exp %356 : vector<16x16xf32>
    %cst_94 = arith.constant dense<0.000000e+00> : vector<16xf32>
    %358 = vector.multi_reduction <add>, %357, %cst_94 [1] : vector<16x16xf32> to vector<16xf32>
    %359 = vector.shape_cast %358 : vector<16xf32> to vector<16x1xf32>
    %360 = vector.broadcast %359 : vector<16x1xf32> to vector<16x16xf32>
    %361 = arith.divf %357, %360 : vector<16x16xf32>
    %362 = arith.truncf %361 : vector<16x16xf32> to vector<16x16xbf16>
    %cst_95 = arith.constant dense<0.000000e+00> : vector<16x32xf32>
    %363 = tpu.matmul %362, %349, %cst_95 {dimension_numbers = #tpu.dot_dimension_numbers<[1], [0], [0], [1], [0, 0, 1, 1], [], []>} : vector<16x16xbf16>, vector<16x32xbf16>, vector<16x32xf32> -> vector<16x32xf32>
    %364 = vector.extract_strided_slice %301 {offsets = [0, 96], sizes = [16, 32], strides = [1, 1]} : vector<16x128xf32> to vector<16x32xf32>
    %365 = arith.truncf %364 : vector<16x32xf32> to vector<16x32xbf16>
    %366 = vector.extract_strided_slice %302 {offsets = [0, 96], sizes = [16, 32], strides = [1, 1]} : vector<16x128xf32> to vector<16x32xf32>
    %367 = arith.truncf %366 : vector<16x32xf32> to vector<16x32xbf16>
    %368 = vector.extract_strided_slice %303 {offsets = [0, 96], sizes = [16, 32], strides = [1, 1]} : vector<16x128xf32> to vector<16x32xf32>
    %369 = arith.truncf %368 : vector<16x32xf32> to vector<16x32xbf16>
    %cst_96 = arith.constant dense<0.000000e+00> : vector<16x16xf32>
    %370 = tpu.matmul %365, %367, %cst_96 {dimension_numbers = #tpu.dot_dimension_numbers<[1], [1], [0], [0], [0, 0, 1, 0], [], []>} : vector<16x32xbf16>, vector<16x32xbf16>, vector<16x16xf32> -> vector<16x16xf32>
    %cst_97 = arith.constant 0.176776692 : f32
    %371 = vector.broadcast %cst_97 : f32 to vector<16x16xf32>
    %372 = arith.mulf %370, %371 : vector<16x16xf32>
    %cst_98 = arith.constant dense<0xFF800000> : vector<16xf32>
    %373 = vector.multi_reduction <maximumf>, %372, %cst_98 [1] : vector<16x16xf32> to vector<16xf32>
    %374 = vector.shape_cast %373 : vector<16xf32> to vector<16x1xf32>
    %375 = vector.broadcast %374 : vector<16x1xf32> to vector<16x16xf32>
    %376 = arith.subf %372, %375 : vector<16x16xf32>
    %377 = math.exp %376 : vector<16x16xf32>
    %cst_99 = arith.constant dense<0.000000e+00> : vector<16xf32>
    %378 = vector.multi_reduction <add>, %377, %cst_99 [1] : vector<16x16xf32> to vector<16xf32>
    %379 = vector.shape_cast %378 : vector<16xf32> to vector<16x1xf32>
    %380 = vector.broadcast %379 : vector<16x1xf32> to vector<16x16xf32>
    %381 = arith.divf %377, %380 : vector<16x16xf32>
    %382 = arith.truncf %381 : vector<16x16xf32> to vector<16x16xbf16>
    %cst_100 = arith.constant dense<0.000000e+00> : vector<16x32xf32>
    %383 = tpu.matmul %382, %369, %cst_100 {dimension_numbers = #tpu.dot_dimension_numbers<[1], [0], [0], [1], [0, 0, 1, 1], [], []>} : vector<16x16xbf16>, vector<16x32xbf16>, vector<16x32xf32> -> vector<16x32xf32>
    %384 = tpu.concatenate %323, %343, %363, %383 in 1 : vector<16x32xf32>, vector<16x32xf32>, vector<16x32xf32>, vector<16x32xf32> -> vector<16x128xf32>
    %385 = tpu.concatenate %129, %214, %299, %384 in 0 : vector<16x128xf32>, vector<16x128xf32>, vector<16x128xf32>, vector<16x128xf32> -> vector<64x128xf32>
    %c0_101 = arith.constant 0 : index
    %c0_102 = arith.constant 0 : index
    %c0_103 = arith.constant 0 : index
    %386 = vector.load %arg7[%c0_101, %c0_102, %c0_103] : memref<1x128x128xbf16, #tpu.memory_space<vmem>>, vector<1x128x128xbf16>
    %387 = vector.shape_cast %386 : vector<1x128x128xbf16> to vector<128x128xbf16>
    %388 = arith.truncf %385 : vector<64x128xf32> to vector<64x128xbf16>
    %cst_104 = arith.constant dense<0.000000e+00> : vector<64x128xf32>
    %389 = tpu.matmul %388, %387, %cst_104 {dimension_numbers = #tpu.dot_dimension_numbers<[1], [0], [0], [1], [0, 0, 1, 1], [], []>} : vector<64x128xbf16>, vector<128x128xbf16>, vector<64x128xf32> -> vector<64x128xf32>
    %390 = arith.addf %9, %389 : vector<64x128xf32>
    %c0_105 = arith.constant 0 : index
    %c0_106 = arith.constant 0 : index
    %c0_107 = arith.constant 0 : index
    %391 = vector.load %arg8[%c0_105, %c0_106, %c0_107] : memref<1x1x128xbf16, #tpu.memory_space<vmem>>, vector<1x1x128xbf16>
    %392 = vector.shape_cast %391 : vector<1x1x128xbf16> to vector<1x128xbf16>
    %393 = arith.extf %392 : vector<1x128xbf16> to vector<1x128xf32>
    %394 = vector.broadcast %393 : vector<1x128xf32> to vector<64x128xf32>
    %395 = arith.addf %390, %394 : vector<64x128xf32>
    %c0_108 = arith.constant 0 : index
    %c0_109 = arith.constant 0 : index
    %c0_110 = arith.constant 0 : index
    %396 = vector.load %arg9[%c0_108, %c0_109, %c0_110] : memref<1x1x128xbf16, #tpu.memory_space<vmem>>, vector<1x1x128xbf16>
    %397 = vector.shape_cast %396 : vector<1x1x128xbf16> to vector<1x128xbf16>
    %c0_111 = arith.constant 0 : index
    %c0_112 = arith.constant 0 : index
    %c0_113 = arith.constant 0 : index
    %398 = vector.load %arg10[%c0_111, %c0_112, %c0_113] : memref<1x1x128xbf16, #tpu.memory_space<vmem>>, vector<1x1x128xbf16>
    %399 = vector.shape_cast %398 : vector<1x1x128xbf16> to vector<1x128xbf16>
    %400 = arith.extf %397 : vector<1x128xbf16> to vector<1x128xf32>
    %401 = arith.extf %399 : vector<1x128xbf16> to vector<1x128xf32>
    %cst_114 = arith.constant dense<0.000000e+00> : vector<64xf32>
    %402 = vector.multi_reduction <add>, %395, %cst_114 [1] : vector<64x128xf32> to vector<64xf32>
    %403 = vector.shape_cast %402 : vector<64xf32> to vector<64x1xf32>
    %cst_115 = arith.constant 1.280000e+02 : f32
    %404 = vector.broadcast %cst_115 : f32 to vector<64x1xf32>
    %405 = arith.divf %403, %404 : vector<64x1xf32>
    %406 = vector.broadcast %405 : vector<64x1xf32> to vector<64x128xf32>
    %407 = arith.subf %395, %406 : vector<64x128xf32>
    %408 = arith.mulf %407, %407 : vector<64x128xf32>
    %cst_116 = arith.constant dense<0.000000e+00> : vector<64xf32>
    %409 = vector.multi_reduction <add>, %408, %cst_116 [1] : vector<64x128xf32> to vector<64xf32>
    %410 = vector.shape_cast %409 : vector<64xf32> to vector<64x1xf32>
    %cst_117 = arith.constant 1.280000e+02 : f32
    %411 = vector.broadcast %cst_117 : f32 to vector<64x1xf32>
    %412 = arith.divf %410, %411 : vector<64x1xf32>
    %cst_118 = arith.constant 9.99999974E-6 : f32
    %413 = vector.broadcast %cst_118 : f32 to vector<64x1xf32>
    %414 = arith.addf %412, %413 : vector<64x1xf32>
    %415 = math.rsqrt %414 : vector<64x1xf32>
    %416 = vector.broadcast %415 : vector<64x1xf32> to vector<64x128xf32>
    %417 = arith.mulf %407, %416 : vector<64x128xf32>
    %418 = vector.broadcast %400 : vector<1x128xf32> to vector<64x128xf32>
    %419 = arith.mulf %417, %418 : vector<64x128xf32>
    %420 = vector.broadcast %401 : vector<1x128xf32> to vector<64x128xf32>
    %421 = arith.addf %419, %420 : vector<64x128xf32>
    %c0_119 = arith.constant 0 : index
    %c0_120 = arith.constant 0 : index
    %c0_121 = arith.constant 0 : index
    %422 = vector.load %arg11[%c0_119, %c0_120, %c0_121] : memref<1x128x512xbf16, #tpu.memory_space<vmem>>, vector<1x128x512xbf16>
    %423 = vector.shape_cast %422 : vector<1x128x512xbf16> to vector<128x512xbf16>
    %424 = arith.truncf %421 : vector<64x128xf32> to vector<64x128xbf16>
    %cst_122 = arith.constant dense<0.000000e+00> : vector<64x512xf32>
    %425 = tpu.matmul %424, %423, %cst_122 {dimension_numbers = #tpu.dot_dimension_numbers<[1], [0], [0], [1], [0, 0, 1, 1], [], []>} : vector<64x128xbf16>, vector<128x512xbf16>, vector<64x512xf32> -> vector<64x512xf32>
    %c0_123 = arith.constant 0 : index
    %c0_124 = arith.constant 0 : index
    %c0_125 = arith.constant 0 : index
    %426 = vector.load %arg12[%c0_123, %c0_124, %c0_125] : memref<1x1x512xbf16, #tpu.memory_space<vmem>>, vector<1x1x512xbf16>
    %427 = vector.shape_cast %426 : vector<1x1x512xbf16> to vector<1x512xbf16>
    %428 = arith.extf %427 : vector<1x512xbf16> to vector<1x512xf32>
    %429 = vector.broadcast %428 : vector<1x512xf32> to vector<64x512xf32>
    %430 = arith.addf %425, %429 : vector<64x512xf32>
    %cst_126 = arith.constant 5.000000e-01 : f32
    %431 = vector.broadcast %cst_126 : f32 to vector<64x512xf32>
    %432 = arith.mulf %431, %430 : vector<64x512xf32>
    %cst_127 = arith.constant 8.510000e-01 : f32
    %433 = vector.broadcast %cst_127 : f32 to vector<64x512xf32>
    %434 = arith.mulf %433, %430 : vector<64x512xf32>
    %435 = math.tanh %434 : vector<64x512xf32>
    %cst_128 = arith.constant 1.000000e+00 : f32
    %436 = vector.broadcast %cst_128 : f32 to vector<64x512xf32>
    %437 = arith.addf %436, %435 : vector<64x512xf32>
    %438 = arith.mulf %432, %437 : vector<64x512xf32>
    %c0_129 = arith.constant 0 : index
    %c0_130 = arith.constant 0 : index
    %c0_131 = arith.constant 0 : index
    %439 = vector.load %arg13[%c0_129, %c0_130, %c0_131] : memref<1x512x128xbf16, #tpu.memory_space<vmem>>, vector<1x512x128xbf16>
    %440 = vector.shape_cast %439 : vector<1x512x128xbf16> to vector<512x128xbf16>
    %441 = arith.truncf %438 : vector<64x512xf32> to vector<64x512xbf16>
    %cst_132 = arith.constant dense<0.000000e+00> : vector<64x128xf32>
    %442 = tpu.matmul %441, %440, %cst_132 {dimension_numbers = #tpu.dot_dimension_numbers<[1], [0], [0], [1], [0, 0, 1, 1], [], []>} : vector<64x512xbf16>, vector<512x128xbf16>, vector<64x128xf32> -> vector<64x128xf32>
    %443 = arith.addf %395, %442 : vector<64x128xf32>
    %c0_133 = arith.constant 0 : index
    %c0_134 = arith.constant 0 : index
    %c0_135 = arith.constant 0 : index
    %444 = vector.load %arg14[%c0_133, %c0_134, %c0_135] : memref<1x1x128xbf16, #tpu.memory_space<vmem>>, vector<1x1x128xbf16>
    %445 = vector.shape_cast %444 : vector<1x1x128xbf16> to vector<1x128xbf16>
    %446 = arith.extf %445 : vector<1x128xbf16> to vector<1x128xf32>
    %447 = vector.broadcast %446 : vector<1x128xf32> to vector<64x128xf32>
    %448 = arith.addf %443, %447 : vector<64x128xf32>
    %449 = arith.truncf %448 : vector<64x128xf32> to vector<64x128xbf16>
    %c0_136 = arith.constant 0 : index
    %c0_137 = arith.constant 0 : index
    %450 = vector.load %arg15[%c0_136, %c0_137] : memref<64x128xbf16, #tpu.memory_space<vmem>>, vector<64x128xbf16>
    tpu.vector_store %arg15[%c0_136, %c0_137], %449 {strides = array<i32>} : memref<64x128xbf16, #tpu.memory_space<vmem>>, vector<64x128xbf16>,
    return
  }
  func.func @transform_0(%arg0: i32) -> (i32, i32) {
    %c0_i32 = arith.constant 0 : i32
    %c0_i32_0 = arith.constant 0 : i32
    %c0_i32_1 = arith.constant 0 : i32
    return %c0_i32, %c0_i32_0 : i32, i32
  }
  func.func @transform_1(%arg0: i32) -> (i32, i32, i32) {
    %c0_i32 = arith.constant 0 : i32
    %c0_i32_0 = arith.constant 0 : i32
    %c0_i32_1 = arith.constant 0 : i32
    return %arg0, %c0_i32, %c0_i32_0 : i32, i32, i32
  }
  func.func @transform_2(%arg0: i32) -> (i32, i32, i32) {
    %c0_i32 = arith.constant 0 : i32
    %c0_i32_0 = arith.constant 0 : i32
    %c0_i32_1 = arith.constant 0 : i32
    return %arg0, %c0_i32, %c0_i32_0 : i32, i32, i32
  }
  func.func @transform_3(%arg0: i32) -> (i32, i32, i32) {
    %c0_i32 = arith.constant 0 : i32
    %c0_i32_0 = arith.constant 0 : i32
    %c0_i32_1 = arith.constant 0 : i32
    return %arg0, %c0_i32, %c0_i32_0 : i32, i32, i32
  }
  func.func @transform_4(%arg0: i32) -> (i32, i32, i32) {
    %c0_i32 = arith.constant 0 : i32
    %c0_i32_0 = arith.constant 0 : i32
    %c0_i32_1 = arith.constant 0 : i32
    return %arg0, %c0_i32, %c0_i32_0 : i32, i32, i32
  }
  func.func @transform_5(%arg0: i32) -> (i32, i32, i32) {
    %c0_i32 = arith.constant 0 : i32
    %c0_i32_0 = arith.constant 0 : i32
    %c0_i32_1 = arith.constant 0 : i32
    return %arg0, %c0_i32, %c0_i32_0 : i32, i32, i32
  }
  func.func @transform_6(%arg0: i32) -> (i32, i32, i32) {
    %c0_i32 = arith.constant 0 : i32
    %c0_i32_0 = arith.constant 0 : i32
    %c0_i32_1 = arith.constant 0 : i32
    return %arg0, %c0_i32, %c0_i32_0 : i32, i32, i32
  }
  func.func @transform_7(%arg0: i32) -> (i32, i32, i32) {
    %c0_i32 = arith.constant 0 : i32
    %c0_i32_0 = arith.constant 0 : i32
    %c0_i32_1 = arith.constant 0 : i32
    return %arg0, %c0_i32, %c0_i32_0 : i32, i32, i32
  }
  func.func @transform_8(%arg0: i32) -> (i32, i32, i32) {
    %c0_i32 = arith.constant 0 : i32
    %c0_i32_0 = arith.constant 0 : i32
    %c0_i32_1 = arith.constant 0 : i32
    return %arg0, %c0_i32, %c0_i32_0 : i32, i32, i32
  }
  func.func @transform_9(%arg0: i32) -> (i32, i32, i32) {
    %c0_i32 = arith.constant 0 : i32
    %c0_i32_0 = arith.constant 0 : i32
    %c0_i32_1 = arith.constant 0 : i32
    return %arg0, %c0_i32, %c0_i32_0 : i32, i32, i32
  }
  func.func @transform_10(%arg0: i32) -> (i32, i32, i32) {
    %c0_i32 = arith.constant 0 : i32
    %c0_i32_0 = arith.constant 0 : i32
    %c0_i32_1 = arith.constant 0 : i32
    return %arg0, %c0_i32, %c0_i32_0 : i32, i32, i32
  }
  func.func @transform_11(%arg0: i32) -> (i32, i32, i32) {
    %c0_i32 = arith.constant 0 : i32
    %c0_i32_0 = arith.constant 0 : i32
    %c0_i32_1 = arith.constant 0 : i32
    return %arg0, %c0_i32, %c0_i32_0 : i32, i32, i32
  }
  func.func @transform_12(%arg0: i32) -> (i32, i32, i32) {
    %c0_i32 = arith.constant 0 : i32
    %c0_i32_0 = arith.constant 0 : i32
    %c0_i32_1 = arith.constant 0 : i32
    return %arg0, %c0_i32, %c0_i32_0 : i32, i32, i32
  }
  func.func @transform_13(%arg0: i32) -> (i32, i32, i32) {
    %c0_i32 = arith.constant 0 : i32
    %c0_i32_0 = arith.constant 0 : i32
    %c0_i32_1 = arith.constant 0 : i32
    return %arg0, %c0_i32, %c0_i32_0 : i32, i32, i32
  }
  func.func @transform_14(%arg0: i32) -> (i32, i32) {
    %c0_i32 = arith.constant 0 : i32
    %c0_i32_0 = arith.constant 0 : i32
    %c0_i32_1 = arith.constant 0 : i32
    return %c0_i32, %c0_i32_0 : i32, i32
  }
}

module attributes {stable_mosaic.version = 11 : i64} {
  func.func @_head_kernel(%arg0: memref<2x128xbf16, #tpu.memory_space<vmem>>, %arg1: memref<1x128xbf16, #tpu.memory_space<vmem>>, %arg2: memref<1x128xbf16, #tpu.memory_space<vmem>>, %arg3: memref<128x128xbf16, #tpu.memory_space<vmem>>, %arg4: memref<4x128xbf16, #tpu.memory_space<vmem>>, %arg5: memref<1x128xbf16, #tpu.memory_space<vmem>>, %arg6: memref<1x128xbf16, #tpu.memory_space<vmem>>, %arg7: memref<128x128xbf16, #tpu.memory_space<vmem>>, %arg8: memref<1xf32, #tpu.memory_space<smem>>, %arg9: memref<2x4xf32, #tpu.memory_space<vmem>>) attributes {dimension_semantics = [], scalar_prefetch = 0 : i64, scratch_operands = 0 : i64, tpu.core_type = #tpu.core_type<tc>} {
    %c0 = arith.constant 0 : index
    %c0_0 = arith.constant 0 : index
    %0 = vector.load %arg0[%c0, %c0_0] : memref<2x128xbf16, #tpu.memory_space<vmem>>, vector<2x128xbf16>
    %1 = arith.extf %0 : vector<2x128xbf16> to vector<2x128xf32>
    %c0_1 = arith.constant 0 : index
    %c0_2 = arith.constant 0 : index
    %2 = vector.load %arg1[%c0_1, %c0_2] : memref<1x128xbf16, #tpu.memory_space<vmem>>, vector<1x128xbf16>
    %c0_3 = arith.constant 0 : index
    %c0_4 = arith.constant 0 : index
    %3 = vector.load %arg2[%c0_3, %c0_4] : memref<1x128xbf16, #tpu.memory_space<vmem>>, vector<1x128xbf16>
    %4 = arith.extf %2 : vector<1x128xbf16> to vector<1x128xf32>
    %5 = arith.extf %3 : vector<1x128xbf16> to vector<1x128xf32>
    %cst = arith.constant dense<0.000000e+00> : vector<2xf32>
    %6 = vector.multi_reduction <add>, %1, %cst [1] : vector<2x128xf32> to vector<2xf32>
    %7 = vector.shape_cast %6 : vector<2xf32> to vector<2x1xf32>
    %cst_5 = arith.constant 1.280000e+02 : f32
    %8 = vector.broadcast %cst_5 : f32 to vector<2x1xf32>
    %9 = arith.divf %7, %8 : vector<2x1xf32>
    %10 = vector.broadcast %9 : vector<2x1xf32> to vector<2x128xf32>
    %11 = arith.subf %1, %10 : vector<2x128xf32>
    %12 = arith.mulf %11, %11 : vector<2x128xf32>
    %cst_6 = arith.constant dense<0.000000e+00> : vector<2xf32>
    %13 = vector.multi_reduction <add>, %12, %cst_6 [1] : vector<2x128xf32> to vector<2xf32>
    %14 = vector.shape_cast %13 : vector<2xf32> to vector<2x1xf32>
    %cst_7 = arith.constant 1.280000e+02 : f32
    %15 = vector.broadcast %cst_7 : f32 to vector<2x1xf32>
    %16 = arith.divf %14, %15 : vector<2x1xf32>
    %cst_8 = arith.constant 9.99999974E-6 : f32
    %17 = vector.broadcast %cst_8 : f32 to vector<2x1xf32>
    %18 = arith.addf %16, %17 : vector<2x1xf32>
    %19 = math.rsqrt %18 : vector<2x1xf32>
    %20 = vector.broadcast %19 : vector<2x1xf32> to vector<2x128xf32>
    %21 = arith.mulf %11, %20 : vector<2x128xf32>
    %22 = vector.broadcast %4 : vector<1x128xf32> to vector<2x128xf32>
    %23 = arith.mulf %21, %22 : vector<2x128xf32>
    %24 = vector.broadcast %5 : vector<1x128xf32> to vector<2x128xf32>
    %25 = arith.addf %23, %24 : vector<2x128xf32>
    %c0_9 = arith.constant 0 : index
    %c0_10 = arith.constant 0 : index
    %26 = vector.load %arg3[%c0_9, %c0_10] : memref<128x128xbf16, #tpu.memory_space<vmem>>, vector<128x128xbf16>
    %27 = arith.truncf %25 : vector<2x128xf32> to vector<2x128xbf16>
    %cst_11 = arith.constant dense<0.000000e+00> : vector<2x128xf32>
    %28 = tpu.matmul %27, %26, %cst_11 {dimension_numbers = #tpu.dot_dimension_numbers<[1], [0], [0], [1], [0, 0, 1, 1], [], []>} : vector<2x128xbf16>, vector<128x128xbf16>, vector<2x128xf32> -> vector<2x128xf32>
    %c0_12 = arith.constant 0 : index
    %c0_13 = arith.constant 0 : index
    %29 = vector.load %arg4[%c0_12, %c0_13] : memref<4x128xbf16, #tpu.memory_space<vmem>>, vector<4x128xbf16>
    %30 = arith.extf %29 : vector<4x128xbf16> to vector<4x128xf32>
    %c0_14 = arith.constant 0 : index
    %c0_15 = arith.constant 0 : index
    %31 = vector.load %arg5[%c0_14, %c0_15] : memref<1x128xbf16, #tpu.memory_space<vmem>>, vector<1x128xbf16>
    %c0_16 = arith.constant 0 : index
    %c0_17 = arith.constant 0 : index
    %32 = vector.load %arg6[%c0_16, %c0_17] : memref<1x128xbf16, #tpu.memory_space<vmem>>, vector<1x128xbf16>
    %33 = arith.extf %31 : vector<1x128xbf16> to vector<1x128xf32>
    %34 = arith.extf %32 : vector<1x128xbf16> to vector<1x128xf32>
    %cst_18 = arith.constant dense<0.000000e+00> : vector<4xf32>
    %35 = vector.multi_reduction <add>, %30, %cst_18 [1] : vector<4x128xf32> to vector<4xf32>
    %36 = vector.shape_cast %35 : vector<4xf32> to vector<4x1xf32>
    %cst_19 = arith.constant 1.280000e+02 : f32
    %37 = vector.broadcast %cst_19 : f32 to vector<4x1xf32>
    %38 = arith.divf %36, %37 : vector<4x1xf32>
    %39 = vector.broadcast %38 : vector<4x1xf32> to vector<4x128xf32>
    %40 = arith.subf %30, %39 : vector<4x128xf32>
    %41 = arith.mulf %40, %40 : vector<4x128xf32>
    %cst_20 = arith.constant dense<0.000000e+00> : vector<4xf32>
    %42 = vector.multi_reduction <add>, %41, %cst_20 [1] : vector<4x128xf32> to vector<4xf32>
    %43 = vector.shape_cast %42 : vector<4xf32> to vector<4x1xf32>
    %cst_21 = arith.constant 1.280000e+02 : f32
    %44 = vector.broadcast %cst_21 : f32 to vector<4x1xf32>
    %45 = arith.divf %43, %44 : vector<4x1xf32>
    %cst_22 = arith.constant 9.99999974E-6 : f32
    %46 = vector.broadcast %cst_22 : f32 to vector<4x1xf32>
    %47 = arith.addf %45, %46 : vector<4x1xf32>
    %48 = math.rsqrt %47 : vector<4x1xf32>
    %49 = vector.broadcast %48 : vector<4x1xf32> to vector<4x128xf32>
    %50 = arith.mulf %40, %49 : vector<4x128xf32>
    %51 = vector.broadcast %33 : vector<1x128xf32> to vector<4x128xf32>
    %52 = arith.mulf %50, %51 : vector<4x128xf32>
    %53 = vector.broadcast %34 : vector<1x128xf32> to vector<4x128xf32>
    %54 = arith.addf %52, %53 : vector<4x128xf32>
    %c0_23 = arith.constant 0 : index
    %c0_24 = arith.constant 0 : index
    %55 = vector.load %arg7[%c0_23, %c0_24] : memref<128x128xbf16, #tpu.memory_space<vmem>>, vector<128x128xbf16>
    %56 = arith.truncf %54 : vector<4x128xf32> to vector<4x128xbf16>
    %cst_25 = arith.constant dense<0.000000e+00> : vector<4x128xf32>
    %57 = tpu.matmul %56, %55, %cst_25 {dimension_numbers = #tpu.dot_dimension_numbers<[1], [0], [0], [1], [0, 0, 1, 1], [], []>} : vector<4x128xbf16>, vector<128x128xbf16>, vector<4x128xf32> -> vector<4x128xf32>
    %58 = arith.mulf %28, %28 : vector<2x128xf32>
    %cst_26 = arith.constant dense<0.000000e+00> : vector<2xf32>
    %59 = vector.multi_reduction <add>, %58, %cst_26 [1] : vector<2x128xf32> to vector<2xf32>
    %60 = vector.shape_cast %59 : vector<2xf32> to vector<2x1xf32>
    %61 = math.rsqrt %60 : vector<2x1xf32>
    %62 = vector.broadcast %61 : vector<2x1xf32> to vector<2x128xf32>
    %63 = arith.mulf %28, %62 : vector<2x128xf32>
    %64 = arith.mulf %57, %57 : vector<4x128xf32>
    %cst_27 = arith.constant dense<0.000000e+00> : vector<4xf32>
    %65 = vector.multi_reduction <add>, %64, %cst_27 [1] : vector<4x128xf32> to vector<4xf32>
    %66 = vector.shape_cast %65 : vector<4xf32> to vector<4x1xf32>
    %67 = math.rsqrt %66 : vector<4x1xf32>
    %68 = vector.broadcast %67 : vector<4x1xf32> to vector<4x128xf32>
    %69 = arith.mulf %57, %68 : vector<4x128xf32>
    %70 = arith.truncf %63 : vector<2x128xf32> to vector<2x128xbf16>
    %71 = arith.truncf %69 : vector<4x128xf32> to vector<4x128xbf16>
    %cst_28 = arith.constant dense<0.000000e+00> : vector<2x4xf32>
    %72 = tpu.matmul %70, %71, %cst_28 {dimension_numbers = #tpu.dot_dimension_numbers<[1], [1], [0], [0], [0, 0, 1, 0], [], []>} : vector<2x128xbf16>, vector<4x128xbf16>, vector<2x4xf32> -> vector<2x4xf32>
    %c0_29 = arith.constant 0 : index
    %73 = memref.load %arg8[%c0_29] : memref<1xf32, #tpu.memory_space<smem>>
    %74 = vector.broadcast %73 : f32 to vector<2x4xf32>
    %75 = arith.mulf %72, %74 : vector<2x4xf32>
    %c0_30 = arith.constant 0 : index
    %c0_31 = arith.constant 0 : index
    %76 = vector.load %arg9[%c0_30, %c0_31] : memref<2x4xf32, #tpu.memory_space<vmem>>, vector<2x4xf32>
    tpu.vector_store %arg9[%c0_30, %c0_31], %75 {strides = array<i32>} : memref<2x4xf32, #tpu.memory_space<vmem>>, vector<2x4xf32>,
    return
  }
}

</mosaic_0001>

<bundles_post_ra>
// kernel: custom_clip_forward.7
= control target key start
LH: loop header
LB: loop body
LE: loop exit
PB: predicated region body
PF: predicated region fallthrough
CT: control target
= control target key end

     0   :  { %v356_v0 = vmov 0   ;;  %vm139_vm0 = vcmask 523264   ;;  %vm192_vm1 = vcmask 1040384   ;;  %v57_v22 = vlaneseq  ;;  %s481_s1 = inlined_call_operand.vmem [shape: bf16[192,128], index: 1, kind: input, shape index: {}]   ;;  %s482_s0 = inlined_call_operand.vmem [shape: bf16[8,192], index: 0, kind: input, shape index: {}]   ;;  %s483_s3 = inlined_call_operand.vmem [shape: bf16[1,128], index: 3, kind: input, shape index: {}]   ;;  %s484_s4 = inlined_call_operand.vmem [shape: bf16[5,128], index: 4, kind: input, shape index: {}]   ;;  %s485_s2 = inlined_call_operand.vmem [shape: bf16[1,128], index: 2, kind: input, shape index: {}]   ;;  %s486_s7 = inlined_call_operand.vmem [shape: bf16[8,128], index: 7, kind: input, shape index: {}]   ;;  %s487_s8 = inlined_call_operand.vmem [shape: bf16[26,128], index: 8, kind: output, shape index: {}]   ;;  %s488_s5 = inlined_call_operand.vmem [shape: bf16[1,128], index: 5, kind: input, shape index: {}]   ;;  %s489_s6 = inlined_call_operand.vmem [shape: bf16[1,128], index: 6, kind: input, shape index: {}]  }
   0x1   :  { %143 = vmatprep.subr.bf16.mxu0 %v356_v0  ;;  %v336_v1 = vld [vmem:[%s481_s1] sm:$0xff]   ;;  %v337_v2 = vld [vmem:[%s481_s1 + $0x8] sm:$0xff]   ;;  %v338_v3 = vld [vmem:[%s481_s1 + $0x10] sm:$0xff]   ;;  %vm242_vm2 = vcmask 1047556   ;;  %vm215_vm3 = vcmask 1043456   ;;  %vm276_vm4 = vcmask 1044480  }
   0x2   :  { %144 = vmatpush1.bf16.msra.mxu0 %v336_v1  ;;  %v339_v4 = vld [vmem:[%s481_s1 + $0x18] sm:$0xff]   ;;  %v30_v5 = vld [vmem:[%s482_s0] sm:$0xff]  ;;  %v341_v14 = vld [vmem:[%s481_s1 + $0x28] sm:$0xff]   ;;  %v58_v23 = vshrl.u32 %v57_v22, 7  ;;  %vm279_vm5 = vcmask 1045504   ;;  %vm281_vm6 = vcmask 1041408  }
   0x3   :  { %145 = vmatprep.subr.bf16.mxu0 %v356_v0  ;;  %v183_v6 = vld [vmem:[%s484_s4] sm:$0x7]  ;;  %v308_v8 = vcombine.high %v30_v5, %v30_v5  ;;  %v342_v15 = vld [vmem:[%s481_s1 + $0x30] sm:$0xff]   ;;  %v343_v16 = vld [vmem:[%s481_s1 + $0x38] sm:$0xff]   ;;  %v307_v21 = vcombine.low %v30_v5, %v30_v5 }
   0x4   :  { %v187_v7 = vld [vmem:[%s483_s3] sm:$0x1]  ;;  %v184_v9 = vunpack.c.l.bf16 %v183_v6  ;;  %v345_v18 = vld [vmem:[%s481_s1 + $0x48] sm:$0xff]   ;;  %v346_v19 = vld [vmem:[%s481_s1 + $0x50] sm:$0xff]   ;;  %v451_v27 = vsub.s32 0, %v58_v23 }
   0x5   :  { %v188_v10 = vunpack.c.l.bf16 %v187_v7  ;;  %v340_v11 = vld [vmem:[%s481_s1 + $0x20] sm:$0xff]   ;;  %321 = vmatprep.mubr.msk.bf16.mxu0 %vm139_vm0, %v308_v8  ;;  %v347_v20 = vld [vmem:[%s481_s1 + $0x58] sm:$0xff]  }
   0x6   :  { %146 = vmatpush1.bf16.msra.mxu0 %v337_v2  ;;  %v344_v17 = vld [vmem:[%s481_s1 + $0x40] sm:$0xff]   ;;  %v239_v31 = vrot.slane %v184_v9, 5  ;;  %v212_v32 = vrot.slane %v184_v9, 1 }
   0x7   :  { %147 = vmatprep.subr.bf16.mxu0 %v356_v0  ;;  %v189_v12 = vadd.f32 %v188_v10, %v184_v9  ;;  %v55_v24 = vld [vmem:[%s485_s2] sm:$0x1] }
   0x8   :  { %v56_v26 = vunpack.c.l.bf16 %v55_v24  ;;  %v209_v44 = vld [vmem:[%s486_s7] sm:$0xf] }
   0x9   :  { %v193_v13 = vsel %vm192_vm1, %v189_v12, 0.0  ;;  %v210_v45 = vunpack.c.l.bf16 %v209_v44  ;;  %v186_v7 = vld [vmem:[%s489_s6] sm:$0x1] }
   0xa   :  { %148 = vmatpush1.bf16.msra.mxu0 %v338_v3  ;;  %194 = vadd.xlane.f32.xlu0 %v193_v13  ;;  %v60_v29 = vrot.slane %v56_v26, %v451_v27  ;;  %v191_v8 = vunpack.c.l.bf16 %v186_v7 }
   0xb   :  { %149 = vmatprep.subr.bf16.mxu0 %v356_v0  ;;  %v273_v46 = vrot.slane %v210_v45, 6 }
   0xd   :  { %v329_v47 = vpack.c.bf16 %v273_v46, %v273_v46 }
   0xe   :  { %150 = vmatpush1.bf16.msra.mxu0 %v339_v4  ;;  %v185_v4 = vld [vmem:[%s488_s5] sm:$0x1] }
   0xf   :  { %151 = vmatprep.subr.bf16.mxu0 %v356_v0  ;;  %302 = vst [vmem:[%s487_s8 + $0xc] sm:$0x1] %v329_v47  ;;  %v190_v5 = vunpack.c.l.bf16 %v185_v4 }
  0x11   :  { %v232_v10 = vrot.slane %v190_v5, %v451_v27 }
  0x12   :  { %152 = vmatpush1.bf16.msra.mxu0 %v340_v11 }
  0x13   :  { %153 = vmatprep.subr.bf16.mxu0 %v356_v0 }
  0x16   :  { %154 = vmatpush1.bf16.msra.mxu0 %v341_v14  ;;  %v237_v14 = vrot.slane %v191_v8, %v451_v27 }
  0x17   :  { %155 = vmatprep.subr.bf16.mxu0 %v356_v0 }
  0x1a   :  { %156 = vmatpush1.bf16.msra.mxu0 %v342_v15 }
  0x1b   :  { %157 = vmatprep.subr.bf16.mxu0 %v356_v0 }
  0x1e   :  { %158 = vmatpush1.bf16.msra.mxu0 %v343_v16 }
  0x1f   :  { %159 = vmatprep.subr.bf16.mxu0 %v356_v0 }
  0x22   :  { %160 = vmatpush1.bf16.msra.mxu0 %v344_v17 }
  0x23   :  { %161 = vmatprep.subr.bf16.mxu0 %v356_v0 }
  0x26   :  { %162 = vmatpush1.bf16.msra.mxu0 %v345_v18 }
  0x27   :  { %163 = vmatprep.subr.bf16.mxu0 %v356_v0 }
  0x2a   :  { %164 = vmatpush1.bf16.msra.mxu0 %v346_v19  ;;  %v262_v19 = vrot.slane %v210_v45, 3 }
  0x2b   :  { %165 = vmatprep.subr.bf16.mxu0 %v356_v0 }
  0x2e   :  { %166 = vmatpush1.bf16.msra.mxu0 %v347_v20 }
  0x31   :  { %176 = vmatmul.mubr.bf16.vlgmr.msra.gmra.mrb[0].mxu0 %v307_v21 }
  0x97   :  { %v195_v25 = vpop.xlane.xlu0 %194 }
  0x98   :  { %v197_v28 = vmul.f32 0.0078125, %v195_v25 }
  0x9a   :  { %v198_v30 = vsub.f32 %v189_v12, %v197_v28 }
  0x9c   :  { %v199_v40 = vmul.f32 %v198_v30, %v198_v30 }
  0x9e   :  { %v200_v43 = vsel %vm192_vm1, %v199_v40, 0.0 }
 0x104   :  { %v177_v33 = vpop.f32.mrb[0].mxu0 }
 0x105   :  { %v178_v34 = vadd.f32 %v177_v33, %v60_v29  ;;  %v179_v35 = vpop.f32.mrb[1].mxu0 }
 0x106   :  { %v180_v36 = vpop.f32.mrb[2].mxu0 }
 0x107   :  { %v181_v37 = vpop.f32.mrb[3].mxu0  ;;  %v241_v38 = vadd.f32 %v239_v31, %v178_v34  ;;  %v214_v39 = vadd.f32 %v212_v32, %v178_v34 }
 0x109   :  { %v243_v41 = vsel %vm242_vm2, %v241_v38, 0.0  ;;  %v216_v42 = vsel %vm215_vm3, %v214_v39, 0.0 }
 0x10a   :  { %244 = vadd.xlane.f32.xlu1 %v243_v41  ;;  %217 = vadd.xlane.f32.xlu0 %v216_v42 }
 0x10e   :  { %201 = vadd.xlane.f32.xlu1 %v200_v43 }
 0x197   :  { %v245_v48 = vpop.xlane.xlu1 %244  ;;  %v218_v49 = vpop.xlane.xlu0 %217 }
 0x198   :  { %v246_v50 = vmul.f32 0.0078125, %v245_v48  ;;  %v219_v51 = vmul.f32 0.0078125, %v218_v49 }
 0x19a   :  { %v247_v52 = vsub.f32 %v241_v38, %v246_v50  ;;  %v220_v53 = vsub.f32 %v214_v39, %v219_v51 }
 0x19b   :  { %v202_v58 = vpop.xlane.xlu1 %201 }
 0x19c   :  { %v248_v54 = vmul.f32 %v247_v52, %v247_v52  ;;  %v221_v55 = vmul.f32 %v220_v53, %v220_v53  ;;  %v203_v59 = vmul.f32 0.0078125, %v202_v58 }
 0x19e   :  { %v249_v56 = vsel %vm242_vm2, %v248_v54, 0.0  ;;  %v222_v57 = vsel %vm215_vm3, %v221_v55, 0.0  ;;  %v204_v60 = vadd.f32 1e-05, %v203_v59 }
 0x19f   :  { %250 = vadd.xlane.f32.xlu1 %v249_v56  ;;  %223 = vadd.xlane.f32.xlu0 %v222_v57 }
 0x1a0   :  { %350 = vrsqrt.f32 %v204_v60 }
 0x1aa   :  { %v351_v3 = vpop.eup %350 }
 0x1ab   :  { %v206_v6 = vmul.f32 %v351_v3, %v198_v30 }
 0x1ad   :  { %v207_v9 = vmul.f32 %v206_v6, %v190_v5 }
 0x1af   :  { %v208_v12 = vadd.f32 %v207_v9, %v191_v8 }
 0x1b1   :  { %v268_v18 = vrot.slane %v208_v12, %v451_v27 }
 0x1b3   :  { %v278_v24 = vsel %vm276_vm4, %v262_v19, %v268_v18 }
 0x22c   :  { %v251_v61 = vpop.xlane.xlu1 %250  ;;  %v224_v62 = vpop.xlane.xlu0 %223 }
 0x22d   :  { %v252_v63 = vmul.f32 0.0078125, %v251_v61  ;;  %v225_v0 = vmul.f32 0.0078125, %v224_v62 }
 0x22f   :  { %v253_v1 = vadd.f32 1e-05, %v252_v63  ;;  %v226_v2 = vadd.f32 1e-05, %v225_v0 }
 0x231   :  { %352 = vrsqrt.f32 %v253_v1 }
 0x232   :  { %354 = vrsqrt.f32 %v226_v2 }
 0x23b   :  { %v353_v11 = vpop.eup %352 }
 0x23c   :  { %v355_v13 = vpop.eup %354  ;;  %v255_v15 = vmul.f32 %v353_v11, %v247_v52 }
 0x23d   :  { %v228_v16 = vmul.f32 %v355_v13, %v220_v53 }
 0x23e   :  { %v256_v17 = vmul.f32 %v255_v15, %v232_v10 }
 0x23f   :  { %v233_v20 = vmul.f32 %v232_v10, %v228_v16 }
 0x240   :  { %v257_v21 = vadd.f32 %v256_v17, %v237_v14 }
 0x241   :  { %v238_v22 = vadd.f32 %v237_v14, %v233_v20 }
 0x242   :  { %v271_v23 = vrot.slane %v257_v21, 6 }
 0x243   :  { %v259_v25 = vrot.slane %v238_v22, 7 }
 0x244   :  { %v280_v26 = vsel %vm279_vm5, %v278_v24, %v271_v23  ;;  %v282_v28 = vsel %vm281_vm6, %v271_v23, %v273_v46 }
 0x245   :  { %v328_v29 = vpack.c.bf16 %v282_v28, %v282_v28  ;;  %v275_v30 = vsel %vm192_vm1, %v208_v12, %v259_v25 }
 0x246   :  { %v277_v31 = vsel %vm276_vm4, %v275_v30, %v262_v19 }
 0x247   :  { %301 = vst [vmem:[%s487_s8 + $0x8] sm:$0xf] %v328_v29  ;;  %v333_v27 = vpack.c.bf16 %v280_v26, %v277_v31 }
 0x249   :  { %334 = vst [vmem:[%s487_s8] sm:$0xff] %v333_v27  }

// kernel: custom_clip_forward.5
= control target key start
LH: loop header
LB: loop body
LE: loop exit
PB: predicated region body
PF: predicated region fallthrough
CT: control target
= control target key end

     0   :  { %s4413_s0 = inlined_call_operand.vmem [shape: bf16[2,4,128], index: 0, kind: input, shape index: {}]   ;;  %s4414_s1 = inlined_call_operand.hbm [shape: bf16[2,128,384], index: 1, kind: input, shape index: {}]   ;;  %s4415_s2 = inlined_call_operand.vmem [shape: bf16[2,1,384], index: 2, kind: input, shape index: {}]   ;;  %s4416_s3 = inlined_call_operand.vmem [shape: bf16[2,128,128], index: 3, kind: input, shape index: {}]   ;;  %s4417_s4 = inlined_call_operand.vmem [shape: bf16[2,1,128], index: 4, kind: input, shape index: {}]   ;;  %s4418_s5 = inlined_call_operand.vmem [shape: bf16[2,128,512], index: 5, kind: input, shape index: {}]   ;;  %s4419_s6 = inlined_call_operand.vmem [shape: bf16[2,1,512], index: 6, kind: input, shape index: {}]   ;;  %s4420_s7 = inlined_call_operand.hbm [shape: bf16[2,512,128], index: 7, kind: input, shape index: {}]   ;;  %s4421_s8 = inlined_call_operand.vmem [shape: bf16[2,1,128], index: 8, kind: input, shape index: {}]   ;;  %s4422_s9 = inlined_call_operand.vmem [shape: bf16[2,4,128], index: 9, kind: input, shape index: {}]   ;;  %s4423_s10 = inlined_call_operand.vmem [shape: bf16[2,128,128], index: 10, kind: input, shape index: {}]   ;;  %s4424_s11 = inlined_call_operand.vmem [shape: bf16[2,1,128], index: 11, kind: input, shape index: {}]   ;;  %s4425_s12 = inlined_call_operand.vmem [shape: bf16[2,4,128], index: 12, kind: output, shape index: {0}]   ;;  %s4426_s13 = inlined_call_operand.vmem [shape: bf16[2,4,128], index: 13, kind: output, shape index: {1}]  }
   0x1   :  { %4431 = sst [smem:[#allocation11_spill]] %s4414_s1 }
   0x2   :  { %4432 = sst [smem:[#allocation12_spill]] %s4426_s13 }
   0x3   :  { %19 = vsyncpa [#allocation3], 0 }
   0x4   :  { %21 = vsyncpa [#allocation3 + $0x1], 0 }
   0x5   :  { %22 = vsyncpa [#allocation5], 0 }
   0x6   :  { %24 = vsyncpa [#allocation5 + $0x1], 0  ;;  %s3845_s25 = smov 0   ;;  %s3847_s26 = smov 0  }
   0x7   :  { %s3849_s27 = smov 0   ;;  %s3851_s28 = smov 0  }
   0x8 LB: > { %4433 = sst [smem:[#allocation8_spill]] %s3753_s27  ;;  %s3864_s29 = sadd.s32 4294967295, %s3757_s28   ;;  %s3757_s28 = sphi %s3851_s28, %s4443_s28   ;;  %s3753_s27 = sphi %s3849_s27, %s4445_s27   ;;  %s3749_s26 = sphi %s3847_s26, %s4447_s26   ;;  %s3745_s25 = sphi %s3845_s25, %s4446_s25  }
   0x9   : > { %s3867_s30 = sadd.s32 1, %s3757_s28   ;;  %s63_s15 = sadd.s32 1, %s3753_s27 }
   0xa   : > { %4434 = sst [smem:[#allocation9_spill]] %s3867_s30  ;;  %s60_s14 = ssub.s32 %s3757_s28, %s3867_s30 }
   0xb   : > { %p61_p0 = scmp.eq.s32.totalorder %s60_s14, 0  ;;  %p70_p1 = scmp.ne.s32.totalorder %s3753_s27, %s3749_s26 }
   0xc   : > { %p71_p2 = scmp.eq.s32.totalorder %s3757_s28, 0  ;;  %p76_p3 = scmp.ne.s32.totalorder %s3749_s26, %s3745_s25 }
   0xd   : > { %s3877_s16 = scalar_select %p61_p0, %s3753_s27, %s63_s15  }
   0xe   : > { %p72_p4 = por %p71_p2, %p70_p1  ;;  %p77_p5 = scmp.eq.s32.totalorder %s3864_s29, 0 }
   0xf   : > { %4435 = sst [smem:[#allocation10_spill]] %s3877_s16  ;;  %p3444_p6 = scmp.lt.s32.totalorder %s3757_s28, 2 }
  0x10   : > { %p3881_p7 = por %p77_p5, %p76_p3  ;;  %s3886_s18 = sand.u32 1, %s3753_s27  }
  0x11   : > { %s3429_s19 = smul.u32 192, %s3886_s18  ;;  %p3890_p8 = pnand %p3444_p6, %p72_p4 }
  0x12   : > { %s4436_s17 = scalar_select %p3881_p7, 1, 0 }
  0x13   : > { %s3430_s20 = smul.u32 3072, %s3757_s28  ;;  %s4438_s1 = sld [smem:[#allocation11_spill]] }
  0x14   : > { %s423_s25 = scalar_lea.vmem [#allocation2], %s3429_s19  ;;  %s420_s15 = scalar_lea.sflag [#allocation3], %s3886_s18 }
  0x15   : > { %s430_s14 = sshll.u32 %s423_s25, 4  ;;  %p3661_p11 = pneg %p3890_p8  ;;  %s3899_s14 = int_to_ptr.vmem [resolvable:$true] %s430_s14 }
  0x19   : > { %s3897_s24 = scalar_lea.hbm %s4438_s1, %s3430_s20  ;;  %s3664_s23 = scalar_lea.hbm %s4438_s1, 6144 }
  0x1a   : > { %s3659_s16 = scalar_lea.hbm %s3897_s24, 3072  ;;  %p3665_p0 = scmp.lt.u32.totalorder %s3897_s24, %s4438_s1 }
  0x1b   : > { %p3660_p10 = scmp.ne.s32.totalorder %s3897_s24, %s3659_s16  ;;  %p3666_p1 = scmp.lt.u32.totalorder %s3664_s23, %s3659_s16 }
  0x1c   : > { %p3668_p3 = scmp.lt.u32.totalorder %s3659_s16, %s3897_s24 }
  0x1d   : > { %p3662_p12 = pnand %p3661_p11, %p3660_p10  ;;  %p3667_p2 = por %p3666_p1, %p3665_p0 }
  0x1f   : > { %p3663_p13 = pneg %p3662_p12  ;;  %p3669_p4 = por %p3668_p3, %p3667_p2 }
  0x21   : > { %p3670_p5 = pnand %p3669_p4, %p3663_p13 }
  0x23   : > { %3673 = shalt.err (!%p3670_p5)
}
  0x24   : > { %s3674_s19 = scalar_lea.vmem %s3899_s14, 3072  ;;  %s3759_s25 = smov [#allocation2]  }
  0x25   : > { %p3675_p6 = scmp.ne.s32.totalorder %s3899_s14, %s3674_s19  ;;  %s3679_s20 = sshll.u32 %s3759_s25, 4  ;;  %s3680_s20 = int_to_ptr.vmem [resolvable:$false] %s3679_s20 }
  0x26   : > { %s3681_s27 = scalar_lea.vmem %s3680_s20, 6144  ;;  %p3682_p9 = scmp.lt.s32.totalorder %s3899_s14, %s3680_s20 }
  0x27   : > { %p3677_p10 = pnand %p3675_p6, %p3661_p11  ;;  %p3683_p0 = scmp.lt.s32.totalorder %s3681_s27, %s3674_s19 }
  0x29   : > { %p3678_p12 = pneg %p3677_p10  ;;  %p3684_p1 = por %p3683_p0, %p3682_p9 }
  0x2b   : > { %p3685_p2 = pnand %p3684_p1, %p3678_p12 }
  0x2d   : > { %3688 = shalt.err (!%p3685_p2)
}
  0x2e   : > { %s3760_s30 = smov 192   ;;  %s3761_s16 = smov 12  }
  0x2f   : > { %3440 = dma.hbm_to_vmem [thread:$0]  (!%p3890_p8), %s3897_s24, 3072, %s3899_s14, %s420_s15, %s3760_s30, %s3760_s30, %s3761_s16  }
  0x30   : > { %p522_p13 = scmp.lt.s32.totalorder %s3757_s28, 3  ;;  %s3028_s22 = sshll.u32 %s3886_s18, 8 }
  0x31   : > { %s3166_s23 = sshll.u32 %s3757_s28, 12  ;;  %p4439_p9 = scmp.ge.s32.totalorder %s3757_s28, 1 }
  0x32   : > { %s3942_s27 = scalar_lea.hbm %s4420_s7, %s3166_s23  ;;  %s480_s1 = scalar_lea.vmem [#allocation4], %s3028_s22 }
  0x33   : > { %p3935_p3 = pnand %p4439_p9, %p522_p13  ;;  %s487_s13 = sshll.u32 %s480_s1, 4  ;;  %s3944_s13 = int_to_ptr.vmem [resolvable:$true] %s487_s13 }
  0x34   : > { %s477_s24 = scalar_lea.sflag [#allocation5], %s3886_s18  ;;  %s3689_s14 = scalar_lea.hbm %s3942_s27, 4096 }
  0x35   : > { %p3690_p4 = scmp.ne.s32.totalorder %s3942_s27, %s3689_s14  ;;  %s3694_s30 = scalar_lea.hbm %s4420_s7, 8192 }
  0x36   : > { %p3695_p10 = scmp.lt.u32.totalorder %s3942_s27, %s4420_s7  ;;  %p3696_p12 = scmp.lt.u32.totalorder %s3694_s30, %s3689_s14 }
  0x37   : > { %p3692_p5 = pnand %p3690_p4, %p3661_p11  ;;  %p3698_p1 = scmp.lt.u32.totalorder %s3689_s14, %s3942_s27 }
  0x38   : > { %p3697_p0 = por %p3696_p12, %p3695_p10 }
  0x39   : > { %p3693_p6 = pneg %p3692_p5 }
  0x3a   : > { %p3699_p2 = por %p3698_p1, %p3697_p0 }
  0x3c   : > { %p3700_p13 = pnand %p3699_p2, %p3693_p6 }
  0x3e   : > { %3703 = shalt.err (!%p3700_p13)
}
  0x3f   : > { %s3704_s1 = scalar_lea.vmem %s3944_s13, 4096  ;;  %s3762_s22 = smov [#allocation4]  }
  0x40   : > { %p3705_p9 = scmp.ne.s32.totalorder %s3944_s13, %s3704_s1  ;;  %s3709_s25 = sshll.u32 %s3762_s22, 4  ;;  %s3710_s25 = int_to_ptr.vmem [resolvable:$false] %s3709_s25 }
  0x41   : > { %s3711_s20 = scalar_lea.vmem %s3710_s25, 8192  ;;  %p3712_p7 = scmp.lt.s32.totalorder %s3944_s13, %s3710_s25 }
  0x42   : > { %p3707_p4 = pnand %p3705_p9, %p3661_p11  ;;  %p3713_p10 = scmp.lt.s32.totalorder %s3711_s20, %s3704_s1 }
  0x44   : > { %p3708_p5 = pneg %p3707_p4  ;;  %p3714_p12 = por %p3713_p10, %p3712_p7 }
  0x46   : > { %p3715_p0 = pnand %p3714_p12, %p3708_p5 }
  0x48   : > { %3718 = shalt.err (!%p3715_p0)
}
  0x49   : > { %s3763_s14 = smov 64   ;;  %s3764_s28 = smov 4  }
  0x4a   : > { %3443 = dma.hbm_to_vmem [thread:$0]  (!%p3890_p8), %s3942_s27, 4096, %s3944_s13, %s477_s24, %s3763_s14, %s3763_s14, %s3764_s28  }
  0x4b   : > { %526 = sbr.rel (%p3935_p3) target bundleno = 2105 (0x839), region = 68  ;;  %s528_s15 = sand.u32 (!%p3935_p3), 1, %s3749_s26  }
  0x4c   : > { %s3431_s30 = smul.u32 (!%p3935_p3), 192, %s528_s15  ;;  %s529_s16 = scalar_lea.sflag (!%p3935_p3), [#allocation3], %s528_s15 }
  0x4d   : > { %p4441_p7 = scmp.ne.s32.totalorder (!%p3935_p3), %s4436_s17, 0 }
  0x4e   : > { %s3975_s23 = scalar_lea.vmem (!%p3935_p3), [#allocation2], %s3431_s30 }
  0x52   : > { %3736 = dma.done.wait (%p4441_p7), %s529_s16, 3072  }
  0x53   : > { %3738 = vsyncadd (%p4441_p7), %s529_s16, 4294964224  ;;  %s3032_s1 = sshll.u32 %s528_s15, 8  ;;  %s538_s21 = scalar_lea.sflag [#allocation5], %s528_s15 }
  0x54   : > { %s3981_s18 = scalar_lea.vmem [#allocation4], %s3032_s1 }
  0x55   : > { %3740 = dma.done.wait (%p4441_p7), %s538_s21, 4096  }
  0x56   : > { %3742 = vsyncadd (%p4441_p7), %s538_s21, 4294963200  ;;  %v3765_v0 = vmov 0   ;;  %v3491_v1 = vld [vmem:[%s3975_s23 + $0x4] ss:$12 sps:$4 sm:$0xff]   ;;  %v3493_v2 = vld [vmem:[%s3975_s23] ss:$12 sps:$4 sm:$0xff]   ;;  %v717_v19 = vlaneseq }
  0x57   : > { %904 = vmatprep.mubr.bf16.mxu0 %v3765_v0  ;;  %872 = vmatprep.subr.bf16.mxu0 %v3491_v1  ;;  %v3494_v3 = vld [vmem:[%s3975_s23 + $0x1c] ss:$12 sps:$4 sm:$0xff]   ;;  %v3496_v4 = vld [vmem:[%s3975_s23 + $0x18] ss:$12 sps:$4 sm:$0xff]   ;;  %v3497_v5 = vld [vmem:[%s3975_s23 + $0x34] ss:$12 sps:$4 sm:$0xff]  }
  0x58   : > { %873 = vmatpush1.bf16.msra.mxu0 %v3493_v2  ;;  %p632_p8 = scmp.lt.s32.totalorder %s3864_s29, 1  ;;  %v3499_v6 = vld [vmem:[%s3975_s23 + $0x30] ss:$12 sps:$4 sm:$0xff]   ;;  %v3500_v7 = vld [vmem:[%s3975_s23 + $0x4c] ss:$12 sps:$4 sm:$0xff]   ;;  %v3766_v18 = vmov 0.0  }
  0x59   : > { %874 = vmatprep.subr.bf16.mxu0 %v3494_v3  ;;  %v3502_v8 = vld [vmem:[%s3975_s23 + $0x48] ss:$12 sps:$4 sm:$0xff]   ;;  %v3503_v9 = vld [vmem:[%s3975_s23 + $0x64] ss:$12 sps:$4 sm:$0xff]   ;;  %v3505_v10 = vld [vmem:[%s3975_s23 + $0x60] ss:$12 sps:$4 sm:$0xff]   ;;  %3273 = vmatprep.subr.bf16.mxu1 %v3766_v18 }
  0x5a   : > { %s4449_s29 = smov (!%p632_p8, %s3864_s29), 1  ;;  %v3506_v11 = vld [vmem:[%s3975_s23 + $0x7c] ss:$12 sps:$4 sm:$0xff]   ;;  %v3508_v12 = vld [vmem:[%s3975_s23 + $0x78] ss:$12 sps:$4 sm:$0xff]   ;;  %vm3767_vm0 = vmmov 0  }
  0x5b   : > { %s3167_s13 = sshll.u32 %s4449_s29, 6  ;;  %s3168_s17 = sshll.u32 %s4449_s29, 8  ;;  %v3509_v13 = vld [vmem:[%s3975_s23 + $0x94] ss:$12 sps:$4 sm:$0xff]   ;;  %v3511_v14 = vld [vmem:[%s3975_s23 + $0x90] ss:$12 sps:$4 sm:$0xff]   ;;  %3289 = vmatprep.mubr.msk.bf16.mxu1 %vm3767_vm0, %v3766_v18 }
  0x5c   : > { %875 = vmatpush1.bf16.msra.mxu0 %v3496_v4  ;;  %s4008_s24 = scalar_lea.vmem %s4416_s3, %s3167_s13  ;;  %s4016_s20 = scalar_lea.vmem %s4418_s5, %s3168_s17  ;;  %v3512_v15 = vld [vmem:[%s3975_s23 + $0xac] ss:$12 sps:$4 sm:$0xff]   ;;  %v3514_v16 = vld [vmem:[%s3975_s23 + $0xa8] ss:$12 sps:$4 sm:$0xff]   ;;  %v4045_v20 = vshrl.u32 %v717_v19, 7  ;;  %vm956_vm1 = vcmask 130048  }
  0x5d   : > { %876 = vmatprep.subr.bf16.mxu0 %v3497_v5  ;;  %s4020_s14 = sshll.u32 %s4449_s29, 1  ;;  %s4033_s21 = scalar_lea.vmem %s4423_s10, %s3167_s13  ;;  %v3515_v38 = vld [vmem:[%s3975_s23 + $0x8] ss:$12 sps:$4 sm:$0xff]   ;;  %v3516_v39 = vld [vmem:[%s3975_s23 + $0x20] ss:$12 sps:$4 sm:$0xff]   ;;  %vm1004_vm2 = vcmask 27648  }
  0x5e   : > { %s635_s30 = scalar_lea.vmem %s4413_s0, %s4020_s14  ;;  %s3432_s17 = smul.u32 3, %s4449_s29  ;;  %v723_v23 = vsub.s32 2, %v4045_v20  ;;  %v4051_v24 = vsub.s32 0, %v4045_v20  ;;  %3274 = vmatpush3.bf16.msra.mxu1 %v3515_v38  ;;  %v3517_v40 = vld [vmem:[%s3975_s23 + $0x38] ss:$12 sps:$4 sm:$0xff]   ;;  %vm1021_vm3 = vcmask 1041408  }
  0x5f   : > { %v4027_v17 = vld [vmem:[%s635_s30] sm:$0x3]  ;;  %s3768_s13 = smov 96   ;;  %s3769_s25 = smov 112   ;;  %3275 = vmatprep.subr.bf16.mxu1 %v3766_v18  ;;  %v3518_v41 = vld [vmem:[%s3975_s23 + $0x50] ss:$12 sps:$4 sm:$0xff]  }
  0x60   : > { %877 = vmatpush1.bf16.msra.mxu0 %v3499_v6  ;;  %s639_s22 = scalar_lea.vmem %s4415_s2, %s3432_s17  ;;  %s3770_s28 = smov 80   ;;  %v3519_v42 = vld [vmem:[%s3975_s23 + $0x68] ss:$12 sps:$4 sm:$0xff]   ;;  %v3520_v43 = vld [vmem:[%s3975_s23 + $0x80] ss:$12 sps:$4 sm:$0xff]   ;;  %vm1017_vm4 = vcmask 31744  }
  0x61   : > { %878 = vmatprep.subr.bf16.mxu0 %v3500_v7  ;;  %v714_v21 = vld [vmem:[%s639_s22] sm:$0x7]  ;;  %s3771_s15 = smov 64   ;;  %s3772_s30 = smov 48   ;;  %v3521_v44 = vld [vmem:[%s3975_s23 + $0x98] ss:$12 sps:$4 sm:$0xff]  }
  0x62   : > { %v4047_v22 = vunpack.c.l.bf16 %v714_v21  ;;  %s3773_s16 = smov 32   ;;  %s3774_s1 = smov 16   ;;  %3276 = vmatpush3.bf16.msra.mxu1 %v3516_v39  ;;  %v3522_v47 = vld [vmem:[%s3975_s23 + $0xb0] ss:$12 sps:$4 sm:$0xff]   ;;  %vm1874_vm5 = vcmask 261120   ;;  %vm1876_vm6 = vcmask 392192  }
  0x63   : > { %3277 = vmatprep.subr.bf16.mxu1 %v3766_v18  ;;  %vm1878_vm7 = vcmask 523264   ;;  %vm1880_vm8 = vcmask 654336   ;;  %vm1882_vm9 = vcmask 785408   ;;  %vm1884_vm10 = vcmask 916480   ;;  %s647_s17 = scalar_lea.vmem %s4417_s4, %s4449_s29  ;;  %s4442_s27 = sld [smem:[#allocation12_spill]] }
  0x64   : > { %879 = vmatpush1.bf16.msra.mxu0 %v3502_v8  ;;  %v724_v25 = vrot.slane %v4047_v22, %v723_v23  ;;  %v720_v26 = vrot.slane %v4047_v22, %v4051_v24 }
  0x65   : > { %880 = vmatprep.subr.bf16.mxu0 %v3503_v9 }
  0x66   : > { %v739_v27 = vrot.slane %v724_v25, %v4051_v24  ;;  %v735_v28 = vrot.slane %v720_v26, %v4051_v24  ;;  %3278 = vmatpush3.bf16.msra.mxu1 %v3517_v40 }
  0x67   : > { %3279 = vmatprep.subr.bf16.mxu1 %v3766_v18 }
  0x68   : > { %881 = vmatpush1.bf16.msra.mxu0 %v3505_v10  ;;  %v727_v10 = vsub.s32 4, %v4045_v20 }
  0x69   : > { %882 = vmatprep.subr.bf16.mxu0 %v3506_v11 }
  0x6a   : > { %3280 = vmatpush3.bf16.msra.mxu1 %v3518_v41  ;;  %v728_v11 = vrot.slane %v4047_v22, %v727_v10 }
  0x6b   : > { %3281 = vmatprep.subr.bf16.mxu1 %v3766_v18 }
  0x6c   : > { %883 = vmatpush1.bf16.msra.mxu0 %v3508_v12  ;;  %v743_v12 = vrot.slane %v728_v11, %v4051_v24 }
  0x6d   : > { %884 = vmatprep.subr.bf16.mxu0 %v3509_v13 }
  0x6e   : > { %3282 = vmatpush3.bf16.msra.mxu1 %v3519_v42 }
  0x6f   : > { %3283 = vmatprep.subr.bf16.mxu1 %v3766_v18 }
  0x70   : > { %885 = vmatpush1.bf16.msra.mxu0 %v3511_v14 }
  0x71   : > { %886 = vmatprep.subr.bf16.mxu0 %v3512_v15 }
  0x72   : > { %3284 = vmatpush3.bf16.msra.mxu1 %v3520_v43 }
  0x73   : > { %3285 = vmatprep.subr.bf16.mxu1 %v3766_v18 }
  0x74   : > { %887 = vmatpush1.bf16.msra.mxu0 %v3514_v16 }
  0x75   : > { %3293 = vmatprep.subr.bf16.mxu0 %v3766_v18 }
  0x76   : > { %3286 = vmatpush3.bf16.msra.mxu1 %v3521_v44 }
  0x77   : > { %905 = vmatmul.mubr.bf16.vlgmr.msra.gmra.mrb[0].mxu0 %v4027_v17  ;;  %3287 = vmatprep.subr.bf16.mxu1 %v3766_v18 }
  0x78   : > { %3295 = vmatprep.mubr.msk.bf16.mxu0 %vm3767_vm0, %v3766_v18 }
  0x7a   : > { %3288 = vmatpush3.bf16.msra.mxu1 %v3522_v47 }
  0x7b   : > { %3299 = vmatprep.subr.bf16.mxu1 %v3766_v18 }
  0x7d   : > { %3290 = vmatmul.mubr.bf16.vlgmr.msra.gmra.mrb[0].mxu1 %v4027_v17 }
  0x7e   : > { %3301 = vmatprep.mubr.msk.bf16.mxu1 %vm3767_vm0, %v3766_v18 }
 0x14a   : > { %v906_v29 = vpop.f32.mrb[0].mxu0 }
 0x14b   : > { %v908_v30 = vpop.f32.mrb[1].mxu0  ;;  %v907_v34 = vadd.f32 %v906_v29, %v735_v28 }
 0x14c   : > { %v909_v31 = vadd.f32 %v908_v30, %v739_v27  ;;  %v910_v32 = vpop.f32.mrb[2].mxu0 }
 0x14d   : > { %v911_v33 = vpop.f32.mrb[3].mxu0  ;;  %v953_v37 = vpack.c.bf16 %v907_v34, %v907_v34 }
 0x14e   : > { %v954_v35 = vpack.c.bf16 %v909_v31, %v909_v31 }
 0x150   : > { %1181 = vrot.lane.b32.xlu1 %v954_v35, %s3768_s13  ;;  %1069 = vrot.lane.b32.xlu0 %v954_v35, %s3769_s25  ;;  %v961_v36 = vsel %vm956_vm1, %v954_v35, 0  ;;  %v947_v13 = vpop.f32.mrb[0].mxu1 }
 0x151   : > { %3294 = vmatpush3.bf16.xpose.msra.mxu0 %v961_v36  ;;  %v948_v15 = vadd.f32 %v947_v13, %v743_v12  ;;  %v3291_v16 = vpop.f32.mrb[1].mxu1 }
 0x152   : > { %3305 = vmatprep.subr.bf16.mxu0 %v3766_v18  ;;  %v950_v21 = vpop.f32.mrb[2].mxu1 }
 0x153   : > { %v4141_v26 = vpack.c.bf16 %v948_v15, %v948_v15  ;;  %v3292_v27 = vpop.f32.mrb[3].mxu1 }
 0x154   : > { %1179 = vrot.lane.b32.xlu1 %v953_v37, %s3768_s13  ;;  %1066 = vrot.lane.b32.xlu0 %v953_v37, %s3769_s25 }
 0x155   : > { %v1023_v22 = vsel %vm1021_vm3, %v4141_v26, 0 }
 0x156   : > { %3300 = vmatpush3.bf16.msra.mxu1 %v1023_v22 }
 0x157   : > { %3311 = vmatprep.subr.bf16.mxu1 %v3766_v18 }
 0x158   : > { %1290 = vrot.lane.b32.xlu1 %v953_v37, %s3770_s28  ;;  %1292 = vrot.lane.b32.xlu0 %v954_v35, %s3770_s28 }
 0x159   : > { %3296 = vmatmul.mubr.msk.bf16.vlgmr.msra.gmra.mrb[4].mxu0 %vm956_vm1, %v953_v37 }
 0x15a   : > { %3307 = vmatprep.mubr.msk.bf16.mxu0 %vm3767_vm0, %v3766_v18 }
 0x15c   : > { %1401 = vrot.lane.b32.xlu1 %v953_v37, %s3771_s15  ;;  %1403 = vrot.lane.b32.xlu0 %v954_v35, %s3771_s15 }
 0x160   : > { %1512 = vrot.lane.b32.xlu1 %v953_v37, %s3772_s30  ;;  %1514 = vrot.lane.b32.xlu0 %v954_v35, %s3772_s30 }
 0x164   : > { %1623 = vrot.lane.b32.xlu1 %v953_v37, %s3773_s16  ;;  %1625 = vrot.lane.b32.xlu0 %v954_v35, %s3773_s16 }
 0x168   : > { %1734 = vrot.lane.b32.xlu1 %v953_v37, %s3774_s1  ;;  %1736 = vrot.lane.b32.xlu0 %v954_v35, %s3774_s1 }
 0x1c2   : > { %v1070_v45 = vpop.permute.xlu0 %1069  ;;  %v1182_v48 = vpop.permute.xlu1 %1181 }
 0x1c3   : > { %v1075_v46 = vsel %vm956_vm1, %v1070_v45, 0  ;;  %v1187_v50 = vsel %vm956_vm1, %v1182_v48, 0 }
 0x1c4   : > { %3306 = vmatpush3.bf16.xpose.msra.mxu0 %v1075_v46 }
 0x1c5   : > { %3317 = vmatprep.subr.bf16.mxu0 %v3766_v18 }
 0x1c6   : > { %v1067_v49 = vpop.permute.xlu0 %1066  ;;  %v1180_v52 = vpop.permute.xlu1 %1179 }
 0x1ca   : > { %v1293_v51 = vpop.permute.xlu0 %1292  ;;  %v1291_v55 = vpop.permute.xlu1 %1290 }
 0x1cb   : > { %3308 = vmatmul.mubr.msk.bf16.vlgmr.msra.gmra.mrb[8].mxu0 %vm956_vm1, %v1067_v49  ;;  %v1298_v53 = vsel %vm956_vm1, %v1293_v51, 0 }
 0x1cc   : > { %3318 = vmatpush3.bf16.xpose.msra.mxu0 %v1187_v50  ;;  %3319 = vmatprep.mubr.msk.bf16.mxu0 %vm3767_vm0, %v3766_v18 }
 0x1cd   : > { %3329 = vmatprep.subr.bf16.mxu0 %v3766_v18 }
 0x1ce   : > { %v1404_v54 = vpop.permute.xlu0 %1403  ;;  %v1402_v58 = vpop.permute.xlu1 %1401 }
 0x1cf   : > { %v1409_v56 = vsel %vm956_vm1, %v1404_v54, 0 }
 0x1d2   : > { %v1515_v57 = vpop.permute.xlu0 %1514  ;;  %v1513_v61 = vpop.permute.xlu1 %1512 }
 0x1d3   : > { %3320 = vmatmul.mubr.msk.bf16.vlgmr.msra.gmra.mrb[12].mxu0 %vm956_vm1, %v1180_v52  ;;  %v1520_v59 = vsel %vm956_vm1, %v1515_v57, 0 }
 0x1d4   : > { %3330 = vmatpush3.bf16.xpose.msra.mxu0 %v1298_v53  ;;  %3331 = vmatprep.mubr.msk.bf16.mxu0 %vm3767_vm0, %v3766_v18 }
 0x1d5   : > { %3341 = vmatprep.subr.bf16.mxu0 %v3766_v18 }
 0x1d6   : > { %v1626_v60 = vpop.permute.xlu0 %1625  ;;  %v1624_v1 = vpop.permute.xlu1 %1623 }
 0x1d7   : > { %v1631_v62 = vsel %vm956_vm1, %v1626_v60, 0 }
 0x1da   : > { %v1737_v63 = vpop.permute.xlu0 %1736  ;;  %v1735_v3 = vpop.permute.xlu1 %1734 }
 0x1db   : > { %3332 = vmatmul.mubr.msk.bf16.vlgmr.msra.gmra.mrb[16].mxu0 %vm956_vm1, %v1291_v55  ;;  %v1742_v2 = vsel %vm956_vm1, %v1737_v63, 0 }
 0x1dc   : > { %3342 = vmatpush3.bf16.xpose.msra.mxu0 %v1409_v56  ;;  %3343 = vmatprep.mubr.msk.bf16.mxu0 %vm3767_vm0, %v3766_v18 }
 0x1dd   : > { %3353 = vmatprep.subr.bf16.mxu0 %v3766_v18 }
 0x1e3   : > { %3344 = vmatmul.mubr.msk.bf16.vlgmr.msra.gmra.mrb[20].mxu0 %vm956_vm1, %v1402_v58 }
 0x1e4   : > { %3354 = vmatpush3.bf16.xpose.msra.mxu0 %v1520_v59  ;;  %3355 = vmatprep.mubr.msk.bf16.mxu0 %vm3767_vm0, %v3766_v18 }
 0x1e5   : > { %3365 = vmatprep.subr.bf16.mxu0 %v3766_v18 }
 0x1eb   : > { %3356 = vmatmul.mubr.msk.bf16.vlgmr.msra.gmra.mrb[24].mxu0 %vm956_vm1, %v1513_v61 }
 0x1ec   : > { %3366 = vmatpush3.bf16.xpose.msra.mxu0 %v1631_v62  ;;  %3367 = vmatprep.mubr.msk.bf16.mxu0 %vm3767_vm0, %v3766_v18 }
 0x1ed   : > { %3377 = vmatprep.subr.bf16.mxu0 %v3766_v18 }
 0x1f3   : > { %3368 = vmatmul.mubr.msk.bf16.vlgmr.msra.gmra.mrb[28].mxu0 %vm956_vm1, %v1624_v1 }
 0x1f4   : > { %3378 = vmatpush3.bf16.xpose.msra.mxu0 %v1742_v2  ;;  %3379 = vmatprep.mubr.msk.bf16.mxu0 %vm3767_vm0, %v3766_v18 }
 0x1f5   : > { %3389 = vmatprep.subr.bf16.mxu0 %v3766_v18 }
 0x1fb   : > { %3380 = vmatmul.mubr.msk.bf16.vlgmr.msra.gmra.mrb[32].mxu0 %vm956_vm1, %v1735_v3 }
 0x1fc   : > { %3405 = vmatprep.mubr.msk.bf16.mxu0 %vm3767_vm0, %v3766_v18 }
 0x22c   : > { %v997_v4 = vpop.f32.mrb[4].mxu0 }
 0x22d   : > { %v1003_v5 = vmul.f32 0.25, %v997_v4  ;;  %v3297_v6 = vpop.f32.mrb[5].mxu0 }
 0x22e   : > { %v1000_v7 = vpop.f32.mrb[6].mxu0 }
 0x22f   : > { %v3298_v8 = vpop.f32.mrb[7].mxu0  ;;  %v1005_v9 = vsel %vm1004_vm2, %v1003_v5, -inf }
 0x230   : > { %1006 = vmax.xlane.f32.xlu0 %v1005_v9 }
 0x29e   : > { %v1111_v14 = vpop.f32.mrb[8].mxu0 }
 0x29f   : > { %v4139_v17 = vmul.f32 0.25, %v1111_v14  ;;  %v3309_v19 = vpop.f32.mrb[9].mxu0 }
 0x2a0   : > { %v1114_v25 = vpop.f32.mrb[10].mxu0 }
 0x2a1   : > { %v3310_v28 = vpop.f32.mrb[11].mxu0  ;;  %v1118_v29 = vsel %vm1004_vm2, %v4139_v17, -inf }
 0x2a2   : > { %1119 = vmax.xlane.f32.xlu1 %v1118_v29 }
 0x2a6   : > { %v1223_v30 = vpop.f32.mrb[12].mxu0 }
 0x2a7   : > { %v1229_v31 = vmul.f32 0.25, %v1223_v30  ;;  %v3321_v32 = vpop.f32.mrb[13].mxu0 }
 0x2a8   : > { %v1226_v33 = vpop.f32.mrb[14].mxu0 }
 0x2a9   : > { %v3322_v34 = vpop.f32.mrb[15].mxu0  ;;  %v1230_v35 = vsel %vm1004_vm2, %v1229_v31, -inf }
 0x2aa   : > { %1231 = vmax.xlane.f32.xlu0 %v1230_v35 }
 0x2ae   : > { %v1334_v36 = vpop.f32.mrb[16].mxu0 }
 0x2af   : > { %v1340_v37 = vmul.f32 0.25, %v1334_v36  ;;  %v3333_v38 = vpop.f32.mrb[17].mxu0 }
 0x2b0   : > { %v1337_v39 = vpop.f32.mrb[18].mxu0 }
 0x2b1   : > { %v3334_v40 = vpop.f32.mrb[19].mxu0  ;;  %v1341_v41 = vsel %vm1004_vm2, %v1340_v37, -inf }
 0x2b2   : > { %1342 = vmax.xlane.f32.xlu0 %v1341_v41 }
 0x2b6   : > { %v1445_v42 = vpop.f32.mrb[20].mxu0 }
 0x2b7   : > { %v4150_v43 = vmul.f32 0.25, %v1445_v42  ;;  %v3345_v44 = vpop.f32.mrb[21].mxu0 }
 0x2b8   : > { %v1448_v45 = vpop.f32.mrb[22].mxu0 }
 0x2b9   : > { %v3346_v46 = vpop.f32.mrb[23].mxu0  ;;  %v1452_v47 = vsel %vm1004_vm2, %v4150_v43, -inf }
 0x2ba   : > { %1453 = vmax.xlane.f32.xlu1 %v1452_v47 }
 0x2bd   : > { %v1007_v48 = vpop.xlane.xlu0 %1006 }
 0x2be   : > { %v1008_v49 = vsub.f32 %v1003_v5, %v1007_v48  ;;  %v1556_v50 = vpop.f32.mrb[24].mxu0 }
 0x2bf   : > { %v4154_v51 = vmul.f32 0.25, %v1556_v50  ;;  %v3357_v52 = vpop.f32.mrb[25].mxu0 }
 0x2c0   : > { %v1009_v53 = vmul.f32 1.442695, %v1008_v49  ;;  %v1559_v54 = vpop.f32.mrb[26].mxu0 }
 0x2c1   : > { %v3358_v55 = vpop.f32.mrb[27].mxu0  ;;  %v1563_v56 = vsel %vm1004_vm2, %v4154_v51, -inf }
 0x2c2   : > { %3619 = vpow2.f32 %v1009_v53  ;;  %1564 = vmax.xlane.f32.xlu0 %v1563_v56 }
 0x2c6   : > { %v1667_v57 = vpop.f32.mrb[28].mxu0 }
 0x2c7   : > { %v4158_v58 = vmul.f32 0.25, %v1667_v57  ;;  %v3369_v59 = vpop.f32.mrb[29].mxu0 }
 0x2c8   : > { %v1670_v60 = vpop.f32.mrb[30].mxu0 }
 0x2c9   : > { %v3370_v61 = vpop.f32.mrb[31].mxu0  ;;  %v1674_v62 = vsel %vm1004_vm2, %v4158_v58, -inf }
 0x2ca   : > { %1675 = vmax.xlane.f32.xlu1 %v1674_v62 }
 0x2cc   : > { %v3620_v63 = vpop.eup %3619 }
 0x2cd   : > { %v1011_v1 = vsel %vm1004_vm2, %v3620_v63, 0.0 }
 0x2ce   : > { %1012 = vadd.xlane.f32.xlu1 %v1011_v1  ;;  %v1778_v2 = vpop.f32.mrb[32].mxu0 }
 0x2cf   : > { %v1784_v3 = vmul.f32 0.25, %v1778_v2  ;;  %v3381_v4 = vpop.f32.mrb[33].mxu0 }
 0x2d0   : > { %v1781_v5 = vpop.f32.mrb[34].mxu0 }
 0x2d1   : > { %v3382_v6 = vpop.f32.mrb[35].mxu0  ;;  %v1785_v7 = vsel %vm1004_vm2, %v1784_v3, -inf }
 0x2d2   : > { %1786 = vmax.xlane.f32.xlu0 %v1785_v7 }
 0x2df   : > { %1242 = vrot.lane.b32.xlu1 %v4141_v26, %s3768_s13 }
 0x2e8   : > { %1131 = vrot.lane.b32.xlu0 %v4141_v26, %s3769_s25 }
 0x32f   : > { %v1120_v8 = vpop.xlane.xlu1 %1119 }
 0x330   : > { %v1121_v9 = vsub.f32 %v4139_v17, %v1120_v8 }
 0x332   : > { %v1122_v11 = vmul.f32 1.442695, %v1121_v9 }
 0x334   : > { %3621 = vpow2.f32 %v1122_v11 }
 0x337   : > { %v1232_v12 = vpop.xlane.xlu0 %1231 }
 0x338   : > { %v1233_v13 = vsub.f32 %v1229_v31, %v1232_v12 }
 0x33a   : > { %v1234_v14 = vmul.f32 1.442695, %v1233_v13 }
 0x33c   : > { %3623 = vpow2.f32 %v1234_v14 }
 0x33e   : > { %v4169_v15 = vpop.eup %3621 }
 0x33f   : > { %v1343_v16 = vpop.xlane.xlu0 %1342  ;;  %v1124_v19 = vsel %vm1004_vm2, %v4169_v15, 0.0 }
 0x340   : > { %v1344_v21 = vsub.f32 %v1340_v37, %v1343_v16  ;;  %1125 = vadd.xlane.f32.xlu0 %v1124_v19 }
 0x342   : > { %v1345_v25 = vmul.f32 1.442695, %v1344_v21 }
 0x344   : > { %3625 = vpow2.f32 %v1345_v25 }
 0x346   : > { %v4173_v27 = vpop.eup %3623 }
 0x347   : > { %v1236_v17 = vsel %vm1004_vm2, %v4173_v27, 0.0  ;;  %v1454_v22 = vpop.xlane.xlu1 %1453 }
 0x348   : > { %1237 = vadd.xlane.f32.xlu1 %v1236_v17  ;;  %v1455_v35 = vsub.f32 %v4150_v43, %v1454_v22 }
 0x34a   : > { %v1456_v40 = vmul.f32 1.442695, %v1455_v35 }
 0x34e   : > { %v4177_v28 = vpop.eup %3625 }
 0x34f   : > { %v1347_v29 = vsel %vm1004_vm2, %v4177_v28, 0.0  ;;  %v1565_v32 = vpop.xlane.xlu0 %1564 }
 0x350   : > { %1348 = vadd.xlane.f32.xlu0 %v1347_v29  ;;  %v1566_v41 = vsub.f32 %v4154_v51, %v1565_v32 }
 0x352   : > { %v1567_v43 = vmul.f32 1.442695, %v1566_v41 }
 0x357   : > { %v1676_v30 = vpop.xlane.xlu1 %1675 }
 0x358   : > { %v1677_v42 = vsub.f32 %v4158_v58, %v1676_v30 }
 0x359   : > { %1353 = vrot.lane.b32.xlu1 %v4141_v26, %s3770_s28 }
 0x35a   : > { %v1678_v45 = vmul.f32 1.442695, %v1677_v42 }
 0x35b   : > { %v1013_v31 = vpop.xlane.xlu1 %1012 }
 0x35c   : > { %3627 = vrcp.f32 %v1013_v31 }
 0x35d   : > { %3629 = vpow2.f32 %v1456_v40 }
 0x35e   : > { %3631 = vpow2.f32 %v1567_v43 }
 0x35f   : > { %v1787_v33 = vpop.xlane.xlu0 %1786  ;;  %3633 = vpow2.f32 %v1678_v45  ;;  %v1243_v56 = vpop.permute.xlu1 %1242  ;;  %v3523_v45 = vld [vmem:[%s4008_s24] sm:$0xff]  }
 0x360   : > { %v1788_v44 = vsub.f32 %v1784_v3, %v1787_v33  ;;  %v1248_v61 = vsel %vm1021_vm3, %v1243_v56, 0  ;;  %3390 = vmatpush3.bf16.msra.mxu0 %v3523_v45  ;;  %v3526_v56 = vld [vmem:[%s4008_s24 + $0x18] sm:$0xff]  }
 0x361   : > { %3391 = vmatprep.subr.bf16.mxu0 %v3766_v18 }
 0x362   : > { %v1789_v46 = vmul.f32 1.442695, %v1788_v44 }
 0x363   : > { %v1132_v36 = vpop.permute.xlu0 %1131 }
 0x364   : > { %v1137_v39 = vsel %vm1021_vm3, %v1132_v36, 0  ;;  %3635 = vpow2.f32 %v1789_v46 }
 0x366   : > { %1464 = vrot.lane.b32.xlu0 %v4141_v26, %s3771_s15  ;;  %v3628_v34 = vpop.eup %3627 }
 0x367   : > { %v1015_v37 = vmul.f32 %v3628_v34, %v3620_v63  ;;  %v3630_v47 = vpop.eup %3629 }
 0x368   : > { %v1458_v48 = vsel %vm1004_vm2, %v3630_v47, 0.0  ;;  %v3632_v49 = vpop.eup %3631 }
 0x369   : > { %v1016_v38 = vpack.c.bf16 %v1015_v37, %v1015_v37  ;;  %v4194_v50 = vpop.eup %3633  ;;  %v1569_v51 = vsel %vm1004_vm2, %v3632_v49, 0.0 }
 0x36a   : > { %v1680_v53 = vsel %vm1004_vm2, %v4194_v50, 0.0 }
 0x36b   : > { %3302 = vmatmul.mubr.msk.bf16.vlgmr.msra.gmra.mrb[4].mxu1 %vm1017_vm4, %v1016_v38 }
 0x36c   : > { %3312 = vmatpush3.bf16.msra.mxu1 %v1137_v39  ;;  %3313 = vmatprep.mubr.msk.bf16.mxu1 %vm3767_vm0, %v3766_v18 }
 0x36d   : > { %3323 = vmatprep.subr.bf16.mxu1 %v3766_v18 }
 0x36e   : > { %v4197_v52 = vpop.eup %3635 }
 0x36f   : > { %v1791_v54 = vsel %vm1004_vm2, %v4197_v52, 0.0 }
 0x37d   : > { %1459 = vadd.xlane.f32.xlu1 %v1458_v48 }
 0x381   : > { %1570 = vadd.xlane.f32.xlu1 %v1569_v51 }
 0x385   : > { %1681 = vadd.xlane.f32.xlu0 %v1680_v53  ;;  %1792 = vadd.xlane.f32.xlu1 %v1791_v54  ;;  %v3524_v54 = vld [vmem:[%s4008_s24 + $0x8] sm:$0xff]  }
 0x386   : > { %3392 = vmatpush3.bf16.msra.mxu0 %v3524_v54  ;;  %v3554_v54 = vld [vmem:[%s4016_s20 + $0x6c] ss:$16 sps:$4 sm:$0xff]  }
 0x387   : > { %3393 = vmatprep.subr.bf16.mxu0 %v3766_v18 }
 0x396   : > { %1575 = vrot.lane.b32.xlu1 %v4141_v26, %s3772_s30 }
 0x39b   : > { %1686 = vrot.lane.b32.xlu0 %v4141_v26, %s3773_s16 }
 0x39f   : > { %1797 = vrot.lane.b32.xlu0 %v4141_v26, %s3774_s1 }
 0x3cd   : > { %v1126_v55 = vpop.xlane.xlu0 %1125 }
 0x3ce   : > { %3637 = vrcp.f32 %v1126_v55  ;;  %v3525_v55 = vld [vmem:[%s4008_s24 + $0x10] sm:$0xff]  }
 0x3cf   : > { %3394 = vmatpush3.bf16.msra.mxu0 %v3525_v55  ;;  %v3552_v55 = vld [vmem:[%s4016_s20 + $0x68] ss:$16 sps:$4 sm:$0xff]  }
 0x3d0   : > { %3395 = vmatprep.subr.bf16.mxu0 %v3766_v18 }
 0x3d3   : > { %3396 = vmatpush3.bf16.msra.mxu0 %v3526_v56  ;;  %v3560_v56 = vld [vmem:[%s4016_s20 + $0x8c] ss:$16 sps:$4 sm:$0xff]  }
 0x3d4   : > { %3397 = vmatprep.subr.bf16.mxu0 %v3766_v18 }
 0x3d5   : > { %v1238_v57 = vpop.xlane.xlu1 %1237 }
 0x3d6   : > { %3639 = vrcp.f32 %v1238_v57  ;;  %v3527_v57 = vld [vmem:[%s4008_s24 + $0x20] sm:$0xff]  }
 0x3d7   : > { %3398 = vmatpush3.bf16.msra.mxu0 %v3527_v57  ;;  %v3558_v57 = vld [vmem:[%s4016_s20 + $0x88] ss:$16 sps:$4 sm:$0xff]  }
 0x3d8   : > { %v3638_v58 = vpop.eup %3637  ;;  %3399 = vmatprep.subr.bf16.mxu0 %v3766_v18 }
 0x3d9   : > { %v1128_v59 = vmul.f32 %v3638_v58, %v4169_v15  ;;  %v1354_v1 = vpop.permute.xlu1 %1353 }
 0x3da   : > { %v1359_v3 = vsel %vm1021_vm3, %v1354_v1, 0 }
 0x3db   : > { %v1129_v60 = vpack.c.bf16 %v1128_v59, %v1128_v59 }
 0x3dd   : > { %3314 = vmatmul.mubr.msk.bf16.vlgmr.msra.gmra.mrb[8].mxu1 %vm1017_vm4, %v1129_v60  ;;  %v1349_v62 = vpop.xlane.xlu0 %1348 }
 0x3de   : > { %3324 = vmatpush3.bf16.msra.mxu1 %v1248_v61  ;;  %3641 = vrcp.f32 %v1349_v62  ;;  %3325 = vmatprep.mubr.msk.bf16.mxu1 %vm3767_vm0, %v3766_v18  ;;  %v3528_v62 = vld [vmem:[%s4008_s24 + $0x28] sm:$0xff]  }
 0x3df   : > { %3335 = vmatprep.subr.bf16.mxu1 %v3766_v18  ;;  %3400 = vmatpush3.bf16.msra.mxu0 %v3528_v62  ;;  %v3578_v62 = vld [vmem:[%s4016_s20 + $0xec] ss:$16 sps:$4 sm:$0xff]  }
 0x3e0   : > { %v3640_v26 = vpop.eup %3639  ;;  %3401 = vmatprep.subr.bf16.mxu0 %v3766_v18 }
 0x3e1   : > { %v1240_v63 = vmul.f32 %v3640_v26, %v4173_v27  ;;  %v1465_v6 = vpop.permute.xlu0 %1464  ;;  %v3529_v26 = vld [vmem:[%s4008_s24 + $0x30] sm:$0xff]  }
 0x3e2   : > { %v1470_v8 = vsel %vm1021_vm3, %v1465_v6, 0  ;;  %v3533_v6 = vld [vmem:[%s4016_s20 + $0x4] ss:$16 sps:$4 sm:$0xff]  }
 0x3e3   : > { %v1241_v2 = vpack.c.bf16 %v1240_v63, %v1240_v63  ;;  %3402 = vmatpush3.bf16.msra.mxu0 %v3529_v26  ;;  %v3573_v26 = vld [vmem:[%s4016_s20 + $0xe0] ss:$16 sps:$4 sm:$0xff]  }
 0x3e4   : > { %3403 = vmatprep.subr.bf16.mxu0 %v3766_v18 }
 0x3e5   : > { %3326 = vmatmul.mubr.msk.bf16.vlgmr.msra.gmra.mrb[12].mxu1 %vm1017_vm4, %v1241_v2 }
 0x3e6   : > { %3336 = vmatpush3.bf16.msra.mxu1 %v1359_v3  ;;  %3337 = vmatprep.mubr.msk.bf16.mxu1 %vm3767_vm0, %v3766_v18 }
 0x3e7   : > { %3347 = vmatprep.subr.bf16.mxu1 %v3766_v18 }
 0x3e8   : > { %v3642_v4 = vpop.eup %3641 }
 0x3e9   : > { %v1351_v5 = vmul.f32 %v3642_v4, %v4177_v28  ;;  %v3530_v4 = vld [vmem:[%s4008_s24 + $0x38] sm:$0xff]  }
 0x3ea   : > { %3404 = vmatpush3.bf16.msra.mxu0 %v3530_v4 }
 0x3eb   : > { %v1352_v7 = vpack.c.bf16 %v1351_v5, %v1351_v5  ;;  %v3531_v5 = vld [vmem:[%s4016_s20] ss:$16 sps:$4 sm:$0xff]  }
 0x3ed   : > { %3338 = vmatmul.mubr.msk.bf16.vlgmr.msra.gmra.mrb[16].mxu1 %vm1017_vm4, %v1352_v7 }
 0x3ee   : > { %3348 = vmatpush3.bf16.msra.mxu1 %v1470_v8  ;;  %3349 = vmatprep.mubr.msk.bf16.mxu1 %vm3767_vm0, %v3766_v18  ;;  %v3536_v8 = vld [vmem:[%s4016_s20 + $0xc] ss:$16 sps:$4 sm:$0xff]  }
 0x3ef   : > { %3359 = vmatprep.subr.bf16.mxu1 %v3766_v18  ;;  %2270 = vmatprep.subr.bf16.mxu0 %v3536_v8 }
 0x40a   : > { %v1460_v9 = vpop.xlane.xlu1 %1459 }
 0x40b   : > { %3643 = vrcp.f32 %v1460_v9 }
 0x40e   : > { %v1571_v11 = vpop.xlane.xlu1 %1570 }
 0x40f   : > { %3645 = vrcp.f32 %v1571_v11  ;;  %v3539_v11 = vld [vmem:[%s4016_s20 + $0x24] ss:$16 sps:$4 sm:$0xff]  }
 0x412   : > { %v1793_v12 = vpop.xlane.xlu1 %1792  ;;  %v1682_v13 = vpop.xlane.xlu0 %1681 }
 0x413   : > { %3647 = vrcp.f32 %v1682_v13  ;;  %v3537_v13 = vld [vmem:[%s4016_s20 + $0x20] ss:$16 sps:$4 sm:$0xff]  }
 0x414   : > { %3649 = vrcp.f32 %v1793_v12 }
 0x415   : > { %v3644_v14 = vpop.eup %3643 }
 0x416   : > { %v1462_v15 = vmul.f32 %v3644_v14, %v3630_v47  ;;  %v1576_v16 = vpop.permute.xlu1 %1575  ;;  %v1687_v17 = vpop.permute.xlu0 %1686 }
 0x417   : > { %v1581_v25 = vsel %vm1021_vm3, %v1576_v16, 0  ;;  %v1692_v22 = vsel %vm1021_vm3, %v1687_v17, 0  ;;  %v3543_v16 = vld [vmem:[%s4016_s20 + $0x40] ss:$16 sps:$4 sm:$0xff]  }
 0x418   : > { %v1463_v19 = vpack.c.bf16 %v1462_v15, %v1462_v15  ;;  %v3545_v15 = vld [vmem:[%s4016_s20 + $0x44] ss:$16 sps:$4 sm:$0xff]   ;;  %v3549_v17 = vld [vmem:[%s4016_s20 + $0x60] ss:$16 sps:$4 sm:$0xff]  }
 0x419   : > { %v3646_v21 = vpop.eup %3645 }
 0x41a   : > { %3350 = vmatmul.mubr.msk.bf16.vlgmr.msra.gmra.mrb[20].mxu1 %vm1017_vm4, %v1463_v19  ;;  %v1573_v27 = vmul.f32 %v3646_v21, %v3632_v49  ;;  %v1798_v31 = vpop.permute.xlu0 %1797  ;;  %v3551_v21 = vld [vmem:[%s4016_s20 + $0x64] ss:$16 sps:$4 sm:$0xff]  }
 0x41b   : > { %3360 = vmatpush3.bf16.msra.mxu1 %v1581_v25  ;;  %3361 = vmatprep.mubr.msk.bf16.mxu1 %vm3767_vm0, %v3766_v18  ;;  %v1803_v34 = vsel %vm1021_vm3, %v1798_v31, 0  ;;  %v3561_v31 = vld [vmem:[%s4016_s20 + $0xa0] ss:$16 sps:$4 sm:$0xff]  }
 0x41c   : > { %3371 = vmatprep.subr.bf16.mxu1 %v3766_v18  ;;  %v1574_v28 = vpack.c.bf16 %v1573_v27, %v1573_v27 }
 0x41d   : > { %v3648_v29 = vpop.eup %3647 }
 0x41e   : > { %v1684_v30 = vmul.f32 %v3648_v29, %v4194_v50  ;;  %v3650_v33 = vpop.eup %3649  ;;  %v3557_v29 = vld [vmem:[%s4016_s20 + $0x84] ss:$16 sps:$4 sm:$0xff]  }
 0x41f   : > { %v1795_v35 = vmul.f32 %v3650_v33, %v4197_v52  ;;  %v3567_v33 = vld [vmem:[%s4016_s20 + $0xc0] ss:$16 sps:$4 sm:$0xff]  }
 0x420   : > { %v1685_v32 = vpack.c.bf16 %v1684_v30, %v1684_v30  ;;  %v3563_v30 = vld [vmem:[%s4016_s20 + $0xa4] ss:$16 sps:$4 sm:$0xff]  }
 0x421   : > { %v1796_v36 = vpack.c.bf16 %v1795_v35, %v1795_v35 }
 0x422   : > { %3362 = vmatmul.mubr.msk.bf16.vlgmr.msra.gmra.mrb[24].mxu1 %vm1017_vm4, %v1574_v28 }
 0x423   : > { %3372 = vmatpush3.bf16.msra.mxu1 %v1692_v22  ;;  %3373 = vmatprep.mubr.msk.bf16.mxu1 %vm3767_vm0, %v3766_v18  ;;  %v3555_v22 = vld [vmem:[%s4016_s20 + $0x80] ss:$16 sps:$4 sm:$0xff]  }
 0x424   : > { %3383 = vmatprep.subr.bf16.mxu1 %v3766_v18 }
 0x42a   : > { %3374 = vmatmul.mubr.msk.bf16.vlgmr.msra.gmra.mrb[28].mxu1 %vm1017_vm4, %v1685_v32  ;;  %v3569_v32 = vld [vmem:[%s4016_s20 + $0xc4] ss:$16 sps:$4 sm:$0xff]  }
 0x42b   : > { %3384 = vmatpush3.bf16.msra.mxu1 %v1803_v34  ;;  %3385 = vmatprep.mubr.msk.bf16.mxu1 %vm3767_vm0, %v3766_v18 }
 0x42c   : > { %2229 = vmatprep.subr.bf16.mxu1 %v3533_v6 }
 0x432   : > { %3386 = vmatmul.mubr.msk.bf16.vlgmr.msra.gmra.mrb[32].mxu1 %vm1017_vm4, %v1796_v36 }
 0x433   : > { %2261 = vmatprep.mubr.bf16.mxu1 %v3765_v0  ;;  %2230 = vmatpush1.bf16.msra.mxu1 %v3531_v5 }
 0x434   : > { %2231 = vmatprep.subr.bf16.mxu1 %v3539_v11  ;;  %v3580_v11 = vld [vmem:[%s3981_s18] sm:$0xff]  }
 0x437   : > { %2232 = vmatpush1.bf16.msra.mxu1 %v3537_v13 }
 0x438   : > { %2233 = vmatprep.subr.bf16.mxu1 %v3545_v15  ;;  %v3583_v15 = vld [vmem:[%s3981_s18 + $0x48] sm:$0xff]  }
 0x43b   : > { %2234 = vmatpush1.bf16.msra.mxu1 %v3543_v16  ;;  %v3585_v16 = vld [vmem:[%s3981_s18 + $0xc8] sm:$0xff]  }
 0x43c   : > { %2235 = vmatprep.subr.bf16.mxu1 %v3551_v21  ;;  %v3586_v21 = vld [vmem:[%s3981_s18 + $0x88] sm:$0xff]  }
 0x43e   : > { %v4245_v37 = vpop.f32.mrb[4].mxu1 }
 0x43f   : > { %v3303_v38 = vpop.f32.mrb[5].mxu1  ;;  %2236 = vmatpush1.bf16.msra.mxu1 %v3549_v17  ;;  %v3589_v17 = vld [vmem:[%s3981_s18 + $0xd0] sm:$0xff]  }
 0x440   : > { %v1062_v39 = vpop.f32.mrb[6].mxu1  ;;  %2237 = vmatprep.subr.bf16.mxu1 %v3557_v29  ;;  %v3591_v29 = vld [vmem:[%s3981_s18 + $0x58] sm:$0xff]  }
 0x441   : > { %v3304_v40 = vpop.f32.mrb[7].mxu1 }
 0x443   : > { %2238 = vmatpush1.bf16.msra.mxu1 %v3555_v22  ;;  %v3592_v22 = vld [vmem:[%s3981_s18 + $0x18] sm:$0xff]  }
 0x444   : > { %2239 = vmatprep.subr.bf16.mxu1 %v3563_v30  ;;  %v3593_v30 = vld [vmem:[%s3981_s18 + $0xd8] sm:$0xff]  }
 0x447   : > { %2240 = vmatpush1.bf16.msra.mxu1 %v3561_v31  ;;  %v3594_v31 = vld [vmem:[%s3981_s18 + $0x98] sm:$0xff]  }
 0x448   : > { %2241 = vmatprep.subr.bf16.mxu1 %v3569_v32  ;;  %v3595_v32 = vld [vmem:[%s3981_s18 + $0x60] sm:$0xff]  }
 0x44b   : > { %2242 = vmatpush1.bf16.msra.mxu1 %v3567_v33  ;;  %v3596_v33 = vld [vmem:[%s3981_s18 + $0x20] sm:$0xff]  }
 0x4b0   : > { %v1173_v41 = vpop.f32.mrb[8].mxu1 }
 0x4b1   : > { %1846 = vrot.lane.b32.xlu1 %v1173_v41, %s3774_s1  ;;  %v3315_v42 = vpop.f32.mrb[9].mxu1  ;;  %s675_s1 = scalar_lea.vmem %s4425_s12, %s4020_s14 }
 0x4b2   : > { %v1176_v43 = vpop.f32.mrb[10].mxu1 }
 0x4b3   : > { %v3316_v44 = vpop.f32.mrb[11].mxu1 }
 0x4b8   : > { %v1284_v46 = vpop.f32.mrb[12].mxu1 }
 0x4b9   : > { %1850 = vrot.lane.b32.xlu0 %v1284_v46, %s3773_s16  ;;  %v3327_v47 = vpop.f32.mrb[13].mxu1 }
 0x4ba   : > { %v1287_v48 = vpop.f32.mrb[14].mxu1 }
 0x4bb   : > { %v3328_v49 = vpop.f32.mrb[15].mxu1 }
 0x4c0   : > { %v1395_v50 = vpop.f32.mrb[16].mxu1 }
 0x4c1   : > { %1854 = vrot.lane.b32.xlu1 %v1395_v50, %s3772_s30  ;;  %v3339_v51 = vpop.f32.mrb[17].mxu1  ;;  %v3542_v50 = vld [vmem:[%s4016_s20 + $0x2c] ss:$16 sps:$4 sm:$0xff]   ;;  %s659_s30 = scalar_lea.vmem %s4421_s8, %s4449_s29 }
 0x4c2   : > { %v1398_v52 = vpop.f32.mrb[18].mxu1  ;;  %v3540_v51 = vld [vmem:[%s4016_s20 + $0x28] ss:$16 sps:$4 sm:$0xff]  }
 0x4c3   : > { %v3340_v53 = vpop.f32.mrb[19].mxu1  ;;  %v3548_v52 = vld [vmem:[%s4016_s20 + $0x4c] ss:$16 sps:$4 sm:$0xff]  }
 0x4c4   : > { %v3546_v53 = vld [vmem:[%s4016_s20 + $0x48] ss:$16 sps:$4 sm:$0xff]  }
 0x4ed   : > { %v1506_v58 = vpop.f32.mrb[20].mxu1 }
 0x4ee   : > { %1858 = vrot.lane.b32.xlu0 %v1506_v58, %s3771_s15  ;;  %v3351_v59 = vpop.f32.mrb[21].mxu1  ;;  %v3564_v58 = vld [vmem:[%s4016_s20 + $0xa8] ss:$16 sps:$4 sm:$0xff]  }
 0x4ef   : > { %v1509_v60 = vpop.f32.mrb[22].mxu1  ;;  %v3572_v59 = vld [vmem:[%s4016_s20 + $0xcc] ss:$16 sps:$4 sm:$0xff]  }
 0x4f0   : > { %v3352_v61 = vpop.f32.mrb[23].mxu1  ;;  %v3570_v60 = vld [vmem:[%s4016_s20 + $0xc8] ss:$16 sps:$4 sm:$0xff]  }
 0x4f1   : > { %v3575_v61 = vld [vmem:[%s4016_s20 + $0xe4] ss:$16 sps:$4 sm:$0xff]  }
 0x4f2   : > { %2243 = vmatprep.subr.bf16.mxu1 %v3575_v61 }
 0x4f3   : > { %2244 = vmatpush1.bf16.msra.mxu1 %v3573_v26 }
 0x4f5   : > { %v1617_v63 = vpop.f32.mrb[24].mxu1 }
 0x4f6   : > { %1862 = vrot.lane.b32.xlu1 %v1617_v63, %s3770_s28  ;;  %v3363_v1 = vpop.f32.mrb[25].mxu1  ;;  %v3576_v63 = vld [vmem:[%s4016_s20 + $0xe8] ss:$16 sps:$4 sm:$0xff]  }
 0x4f7   : > { %v1620_v2 = vpop.f32.mrb[26].mxu1  ;;  %v3579_v1 = vld [vmem:[%s3981_s18 + $0x40] sm:$0xff]  }
 0x4f8   : > { %v3364_v3 = vpop.f32.mrb[27].mxu1  ;;  %v3581_v2 = vld [vmem:[%s3981_s18 + $0xc0] sm:$0xff]   ;;  %3220 = vmatprep.subr.bf16.mxu1 %v3579_v1 }
 0x4f9   : > { %v1903_v3 = vld [vmem:[%s647_s17] sm:$0x1]  ;;  %s671_s17 = scalar_lea.vmem %s4424_s11, %s4449_s29 }
 0x4fa   : > { %v1904_v4 = vunpack.c.l.bf16 %v1903_v3 }
 0x4fc   : > { %v1908_v5 = vrot.slane %v1904_v4, %v4051_v24 }
 0x4fd   : > { %v1728_v7 = vpop.f32.mrb[28].mxu1 }
 0x4fe   : > { %1866 = vrot.lane.b32.xlu0 %v1728_v7, %s3768_s13  ;;  %v3375_v9 = vpop.f32.mrb[29].mxu1 }
 0x4ff   : > { %v1731_v12 = vpop.f32.mrb[30].mxu1 }
 0x500   : > { %v3376_v14 = vpop.f32.mrb[31].mxu1  ;;  %v3582_v12 = vld [vmem:[%s3981_s18 + $0x80] sm:$0xff]  }
 0x505   : > { %v1839_v19 = vpop.f32.mrb[32].mxu1 }
 0x506   : > { %1870 = vrot.lane.b32.xlu1 %v1839_v19, %s3769_s25  ;;  %v3387_v25 = vpop.f32.mrb[33].mxu1  ;;  %v3584_v19 = vld [vmem:[%s3981_s18 + $0x8] sm:$0xff]   ;;  %s663_s25 = scalar_lea.vmem %s4422_s9, %s4020_s14 }
 0x507   : > { %v1842_v27 = vpop.f32.mrb[34].mxu1  ;;  %v3587_v25 = vld [vmem:[%s3981_s18 + $0x50] sm:$0xff]  }
 0x508   : > { %v3388_v28 = vpop.f32.mrb[35].mxu1  ;;  %v3588_v27 = vld [vmem:[%s3981_s18 + $0x10] sm:$0xff]  }
 0x509   : > { %v3590_v28 = vld [vmem:[%s3981_s18 + $0x90] sm:$0xff]  }
 0x523   : > { %v1847_v34 = vpop.permute.xlu1 %1846 }
 0x524   : > { %v1873_v39 = vsel %vm956_vm1, %v4245_v37, %v1847_v34  ;;  %v3534_v37 = vld [vmem:[%s4016_s20 + $0x8] ss:$16 sps:$4 sm:$0xff]   ;;  %v3597_v34 = vld [vmem:[%s3981_s18 + $0xe0] sm:$0xff]  }
 0x52b   : > { %v1851_v35 = vpop.permute.xlu0 %1850 }
 0x52c   : > { %v1875_v40 = vsel %vm1874_vm5, %v1873_v39, %v1851_v35  ;;  %v3598_v35 = vld [vmem:[%s3981_s18 + $0xa0] sm:$0xff]   ;;  %v3601_v39 = vld [vmem:[%s3981_s18 + $0xe8] sm:$0xff]  }
 0x533   : > { %v1855_v36 = vpop.permute.xlu1 %1854 }
 0x534   : > { %v1877_v42 = vsel %vm1876_vm6, %v1875_v40, %v1855_v36  ;;  %v3599_v36 = vld [vmem:[%s3981_s18 + $0x68] sm:$0xff]  }
 0x535   : > { %v3602_v40 = vld [vmem:[%s3981_s18 + $0xa8] sm:$0xff]  }
 0x560   : > { %v1859_v38 = vpop.permute.xlu0 %1858 }
 0x561   : > { %v1879_v44 = vsel %vm1878_vm7, %v1877_v42, %v1859_v38  ;;  %v3600_v38 = vld [vmem:[%s3981_s18 + $0x28] sm:$0xff]   ;;  %v3604_v42 = vld [vmem:[%s3981_s18 + $0x30] sm:$0xff]  }
 0x568   : > { %v1863_v41 = vpop.permute.xlu1 %1862 }
 0x569   : > { %v1881_v45 = vsel %vm1880_vm8, %v1879_v44, %v1863_v41  ;;  %v3603_v41 = vld [vmem:[%s3981_s18 + $0x70] sm:$0xff]  }
 0x56a   : > { %v3606_v44 = vld [vmem:[%s3981_s18 + $0xb0] sm:$0xff]  }
 0x570   : > { %v1867_v43 = vpop.permute.xlu0 %1866 }
 0x571   : > { %v1883_v46 = vsel %vm1882_vm9, %v1881_v45, %v1867_v43  ;;  %v3605_v43 = vld [vmem:[%s3981_s18 + $0xf0] sm:$0xff]   ;;  %v3607_v45 = vld [vmem:[%s3981_s18 + $0x78] sm:$0xff]  }
 0x578   : > { %v1871_v47 = vpop.permute.xlu1 %1870 }
 0x579   : > { %v1885_v48 = vsel %vm1884_vm10, %v1883_v46, %v1871_v47  ;;  %v3608_v46 = vld [vmem:[%s3981_s18 + $0x38] sm:$0xff]  }
 0x57a   : > { %v1902_v49 = vpack.c.bf16 %v1885_v48, %v1885_v48  ;;  %v3609_v47 = vld [vmem:[%s3981_s18 + $0xf8] sm:$0xff]  }
 0x57b   : > { %v3610_v48 = vld [vmem:[%s3981_s18 + $0xb8] sm:$0xff]  }
 0x57c   : > { %3406 = vmatmul.mubr.bf16.vlgmr.msra.gmra.mrb[36].mxu0 %v1902_v49 }
 0x57d   : > { %2271 = vmatpush1.bf16.msra.mxu0 %v3534_v37  ;;  %2302 = vmatprep.mubr.bf16.mxu0 %v3765_v0  ;;  %v3566_v0 = vld [vmem:[%s4016_s20 + $0xac] ss:$16 sps:$4 sm:$0xff]   ;;  %s3038_s20 = sshll.u32 %s4449_s29, 2 }
 0x57e   : > { %2272 = vmatprep.subr.bf16.mxu0 %v3542_v50  ;;  %s656_s22 = scalar_lea.vmem %s4419_s6, %s3038_s20  ;;  %v2047_v50 = vsub.s32 6, %v4045_v20 }
 0x57f   : > { %v2030_v37 = vld [vmem:[%s656_s22] sm:$0xf]  ;;  %s679_s22 = scalar_lea.vmem %s4442_s27, %s4020_s14 }
 0x580   : > { %v2031_v49 = vunpack.c.l.bf16 %v2030_v37 }
 0x581   : > { %2273 = vmatpush1.bf16.msra.mxu0 %v3540_v51 }
 0x582   : > { %2274 = vmatprep.subr.bf16.mxu0 %v3548_v52  ;;  %v2036_v51 = vrot.slane %v2031_v49, %v4051_v24  ;;  %v2044_v52 = vrot.slane %v2031_v49, %v727_v10 }
 0x585   : > { %2275 = vmatpush1.bf16.msra.mxu0 %v3546_v53  ;;  %v2040_v53 = vrot.slane %v2031_v49, %v723_v23 }
 0x586   : > { %2276 = vmatprep.subr.bf16.mxu0 %v3554_v54  ;;  %v2048_v54 = vrot.slane %v2031_v49, %v2047_v50 }
 0x589   : > { %2277 = vmatpush1.bf16.msra.mxu0 %v3552_v55  ;;  %v2056_v55 = vrot.slane %v2036_v51, %v4051_v24 }
 0x58a   : > { %2278 = vmatprep.subr.bf16.mxu0 %v3560_v56  ;;  %v2064_v56 = vrot.slane %v2044_v52, %v4051_v24 }
 0x58d   : > { %2279 = vmatpush1.bf16.msra.mxu0 %v3558_v57  ;;  %v2060_v57 = vrot.slane %v2040_v53, %v4051_v24 }
 0x58e   : > { %2280 = vmatprep.subr.bf16.mxu0 %v3566_v0  ;;  %v2068_v0 = vrot.slane %v2048_v54, %v4051_v24 }
 0x591   : > { %2281 = vmatpush1.bf16.msra.mxu0 %v3564_v58 }
 0x592   : > { %2282 = vmatprep.subr.bf16.mxu0 %v3572_v59 }
 0x595   : > { %2283 = vmatpush1.bf16.msra.mxu0 %v3570_v60 }
 0x596   : > { %2284 = vmatprep.subr.bf16.mxu0 %v3578_v62 }
 0x599   : > { %2285 = vmatpush1.bf16.msra.mxu0 %v3576_v63 }
 0x59a   : > { %3242 = vmatprep.subr.bf16.mxu0 %v3581_v2 }
 0x64f   : > { %v1991_v6 = vpop.f32.mrb[36].mxu0 }
 0x650   : > { %v4311_v7 = vadd.f32 %v1991_v6, %v1908_v5  ;;  %v3407_v8 = vpop.f32.mrb[37].mxu0 }
 0x651   : > { %v1994_v9 = vpop.f32.mrb[38].mxu0 }
 0x652   : > { %v2029_v13 = vpack.c.bf16 %v4311_v7, %v4311_v7  ;;  %v3408_v14 = vpop.f32.mrb[39].mxu0 }
 0x654   : > { %2262 = vmatmul.mubr.bf16.vlgmr.msra.gmra.mrb[36].mxu1 %v2029_v13  ;;  %2303 = vmatmul.mubr.bf16.vlgmr.msra.gmra.mrb[40].mxu0 %v2029_v13 }
 0x655   : > { %3221 = vmatpush3.bf16.msra.mxu1 %v3580_v11  ;;  %3243 = vmatpush3.bf16.msra.mxu0 %v3582_v12 }
 0x656   : > { %3222 = vmatprep.subr.bf16.mxu1 %v3583_v15  ;;  %3244 = vmatprep.subr.bf16.mxu0 %v3585_v16 }
 0x659   : > { %3223 = vmatpush3.bf16.msra.mxu1 %v3584_v19  ;;  %3245 = vmatpush3.bf16.msra.mxu0 %v3586_v21 }
 0x65a   : > { %3224 = vmatprep.subr.bf16.mxu1 %v3587_v25  ;;  %3246 = vmatprep.subr.bf16.mxu0 %v3589_v17 }
 0x65d   : > { %3225 = vmatpush3.bf16.msra.mxu1 %v3588_v27  ;;  %3247 = vmatpush3.bf16.msra.mxu0 %v3590_v28 }
 0x65e   : > { %3226 = vmatprep.subr.bf16.mxu1 %v3591_v29  ;;  %3248 = vmatprep.subr.bf16.mxu0 %v3593_v30 }
 0x661   : > { %3227 = vmatpush3.bf16.msra.mxu1 %v3592_v22  ;;  %3249 = vmatpush3.bf16.msra.mxu0 %v3594_v31  ;;  %v3611_v31 = vld [vmem:[%s4033_s21] sm:$0xff]  }
 0x662   : > { %3228 = vmatprep.subr.bf16.mxu1 %v3595_v32  ;;  %3250 = vmatprep.subr.bf16.mxu0 %v3597_v34 }
 0x665   : > { %3229 = vmatpush3.bf16.msra.mxu1 %v3596_v33  ;;  %3251 = vmatpush3.bf16.msra.mxu0 %v3598_v35  ;;  %v3612_v35 = vld [vmem:[%s4033_s21 + $0x8] sm:$0xff]  }
 0x666   : > { %3230 = vmatprep.subr.bf16.mxu1 %v3599_v36  ;;  %3252 = vmatprep.subr.bf16.mxu0 %v3601_v39  ;;  %v3613_v36 = vld [vmem:[%s4033_s21 + $0x10] sm:$0xff]   ;;  %v3615_v39 = vld [vmem:[%s4033_s21 + $0x20] sm:$0xff]  }
 0x669   : > { %3231 = vmatpush3.bf16.msra.mxu1 %v3600_v38  ;;  %3253 = vmatpush3.bf16.msra.mxu0 %v3602_v40  ;;  %v3614_v38 = vld [vmem:[%s4033_s21 + $0x18] sm:$0xff]   ;;  %v3616_v40 = vld [vmem:[%s4033_s21 + $0x28] sm:$0xff]  }
 0x66a   : > { %3232 = vmatprep.subr.bf16.mxu1 %v3603_v41  ;;  %3254 = vmatprep.subr.bf16.mxu0 %v3605_v43  ;;  %v3617_v41 = vld [vmem:[%s4033_s21 + $0x30] sm:$0xff]   ;;  %v2681_v43 = vld [vmem:[%s663_s25] sm:$0x3] }
 0x66d   : > { %3233 = vmatpush3.bf16.msra.mxu1 %v3604_v42  ;;  %3255 = vmatpush3.bf16.msra.mxu0 %v3606_v44  ;;  %v3618_v42 = vld [vmem:[%s4033_s21 + $0x38] sm:$0xff]   ;;  %v2672_v44 = vld [vmem:[%s659_s30] sm:$0x1] }
 0x66e   : > { %3234 = vmatprep.subr.bf16.mxu1 %v3607_v45  ;;  %3256 = vmatprep.subr.bf16.mxu0 %v3609_v47 }
 0x671   : > { %3235 = vmatpush3.bf16.msra.mxu1 %v3608_v46  ;;  %3257 = vmatpush3.bf16.msra.mxu0 %v3610_v48  ;;  %v2673_v48 = vunpack.c.l.bf16 %v2672_v44 }
 0x672   : > { %3409 = vmatprep.subr.bf16.mxu1 %v3766_v18 }
 0x727   : > { %v2263_v58 = vpop.f32.mrb[36].mxu1  ;;  %v2304_v59 = vpop.f32.mrb[40].mxu0 }
 0x728   : > { %v2264_v60 = vadd.f32 %v2263_v58, %v2056_v55  ;;  %v2305_v61 = vadd.f32 %v2304_v59, %v2064_v56  ;;  %v2265_v62 = vpop.f32.mrb[37].mxu1  ;;  %v2306_v26 = vpop.f32.mrb[41].mxu0  ;;  %v2677_v55 = vrot.slane %v2673_v48, %v4051_v24  ;;  %v2698_v58 = vld [vmem:[%s671_s17] sm:$0x1] }
 0x729   : > { %v2266_v63 = vadd.f32 %v2265_v62, %v2060_v57  ;;  %v2307_v10 = vadd.f32 %v2306_v26, %v2068_v0  ;;  %v2267_v1 = vpop.f32.mrb[38].mxu1  ;;  %v2308_v20 = vpop.f32.mrb[42].mxu0  ;;  %v2699_v59 = vunpack.c.l.bf16 %v2698_v58 }
 0x72a   : > { %v2315_v23 = vmul.f32 0.851, %v2264_v60  ;;  %v2317_v2 = vmul.f32 0.851, %v2305_v61  ;;  %v2268_v5 = vpop.f32.mrb[39].mxu1  ;;  %v2309_v6 = vpop.f32.mrb[43].mxu0 }
 0x72b   : > { %v2316_v3 = vmul.f32 0.851, %v2266_v63  ;;  %v2318_v4 = vmul.f32 0.851, %v2307_v10  ;;  %v2311_v13 = vmul.f32 0.5, %v2264_v60  ;;  %v2313_v16 = vmul.f32 0.5, %v2305_v61 }
 0x72c   : > { %3651 = vtanh.f32 %v2315_v23  ;;  %v2312_v19 = vmul.f32 0.5, %v2266_v63  ;;  %v2314_v27 = vmul.f32 0.5, %v2307_v10  ;;  %v2703_v60 = vrot.slane %v2699_v59, %v4051_v24 }
 0x72d   : > { %3653 = vtanh.f32 %v2317_v2 }
 0x72e   : > { %3655 = vtanh.f32 %v2316_v3 }
 0x72f   : > { %3657 = vtanh.f32 %v2318_v4 }
 0x736   : > { %v3652_v8 = vpop.eup %3651 }
 0x737   : > { %v3654_v9 = vpop.eup %3653  ;;  %v2323_v11 = vadd.f32 1.0, %v3652_v8 }
 0x738   : > { %v3656_v12 = vpop.eup %3655  ;;  %v2325_v14 = vadd.f32 1.0, %v3654_v9 }
 0x739   : > { %v3658_v15 = vpop.eup %3657  ;;  %v2324_v21 = vadd.f32 1.0, %v3656_v12  ;;  %v2327_v25 = vmul.f32 %v2323_v11, %v2311_v13 }
 0x73a   : > { %v2326_v17 = vadd.f32 1.0, %v3658_v15  ;;  %v2329_v28 = vmul.f32 %v2325_v14, %v2313_v16 }
 0x73b   : > { %v2328_v29 = vmul.f32 %v2324_v21, %v2312_v19  ;;  %v2395_v32 = vpack.c.bf16 %v2327_v25, %v2327_v25 }
 0x73c   : > { %v2330_v22 = vmul.f32 %v2326_v17, %v2314_v27  ;;  %v2397_v34 = vpack.c.bf16 %v2329_v28, %v2329_v28 }
 0x73d   : > { %v2396_v30 = vpack.c.bf16 %v2328_v29, %v2328_v29 }
 0x73e   : > { %v2398_v33 = vpack.c.bf16 %v2330_v22, %v2330_v22 }
 0x73f   : > { %2623 = vmatprep.mubr.bf16.mxu1 %v2396_v30 }
 0x740   : > { %2663 = vmatprep.mubr.bf16.mxu0 %v2398_v33  ;;  %2624 = vmatmul.mubr.bf16.vlgmr.msra.gmra.mrb[40].mxu1 %v2395_v32 }
 0x741   : > { %2664 = vmatmul.mubr.bf16.vlgmr.msra.gmra.mrb[44].mxu0 %v2397_v34  ;;  %3410 = vmatpush3.bf16.msra.mxu1 %v3611_v31 }
 0x742   : > { %3411 = vmatprep.subr.bf16.mxu1 %v3766_v18  ;;  %3425 = vmatprep.mubr.msk.bf16.mxu1 %vm3767_vm0, %v3766_v18 }
 0x745   : > { %3412 = vmatpush3.bf16.msra.mxu1 %v3612_v35 }
 0x746   : > { %3413 = vmatprep.subr.bf16.mxu1 %v3766_v18 }
 0x749   : > { %3414 = vmatpush3.bf16.msra.mxu1 %v3613_v36 }
 0x74a   : > { %3415 = vmatprep.subr.bf16.mxu1 %v3766_v18 }
 0x74d   : > { %3416 = vmatpush3.bf16.msra.mxu1 %v3614_v38 }
 0x74e   : > { %3417 = vmatprep.subr.bf16.mxu1 %v3766_v18 }
 0x751   : > { %3418 = vmatpush3.bf16.msra.mxu1 %v3615_v39 }
 0x752   : > { %3419 = vmatprep.subr.bf16.mxu1 %v3766_v18 }
 0x755   : > { %3420 = vmatpush3.bf16.msra.mxu1 %v3616_v40 }
 0x756   : > { %3421 = vmatprep.subr.bf16.mxu1 %v3766_v18 }
 0x759   : > { %3422 = vmatpush3.bf16.msra.mxu1 %v3617_v41 }
 0x75a   : > { %3423 = vmatprep.subr.bf16.mxu1 %v3766_v18 }
 0x75d   : > { %3424 = vmatpush3.bf16.msra.mxu1 %v3618_v42 }
 0x760   : > { %3426 = vmatmul.mubr.bf16.vlgmr.msra.gmra.mrb[44].mxu1 %v2681_v43 }
 0x813   : > { %v3236_v45 = vpop.f32.mrb[40].mxu1 }
 0x814   : > { %v3258_v46 = vpop.f32.mrb[44].mxu0  ;;  %v3237_v47 = vpop.f32.mrb[41].mxu1 }
 0x815   : > { %v3238_v37 = vadd.f32 %v3237_v47, %v3236_v45  ;;  %v3259_v18 = vpop.f32.mrb[45].mxu0  ;;  %v3239_v49 = vpop.f32.mrb[42].mxu1 }
 0x816   : > { %v3260_v50 = vadd.f32 %v3259_v18, %v3258_v46  ;;  %v3261_v51 = vpop.f32.mrb[46].mxu0  ;;  %v3240_v52 = vpop.f32.mrb[43].mxu1 }
 0x817   : > { %v3262_v53 = vpop.f32.mrb[47].mxu0 }
 0x818   : > { %v2666_v54 = vadd.f32 %v3260_v50, %v3238_v37 }
 0x81a   : > { %v2671_v56 = vadd.f32 %v2666_v54, %v4311_v7 }
 0x81c   : > { %v2678_v57 = vadd.f32 %v2677_v55, %v2671_v56 }
 0x81e   : > { %v2679_v0 = vpack.c.bf16 %v2678_v57, %v2678_v57 }
 0x820   : > { %2680 = vst [vmem:[%s675_s1] sm:$0x3] %v2679_v0 }
 0x833   : > { %v2786_v61 = vpop.f32.mrb[44].mxu1 }
 0x834   : > { %v2787_v62 = vadd.f32 %v2786_v61, %v2703_v60  ;;  %v3427_v26 = vpop.f32.mrb[45].mxu1 }
 0x835   : > { %v2789_v7 = vpop.f32.mrb[46].mxu1 }
 0x836   : > { %v2792_v63 = vpack.c.bf16 %v2787_v62, %v2787_v62  ;;  %v3428_v10 = vpop.f32.mrb[47].mxu1 }
 0x838   : > { %2793 = vst [vmem:[%s679_s22] sm:$0x3] %v2792_v63 }
 0x839 PF: > { %s4443_s28 = sld [smem:[#allocation9_spill]]  ;;  %s4444_s18 = sld [smem:[#allocation8_spill]] }
 0x83a   : > { %s4445_s27 = sld [smem:[#allocation10_spill]]  ;;  %s4446_s25 = smov %s3749_s26 }
 0x83f   : > { %p27_p11 = scmp.ge.s32.totalorder %s4443_s28, 4   ;;  %s4447_s26 = smov %s4444_s18 }
 0x841   :  { %29 = sbr.rel (!%p27_p11) target bundleno = 8 (0x8), region = 163 }
 0x848   :  { %2827 = vsyncpa [#allocation3], 1 }
 0x849   :  { %2829 = vsyncpa [#allocation3 + $0x1], 1 }
 0x84a   :  { %2830 = vsyncpa [#allocation5], 1 }
 0x84b   :  { %2832 = vsyncpa [#allocation5 + $0x1], 1 }

// kernel: custom_clip_forward.8
= control target key start
LH: loop header
LB: loop body
LE: loop exit
PB: predicated region body
PF: predicated region fallthrough
CT: control target
= control target key end

     0   :  { %s4124_s29 = smov 0   ;;  %s4850_s0 = inlined_call_operand.vmem [shape: bf16[26,128], index: 0, kind: input, shape index: {}]   ;;  %s4851_s1 = inlined_call_operand.vmem [shape: bf16[2,8,128], index: 1, kind: input, shape index: {}]   ;;  %s4852_s2 = inlined_call_operand.vmem [shape: bf16[2,1,128], index: 2, kind: input, shape index: {}]   ;;  %s4853_s3 = inlined_call_operand.vmem [shape: bf16[2,1,128], index: 3, kind: input, shape index: {}]   ;;  %s4854_s4 = inlined_call_operand.vmem [shape: bf16[2,128,384], index: 4, kind: input, shape index: {}]   ;;  %s4855_s5 = inlined_call_operand.vmem [shape: bf16[2,1,384], index: 5, kind: input, shape index: {}]   ;;  %s4856_s6 = inlined_call_operand.vmem [shape: bf16[2,128,128], index: 6, kind: input, shape index: {}]   ;;  %s4857_s7 = inlined_call_operand.vmem [shape: bf16[2,1,128], index: 7, kind: input, shape index: {}]   ;;  %s4858_s8 = inlined_call_operand.vmem [shape: bf16[2,1,128], index: 8, kind: input, shape index: {}]   ;;  %s4859_s9 = inlined_call_operand.vmem [shape: bf16[2,1,128], index: 9, kind: input, shape index: {}]   ;;  %s4860_s10 = inlined_call_operand.vmem [shape: bf16[2,128,512], index: 10, kind: input, shape index: {}]   ;;  %s4861_s11 = inlined_call_operand.vmem [shape: bf16[2,1,512], index: 11, kind: input, shape index: {}]   ;;  %s4862_s12 = inlined_call_operand.vmem [shape: bf16[2,512,128], index: 12, kind: input, shape index: {}]   ;;  %s4863_s13 = inlined_call_operand.vmem [shape: bf16[2,1,128], index: 13, kind: input, shape index: {}]   ;;  %s4864_s14 = inlined_call_operand.vmem [shape: bf16[26,128], index: 14, kind: output, shape index: {}]  }
   0x1   :  { %4872 = sst [smem:[#allocation4_spill]] %s4850_s0 }
   0x2   :  { %4873 = sst [smem:[#allocation5_spill]] %s4851_s1 }
   0x3   :  { %4874 = sst [smem:[#allocation6_spill]] %s4853_s3 }
   0x4   :  { %4875 = sst [smem:[#allocation7_spill]] %s4854_s4 }
   0x5   :  { %4876 = sst [smem:[#allocation8_spill]] %s4856_s6 }
   0x6   :  { %4877 = sst [smem:[#allocation9_spill]] %s4864_s14 }
   0x7 LB: > { %4878 = sst [smem:[#allocation2_spill]] %s4040_s29  ;;  %s4130_s30 = sadd.s32 4294967295, %s4040_s29   ;;  %s4040_s29 = sphi %s4124_s29, %s24_s29  }
   0x8   : > { %4879 = sst [smem:[#allocation3_spill]] %s4130_s30  ;;  %p3366_p0 = scmp.ge.s32.totalorder %s4040_s29, 1 }
   0x9   : > { %p512_p1 = scmp.lt.s32.totalorder %s4040_s29, 3 }
   0xb   : > { %p513_p2 = pnand %p3366_p0, %p512_p1 }
   0xc   : > { %p598_p3 = scmp.lt.s32.totalorder (!%p513_p2), %s4130_s30, 1  ;;  %s4880_s1 = sld [smem:[#allocation5_spill]] (!%p513_p2) }
   0xd   : > { %516 = sbr.rel (%p513_p2) target bundleno = 2710 (0xa96), region = 76  ;;  %s4882_s6 = sld [smem:[#allocation8_spill]] (!%p513_p2) }
   0xe   : > { %s4883_s4 = sld [smem:[#allocation7_spill]] (!%p513_p2) }
  0x14   : > { %s4136_s15 = scalar_select %p598_p3, %s4130_s30, 1 }
  0x16   : > { %s3367_s16 = sshll.u32 %s4136_s15, 2  ;;  %s3755_s26 = smul.u32 192, %s4136_s15 }
  0x17   : > { %s601_s22 = scalar_lea.vmem %s4880_s1, %s3367_s16  ;;  %s3495_s27 = sshll.u32 %s4136_s15, 6 }
  0x18   : > { %s3756_s28 = smul.u32 3, %s4136_s15  ;;  %s4156_s0 = scalar_lea.vmem %s4882_s6, %s3495_s27 }
  0x19   : > { %s4161_s18 = scalar_lea.vmem %s4883_s4, %s3755_s26  ;;  %s3496_s30 = sshll.u32 %s4136_s15, 8 }
  0x1a   : > { %s4170_s24 = scalar_lea.vmem %s4855_s5, %s3756_s28  ;;  %s4184_s4 = scalar_lea.vmem %s4860_s10, %s3496_s30 }
  0x1b   : > { %s4189_s1 = scalar_lea.vmem %s4861_s11, %s3367_s16  ;;  %s4194_s3 = scalar_lea.vmem %s4862_s12, %s3496_s30 }
  0x1c   : > { %s4884_s27 = sld [smem:[#allocation3_spill]] }
  0x22   : > { %p3376_p4 = scmp.ne.s32.totalorder %s4884_s27, 0 }
  0x23   : > { %s4885_s6 = sld [smem:[#allocation4_spill]] (!%p3376_p4)  ;;  %s4886_s23 = sld [smem:[#allocation9_spill]] (!%p3376_p4) }
  0x24   : > { %652 = sbr.rel (%p3376_p4) target bundleno = 44 (0x2c), region = 80 }
  0x29   : > { %v653_v0 = vld [vmem:[%s4885_s6] sm:$0xff] (!%p3376_p4)   ;;  %v655_v1 = vld [vmem:[%s4885_s6 + $0x8] sm:$0xf] (!%p3376_p4)  ;;  %v656_v2 = vld [vmem:[%s4885_s6 + $0xc] sm:$0x1] (!%p3376_p4) }
  0x2a   : > { %657 = vst [vmem:[%s4886_s23] sm:$0xff] (!%p3376_p4), %v653_v0   ;;  %659 = vst [vmem:[%s4886_s23 + $0x8] sm:$0xf] (!%p3376_p4), %v655_v1 }
  0x2b   : > { %660 = vst [vmem:[%s4886_s23 + $0xc] sm:$0x1] %v656_v2 }
  0x2c PF: > { %s4887_s26 = sld [smem:[#allocation3_spill]] }
  0x32   : > { %p661_p5 = scmp.gt.s32.totalorder %s4887_s26, 0  ;;  %p662_p6 = scmp.le.s32.totalorder %s4887_s26, 1 }
  0x34   : > { %p663_p7 = pnand %p662_p6, %p661_p5 }
  0x35   : > { %v667_v3 = vld [vmem:[%s601_s22] sm:$0xf] (!%p663_p7)  ;;  %vm679_vm0 = vcmask (!%p663_p7), 1043458   ;;  %vm680_vm1 = vsmask.f32 (!%p663_p7), 7946  ;;  %vm685_vm2 = vcmask (!%p663_p7), 1042432  }
  0x36   : > { %666 = sbr.rel (%p663_p7) target bundleno = 64 (0x40), region = 84  ;;  %v669_v4 = vshrl.u32 (!%p663_p7), %v667_v3, 16  ;;  %v672_v5 = vshll.u32 (!%p663_p7), %v667_v3, 16  ;;  %v692_v6 = vrot.slane (!%p663_p7), %v667_v3, 7  ;;  %vm686_vm3 = vsmask.f32 (!%p663_p7), 2304  ;;  %vm681_vm4 = vmand (!%p663_p7), %vm679_vm0, %vm680_vm1 }
  0x37   : > { %s4888_s17 = sld [smem:[#allocation9_spill]] (!%p663_p7)  ;;  %vm687_vm5 = vmand (!%p663_p7), %vm685_vm2, %vm686_vm3 }
  0x38   : > { %v671_v7 = vrot.slane (!%p663_p7), %v669_v4, 5  ;;  %v674_v8 = vrot.slane (!%p663_p7), %v672_v5, 6  ;;  %v693_v10 = vrot.slane (!%p663_p7), %v692_v6, 4 }
  0x3a   : > { %v675_v11 = vor.u32 (!%p663_p7), %v674_v8, %v671_v7 }
  0x3c   : > { %v676_v14 = vrot.slane (!%p663_p7), %v675_v11, 4 }
  0x3d   : > { %v682_v9 = vld [vmem:[%s4888_s17] sm:$0xc]  ;;  %696 = vst [vmem:[%s4888_s17 + $0x8] sm:$0xe] %v692_v6  ;;  %v688_v12 = vld [vmem:[%s4888_s17 + $0x4] sm:$0x7] }
  0x3e   : > { %697 = vst [vmem:[%s4888_s17 + $0xc] sm:$0x1] %v693_v10  ;;  %v683_v13 = vsel %vm681_vm4, %v675_v11, %v682_v9  ;;  %v689_v15 = vsel %vm687_vm5, %v676_v14, %v688_v12 }
  0x3f   : > { %684 = vst [vmem:[%s4888_s17] sm:$0xc] %v683_v13  ;;  %690 = vst [vmem:[%s4888_s17 + $0x4] sm:$0x7] %v689_v15 }
  0x40 PF: > { %s4889_s29 = sld [smem:[#allocation9_spill]]  ;;  %vm716_vm6 = vcmask 1041408   ;;  %v3802_v24 = vld [vmem:[%s4161_s18 + $0x4] ss:$12 sps:$4 sm:$0xff]   ;;  %v3804_v25 = vld [vmem:[%s4161_s18] ss:$12 sps:$4 sm:$0xff]   ;;  %v758_v6 = vlaneseq  ;;  %s4890_s30 = scalar_lea.vmem %s4852_s2, %s4136_s15 }
  0x41   : > { %v3805_v26 = vld [vmem:[%s4161_s18 + $0x1c] ss:$12 sps:$4 sm:$0xff]   ;;  %966 = vmatprep.subr.bf16.mxu0 %v3802_v24  ;;  %v3808_v45 = vld [vmem:[%s4161_s18 + $0x18] ss:$12 sps:$4 sm:$0xff]   ;;  %v3809_v46 = vld [vmem:[%s4161_s18 + $0x34] ss:$12 sps:$4 sm:$0xff]   ;;  %s4893_s20 = scalar_lea.vmem %s4857_s7, %s4136_s15  ;;  %s4894_s22 = scalar_lea.vmem %s4858_s8, %s4136_s15 }
  0x42   : > { %v3807_v27 = vld [vmem:[%s4161_s18 + $0x8] ss:$12 sps:$4 sm:$0xff]   ;;  %967 = vmatpush1.bf16.msra.mxu0 %v3804_v25  ;;  %v3811_v47 = vld [vmem:[%s4161_s18 + $0x20] ss:$12 sps:$4 sm:$0xff]   ;;  %v3812_v48 = vld [vmem:[%s4161_s18 + $0x30] ss:$12 sps:$4 sm:$0xff]   ;;  %s4895_s17 = scalar_lea.vmem %s4859_s9, %s4136_s15 }
  0x43   : > { %3619 = vmatprep.subr.bf16.mxu1 %v3807_v27  ;;  %968 = vmatprep.subr.bf16.mxu0 %v3805_v26  ;;  %v3813_v49 = vld [vmem:[%s4161_s18 + $0x4c] ss:$12 sps:$4 sm:$0xff]   ;;  %v3816_v51 = vld [vmem:[%s4161_s18 + $0x48] ss:$12 sps:$4 sm:$0xff]   ;;  %v3817_v52 = vld [vmem:[%s4161_s18 + $0x64] ss:$12 sps:$4 sm:$0xff]  }
  0x44   : > { %3620 = vmatpush3.bf16.msra.mxu1 %v3807_v27  ;;  %v3815_v50 = vld [vmem:[%s4161_s18 + $0x38] ss:$12 sps:$4 sm:$0xff]   ;;  %v3819_v53 = vld [vmem:[%s4161_s18 + $0x50] ss:$12 sps:$4 sm:$0xff]   ;;  %v3820_v54 = vld [vmem:[%s4161_s18 + $0x60] ss:$12 sps:$4 sm:$0xff]  }
  0x45   : > { %3621 = vmatprep.subr.bf16.mxu1 %v3811_v47  ;;  %v3821_v55 = vld [vmem:[%s4161_s18 + $0x7c] ss:$12 sps:$4 sm:$0xff]   ;;  %v3824_v57 = vld [vmem:[%s4161_s18 + $0x78] ss:$12 sps:$4 sm:$0xff]   ;;  %v3825_v58 = vld [vmem:[%s4161_s18 + $0x94] ss:$12 sps:$4 sm:$0xff]  }
  0x46   : > { %v3503_v16 = vld [vmem:[%s4889_s29] sm:$0xff]   ;;  %v701_v17 = vld [vmem:[%s4889_s29 + $0xc] sm:$0x1]  ;;  %v700_v18 = vld [vmem:[%s4889_s29 + $0x8] sm:$0xf]  ;;  %969 = vmatpush1.bf16.msra.mxu0 %v3808_v45  ;;  %v4042_v63 = vmov 0  }
  0x47   : > { %v4248_v19 = vunpack.c.l.bf16 %v3503_v16  ;;  %v4250_v20 = vunpack.c.l.bf16 %v701_v17  ;;  %v4255_v22 = vunpack.c.h.bf16 %v3503_v16  ;;  %v4257_v23 = vunpack.c.l.bf16 %v700_v18  ;;  %970 = vmatprep.subr.bf16.mxu0 %v3809_v46  ;;  %v3823_v56 = vld [vmem:[%s4161_s18 + $0x68] ss:$12 sps:$4 sm:$0xff]   ;;  %v3827_v59 = vld [vmem:[%s4161_s18 + $0x80] ss:$12 sps:$4 sm:$0xff]   ;;  %v3828_v60 = vld [vmem:[%s4161_s18 + $0x90] ss:$12 sps:$4 sm:$0xff]   ;;  %998 = vmatprep.mubr.bf16.mxu0 %v4042_v63 }
  0x48   : > { %3622 = vmatpush3.bf16.msra.mxu1 %v3811_v47  ;;  %v3829_v61 = vld [vmem:[%s4161_s18 + $0xac] ss:$12 sps:$4 sm:$0xff]   ;;  %v3832_v0 = vld [vmem:[%s4161_s18 + $0xa8] ss:$12 sps:$4 sm:$0xff]   ;;  %v3833_v1 = vld [vmem:[%s4161_s18 + $0xb0] ss:$12 sps:$4 sm:$0xff]  }
  0x49   : > { %710 = vadd.xlane.f32.xlu0 %v4248_v19  ;;  %v717_v21 = vsel %vm716_vm6, %v4250_v20, 0.0  ;;  %3623 = vmatprep.subr.bf16.mxu1 %v3815_v50  ;;  %v3831_v62 = vld [vmem:[%s4161_s18 + $0x98] ss:$12 sps:$4 sm:$0xff]   ;;  %v4307_v13 = vshrl.u32 %v758_v6, 7  ;;  %v706_v15 = vld [vmem:[%s4890_s30] sm:$0x1]  ;;  %s4896_s30 = scalar_lea.vmem %s4863_s13, %s4136_s15 }
  0x4a   : > { %718 = vadd.xlane.f32.xlu1 %v717_v21  ;;  %971 = vmatpush1.bf16.msra.mxu0 %v3812_v48  ;;  %v708_v17 = vunpack.c.l.bf16 %v706_v15  ;;  %s4891_s14 = sld [smem:[#allocation6_spill]]  ;;  %vm4044_vm7 = vmmov 0   ;;  %vm1149_vm8 = vcmask 1045504   ;;  %vm1071_vm9 = vcmask 261120   ;;  %s4047_s27 = smov 64  }
  0x4b   : > { %972 = vmatprep.subr.bf16.mxu0 %v3813_v49  ;;  %v4315_v18 = vsub.s32 0, %v4307_v13  ;;  %v817_v48 = vsub.s32 2, %v4307_v13  ;;  %v821_v49 = vsub.s32 4, %v4307_v13  ;;  %vm1150_vm10 = vcmask 1046528   ;;  %s4048_s26 = smov 32  }
  0x4c   : > { %3624 = vmatpush3.bf16.msra.mxu1 %v3815_v50  ;;  %vm1613_vm11 = vsmask.f32 5376  ;;  %vm1121_vm12 = vcmask 105472   ;;  %vm1125_vm13 = vcmask 102400   ;;  %vm1601_vm14 = vcmask 523264  }
  0x4d   : > { %712 = vadd.xlane.f32.xlu0 %v4255_v22  ;;  %3625 = vmatprep.subr.bf16.mxu1 %v3819_v53  ;;  %v761_v27 = vrot.slane %v708_v17, %v4315_v18  ;;  %vm1604_vm15 = vcmask 785408   ;;  %vm2191_vm0 = vcmask 1044480  }
  0x4e   : > { %714 = vadd.xlane.f32.xlu1 %v4257_v23  ;;  %973 = vmatpush1.bf16.msra.mxu0 %v3816_v51 }
  0x4f   : > { %974 = vmatprep.subr.bf16.mxu0 %v3817_v52 }
  0x50   : > { %3626 = vmatpush3.bf16.msra.mxu1 %v3819_v53  ;;  %s4892_s25 = scalar_lea.vmem %s4891_s14, %s4136_s15 }
  0x51   : > { %3627 = vmatprep.subr.bf16.mxu1 %v3823_v56  ;;  %v707_v21 = vld [vmem:[%s4892_s25] sm:$0x1] }
  0x52   : > { %975 = vmatpush1.bf16.msra.mxu0 %v3820_v54  ;;  %v709_v25 = vunpack.c.l.bf16 %v707_v21 }
  0x53   : > { %976 = vmatprep.subr.bf16.mxu0 %v3821_v55 }
  0x54   : > { %3628 = vmatpush3.bf16.msra.mxu1 %v3823_v56 }
  0x55   : > { %3629 = vmatprep.subr.bf16.mxu1 %v3827_v59 }
  0x56   : > { %977 = vmatpush1.bf16.msra.mxu0 %v3824_v57 }
  0x57   : > { %978 = vmatprep.subr.bf16.mxu0 %v3825_v58 }
  0x58   : > { %3630 = vmatpush3.bf16.msra.mxu1 %v3827_v59 }
  0x59   : > { %3631 = vmatprep.subr.bf16.mxu1 %v3831_v62 }
  0x5a   : > { %979 = vmatpush1.bf16.msra.mxu0 %v3828_v60 }
  0x5b   : > { %980 = vmatprep.subr.bf16.mxu0 %v3829_v61 }
  0x5c   : > { %3632 = vmatpush3.bf16.msra.mxu1 %v3831_v62 }
  0x5d   : > { %3633 = vmatprep.subr.bf16.mxu1 %v3833_v1 }
  0x5e   : > { %981 = vmatpush1.bf16.msra.mxu0 %v3832_v0 }
  0x60   : > { %3634 = vmatpush3.bf16.msra.mxu1 %v3833_v1 }
  0xd6   : > { %v711_v28 = vpop.xlane.xlu0 %710 }
  0xd7   : > { %v721_v29 = vmul.f32 0.0078125, %v711_v28  ;;  %v719_v30 = vpop.xlane.xlu1 %718 }
  0xd8   : > { %v724_v31 = vmul.f32 0.0078125, %v719_v30 }
  0xd9   : > { %v4266_v32 = vsub.f32 %v4248_v19, %v721_v29 }
  0xda   : > { %v4269_v33 = vsub.f32 %v4250_v20, %v724_v31  ;;  %v713_v34 = vpop.xlane.xlu0 %712 }
  0xdb   : > { %v722_v35 = vmul.f32 0.0078125, %v713_v34  ;;  %v715_v36 = vpop.xlane.xlu1 %714  ;;  %v729_v37 = vmul.f32 %v4266_v32, %v4266_v32  ;;  %v769_v34 = vrot.slane %v709_v25, %v4315_v18 }
  0xdc   : > { %v723_v38 = vmul.f32 0.0078125, %v715_v36  ;;  %v732_v41 = vmul.f32 %v4269_v33, %v4269_v33 }
  0xdd   : > { %v4274_v39 = vsub.f32 %v4255_v22, %v722_v35  ;;  %733 = vadd.xlane.f32.xlu0 %v729_v37 }
  0xde   : > { %v4277_v40 = vsub.f32 %v4257_v23, %v723_v38  ;;  %v739_v44 = vsel %vm716_vm6, %v732_v41, 0.0 }
  0xdf   : > { %v730_v42 = vmul.f32 %v4274_v39, %v4274_v39 }
  0xe0   : > { %v731_v43 = vmul.f32 %v4277_v40, %v4277_v40 }
  0xe1   : > { %735 = vadd.xlane.f32.xlu1 %v730_v42 }
  0xe2   : > { %737 = vadd.xlane.f32.xlu0 %v731_v43 }
  0xe5   : > { %740 = vadd.xlane.f32.xlu1 %v739_v44 }
 0x16a   : > { %v734_v2 = vpop.xlane.xlu0 %733 }
 0x16b   : > { %v742_v3 = vmul.f32 0.0078125, %v734_v2 }
 0x16d   : > { %v746_v4 = vadd.f32 1e-05, %v742_v3 }
 0x16e   : > { %v736_v5 = vpop.xlane.xlu1 %735 }
 0x16f   : > { %3922 = vrsqrt.f32 %v746_v4  ;;  %v743_v7 = vmul.f32 0.0078125, %v736_v5  ;;  %v738_v8 = vpop.xlane.xlu0 %737 }
 0x170   : > { %v744_v9 = vmul.f32 0.0078125, %v738_v8 }
 0x171   : > { %v747_v10 = vadd.f32 1e-05, %v743_v7 }
 0x172   : > { %v748_v11 = vadd.f32 1e-05, %v744_v9  ;;  %v741_v12 = vpop.xlane.xlu1 %740  ;;  %v4046_v9 = vmov 65535  }
 0x173   : > { %3924 = vrsqrt.f32 %v747_v10  ;;  %v745_v14 = vmul.f32 0.0078125, %v741_v12  ;;  %v1151_v10 = vsel %vm1149_vm8, 4294967295, %v4046_v9 }
 0x174   : > { %3926 = vrsqrt.f32 %v748_v11 }
 0x175   : > { %v749_v16 = vadd.f32 1e-05, %v745_v14 }
 0x177   : > { %3928 = vrsqrt.f32 %v749_v16 }
 0x179   : > { %v3923_v24 = vpop.eup %3922 }
 0x17a   : > { %v754_v26 = vmul.f32 %v3923_v24, %v4266_v32 }
 0x17c   : > { %v762_v31 = vmul.f32 %v761_v27, %v754_v26 }
 0x17d   : > { %v3925_v28 = vpop.eup %3924 }
 0x17e   : > { %v3927_v29 = vpop.eup %3926  ;;  %v755_v30 = vmul.f32 %v3925_v28, %v4274_v39  ;;  %v770_v38 = vadd.f32 %v769_v34, %v762_v31  ;;  %v4356_v28 = vsel %vm1150_vm10, %v1151_v10, 0 }
 0x17f   : > { %v756_v35 = vmul.f32 %v3927_v29, %v4277_v40  ;;  %v4043_v40 = vmov 0.0  }
 0x180   : > { %v763_v36 = vmul.f32 %v761_v27, %v755_v30  ;;  %3639 = vmatprep.subr.bf16.mxu0 %v4043_v40  ;;  %3651 = vmatprep.subr.bf16.mxu1 %v4043_v40 }
 0x181   : > { %v3929_v37 = vpop.eup %3928  ;;  %v764_v43 = vmul.f32 %v761_v27, %v756_v35 }
 0x182   : > { %v771_v41 = vadd.f32 %v769_v34, %v763_v36  ;;  %v757_v42 = vmul.f32 %v3929_v37, %v4269_v33  ;;  %v808_v33 = vld [vmem:[%s4170_s24] sm:$0x7]  ;;  %s4045_s24 = smov 96  }
 0x183   : > { %v772_v45 = vadd.f32 %v769_v34, %v764_v43  ;;  %v809_v47 = vunpack.c.l.bf16 %v808_v33 }
 0x184   : > { %v806_v44 = vpack.c.bf16 %v771_v41, %v770_v38  ;;  %v765_v32 = vmul.f32 %v761_v27, %v757_v42 }
 0x185   : > { %v814_v50 = vrot.slane %v809_v47, %v4315_v18  ;;  %v818_v51 = vrot.slane %v809_v47, %v817_v48  ;;  %v822_v52 = vrot.slane %v809_v47, %v821_v49 }
 0x186   : > { %999 = vmatmul.mubr.bf16.vlgmr.msra.gmra.mrb[0].mxu0 %v806_v44  ;;  %3635 = vmatprep.mubr.bf16.mxu1 %v806_v44  ;;  %v773_v46 = vadd.f32 %v769_v34, %v765_v32 }
 0x187   : > { %1008 = vmatprep.mubr.bf16.mxu0 %v4042_v63  ;;  %v829_v53 = vrot.slane %v814_v50, %v4315_v18  ;;  %v833_v55 = vrot.slane %v818_v51, %v4315_v18  ;;  %v837_v57 = vrot.slane %v822_v52, %v4315_v18 }
 0x188   : > { %v807_v39 = vpack.c.bf16 %v773_v46, %v772_v45 }
 0x18a   : > { %3636 = vmatmul.mubr.bf16.vlgmr.msra.gmra.mrb[0].mxu1 %v807_v39 }
 0x18b   : > { %3653 = vmatprep.mubr.msk.bf16.mxu1 %vm4044_vm7, %v4043_v40 }
 0x18e   : > { %1009 = vmatmul.mubr.bf16.gmra.mrb[4].mxu0 %v807_v39 }
 0x18f   : > { %3641 = vmatprep.mubr.msk.bf16.mxu0 %vm4044_vm7, %v4043_v40 }
 0x259   : > { %v1000_v54 = vpop.f32.mrb[0].mxu0 }
 0x25a   : > { %v1002_v56 = vpop.f32.mrb[1].mxu0  ;;  %v1001_v59 = vadd.f32 %v1000_v54, %v829_v53 }
 0x25b   : > { %v1004_v58 = vpop.f32.mrb[2].mxu0  ;;  %v1003_v62 = vadd.f32 %v1002_v56, %v833_v55 }
 0x25c   : > { %v1005_v60 = vadd.f32 %v1004_v58, %v829_v53  ;;  %v1006_v61 = vpop.f32.mrb[3].mxu0 }
 0x25d   : > { %v1007_v0 = vadd.f32 %v1006_v61, %v833_v55  ;;  %v3637_v1 = vpop.f32.mrb[0].mxu1 }
 0x25e   : > { %v4346_v2 = vpack.c.bf16 %v1005_v60, %v1001_v59  ;;  %v1062_v3 = vadd.f32 %v3637_v1, %v837_v57  ;;  %v1053_v4 = vpop.f32.mrb[1].mxu1 }
 0x25f   : > { %v1069_v5 = vpack.c.bf16 %v1007_v0, %v1003_v62  ;;  %v3638_v6 = vpop.f32.mrb[2].mxu1  ;;  %v1054_v11 = vadd.f32 %v1053_v4, %v837_v57 }
 0x260   : > { %v1065_v7 = vadd.f32 %v3638_v6, %v837_v57  ;;  %1198 = vrot.lane.b32.xlu1 %v4346_v2, %s4045_s24  ;;  %v1056_v8 = vpop.f32.mrb[3].mxu1 }
 0x261   : > { %v1057_v12 = vadd.f32 %v1056_v8, %v837_v57  ;;  %1201 = vrot.lane.b32.xlu0 %v1069_v5, %s4045_s24  ;;  %v1010_v14 = vpop.f32.mrb[4].mxu0  ;;  %v1076_v15 = vsel %vm1071_vm9, %v1069_v5, 0 }
 0x262   : > { %v1612_v16 = vpack.c.bf16 %v1065_v7, %v1065_v7  ;;  %v1011_v17 = vadd.f32 %v1010_v14, %v829_v53  ;;  %v1012_v21 = vpop.f32.mrb[5].mxu0  ;;  %3640 = vmatpush3.bf16.xpose.msra.mxu0 %v1076_v15 }
 0x263   : > { %v4352_v24 = vpack.c.bf16 %v1057_v12, %v1054_v11  ;;  %v1611_v25 = vpack.c.bf16 %v1062_v3, %v1057_v12  ;;  %v1013_v26 = vadd.f32 %v1012_v21, %v833_v55  ;;  %v1014_v27 = vpop.f32.mrb[6].mxu0  ;;  %3645 = vmatprep.subr.bf16.mxu0 %v4043_v40 }
 0x264   : > { %v1729_v29 = vshrl.u32 %v1612_v16, 16  ;;  %v1732_v30 = vshll.u32 %v1612_v16, 16  ;;  %v1607_v31 = vpack.c.bf16 %v1011_v17, %v1005_v60  ;;  %v1015_v34 = vadd.f32 %v1014_v27, %v829_v53  ;;  %1327 = vrot.lane.b32.xlu1 %v1069_v5, %s4047_s27  ;;  %v1016_v35 = vpop.f32.mrb[7].mxu0 }
 0x265   : > { %v1721_v36 = vshrl.u32 %v1611_v25, 16  ;;  %v1724_v37 = vshll.u32 %v1611_v25, 16  ;;  %v1609_v38 = vpack.c.bf16 %v1013_v26, %v1007_v0  ;;  %v1017_v41 = vadd.f32 %v1016_v35, %v833_v55  ;;  %1452 = vrot.lane.b32.xlu0 %v1069_v5, %s4048_s26 }
 0x266   : > { %v1731_v42 = vrot.slane %v1729_v29, 2  ;;  %v1734_v43 = vrot.slane %v1732_v30, 3  ;;  %v1615_v44 = vshrl.u32 %v1607_v31, 16  ;;  %v1618_v32 = vshll.u32 %v1607_v31, 16 }
 0x267   : > { %v1723_v45 = vrot.slane %v1721_v36, 2  ;;  %v1726_v46 = vrot.slane %v1724_v37, 3  ;;  %v1632_v39 = vshrl.u32 %v1609_v38, 16  ;;  %v1635_v33 = vshll.u32 %v1609_v38, 16 }
 0x268   : > { %v1735_v47 = vor.u32 %v1734_v43, %v1731_v42  ;;  %v1608_v50 = vpack.c.bf16 %v1015_v34, %v1015_v34  ;;  %1325 = vrot.lane.b32.xlu1 %v4346_v2, %s4047_s27  ;;  %v1617_v52 = vrot.slane %v1615_v44, 2  ;;  %v1620_v53 = vrot.slane %v1618_v32, 3 }
 0x269   : > { %v1727_v51 = vor.u32 %v1726_v46, %v1723_v45  ;;  %v1610_v54 = vpack.c.bf16 %v1017_v41, %v1017_v41  ;;  %3642 = vmatmul.mubr.msk.bf16.vlgmr.msra.gmra.mrb[8].mxu0 %vm1071_vm9, %v4346_v2  ;;  %v1634_v55 = vrot.slane %v1632_v39, 2  ;;  %v1154_v58 = vand.u32 %v4356_v28, %v4352_v24 }
 0x26a   : > { %v1623_v56 = vshrl.u32 %v1608_v50, 16  ;;  %v1626_v57 = vshll.u32 %v1608_v50, 16  ;;  %3647 = vmatprep.mubr.msk.bf16.mxu0 %vm4044_vm7, %v4043_v40  ;;  %v1637_v59 = vrot.slane %v1635_v33, 3  ;;  %v1621_v5 = vor.u32 %v1620_v53, %v1617_v52 }
 0x26b   : > { %v1640_v60 = vshrl.u32 %v1610_v54, 16  ;;  %v1643_v61 = vshll.u32 %v1610_v54, 16  ;;  %v4369_v62 = vsel %vm1613_vm11, %v1727_v51, %v1735_v47  ;;  %3646 = vmatpush3.bf16.msra.mxu0 %v1154_v58 }
 0x26c   : > { %v1625_v0 = vrot.slane %v1623_v56, 2  ;;  %v1628_v1 = vrot.slane %v1626_v57, 3  ;;  %1450 = vrot.lane.b32.xlu1 %v4346_v2, %s4048_s26  ;;  %3657 = vmatprep.subr.bf16.mxu0 %v4043_v40  ;;  %v1638_v7 = vor.u32 %v1637_v59, %v1634_v55 }
 0x26d   : > { %v1642_v3 = vrot.slane %v1640_v60, 2  ;;  %v1645_v4 = vrot.slane %v1643_v61, 3 }
 0x26e   : > { %v1629_v6 = vor.u32 %v1628_v1, %v1625_v0 }
 0x26f   : > { %v1646_v8 = vor.u32 %v1645_v4, %v1642_v3 }
 0x270   : > { %v1630_v9 = vsel %vm1613_vm11, %v1621_v5, %v1629_v6 }
 0x271   : > { %v1647_v10 = vsel %vm1613_vm11, %v1638_v7, %v1646_v8  ;;  %1784 = vrot.lane.b32.xlu1 %v1630_v9, %s4045_s24 }
 0x272   : > { %1786 = vrot.lane.b32.xlu0 %v1647_v10, %s4045_s24  ;;  %v1652_v26 = vsel %vm1071_vm9, %v1647_v10, 0 }
 0x275   : > { %1909 = vrot.lane.b32.xlu1 %v1630_v9, %s4047_s27 }
 0x276   : > { %1911 = vrot.lane.b32.xlu0 %v1647_v10, %s4047_s27 }
 0x279   : > { %2034 = vrot.lane.b32.xlu1 %v1630_v9, %s4048_s26 }
 0x27a   : > { %2036 = vrot.lane.b32.xlu0 %v1647_v10, %s4048_s26 }
 0x2d2   : > { %v1199_v2 = vpop.permute.xlu1 %1198 }
 0x2d3   : > { %v1202_v11 = vpop.permute.xlu0 %1201 }
 0x2d4   : > { %v1207_v12 = vsel %vm1071_vm9, %v1202_v11, 0 }
 0x2d5   : > { %3652 = vmatpush3.bf16.xpose.msra.mxu1 %v1207_v12 }
 0x2d6   : > { %3663 = vmatprep.subr.bf16.mxu1 %v4043_v40  ;;  %v1328_v14 = vpop.permute.xlu1 %1327 }
 0x2d7   : > { %v1333_v15 = vsel %vm1071_vm9, %v1328_v14, 0  ;;  %v1453_v16 = vpop.permute.xlu0 %1452 }
 0x2d8   : > { %v1458_v21 = vsel %vm1071_vm9, %v1453_v16, 0 }
 0x2da   : > { %v1326_v17 = vpop.permute.xlu1 %1325 }
 0x2dc   : > { %3654 = vmatmul.mubr.msk.bf16.vlgmr.msra.gmra.mrb[4].mxu1 %vm1071_vm9, %v1199_v2 }
 0x2dd   : > { %3664 = vmatpush3.bf16.xpose.msra.mxu1 %v1333_v15  ;;  %3665 = vmatprep.mubr.msk.bf16.mxu1 %vm4044_vm7, %v4043_v40 }
 0x2de   : > { %3675 = vmatprep.subr.bf16.mxu1 %v4043_v40  ;;  %v1451_v25 = vpop.permute.xlu1 %1450 }
 0x2e3   : > { %v1785_v31 = vpop.permute.xlu1 %1784 }
 0x2e4   : > { %3666 = vmatmul.mubr.msk.bf16.vlgmr.msra.gmra.mrb[8].mxu1 %vm1071_vm9, %v1326_v17  ;;  %v1787_v27 = vpop.permute.xlu0 %1786 }
 0x2e5   : > { %3676 = vmatpush3.bf16.xpose.msra.mxu1 %v1458_v21  ;;  %3677 = vmatprep.mubr.msk.bf16.mxu1 %vm4044_vm7, %v4043_v40  ;;  %v1792_v29 = vsel %vm1071_vm9, %v1787_v27, 0 }
 0x2e6   : > { %3687 = vmatprep.subr.bf16.mxu1 %v4043_v40 }
 0x2e7   : > { %v1910_v36 = vpop.permute.xlu1 %1909 }
 0x2e8   : > { %v1912_v30 = vpop.permute.xlu0 %1911 }
 0x2e9   : > { %v1917_v34 = vsel %vm1071_vm9, %v1912_v30, 0 }
 0x2eb   : > { %v2035_v38 = vpop.permute.xlu1 %2034 }
 0x2ec   : > { %3678 = vmatmul.mubr.msk.bf16.vlgmr.msra.gmra.mrb[12].mxu1 %vm1071_vm9, %v1451_v25  ;;  %v2037_v35 = vpop.permute.xlu0 %2036 }
 0x2ed   : > { %3688 = vmatpush3.bf16.xpose.msra.mxu1 %v1652_v26  ;;  %3689 = vmatprep.mubr.msk.bf16.mxu1 %vm4044_vm7, %v4043_v40  ;;  %v2042_v37 = vsel %vm1071_vm9, %v2037_v35, 0 }
 0x2ee   : > { %3699 = vmatprep.subr.bf16.mxu1 %v4043_v40 }
 0x2f4   : > { %3690 = vmatmul.mubr.msk.bf16.vlgmr.msra.gmra.mrb[16].mxu1 %vm1071_vm9, %v1630_v9 }
 0x2f5   : > { %3700 = vmatpush3.bf16.xpose.msra.mxu1 %v1792_v29  ;;  %3701 = vmatprep.mubr.msk.bf16.mxu1 %vm4044_vm7, %v4043_v40 }
 0x2f6   : > { %3711 = vmatprep.subr.bf16.mxu1 %v4043_v40 }
 0x2fc   : > { %3702 = vmatmul.mubr.msk.bf16.vlgmr.msra.gmra.mrb[20].mxu1 %vm1071_vm9, %v1785_v31 }
 0x2fd   : > { %3712 = vmatpush3.bf16.xpose.msra.mxu1 %v1917_v34  ;;  %3713 = vmatprep.mubr.msk.bf16.mxu1 %vm4044_vm7, %v4043_v40 }
 0x2fe   : > { %3723 = vmatprep.subr.bf16.mxu1 %v4043_v40 }
 0x304   : > { %3714 = vmatmul.mubr.msk.bf16.vlgmr.msra.gmra.mrb[24].mxu1 %vm1071_vm9, %v1910_v36 }
 0x305   : > { %3724 = vmatpush3.bf16.xpose.msra.mxu1 %v2042_v37  ;;  %3725 = vmatprep.mubr.msk.bf16.mxu1 %vm4044_vm7, %v4043_v40 }
 0x30c   : > { %3726 = vmatmul.mubr.msk.bf16.vlgmr.msra.gmra.mrb[28].mxu1 %vm1071_vm9, %v2035_v38 }
 0x33c   : > { %v1112_v41 = vpop.f32.mrb[8].mxu0 }
 0x33d   : > { %v4414_v42 = vmul.f32 0.17677669, %v1112_v41  ;;  %v3643_v43 = vpop.f32.mrb[9].mxu0 }
 0x33e   : > { %v1115_v44 = vpop.f32.mrb[10].mxu0 }
 0x33f   : > { %v1120_v32 = vmul.f32 0.17677669, %v1115_v44  ;;  %v3644_v45 = vpop.f32.mrb[11].mxu0  ;;  %v1122_v46 = vsel %vm1121_vm12, %v4414_v42, -inf }
 0x340   : > { %1123 = vmax.xlane.f32.xlu0 %v1122_v46 }
 0x341   : > { %v1126_v39 = vsel %vm1125_vm13, %v1120_v32, -inf }
 0x342   : > { %1127 = vmax.xlane.f32.xlu1 %v1126_v39 }
 0x3af   : > { %v1243_v33 = vpop.f32.mrb[4].mxu1 }
 0x3b0   : > { %v4419_v47 = vmul.f32 0.17677669, %v1243_v33  ;;  %v3655_v50 = vpop.f32.mrb[5].mxu1 }
 0x3b1   : > { %v1246_v51 = vpop.f32.mrb[6].mxu1 }
 0x3b2   : > { %v4421_v52 = vmul.f32 0.17677669, %v1246_v51  ;;  %v3656_v53 = vpop.f32.mrb[7].mxu1  ;;  %v1252_v54 = vsel %vm1121_vm12, %v4419_v47, -inf }
 0x3b3   : > { %1253 = vmax.xlane.f32.xlu0 %v1252_v54 }
 0x3b4   : > { %v1255_v55 = vsel %vm1125_vm13, %v4421_v52, -inf }
 0x3b7   : > { %1256 = vmax.xlane.f32.xlu0 %v1255_v55  ;;  %v1369_v56 = vpop.f32.mrb[8].mxu1 }
 0x3b8   : > { %v4427_v57 = vmul.f32 0.17677669, %v1369_v56  ;;  %v3667_v58 = vpop.f32.mrb[9].mxu1 }
 0x3b9   : > { %v1372_v59 = vpop.f32.mrb[10].mxu1 }
 0x3ba   : > { %v4429_v60 = vmul.f32 0.17677669, %v1372_v59  ;;  %v3668_v61 = vpop.f32.mrb[11].mxu1  ;;  %v1378_v0 = vsel %vm1121_vm12, %v4427_v57, -inf }
 0x3bb   : > { %1379 = vmax.xlane.f32.xlu0 %v1378_v0 }
 0x3bc   : > { %v1381_v1 = vsel %vm1125_vm13, %v4429_v60, -inf }
 0x3bd   : > { %1382 = vmax.xlane.f32.xlu1 %v1381_v1 }
 0x3bf   : > { %v1494_v3 = vpop.f32.mrb[12].mxu1 }
 0x3c0   : > { %v4435_v4 = vmul.f32 0.17677669, %v1494_v3  ;;  %v3679_v5 = vpop.f32.mrb[13].mxu1 }
 0x3c1   : > { %v1497_v6 = vpop.f32.mrb[14].mxu1 }
 0x3c2   : > { %v4437_v7 = vmul.f32 0.17677669, %v1497_v6  ;;  %v3680_v8 = vpop.f32.mrb[15].mxu1  ;;  %v1503_v9 = vsel %vm1121_vm12, %v4435_v4, -inf }
 0x3c3   : > { %1504 = vmax.xlane.f32.xlu0 %v1503_v9 }
 0x3c4   : > { %v1506_v10 = vsel %vm1125_vm13, %v4437_v7, -inf }
 0x3c5   : > { %1507 = vmax.xlane.f32.xlu1 %v1506_v10 }
 0x3c7   : > { %v1688_v2 = vpop.f32.mrb[16].mxu1 }
 0x3c8   : > { %v4443_v11 = vmul.f32 0.17677669, %v1688_v2  ;;  %v3691_v12 = vpop.f32.mrb[17].mxu1 }
 0x3c9   : > { %v1691_v14 = vpop.f32.mrb[18].mxu1 }
 0x3ca   : > { %v4445_v15 = vmul.f32 0.17677669, %v1691_v14  ;;  %v3692_v16 = vpop.f32.mrb[19].mxu1  ;;  %v1697_v17 = vsel %vm1121_vm12, %v4443_v11, -inf }
 0x3cb   : > { %1698 = vmax.xlane.f32.xlu0 %v1697_v17 }
 0x3cc   : > { %v1700_v21 = vsel %vm1125_vm13, %v4445_v15, -inf }
 0x3cd   : > { %1701 = vmax.xlane.f32.xlu1 %v1700_v21  ;;  %v1124_v58 = vpop.xlane.xlu0 %1123 }
 0x3ce   : > { %v1129_v59 = vsub.f32 %v4414_v42, %v1124_v58 }
 0x3cf   : > { %v1128_v25 = vpop.xlane.xlu1 %1127  ;;  %v1828_v26 = vpop.f32.mrb[20].mxu1 }
 0x3d0   : > { %v1130_v27 = vsub.f32 %v1120_v32, %v1128_v25  ;;  %v4451_v29 = vmul.f32 0.17677669, %v1828_v26  ;;  %v3703_v30 = vpop.f32.mrb[21].mxu1  ;;  %v1131_v61 = vmul.f32 1.442695, %v1129_v59 }
 0x3d1   : > { %v1831_v31 = vpop.f32.mrb[22].mxu1 }
 0x3d2   : > { %v1133_v34 = vmul.f32 1.442695, %v1130_v27  ;;  %v4453_v35 = vmul.f32 0.17677669, %v1831_v31  ;;  %v3704_v36 = vpop.f32.mrb[23].mxu1  ;;  %v1837_v37 = vsel %vm1121_vm12, %v4451_v29, -inf }
 0x3d3   : > { %1838 = vmax.xlane.f32.xlu0 %v1837_v37 }
 0x3d4   : > { %3930 = vpow2.f32 %v1133_v34  ;;  %v1840_v38 = vsel %vm1125_vm13, %v4453_v35, -inf }
 0x3d5   : > { %1841 = vmax.xlane.f32.xlu1 %v1840_v38  ;;  %3932 = vpow2.f32 %v1131_v61 }
 0x3d7   : > { %v1953_v41 = vpop.f32.mrb[24].mxu1 }
 0x3d8   : > { %v3715_v43 = vpop.f32.mrb[25].mxu1  ;;  %v4476_v0 = vmul.f32 0.17677669, %v1953_v41 }
 0x3d9   : > { %v1956_v44 = vpop.f32.mrb[26].mxu1 }
 0x3da   : > { %v4459_v32 = vmul.f32 0.17677669, %v1956_v44  ;;  %v3716_v45 = vpop.f32.mrb[27].mxu1  ;;  %v1962_v1 = vsel %vm1121_vm12, %v4476_v0, -inf }
 0x3dc   : > { %v1965_v46 = vsel %vm1125_vm13, %v4459_v32, -inf }
 0x3dd   : > { %1966 = vmax.xlane.f32.xlu1 %v1965_v46 }
 0x3de   : > { %v4463_v39 = vpop.eup %3930 }
 0x3df   : > { %v2078_v33 = vpop.f32.mrb[28].mxu1  ;;  %v1138_v50 = vsel %vm1125_vm13, %v4463_v39, 0.0  ;;  %v4480_v3 = vpop.eup %3932 }
 0x3e0   : > { %v3727_v51 = vpop.f32.mrb[29].mxu1  ;;  %v4482_v5 = vmul.f32 0.17677669, %v2078_v33  ;;  %v1135_v6 = vsel %vm1121_vm12, %v4480_v3, 0.0 }
 0x3e1   : > { %1139 = vadd.xlane.f32.xlu1 %v1138_v50  ;;  %v2081_v53 = vpop.f32.mrb[30].mxu1 }
 0x3e2   : > { %v4467_v54 = vmul.f32 0.17677669, %v2081_v53  ;;  %v3728_v55 = vpop.f32.mrb[31].mxu1  ;;  %v2087_v42 = vsel %vm1121_vm12, %v4482_v5, -inf }
 0x3e4   : > { %v2090_v56 = vsel %vm1125_vm13, %v4467_v54, -inf }
 0x3e5   : > { %2091 = vmax.xlane.f32.xlu1 %v2090_v56 }
 0x3e9   : > { %1276 = vrot.lane.b32.xlu0 %v4352_v24, %s4045_s24 }
 0x3f6   : > { %1401 = vrot.lane.b32.xlu1 %v4352_v24, %s4047_s27 }
 0x408   : > { %1963 = vmax.xlane.f32.xlu0 %v1962_v1 }
 0x40c   : > { %1136 = vadd.xlane.f32.xlu0 %v1135_v6 }
 0x410   : > { %2088 = vmax.xlane.f32.xlu0 %v2087_v42 }
 0x440   : > { %v1254_v8 = vpop.xlane.xlu0 %1253 }
 0x441   : > { %v1258_v9 = vsub.f32 %v4419_v47, %v1254_v8 }
 0x443   : > { %v1260_v10 = vmul.f32 1.442695, %v1258_v9 }
 0x444   : > { %v1257_v2 = vpop.xlane.xlu0 %1256 }
 0x445   : > { %3934 = vpow2.f32 %v1260_v10  ;;  %v1259_v12 = vsub.f32 %v4421_v52, %v1257_v2 }
 0x447   : > { %v1262_v14 = vmul.f32 1.442695, %v1259_v12 }
 0x448   : > { %v1380_v16 = vpop.xlane.xlu0 %1379 }
 0x449   : > { %3936 = vpow2.f32 %v1262_v14  ;;  %v1384_v17 = vsub.f32 %v4427_v57, %v1380_v16 }
 0x44a   : > { %v1383_v21 = vpop.xlane.xlu1 %1382 }
 0x44b   : > { %v1386_v25 = vmul.f32 1.442695, %v1384_v17  ;;  %v1385_v26 = vsub.f32 %v4429_v60, %v1383_v21 }
 0x44d   : > { %3938 = vpow2.f32 %v1386_v25  ;;  %v1388_v27 = vmul.f32 1.442695, %v1385_v26 }
 0x44f   : > { %v4492_v30 = vpop.eup %3934  ;;  %3940 = vpow2.f32 %v1388_v27 }
 0x450   : > { %v1505_v47 = vpop.xlane.xlu0 %1504  ;;  %v1264_v31 = vsel %vm1121_vm12, %v4492_v30, 0.0 }
 0x451   : > { %v1509_v52 = vsub.f32 %v4435_v4, %v1505_v47  ;;  %1265 = vadd.xlane.f32.xlu0 %v1264_v31 }
 0x452   : > { %v1508_v34 = vpop.xlane.xlu1 %1507 }
 0x453   : > { %v4497_v36 = vpop.eup %3936  ;;  %v1511_v57 = vmul.f32 1.442695, %v1509_v52  ;;  %v1510_v37 = vsub.f32 %v4437_v7, %v1508_v34 }
 0x454   : > { %v1267_v60 = vsel %vm1125_vm13, %v4497_v36, 0.0 }
 0x455   : > { %3942 = vpow2.f32 %v1511_v57  ;;  %v1513_v38 = vmul.f32 1.442695, %v1510_v37  ;;  %1268 = vadd.xlane.f32.xlu1 %v1267_v60 }
 0x457   : > { %v4502_v41 = vpop.eup %3938  ;;  %3944 = vpow2.f32 %v1513_v38 }
 0x458   : > { %v1699_v43 = vpop.xlane.xlu0 %1698  ;;  %v1390_v4 = vsel %vm1121_vm12, %v4502_v41, 0.0 }
 0x459   : > { %v4506_v44 = vpop.eup %3940  ;;  %v1703_v45 = vsub.f32 %v4443_v11, %v1699_v43  ;;  %1391 = vadd.xlane.f32.xlu0 %v1390_v4 }
 0x45a   : > { %v1702_v46 = vpop.xlane.xlu1 %1701  ;;  %v1393_v7 = vsel %vm1125_vm13, %v4506_v44, 0.0 }
 0x45b   : > { %v1705_v33 = vmul.f32 1.442695, %v1703_v45  ;;  %v1704_v50 = vsub.f32 %v4445_v15, %v1702_v46  ;;  %1394 = vadd.xlane.f32.xlu1 %v1393_v7 }
 0x45d   : > { %3946 = vpow2.f32 %v1705_v33  ;;  %v1707_v51 = vmul.f32 1.442695, %v1704_v50 }
 0x45f   : > { %v4512_v53 = vpop.eup %3942  ;;  %3948 = vpow2.f32 %v1707_v51 }
 0x460   : > { %v1515_v55 = vsel %vm1121_vm12, %v4512_v53, 0.0  ;;  %v1839_v9 = vpop.xlane.xlu0 %1838 }
 0x461   : > { %v4516_v56 = vpop.eup %3944  ;;  %1516 = vadd.xlane.f32.xlu0 %v1515_v55  ;;  %v1843_v10 = vsub.f32 %v4451_v29, %v1839_v9 }
 0x462   : > { %v1842_v11 = vpop.xlane.xlu1 %1841  ;;  %v1518_v58 = vsel %vm1125_vm13, %v4516_v56, 0.0 }
 0x463   : > { %v1844_v59 = vsub.f32 %v4453_v35, %v1842_v11  ;;  %1519 = vadd.xlane.f32.xlu1 %v1518_v58  ;;  %v1845_v2 = vmul.f32 1.442695, %v1843_v10 }
 0x464   : > { %v1277_v14 = vpop.permute.xlu0 %1276 }
 0x465   : > { %v1847_v15 = vmul.f32 1.442695, %v1844_v59 }
 0x467   : > { %v4521_v61 = vpop.eup %3946  ;;  %3950 = vpow2.f32 %v1847_v15 }
 0x468   : > { %v1709_v1 = vsel %vm1121_vm12, %v4521_v61, 0.0  ;;  %3952 = vpow2.f32 %v1845_v2 }
 0x469   : > { %v4525_v6 = vpop.eup %3948  ;;  %1710 = vadd.xlane.f32.xlu1 %v1709_v1 }
 0x46a   : > { %v1712_v42 = vsel %vm1125_vm13, %v4525_v6, 0.0  ;;  %v1967_v12 = vpop.xlane.xlu1 %1966 }
 0x46b   : > { %v1969_v21 = vsub.f32 %v4459_v32, %v1967_v12 }
 0x46d   : > { %1713 = vadd.xlane.f32.xlu1 %v1712_v42 }
 0x46e   : > { %v1140_v17 = vpop.xlane.xlu1 %1139 }
 0x46f   : > { %3954 = vrcp.f32 %v1140_v17 }
 0x471   : > { %v4529_v8 = vpop.eup %3950 }
 0x472   : > { %v1852_v35 = vsel %vm1125_vm13, %v4529_v8, 0.0  ;;  %v4536_v16 = vpop.eup %3952  ;;  %v2092_v29 = vpop.xlane.xlu1 %2091 }
 0x473   : > { %1853 = vadd.xlane.f32.xlu1 %v1852_v35  ;;  %v1849_v26 = vsel %vm1121_vm12, %v4536_v16, 0.0  ;;  %v2094_v52 = vsub.f32 %v4467_v54, %v2092_v29 }
 0x475   : > { %v2097_v57 = vmul.f32 1.442695, %v2094_v52  ;;  %v1741_v52 = vand.u32 %v4369_v62, %v4356_v28 }
 0x476   : > { %v1402_v51 = vpop.permute.xlu1 %1401 }
 0x477   : > { %1526 = vrot.lane.b32.xlu0 %v4352_v24, %s4048_s26  ;;  %v1972_v24 = vmul.f32 1.442695, %v1969_v21  ;;  %v1407_v12 = vand.u32 %v1402_v51, %v4356_v28 }
 0x479   : > { %v3955_v60 = vpop.eup %3954 }
 0x47a   : > { %v1144_v45 = vmul.f32 %v3955_v60, %v4463_v39 }
 0x495   : > { %v1964_v25 = vpop.xlane.xlu0 %1963 }
 0x496   : > { %v1968_v27 = vsub.f32 %v4476_v0, %v1964_v25  ;;  %1850 = vadd.xlane.f32.xlu0 %v1849_v26 }
 0x498   : > { %v1970_v47 = vmul.f32 1.442695, %v1968_v27 }
 0x499   : > { %v1137_v31 = vpop.xlane.xlu0 %1136 }
 0x49a   : > { %3956 = vpow2.f32 %v1970_v47 }
 0x49b   : > { %3958 = vrcp.f32 %v1137_v31 }
 0x49c   : > { %3960 = vpow2.f32 %v1972_v24 }
 0x49d   : > { %v2089_v34 = vpop.xlane.xlu0 %2088 }
 0x49e   : > { %v2093_v32 = vsub.f32 %v4482_v5, %v2089_v34  ;;  %v1282_v5 = vand.u32 %v1277_v14, %v4356_v28 }
 0x4a0   : > { %v2095_v37 = vmul.f32 1.442695, %v2093_v32 }
 0x4a2   : > { %3962 = vpow2.f32 %v2095_v37 }
 0x4a3   : > { %3964 = vpow2.f32 %v2097_v57 }
 0x4a4   : > { %v4544_v38 = vpop.eup %3956 }
 0x4a5   : > { %v3959_v0 = vpop.eup %3958  ;;  %v1974_v43 = vsel %vm1121_vm12, %v4544_v38, 0.0 }
 0x4a6   : > { %v4548_v4 = vpop.eup %3960  ;;  %v1142_v54 = vmul.f32 %v3959_v0, %v4480_v3  ;;  %1975 = vadd.xlane.f32.xlu1 %v1974_v43 }
 0x4a7   : > { %v1977_v7 = vsel %vm1125_vm13, %v4548_v4, 0.0 }
 0x4a8   : > { %v1145_v46 = vpack.c.bf16 %v1144_v45, %v1142_v54 }
 0x4aa   : > { %3648 = vmatmul.mubr.msk.bf16.vlgmr.msra.gmra.mrb[12].mxu0 %vm1121_vm12, %v1145_v46  ;;  %1978 = vadd.xlane.f32.xlu1 %v1977_v7 }
 0x4ab   : > { %3658 = vmatpush3.bf16.msra.mxu0 %v1282_v5  ;;  %3659 = vmatprep.mubr.msk.bf16.mxu0 %vm4044_vm7, %v4043_v40 }
 0x4ac   : > { %v4558_v33 = vpop.eup %3962  ;;  %1860 = vrot.lane.b32.xlu0 %v4369_v62, %s4045_s24  ;;  %3669 = vmatprep.subr.bf16.mxu0 %v4043_v40 }
 0x4ad   : > { %v2099_v39 = vsel %vm1121_vm12, %v4558_v33, 0.0  ;;  %v4565_v3 = vpop.eup %3964 }
 0x4ae   : > { %2100 = vadd.xlane.f32.xlu1 %v2099_v39  ;;  %v2102_v50 = vsel %vm1125_vm13, %v4565_v3, 0.0 }
 0x4b0   : > { %2110 = vrot.lane.b32.xlu0 %v4369_v62, %s4048_s26 }
 0x4b2   : > { %2103 = vadd.xlane.f32.xlu1 %v2102_v50 }
 0x4c3   : > { %1985 = vrot.lane.b32.xlu1 %v4369_v62, %s4047_s27 }
 0x4de   : > { %v1266_v55 = vpop.xlane.xlu0 %1265 }
 0x4df   : > { %3966 = vrcp.f32 %v1266_v55 }
 0x4e2   : > { %v1269_v11 = vpop.xlane.xlu1 %1268 }
 0x4e3   : > { %3968 = vrcp.f32 %v1269_v11 }
 0x4e6   : > { %v1392_v58 = vpop.xlane.xlu0 %1391 }
 0x4e7   : > { %3970 = vrcp.f32 %v1392_v58 }
 0x4e8   : > { %v1395_v59 = vpop.xlane.xlu1 %1394 }
 0x4e9   : > { %3972 = vrcp.f32 %v1395_v59  ;;  %v3967_v15 = vpop.eup %3966 }
 0x4ea   : > { %v1271_v42 = vmul.f32 %v3967_v15, %v4492_v30 }
 0x4ed   : > { %v3969_v1 = vpop.eup %3968 }
 0x4ee   : > { %v1273_v35 = vmul.f32 %v3969_v1, %v4497_v36  ;;  %v1517_v9 = vpop.xlane.xlu0 %1516 }
 0x4ef   : > { %3974 = vrcp.f32 %v1517_v9 }
 0x4f0   : > { %v1520_v10 = vpop.xlane.xlu1 %1519  ;;  %v1274_v2 = vpack.c.bf16 %v1273_v35, %v1271_v42 }
 0x4f1   : > { %3976 = vrcp.f32 %v1520_v10  ;;  %v3971_v14 = vpop.eup %3970 }
 0x4f2   : > { %3660 = vmatmul.mubr.msk.bf16.vlgmr.msra.gmra.mrb[16].mxu0 %vm1121_vm12, %v1274_v2  ;;  %v1397_v30 = vmul.f32 %v3971_v14, %v4502_v41  ;;  %v1527_v36 = vpop.permute.xlu0 %1526 }
 0x4f3   : > { %v3973_v17 = vpop.eup %3972  ;;  %3670 = vmatpush3.bf16.msra.mxu0 %v1407_v12  ;;  %3671 = vmatprep.mubr.msk.bf16.mxu0 %vm4044_vm7, %v4043_v40  ;;  %v1532_v27 = vand.u32 %v1527_v36, %v4356_v28 }
 0x4f4   : > { %v1399_v21 = vmul.f32 %v3973_v17, %v4506_v44  ;;  %3681 = vmatprep.subr.bf16.mxu0 %v4043_v40 }
 0x4f6   : > { %v1711_v25 = vpop.xlane.xlu1 %1710  ;;  %v1400_v26 = vpack.c.bf16 %v1399_v21, %v1397_v30 }
 0x4f7   : > { %3978 = vrcp.f32 %v1711_v25 }
 0x4f9   : > { %v3975_v24 = vpop.eup %3974 }
 0x4fa   : > { %v1714_v47 = vpop.xlane.xlu1 %1713  ;;  %3672 = vmatmul.mubr.msk.bf16.vlgmr.msra.gmra.mrb[20].mxu0 %vm1121_vm12, %v1400_v26  ;;  %v1522_v41 = vmul.f32 %v3975_v24, %v4512_v53 }
 0x4fb   : > { %v3977_v29 = vpop.eup %3976  ;;  %3980 = vrcp.f32 %v1714_v47  ;;  %3682 = vmatpush3.bf16.msra.mxu0 %v1532_v27  ;;  %3683 = vmatprep.mubr.msk.bf16.mxu0 %vm4044_vm7, %v4043_v40 }
 0x4fc   : > { %v1524_v44 = vmul.f32 %v3977_v29, %v4516_v56  ;;  %3693 = vmatprep.subr.bf16.mxu0 %v4043_v40 }
 0x4fe   : > { %v1525_v31 = vpack.c.bf16 %v1524_v44, %v1522_v41 }
 0x500   : > { %v1854_v62 = vpop.xlane.xlu1 %1853 }
 0x501   : > { %v3979_v34 = vpop.eup %3978  ;;  %3982 = vrcp.f32 %v1854_v62 }
 0x502   : > { %3684 = vmatmul.mubr.msk.bf16.vlgmr.msra.gmra.mrb[24].mxu0 %vm1121_vm12, %v1525_v31  ;;  %v1716_v56 = vmul.f32 %v3979_v34, %v4521_v61  ;;  %v3834_v34 = vld [vmem:[%s4156_s0] sm:$0xff]  }
 0x503   : > { %3694 = vmatpush3.bf16.msra.mxu0 %v1741_v52  ;;  %3695 = vmatprep.mubr.msk.bf16.mxu0 %vm4044_vm7, %v4043_v40 }
 0x504   : > { %3705 = vmatprep.subr.bf16.mxu0 %v4043_v40  ;;  %3735 = vmatprep.subr.bf16.mxu1 %v3834_v34 }
 0x505   : > { %v3981_v32 = vpop.eup %3980  ;;  %3736 = vmatpush3.bf16.msra.mxu1 %v3834_v34 }
 0x506   : > { %v1718_v57 = vmul.f32 %v3981_v32, %v4525_v6  ;;  %v3835_v32 = vld [vmem:[%s4156_s0 + $0x8] sm:$0xff]  }
 0x507   : > { %3737 = vmatprep.subr.bf16.mxu1 %v3835_v32 }
 0x508   : > { %v1719_v37 = vpack.c.bf16 %v1718_v57, %v1716_v56  ;;  %v3836_v56 = vld [vmem:[%s4156_s0 + $0x10] sm:$0xff]  }
 0x509   : > { %3738 = vmatpush3.bf16.msra.mxu1 %v3835_v32 }
 0x50a   : > { %3696 = vmatmul.mubr.msk.bf16.vlgmr.msra.gmra.mrb[28].mxu0 %vm1121_vm12, %v1719_v37  ;;  %3739 = vmatprep.subr.bf16.mxu1 %v3836_v56 }
 0x50b   : > { %3707 = vmatprep.mubr.msk.bf16.mxu0 %vm4044_vm7, %v4043_v40  ;;  %v3983_v43 = vpop.eup %3982 }
 0x50c   : > { %v1858_v6 = vmul.f32 %v3983_v43, %v4529_v8  ;;  %v3838_v43 = vld [vmem:[%s4156_s0 + $0x20] sm:$0xff]  }
 0x50d   : > { %3740 = vmatpush3.bf16.msra.mxu1 %v3836_v56 }
 0x523   : > { %v1851_v53 = vpop.xlane.xlu0 %1850 }
 0x524   : > { %3984 = vrcp.f32 %v1851_v53  ;;  %v3837_v53 = vld [vmem:[%s4156_s0 + $0x18] sm:$0xff]  }
 0x525   : > { %3741 = vmatprep.subr.bf16.mxu1 %v3837_v53 }
 0x526   : > { %3742 = vmatpush3.bf16.msra.mxu1 %v3837_v53 }
 0x527   : > { %v1861_v60 = vpop.permute.xlu0 %1860  ;;  %3743 = vmatprep.subr.bf16.mxu1 %v3838_v43 }
 0x528   : > { %v1866_v0 = vand.u32 %v1861_v60, %v4356_v28 }
 0x52a   : > { %3706 = vmatpush3.bf16.msra.mxu0 %v1866_v0  ;;  %3744 = vmatpush3.bf16.msra.mxu1 %v3838_v43 }
 0x52b   : > { %3717 = vmatprep.subr.bf16.mxu0 %v4043_v40  ;;  %v2111_v11 = vpop.permute.xlu0 %2110 }
 0x52c   : > { %v2116_v15 = vand.u32 %v2111_v11, %v4356_v28 }
 0x52e   : > { %v3985_v61 = vpop.eup %3984 }
 0x52f   : > { %v1856_v45 = vmul.f32 %v3985_v61, %v4536_v16  ;;  %v3839_v61 = vld [vmem:[%s4156_s0 + $0x28] sm:$0xff]  }
 0x530   : > { %3745 = vmatprep.subr.bf16.mxu1 %v3839_v61 }
 0x531   : > { %v1859_v54 = vpack.c.bf16 %v1858_v6, %v1856_v45  ;;  %3746 = vmatpush3.bf16.msra.mxu1 %v3839_v61 }
 0x533   : > { %v1976_v46 = vpop.xlane.xlu1 %1975  ;;  %3708 = vmatmul.mubr.msk.bf16.vlgmr.msra.gmra.mrb[32].mxu0 %vm1121_vm12, %v1859_v54 }
 0x534   : > { %3719 = vmatprep.mubr.msk.bf16.mxu0 %vm4044_vm7, %v4043_v40  ;;  %3986 = vrcp.f32 %v1976_v46 }
 0x537   : > { %v1979_v5 = vpop.xlane.xlu1 %1978 }
 0x538   : > { %3988 = vrcp.f32 %v1979_v5 }
 0x53b   : > { %v2101_v7 = vpop.xlane.xlu1 %2100 }
 0x53c   : > { %3990 = vrcp.f32 %v2101_v7  ;;  %v3840_v7 = vld [vmem:[%s4156_s0 + $0x30] sm:$0xff]  }
 0x53d   : > { %3747 = vmatprep.subr.bf16.mxu1 %v3840_v7 }
 0x53e   : > { %v3987_v50 = vpop.eup %3986  ;;  %3748 = vmatpush3.bf16.msra.mxu1 %v3840_v7 }
 0x53f   : > { %v2104_v39 = vpop.xlane.xlu1 %2103  ;;  %v1981_v58 = vmul.f32 %v3987_v50, %v4544_v38 }
 0x540   : > { %3992 = vrcp.f32 %v2104_v39  ;;  %v3841_v39 = vld [vmem:[%s4156_s0 + $0x38] sm:$0xff]  }
 0x541   : > { %3749 = vmatprep.subr.bf16.mxu1 %v3841_v39 }
 0x542   : > { %v3989_v51 = vpop.eup %3988  ;;  %3750 = vmatpush3.bf16.msra.mxu1 %v3841_v39 }
 0x543   : > { %v1983_v8 = vmul.f32 %v3989_v51, %v4548_v4  ;;  %v1986_v55 = vpop.permute.xlu1 %1985 }
 0x544   : > { %v1991_v16 = vand.u32 %v1986_v55, %v4356_v28 }
 0x545   : > { %v1984_v59 = vpack.c.bf16 %v1983_v8, %v1981_v58 }
 0x546   : > { %3718 = vmatpush3.bf16.msra.mxu0 %v1991_v16  ;;  %v3991_v1 = vpop.eup %3990 }
 0x547   : > { %3729 = vmatprep.subr.bf16.mxu0 %v4043_v40  ;;  %v2106_v35 = vmul.f32 %v3991_v1, %v4558_v33 }
 0x549   : > { %3720 = vmatmul.mubr.msk.bf16.vlgmr.msra.gmra.mrb[36].mxu0 %vm1121_vm12, %v1984_v59 }
 0x54a   : > { %v3993_v42 = vpop.eup %3992  ;;  %3730 = vmatpush3.bf16.msra.mxu0 %v2116_v15  ;;  %3731 = vmatprep.mubr.msk.bf16.mxu0 %vm4044_vm7, %v4043_v40 }
 0x54b   : > { %v2108_v4 = vmul.f32 %v3993_v42, %v4565_v3 }
 0x54d   : > { %v2109_v9 = vpack.c.bf16 %v2108_v4, %v2106_v35 }
 0x551   : > { %3732 = vmatmul.mubr.msk.bf16.vlgmr.msra.gmra.mrb[40].mxu0 %vm1121_vm12, %v2109_v9 }
 0x552   : > { %2659 = vmatprep.mubr.bf16.mxu0 %v4042_v63 }
 0x57d   : > { %v4619_v38 = vpop.f32.mrb[12].mxu0 }
 0x57e   : > { %v3649_v28 = vpop.f32.mrb[13].mxu0 }
 0x57f   : > { %v4621_v10 = vpop.f32.mrb[14].mxu0 }
 0x580   : > { %v3650_v2 = vpop.f32.mrb[15].mxu0 }
 0x5c5   : > { %v1318_v12 = vpop.f32.mrb[16].mxu0 }
 0x5c6   : > { %v3661_v14 = vpop.f32.mrb[17].mxu0 }
 0x5c7   : > { %v1321_v17 = vpop.f32.mrb[18].mxu0 }
 0x5c8   : > { %v3772_v21 = vpack.i.bf16 %v1318_v12, %v1321_v17  ;;  %v3662_v40 = vpop.f32.mrb[19].mxu0 }
 0x5ca   : > { %3773 = vrot.lane.b32.xlu0 %v3772_v21, %s4048_s26 }
 0x5cd   : > { %v1443_v33 = vpop.f32.mrb[20].mxu0 }
 0x5ce   : > { %v3673_v3 = vpop.f32.mrb[21].mxu0 }
 0x5cf   : > { %v1446_v30 = vpop.f32.mrb[22].mxu0 }
 0x5d0   : > { %v3787_v36 = vpack.i.bf16 %v1443_v33, %v1446_v30  ;;  %v3674_v25 = vpop.f32.mrb[23].mxu0 }
 0x5d5   : > { %v1568_v26 = vpop.f32.mrb[24].mxu0 }
 0x5d6   : > { %v3685_v27 = vpop.f32.mrb[25].mxu0 }
 0x5d7   : > { %v1571_v24 = vpop.f32.mrb[26].mxu0 }
 0x5d8   : > { %v3797_v47 = vpack.i.bf16 %v1568_v26, %v1571_v24  ;;  %v3686_v29 = vpop.f32.mrb[27].mxu0 }
 0x5dd   : > { %v4624_v44 = vpop.f32.mrb[28].mxu0 }
 0x5de   : > { %v3697_v41 = vpop.f32.mrb[29].mxu0 }
 0x5df   : > { %v1780_v31 = vpop.f32.mrb[30].mxu0 }
 0x5e0   : > { %v3698_v52 = vpop.f32.mrb[31].mxu0 }
 0x606   : > { %v1902_v57 = vpop.f32.mrb[32].mxu0 }
 0x607   : > { %v3709_v37 = vpop.f32.mrb[33].mxu0 }
 0x608   : > { %v1905_v62 = vpop.f32.mrb[34].mxu0 }
 0x609   : > { %v3777_v60 = vpack.i.bf16 %v1905_v62, %v1902_v57  ;;  %v3710_v0 = vpop.f32.mrb[35].mxu0 }
 0x60b   : > { %3778 = vrot.lane.b32.xlu0 %v3777_v60, %s4048_s26 }
 0x61c   : > { %v2027_v6 = vpop.f32.mrb[36].mxu0 }
 0x61d   : > { %v3721_v45 = vpop.f32.mrb[37].mxu0 }
 0x61e   : > { %v2030_v54 = vpop.f32.mrb[38].mxu0 }
 0x61f   : > { %v3782_v46 = vpack.i.bf16 %v2030_v54, %v2027_v6  ;;  %v3722_v5 = vpop.f32.mrb[39].mxu0 }
 0x621   : > { %3783 = vrot.lane.b32.xlu0 %v3782_v46, %s4047_s27 }
 0x624   : > { %v2152_v50 = vpop.f32.mrb[40].mxu0 }
 0x625   : > { %3788 = vrot.lane.b32.xlu0 %v3787_v36, %s4047_s27  ;;  %v3733_v51 = vpop.f32.mrb[41].mxu0 }
 0x626   : > { %v2155_v8 = vpop.f32.mrb[42].mxu0  ;;  %v3845_v51 = vld [vmem:[%s4184_s4 + $0x8] ss:$16 sps:$4 sm:$0xff]  }
 0x627   : > { %v3792_v55 = vpack.i.bf16 %v2155_v8, %v2152_v50  ;;  %v3734_v16 = vpop.f32.mrb[43].mxu0  ;;  %v3844_v50 = vld [vmem:[%s4184_s4 + $0x4] ss:$16 sps:$4 sm:$0xff]   ;;  %v3847_v8 = vld [vmem:[%s4184_s4 + $0xc] ss:$16 sps:$4 sm:$0xff]  }
 0x628   : > { %2627 = vmatprep.subr.bf16.mxu0 %v3844_v50  ;;  %v3853_v16 = vld [vmem:[%s4184_s4 + $0x2c] ss:$16 sps:$4 sm:$0xff]   ;;  %2680 = vmatprep.subr.bf16.mxu1 %v3847_v8 }
 0x629   : > { %3793 = vrot.lane.b32.xlu1 %v3792_v55, %s4045_s24  ;;  %v3850_v55 = vld [vmem:[%s4184_s4 + $0x24] ss:$16 sps:$4 sm:$0xff]  }
 0x62d   : > { %3798 = vrot.lane.b32.xlu1 %v3797_v47, %s4045_s24 }
 0x63c   : > { %v3774_v11 = vpop.permute.xlu0 %3773 }
 0x63d   : > { %v3776_v9 = vunpack.i.h.bf16 %v3774_v11  ;;  %v3775_v28 = vunpack.i.l.bf16 %v3774_v11  ;;  %v3851_v11 = vld [vmem:[%s4184_s4 + $0x28] ss:$16 sps:$4 sm:$0xff]  }
 0x63f   : > { %v1599_v47 = vsel %vm1071_vm9, %v4619_v38, %v3776_v9  ;;  %v1600_v29 = vsel %vm1071_vm9, %v4621_v10, %v3775_v28  ;;  %v2318_v38 = vld [vmem:[%s4893_s20] sm:$0x1] }
 0x640   : > { %v2319_v10 = vunpack.c.l.bf16 %v2318_v38  ;;  %v3878_v38 = vld [vmem:[%s4184_s4 + $0xc0] ss:$16 sps:$4 sm:$0xff]  }
 0x642   : > { %v2323_v60 = vrot.slane %v2319_v10, %v4315_v18  ;;  %v3881_v10 = vld [vmem:[%s4184_s4 + $0xc8] ss:$16 sps:$4 sm:$0xff]  }
 0x67d   : > { %v3779_v58 = vpop.permute.xlu0 %3778 }
 0x67e   : > { %v3781_v15 = vunpack.i.h.bf16 %v3779_v58  ;;  %v3780_v1 = vunpack.i.l.bf16 %v3779_v58 }
 0x680   : > { %v2184_v12 = vsel %vm1071_vm9, %v1780_v31, %v3781_v15  ;;  %v2183_v14 = vsel %vm1071_vm9, %v4624_v44, %v3780_v1 }
 0x693   : > { %v3784_v59 = vpop.permute.xlu0 %3783 }
 0x694   : > { %v3786_v42 = vunpack.i.h.bf16 %v3784_v59  ;;  %v3785_v4 = vunpack.i.l.bf16 %v3784_v59 }
 0x696   : > { %v2185_v40 = vsel %vm1601_vm14, %v2183_v14, %v3785_v4  ;;  %v2186_v33 = vsel %vm1601_vm14, %v2184_v12, %v3786_v42 }
 0x697   : > { %v3789_v35 = vpop.permute.xlu0 %3788 }
 0x698   : > { %v3791_v3 = vunpack.i.h.bf16 %v3789_v35  ;;  %v3790_v30 = vunpack.i.l.bf16 %v3789_v35 }
 0x69a   : > { %v1602_v31 = vsel %vm1601_vm14, %v1599_v47, %v3791_v3  ;;  %v1603_v52 = vsel %vm1601_vm14, %v1600_v29, %v3790_v30  ;;  %v3856_v30 = vld [vmem:[%s4184_s4 + $0x44] ss:$16 sps:$4 sm:$0xff]   ;;  %v3860_v47 = vld [vmem:[%s4184_s4 + $0x60] ss:$16 sps:$4 sm:$0xff]   ;;  %v3863_v29 = vld [vmem:[%s4184_s4 + $0x68] ss:$16 sps:$4 sm:$0xff]  }
 0x69b   : > { %v3794_v2 = vpop.permute.xlu1 %3793 }
 0x69c   : > { %v3796_v17 = vunpack.i.h.bf16 %v3794_v2  ;;  %v3795_v21 = vunpack.i.l.bf16 %v3794_v2 }
 0x69e   : > { %v2187_v36 = vsel %vm1604_vm15, %v2185_v40, %v3795_v21  ;;  %v2188_v25 = vsel %vm1604_vm15, %v2186_v33, %v3796_v17 }
 0x69f   : > { %v2192_v26 = vrot.slane %v2187_v36, 3  ;;  %v2193_v27 = vrot.slane %v2188_v25, 3  ;;  %v3799_v24 = vpop.permute.xlu1 %3798  ;;  %v3859_v36 = vld [vmem:[%s4184_s4 + $0x4c] ss:$16 sps:$4 sm:$0xff]   ;;  %v3854_v25 = vld [vmem:[%s4184_s4 + $0x40] ss:$16 sps:$4 sm:$0xff]  }
 0x6a0   : > { %v3801_v44 = vunpack.i.h.bf16 %v3799_v24  ;;  %v3800_v41 = vunpack.i.l.bf16 %v3799_v24  ;;  %v3865_v24 = vld [vmem:[%s4184_s4 + $0x6c] ss:$16 sps:$4 sm:$0xff]  }
 0x6a1   : > { %v2194_v34 = vsel %vm2191_vm0, %v2192_v26, %v2193_v27 }
 0x6a2   : > { %v1606_v32 = vsel %vm1604_vm15, %v1603_v52, %v3800_v41  ;;  %v1605_v56 = vsel %vm1604_vm15, %v1602_v31, %v3801_v44  ;;  %v2216_v57 = vpack.c.bf16 %v2193_v27, %v2194_v34  ;;  %v3862_v27 = vld [vmem:[%s4184_s4 + $0x64] ss:$16 sps:$4 sm:$0xff]   ;;  %v3871_v41 = vld [vmem:[%s4184_s4 + $0x8c] ss:$16 sps:$4 sm:$0xff]   ;;  %v3866_v31 = vld [vmem:[%s4184_s4 + $0x80] ss:$16 sps:$4 sm:$0xff]  }
 0x6a3   : > { %v2198_v37 = vsel %vm2191_vm0, %v1606_v32, %v2192_v26  ;;  %v3857_v26 = vld [vmem:[%s4184_s4 + $0x48] ss:$16 sps:$4 sm:$0xff]   ;;  %v3868_v44 = vld [vmem:[%s4184_s4 + $0x84] ss:$16 sps:$4 sm:$0xff]   ;;  %v3877_v32 = vld [vmem:[%s4184_s4 + $0xac] ss:$16 sps:$4 sm:$0xff]  }
 0x6a4   : > { %v2215_v62 = vpack.c.bf16 %v2198_v37, %v1605_v56  ;;  %v3869_v52 = vld [vmem:[%s4184_s4 + $0x88] ss:$16 sps:$4 sm:$0xff]   ;;  %v3874_v34 = vld [vmem:[%s4184_s4 + $0xa4] ss:$16 sps:$4 sm:$0xff]   ;;  %v3872_v56 = vld [vmem:[%s4184_s4 + $0xa0] ss:$16 sps:$4 sm:$0xff]  }
 0x6a5   : > { %v3880_v37 = vld [vmem:[%s4184_s4 + $0xc4] ss:$16 sps:$4 sm:$0xff]  }
 0x6a6   : > { %3751 = vmatprep.mubr.bf16.mxu1 %v2215_v62  ;;  %v3883_v62 = vld [vmem:[%s4184_s4 + $0xcc] ss:$16 sps:$4 sm:$0xff]  }
 0x6a7   : > { %3752 = vmatmul.mubr.bf16.vlgmr.msra.gmra.mrb[32].mxu1 %v2216_v57  ;;  %v3875_v57 = vld [vmem:[%s4184_s4 + $0xa8] ss:$16 sps:$4 sm:$0xff]  }
 0x6a8   : > { %2712 = vmatprep.mubr.bf16.mxu1 %v4042_v63  ;;  %2681 = vmatpush1.bf16.msra.mxu1 %v3845_v51 }
 0x6a9   : > { %2682 = vmatprep.subr.bf16.mxu1 %v3853_v16 }
 0x6ac   : > { %2683 = vmatpush1.bf16.msra.mxu1 %v3851_v11 }
 0x6ad   : > { %2684 = vmatprep.subr.bf16.mxu1 %v3859_v36 }
 0x6b0   : > { %2685 = vmatpush1.bf16.msra.mxu1 %v3857_v26 }
 0x6b1   : > { %2686 = vmatprep.subr.bf16.mxu1 %v3865_v24 }
 0x6b4   : > { %2687 = vmatpush1.bf16.msra.mxu1 %v3863_v29  ;;  %v3894_v29 = vld [vmem:[%s4194_s3 + $0x48] sm:$0xff]  }
 0x6b5   : > { %2688 = vmatprep.subr.bf16.mxu1 %v3871_v41 }
 0x6b8   : > { %2689 = vmatpush1.bf16.msra.mxu1 %v3869_v52 }
 0x6b9   : > { %2690 = vmatprep.subr.bf16.mxu1 %v3877_v32  ;;  %v3899_v32 = vld [vmem:[%s4194_s3 + $0xd0] sm:$0xff]  }
 0x6bc   : > { %2691 = vmatpush1.bf16.msra.mxu1 %v3875_v57  ;;  %v3901_v57 = vld [vmem:[%s4194_s3 + $0x90] sm:$0xff]  }
 0x6bd   : > { %2692 = vmatprep.subr.bf16.mxu1 %v3883_v62  ;;  %v3903_v62 = vld [vmem:[%s4194_s3 + $0xd8] sm:$0xff]  }
 0x6c0   : > { %2693 = vmatpush1.bf16.msra.mxu1 %v3881_v10  ;;  %v3905_v10 = vld [vmem:[%s4194_s3 + $0x98] sm:$0xff]  }
 0x77a   : > { %v3753_v53 = vpop.f32.mrb[32].mxu1 }
 0x77b   : > { %v2299_v0 = vpop.f32.mrb[33].mxu1 }
 0x77c   : > { %v2314_v43 = vadd.f32 %v4248_v19, %v2299_v0  ;;  %v3754_v61 = vpop.f32.mrb[34].mxu1  ;;  %v2316_v19 = vadd.f32 %v3753_v53, %v4257_v23  ;;  %v3848_v23 = vld [vmem:[%s4184_s4 + $0x20] ss:$16 sps:$4 sm:$0xff]   ;;  %v3886_v53 = vld [vmem:[%s4184_s4 + $0xe4] ss:$16 sps:$4 sm:$0xff]  }
 0x77d   : > { %v2317_v6 = vadd.f32 %v3754_v61, %v4250_v20  ;;  %v2302_v45 = vpop.f32.mrb[35].mxu1  ;;  %v3884_v0 = vld [vmem:[%s4184_s4 + $0xe0] ss:$16 sps:$4 sm:$0xff]  }
 0x77e   : > { %v4663_v54 = vadd.f32 %v2323_v60, %v2314_v43  ;;  %v2315_v46 = vadd.f32 %v4255_v22, %v2302_v45  ;;  %v4675_v39 = vadd.f32 %v2323_v60, %v2316_v19  ;;  %v3842_v22 = vld [vmem:[%s4184_s4] ss:$16 sps:$4 sm:$0xff]   ;;  %v3887_v43 = vld [vmem:[%s4184_s4 + $0xe8] ss:$16 sps:$4 sm:$0xff]  }
 0x77f   : > { %v4666_v5 = vadd.f32 %v2323_v60, %v2317_v6  ;;  %2628 = vmatpush1.bf16.msra.mxu0 %v3842_v22  ;;  %v3890_v61 = vld [vmem:[%s4194_s3 + $0x40] sm:$0xff]  }
 0x780   : > { %v4668_v7 = vadd.f32 %v2323_v60, %v2315_v46  ;;  %2332 = vadd.xlane.f32.xlu0 %v4663_v54  ;;  %2629 = vmatprep.subr.bf16.mxu0 %v3850_v55  ;;  %v3889_v60 = vld [vmem:[%s4184_s4 + $0xec] ss:$16 sps:$4 sm:$0xff]   ;;  %v3891_v6 = vld [vmem:[%s4194_s3 + $0xc0] sm:$0xff]  }
 0x781   : > { %v2338_v20 = vsel %vm716_vm6, %v4666_v5, 0.0  ;;  %2694 = vmatprep.subr.bf16.mxu1 %v3889_v60  ;;  %v2328_v55 = vld [vmem:[%s4894_s22] sm:$0x1] }
 0x782   : > { %2334 = vadd.xlane.f32.xlu1 %v4668_v7  ;;  %2695 = vmatpush1.bf16.msra.mxu1 %v3887_v43  ;;  %v3907_v60 = vld [vmem:[%s4194_s3 + $0xe0] sm:$0xff]  }
 0x783   : > { %2630 = vmatpush1.bf16.msra.mxu0 %v3848_v23  ;;  %3591 = vmatprep.subr.bf16.mxu1 %v3891_v6  ;;  %v3909_v43 = vld [vmem:[%s4194_s3 + $0xa0] sm:$0xff]   ;;  %v3911_v6 = vld [vmem:[%s4194_s3 + $0xe8] sm:$0xff]  }
 0x784   : > { %2339 = vadd.xlane.f32.xlu0 %v2338_v20  ;;  %2631 = vmatprep.subr.bf16.mxu0 %v3856_v30 }
 0x787   : > { %2632 = vmatpush1.bf16.msra.mxu0 %v3854_v25 }
 0x788   : > { %2336 = vadd.xlane.f32.xlu0 %v4675_v39  ;;  %2633 = vmatprep.subr.bf16.mxu0 %v3862_v27 }
 0x78b   : > { %2634 = vmatpush1.bf16.msra.mxu0 %v3860_v47  ;;  %v3893_v47 = vld [vmem:[%s4194_s3 + $0x80] sm:$0xff]  }
 0x78c   : > { %2635 = vmatprep.subr.bf16.mxu0 %v3868_v44  ;;  %v3895_v44 = vld [vmem:[%s4194_s3 + $0xc8] sm:$0xff]  }
 0x78f   : > { %2636 = vmatpush1.bf16.msra.mxu0 %v3866_v31  ;;  %v3897_v31 = vld [vmem:[%s4194_s3 + $0x88] sm:$0xff]  }
 0x790   : > { %2637 = vmatprep.subr.bf16.mxu0 %v3874_v34 }
 0x793   : > { %2638 = vmatpush1.bf16.msra.mxu0 %v3872_v56  ;;  %v3900_v56 = vld [vmem:[%s4194_s3 + $0x10] sm:$0xff]  }
 0x794   : > { %2639 = vmatprep.subr.bf16.mxu0 %v3880_v37  ;;  %v3902_v37 = vld [vmem:[%s4194_s3 + $0x58] sm:$0xff]  }
 0x797   : > { %2640 = vmatpush1.bf16.msra.mxu0 %v3878_v38  ;;  %v3904_v38 = vld [vmem:[%s4194_s3 + $0x18] sm:$0xff]  }
 0x798   : > { %2641 = vmatprep.subr.bf16.mxu0 %v3886_v53  ;;  %v3906_v53 = vld [vmem:[%s4194_s3 + $0x60] sm:$0xff]  }
 0x79b   : > { %2642 = vmatpush1.bf16.msra.mxu0 %v3884_v0  ;;  %v3908_v0 = vld [vmem:[%s4194_s3 + $0x20] sm:$0xff]  }
 0x79c   : > { %3563 = vmatprep.subr.bf16.mxu0 %v3890_v61  ;;  %v3910_v61 = vld [vmem:[%s4194_s3 + $0x68] sm:$0xff]  }
 0x80d   : > { %v2333_v58 = vpop.xlane.xlu0 %2332 }
 0x80e   : > { %v2341_v59 = vmul.f32 0.0078125, %v2333_v58  ;;  %v2330_v58 = vunpack.c.l.bf16 %v2328_v55  ;;  %v3920_v55 = vld [vmem:[%s4194_s3 + $0x38] sm:$0xff]  }
 0x80f   : > { %v2335_v15 = vpop.xlane.xlu1 %2334 }
 0x810   : > { %v4687_v1 = vsub.f32 %v4663_v54, %v2341_v59  ;;  %v2342_v42 = vmul.f32 0.0078125, %v2335_v15  ;;  %v2329_v15 = vld [vmem:[%s4895_s17] sm:$0x1] }
 0x811   : > { %v2340_v4 = vpop.xlane.xlu0 %2339 }
 0x812   : > { %v4690_v35 = vsub.f32 %v4668_v7, %v2342_v42  ;;  %v2344_v9 = vmul.f32 0.0078125, %v2340_v4  ;;  %v2349_v28 = vmul.f32 %v4687_v1, %v4687_v1  ;;  %v2331_v42 = vunpack.c.l.bf16 %v2329_v15 }
 0x813   : > { %v2381_v4 = vrot.slane %v2330_v58, %v4315_v18  ;;  %v2445_v58 = vsub.s32 6, %v4307_v13 }
 0x814   : > { %v4695_v2 = vsub.f32 %v4666_v5, %v2344_v9  ;;  %2353 = vadd.xlane.f32.xlu0 %v2349_v28  ;;  %v2350_v12 = vmul.f32 %v4690_v35, %v4690_v35 }
 0x815   : > { %v2337_v14 = vpop.xlane.xlu0 %2336 }
 0x816   : > { %v2343_v17 = vmul.f32 0.0078125, %v2337_v14  ;;  %2355 = vadd.xlane.f32.xlu1 %v2350_v12  ;;  %v2352_v21 = vmul.f32 %v4695_v2, %v4695_v2 }
 0x818   : > { %v4702_v40 = vsub.f32 %v4675_v39, %v2343_v17  ;;  %v2359_v33 = vsel %vm716_vm6, %v2352_v21, 0.0  ;;  %v2389_v21 = vrot.slane %v2331_v42, %v4315_v18 }
 0x81a   : > { %2360 = vadd.xlane.f32.xlu1 %v2359_v33  ;;  %v2351_v3 = vmul.f32 %v4702_v40, %v4702_v40 }
 0x81c   : > { %2357 = vadd.xlane.f32.xlu0 %v2351_v3 }
 0x8a1   : > { %v2354_v45 = vpop.xlane.xlu0 %2353 }
 0x8a2   : > { %v2362_v46 = vmul.f32 0.0078125, %v2354_v45  ;;  %v3912_v45 = vld [vmem:[%s4194_s3 + $0x28] sm:$0xff]  }
 0x8a3   : > { %v2356_v19 = vpop.xlane.xlu1 %2355 }
 0x8a4   : > { %v2366_v20 = vadd.f32 1e-05, %v2362_v46  ;;  %v2363_v22 = vmul.f32 0.0078125, %v2356_v19  ;;  %v3913_v46 = vld [vmem:[%s4194_s3 + $0xa8] sm:$0xff]   ;;  %v3914_v19 = vld [vmem:[%s4194_s3 + $0x70] sm:$0xff]  }
 0x8a6   : > { %3994 = vrsqrt.f32 %v2366_v20  ;;  %v2367_v50 = vadd.f32 1e-05, %v2363_v22  ;;  %v3915_v20 = vld [vmem:[%s4194_s3 + $0xf0] sm:$0xff]  }
 0x8a7   : > { %v2361_v51 = vpop.xlane.xlu1 %2360  ;;  %v3916_v22 = vld [vmem:[%s4194_s3 + $0x30] sm:$0xff]  }
 0x8a8   : > { %3996 = vrsqrt.f32 %v2367_v50  ;;  %v2365_v8 = vmul.f32 0.0078125, %v2361_v51  ;;  %v3917_v50 = vld [vmem:[%s4194_s3 + $0xb0] sm:$0xff]   ;;  %v3918_v51 = vld [vmem:[%s4194_s3 + $0x78] sm:$0xff]  }
 0x8a9   : > { %v2358_v16 = vpop.xlane.xlu0 %2357 }
 0x8aa   : > { %v2369_v23 = vadd.f32 1e-05, %v2365_v8  ;;  %v2364_v11 = vmul.f32 0.0078125, %v2358_v16  ;;  %v3919_v8 = vld [vmem:[%s4194_s3 + $0xf8] sm:$0xff]  }
 0x8ab   : > { %v3921_v16 = vld [vmem:[%s4194_s3 + $0xb8] sm:$0xff]  }
 0x8ac   : > { %3998 = vrsqrt.f32 %v2369_v23  ;;  %v2368_v59 = vadd.f32 1e-05, %v2364_v11  ;;  %v2428_v23 = vld [vmem:[%s4189_s1] sm:$0xf] }
 0x8ad   : > { %v2429_v11 = vunpack.c.l.bf16 %v2428_v23 }
 0x8ae   : > { %4000 = vrsqrt.f32 %v2368_v59 }
 0x8af   : > { %v2434_v59 = vrot.slane %v2429_v11, %v4315_v18  ;;  %v2442_v15 = vrot.slane %v2429_v11, %v821_v49  ;;  %v2438_v42 = vrot.slane %v2429_v11, %v817_v48 }
 0x8b0   : > { %v3995_v9 = vpop.eup %3994 }
 0x8b1   : > { %v2374_v28 = vmul.f32 %v3995_v9, %v4687_v1  ;;  %v3892_v1 = vld [vmem:[%s4194_s3] sm:$0xff]   ;;  %v2454_v9 = vrot.slane %v2434_v59, %v4315_v18 }
 0x8b2   : > { %v3997_v12 = vpop.eup %3996 }
 0x8b3   : > { %v2375_v14 = vmul.f32 %v3997_v12, %v4690_v35  ;;  %v2382_v17 = vmul.f32 %v2381_v4, %v2374_v28  ;;  %v2462_v28 = vrot.slane %v2442_v15, %v4315_v18  ;;  %v2458_v12 = vrot.slane %v2438_v42, %v4315_v18 }
 0x8b5   : > { %v2383_v33 = vmul.f32 %v2381_v4, %v2375_v14  ;;  %v2390_v30 = vadd.f32 %v2389_v21, %v2382_v17 }
 0x8b6   : > { %v3999_v3 = vpop.eup %3998 }
 0x8b7   : > { %v2391_v36 = vadd.f32 %v2389_v21, %v2383_v33  ;;  %v2377_v25 = vmul.f32 %v3999_v3, %v4695_v2 }
 0x8b8   : > { %v4001_v26 = vpop.eup %4000 }
 0x8b9   : > { %v2426_v27 = vpack.c.bf16 %v2391_v36, %v2390_v30  ;;  %v2376_v24 = vmul.f32 %v4001_v26, %v4702_v40  ;;  %v2385_v41 = vmul.f32 %v2381_v4, %v2377_v25  ;;  %v3896_v40 = vld [vmem:[%s4194_s3 + $0x8] sm:$0xff]  }
 0x8bb   : > { %2660 = vmatmul.mubr.bf16.vlgmr.msra.gmra.mrb[44].mxu0 %v2426_v27  ;;  %2713 = vmatmul.mubr.bf16.vlgmr.msra.gmra.mrb[36].mxu1 %v2426_v27  ;;  %v2384_v35 = vmul.f32 %v2381_v4, %v2376_v24  ;;  %v2393_v52 = vadd.f32 %v2389_v21, %v2385_v41  ;;  %v2446_v4 = vrot.slane %v2429_v11, %v2445_v58 }
 0x8bc   : > { %2669 = vmatprep.mubr.bf16.mxu0 %v4042_v63  ;;  %2722 = vmatprep.mubr.bf16.mxu1 %v4042_v63  ;;  %v3898_v63 = vld [vmem:[%s4194_s3 + $0x50] sm:$0xff]  }
 0x8bd   : > { %v2392_v2 = vadd.f32 %v2389_v21, %v2384_v35  ;;  %3564 = vmatpush3.bf16.msra.mxu0 %v3892_v1  ;;  %3592 = vmatpush3.bf16.msra.mxu1 %v3893_v47  ;;  %v2466_v14 = vrot.slane %v2446_v4, %v4315_v18 }
 0x8be   : > { %3565 = vmatprep.subr.bf16.mxu0 %v3894_v29  ;;  %3593 = vmatprep.subr.bf16.mxu1 %v3895_v44 }
 0x8bf   : > { %v2427_v34 = vpack.c.bf16 %v2393_v52, %v2392_v2 }
 0x8c1   : > { %3566 = vmatpush3.bf16.msra.mxu0 %v3896_v40  ;;  %3594 = vmatpush3.bf16.msra.mxu1 %v3897_v31 }
 0x8c2   : > { %3567 = vmatprep.subr.bf16.mxu0 %v3898_v63  ;;  %3595 = vmatprep.subr.bf16.mxu1 %v3899_v32 }
 0x8c3   : > { %2670 = vmatmul.mubr.bf16.gmra.mrb[48].mxu0 %v2427_v34  ;;  %2723 = vmatmul.mubr.bf16.gmra.mrb[40].mxu1 %v2427_v34 }
 0x8c5   : > { %3568 = vmatpush3.bf16.msra.mxu0 %v3900_v56  ;;  %3596 = vmatpush3.bf16.msra.mxu1 %v3901_v57 }
 0x8c6   : > { %3569 = vmatprep.subr.bf16.mxu0 %v3902_v37  ;;  %3597 = vmatprep.subr.bf16.mxu1 %v3903_v62 }
 0x8c9   : > { %3570 = vmatpush3.bf16.msra.mxu0 %v3904_v38  ;;  %3598 = vmatpush3.bf16.msra.mxu1 %v3905_v10 }
 0x8ca   : > { %3571 = vmatprep.subr.bf16.mxu0 %v3906_v53  ;;  %3599 = vmatprep.subr.bf16.mxu1 %v3907_v60 }
 0x8cd   : > { %3572 = vmatpush3.bf16.msra.mxu0 %v3908_v0  ;;  %3600 = vmatpush3.bf16.msra.mxu1 %v3909_v43 }
 0x8ce   : > { %3573 = vmatprep.subr.bf16.mxu0 %v3910_v61  ;;  %3601 = vmatprep.subr.bf16.mxu1 %v3911_v6 }
 0x8d1   : > { %3574 = vmatpush3.bf16.msra.mxu0 %v3912_v45  ;;  %3602 = vmatpush3.bf16.msra.mxu1 %v3913_v46 }
 0x8d2   : > { %3575 = vmatprep.subr.bf16.mxu0 %v3914_v19  ;;  %3603 = vmatprep.subr.bf16.mxu1 %v3915_v20 }
 0x8d5   : > { %3576 = vmatpush3.bf16.msra.mxu0 %v3916_v22  ;;  %3604 = vmatpush3.bf16.msra.mxu1 %v3917_v50 }
 0x8d6   : > { %3577 = vmatprep.subr.bf16.mxu0 %v3918_v51  ;;  %3605 = vmatprep.subr.bf16.mxu1 %v3919_v8 }
 0x8d9   : > { %3578 = vmatpush3.bf16.msra.mxu0 %v3920_v55  ;;  %3606 = vmatpush3.bf16.msra.mxu1 %v3921_v16 }
 0x98e   : > { %v2661_v17 = vpop.f32.mrb[44].mxu0  ;;  %v2714_v21 = vpop.f32.mrb[36].mxu1 }
 0x98f   : > { %v2662_v33 = vadd.f32 %v2661_v17, %v2454_v9  ;;  %v2715_v3 = vadd.f32 %v2714_v21, %v2462_v28  ;;  %v2663_v30 = vpop.f32.mrb[45].mxu0  ;;  %v2716_v36 = vpop.f32.mrb[37].mxu1 }
 0x990   : > { %v2664_v25 = vadd.f32 %v2663_v30, %v2458_v12  ;;  %v2717_v49 = vadd.f32 %v2716_v36, %v2466_v14  ;;  %v2665_v26 = vpop.f32.mrb[46].mxu0  ;;  %v2718_v13 = vpop.f32.mrb[38].mxu1 }
 0x991   : > { %v2749_v48 = vmul.f32 0.851, %v2662_v33  ;;  %v2751_v27 = vmul.f32 0.851, %v2715_v3  ;;  %v2666_v47 = vadd.f32 %v2665_v26, %v2454_v9  ;;  %v4792_v29 = vadd.f32 %v2718_v13, %v2462_v28  ;;  %v2667_v44 = vpop.f32.mrb[47].mxu0  ;;  %v2720_v35 = vpop.f32.mrb[39].mxu1 }
 0x992   : > { %v2750_v24 = vmul.f32 0.851, %v2664_v25  ;;  %v2752_v1 = vmul.f32 0.851, %v2717_v49  ;;  %v2668_v41 = vadd.f32 %v2667_v44, %v2458_v12  ;;  %v4794_v2 = vadd.f32 %v2720_v35, %v2466_v14 }
 0x993   : > { %4002 = vtanh.f32 %v2749_v48  ;;  %v2753_v40 = vmul.f32 0.851, %v2666_v47  ;;  %v2755_v31 = vmul.f32 0.851, %v4792_v29  ;;  %v2733_v23 = vmul.f32 0.5, %v2662_v33 }
 0x994   : > { %4004 = vtanh.f32 %v2751_v27  ;;  %v2754_v52 = vmul.f32 0.851, %v2668_v41  ;;  %v2756_v63 = vmul.f32 0.851, %v4794_v2  ;;  %v2735_v11 = vmul.f32 0.5, %v2715_v3 }
 0x995   : > { %4006 = vtanh.f32 %v2750_v24  ;;  %v2734_v42 = vmul.f32 0.5, %v2664_v25  ;;  %v2737_v17 = vmul.f32 0.5, %v2666_v47  ;;  %v2739_v26 = vmul.f32 0.5, %v4792_v29 }
 0x996   : > { %4008 = vtanh.f32 %v2752_v1  ;;  %v2671_v34 = vpop.f32.mrb[48].mxu0  ;;  %v2724_v56 = vpop.f32.mrb[40].mxu1  ;;  %v2738_v25 = vmul.f32 0.5, %v2668_v41  ;;  %v2740_v44 = vmul.f32 0.5, %v4794_v2 }
 0x997   : > { %4010 = vtanh.f32 %v2753_v40  ;;  %v4798_v32 = vadd.f32 %v2671_v34, %v2454_v9  ;;  %v2673_v57 = vpop.f32.mrb[49].mxu0  ;;  %v4800_v37 = vadd.f32 %v2724_v56, %v2462_v28  ;;  %v2726_v38 = vpop.f32.mrb[41].mxu1 }
 0x998   : > { %4012 = vtanh.f32 %v2755_v31  ;;  %v4802_v62 = vadd.f32 %v2673_v57, %v2458_v12  ;;  %v2675_v10 = vpop.f32.mrb[50].mxu0  ;;  %v4805_v60 = vadd.f32 %v2726_v38, %v2466_v14  ;;  %v2728_v0 = vpop.f32.mrb[42].mxu1 }
 0x999   : > { %4014 = vtanh.f32 %v2754_v52  ;;  %v2757_v53 = vmul.f32 0.851, %v4798_v32  ;;  %v2677_v43 = vpop.f32.mrb[51].mxu0  ;;  %v2759_v61 = vmul.f32 0.851, %v4800_v37  ;;  %v2730_v6 = vpop.f32.mrb[43].mxu1  ;;  %v2676_v19 = vadd.f32 %v2675_v10, %v2454_v9 }
 0x99a   : > { %4016 = vtanh.f32 %v2756_v63  ;;  %v2758_v45 = vmul.f32 0.851, %v4802_v62  ;;  %v2760_v46 = vmul.f32 0.851, %v4805_v60  ;;  %v4810_v20 = vadd.f32 %v2728_v0, %v2462_v28 }
 0x99b   : > { %4018 = vtanh.f32 %v2757_v53  ;;  %v4812_v22 = vadd.f32 %v2677_v43, %v2458_v12  ;;  %v2761_v8 = vmul.f32 0.851, %v2676_v19  ;;  %v4814_v55 = vadd.f32 %v2730_v6, %v2466_v14 }
 0x99c   : > { %4020 = vtanh.f32 %v2759_v61  ;;  %v2763_v58 = vmul.f32 0.851, %v4810_v20  ;;  %v2736_v12 = vmul.f32 0.5, %v2717_v49  ;;  %v2741_v61 = vmul.f32 0.5, %v4798_v32 }
 0x99d   : > { %v4003_v50 = vpop.eup %4002  ;;  %4022 = vtanh.f32 %v2758_v45  ;;  %v2762_v4 = vmul.f32 0.851, %v4812_v22  ;;  %v2764_v33 = vmul.f32 0.851, %v4814_v55  ;;  %v2743_v45 = vmul.f32 0.5, %v4800_v37 }
 0x99e   : > { %v4005_v51 = vpop.eup %4004  ;;  %4024 = vtanh.f32 %v2760_v46  ;;  %v2781_v15 = vadd.f32 1.0, %v4003_v50  ;;  %v2745_v50 = vmul.f32 0.5, %v2676_v19  ;;  %v2744_v19 = vmul.f32 0.5, %v4805_v60  ;;  %v3179_v60 = vld [vmem:[%s4896_s30] sm:$0x1] }
 0x99f   : > { %v4007_v16 = vpop.eup %4006  ;;  %4026 = vtanh.f32 %v2761_v8  ;;  %v2783_v28 = vadd.f32 1.0, %v4005_v51 }
 0x9a0   : > { %v4009_v59 = vpop.eup %4008  ;;  %4028 = vtanh.f32 %v2763_v58  ;;  %v2782_v14 = vadd.f32 1.0, %v4007_v16  ;;  %v2797_v27 = vmul.f32 %v2781_v15, %v2733_v23  ;;  %v2742_v16 = vmul.f32 0.5, %v4802_v62 }
 0x9a1   : > { %v4011_v9 = vpop.eup %4010  ;;  %4030 = vtanh.f32 %v2762_v4  ;;  %v2784_v36 = vadd.f32 1.0, %v4009_v59  ;;  %v2799_v49 = vmul.f32 %v2783_v28, %v2735_v11  ;;  %v2747_v23 = vmul.f32 0.5, %v4810_v20 }
 0x9a2   : > { %v4013_v21 = vpop.eup %4012  ;;  %v2785_v30 = vadd.f32 1.0, %v4011_v9  ;;  %4032 = vtanh.f32 %v2764_v33  ;;  %v2798_v31 = vmul.f32 %v2782_v14, %v2734_v42  ;;  %v2746_v58 = vmul.f32 0.5, %v4812_v22 }
 0x9a3   : > { %v4015_v3 = vpop.eup %4014  ;;  %v2787_v13 = vadd.f32 1.0, %v4013_v21  ;;  %v2800_v56 = vmul.f32 %v2784_v36, %v2736_v12  ;;  %v2748_v28 = vmul.f32 0.5, %v4814_v55 }
 0x9a4   : > { %v4017_v48 = vpop.eup %4016  ;;  %v2801_v24 = vmul.f32 %v2785_v30, %v2737_v17  ;;  %v2786_v1 = vadd.f32 1.0, %v4015_v3 }
 0x9a5   : > { %v2803_v47 = vmul.f32 %v2787_v13, %v2739_v26  ;;  %v2788_v35 = vadd.f32 1.0, %v4017_v48  ;;  %v4019_v40 = vpop.eup %4018 }
 0x9a6   : > { %v2877_v52 = vpack.c.bf16 %v2801_v24, %v2797_v27  ;;  %v2802_v34 = vmul.f32 %v2786_v1, %v2738_v25  ;;  %v4021_v63 = vpop.eup %4020  ;;  %v2789_v53 = vadd.f32 1.0, %v4019_v40  ;;  %v3180_v27 = vunpack.c.l.bf16 %v3179_v60 }
 0x9a7   : > { %v2879_v57 = vpack.c.bf16 %v2803_v47, %v2799_v49  ;;  %v2804_v29 = vmul.f32 %v2788_v35, %v2740_v44  ;;  %v4023_v38 = vpop.eup %4022  ;;  %v2791_v6 = vadd.f32 1.0, %v4021_v63 }
 0x9a8   : > { %v2878_v41 = vpack.c.bf16 %v2802_v34, %v2798_v31  ;;  %v4025_v10 = vpop.eup %4024  ;;  %v2790_v46 = vadd.f32 1.0, %v4023_v38  ;;  %v2805_v32 = vmul.f32 %v2789_v53, %v2741_v61  ;;  %v3184_v31 = vrot.slane %v3180_v27, %v4315_v18 }
 0x9a9   : > { %v2880_v0 = vpack.c.bf16 %v2804_v29, %v2800_v56  ;;  %v4027_v43 = vpop.eup %4026  ;;  %v2792_v59 = vadd.f32 1.0, %v4025_v10  ;;  %v2807_v37 = vmul.f32 %v2791_v6, %v2743_v45 }
 0x9aa   : > { %3109 = vmatprep.mubr.bf16.mxu0 %v2878_v41  ;;  %v4029_v2 = vpop.eup %4028  ;;  %v2793_v51 = vadd.f32 1.0, %v4027_v43  ;;  %v2806_v12 = vmul.f32 %v2790_v46, %v2742_v16 }
 0x9ab   : > { %3158 = vmatprep.mubr.bf16.mxu1 %v2880_v0  ;;  %3110 = vmatmul.mubr.bf16.vlgmr.msra.gmra.mrb[52].mxu0 %v2877_v52  ;;  %v4031_v8 = vpop.eup %4030  ;;  %v2795_v11 = vadd.f32 1.0, %v4029_v2  ;;  %v2808_v14 = vmul.f32 %v2792_v59, %v2744_v19 }
 0x9ac   : > { %3159 = vmatmul.mubr.bf16.vlgmr.msra.gmra.mrb[44].mxu1 %v2879_v57  ;;  %v2809_v15 = vmul.f32 %v2793_v51, %v2745_v50  ;;  %v2794_v42 = vadd.f32 1.0, %v4031_v8  ;;  %v4033_v4 = vpop.eup %4032 }
 0x9ad   : > { %v2811_v9 = vmul.f32 %v2795_v11, %v2747_v23  ;;  %v2796_v17 = vadd.f32 1.0, %v4033_v4 }
 0x9ae   : > { %v2810_v62 = vmul.f32 %v2794_v42, %v2746_v58  ;;  %v2881_v20 = vpack.c.bf16 %v2809_v15, %v2805_v32 }
 0x9af   : > { %v2883_v21 = vpack.c.bf16 %v2811_v9, %v2807_v37  ;;  %v2812_v22 = vmul.f32 %v2796_v17, %v2748_v28 }
 0x9b0   : > { %v2882_v30 = vpack.c.bf16 %v2810_v62, %v2806_v12 }
 0x9b1   : > { %v2884_v33 = vpack.c.bf16 %v2812_v22, %v2808_v14 }
 0x9b2   : > { %3117 = vmatprep.mubr.bf16.mxu0 %v2882_v30 }
 0x9b3   : > { %3118 = vmatmul.mubr.bf16.gmra.mrb[56].mxu0 %v2881_v20  ;;  %3166 = vmatprep.mubr.bf16.mxu1 %v2884_v33 }
 0x9b4   : > { %3167 = vmatmul.mubr.bf16.gmra.mrb[48].mxu1 %v2883_v21 }
 0xa7e   : > { %v3579_v3 = vpop.f32.mrb[52].mxu0 }
 0xa7f   : > { %v3607_v55 = vpop.f32.mrb[44].mxu1  ;;  %v3580_v36 = vpop.f32.mrb[53].mxu0 }
 0xa80   : > { %v3581_v26 = vadd.f32 %v3580_v36, %v3579_v3  ;;  %v3608_v13 = vpop.f32.mrb[45].mxu1  ;;  %v3582_v25 = vpop.f32.mrb[54].mxu0 }
 0xa81   : > { %v3609_v48 = vadd.f32 %v3608_v13, %v3607_v55  ;;  %v3610_v24 = vpop.f32.mrb[46].mxu1  ;;  %v3583_v1 = vpop.f32.mrb[55].mxu0 }
 0xa82   : > { %v3584_v49 = vadd.f32 %v3583_v1, %v3582_v25  ;;  %v3611_v47 = vpop.f32.mrb[47].mxu1 }
 0xa83   : > { %v3161_v44 = vadd.f32 %v3609_v48, %v3581_v26  ;;  %v3612_v35 = vadd.f32 %v3611_v47, %v3610_v24 }
 0xa85   : > { %v3175_v40 = vadd.f32 %v3161_v44, %v4663_v54  ;;  %v3164_v52 = vadd.f32 %v3612_v35, %v3584_v49 }
 0xa86   : > { %v3585_v63 = vpop.f32.mrb[56].mxu0 }
 0xa87   : > { %v3176_v34 = vadd.f32 %v3164_v52, %v4668_v7  ;;  %v3586_v56 = vpop.f32.mrb[57].mxu0  ;;  %v3185_v57 = vadd.f32 %v3184_v31, %v3175_v40  ;;  %v3613_v38 = vpop.f32.mrb[48].mxu1 }
 0xa88   : > { %v3587_v41 = vadd.f32 %v3586_v56, %v3585_v63  ;;  %v3588_v10 = vpop.f32.mrb[58].mxu0  ;;  %v3614_v53 = vpop.f32.mrb[49].mxu1 }
 0xa89   : > { %v3186_v29 = vadd.f32 %v3184_v31, %v3176_v34  ;;  %v3589_v0 = vpop.f32.mrb[59].mxu0  ;;  %v3615_v61 = vadd.f32 %v3614_v53, %v3613_v38  ;;  %v3616_v6 = vpop.f32.mrb[50].mxu1 }
 0xa8a   : > { %v3590_v2 = vadd.f32 %v3589_v0, %v3588_v10  ;;  %v3617_v45 = vpop.f32.mrb[51].mxu1 }
 0xa8b   : > { %v3509_v43 = vpack.c.bf16 %v3186_v29, %v3185_v57  ;;  %v3169_v18 = vadd.f32 %v3615_v61, %v3587_v41  ;;  %v3618_v54 = vadd.f32 %v3617_v45, %v3616_v6 }
 0xa8d   : > { %3510 = vst [vmem:[%s4889_s29] sm:$0xff] %v3509_v43   ;;  %v3177_v7 = vadd.f32 %v3169_v18, %v4675_v39  ;;  %v3172_v46 = vadd.f32 %v3618_v54, %v3590_v2 }
 0xa8f   : > { %v3187_v50 = vadd.f32 %v3184_v31, %v3177_v7  ;;  %v3178_v51 = vadd.f32 %v3172_v46, %v4666_v5 }
 0xa91   : > { %v3500_v8 = vpack.c.bf16 %v3187_v50, %v3187_v50  ;;  %v3188_v16 = vadd.f32 %v3184_v31, %v3178_v51 }
 0xa93   : > { %3207 = vst [vmem:[%s4889_s29 + $0x8] sm:$0xf] %v3500_v8  ;;  %v3501_v23 = vpack.c.bf16 %v3188_v16, %v3188_v16 }
 0xa95   : > { %3208 = vst [vmem:[%s4889_s29 + $0xc] sm:$0x1] %v3501_v23 }
 0xa96 PF: > { %s4897_s27 = sld [smem:[#allocation2_spill]] }
 0xa9c   : > { %s24_s29 = sadd.s32 1, %s4897_s27  }
 0xa9d   : > { %p21_p8 = scmp.ge.s32.totalorder %s24_s29, 4  }
 0xa9f   :  { %23 = sbr.rel (!%p21_p8) target bundleno = 7 (0x7), region = 146 }

// kernel: custom_clip_forward.9
= control target key start
LH: loop header
LB: loop body
LE: loop exit
PB: predicated region body
PF: predicated region fallthrough
CT: control target
= control target key end

     0   :  { %vm177_vm0 = vcmask 1043456   ;;  %vm41_vm1 = vcmask 1041408   ;;  %s685_s0 = inlined_call_operand.vmem [shape: bf16[2,128], index: 0, kind: input, shape index: {}]   ;;  %s686_s1 = inlined_call_operand.vmem [shape: bf16[1,128], index: 1, kind: input, shape index: {}]   ;;  %s687_s2 = inlined_call_operand.vmem [shape: bf16[1,128], index: 2, kind: input, shape index: {}]   ;;  %s688_s3 = inlined_call_operand.vmem [shape: bf16[128,128], index: 3, kind: input, shape index: {}]   ;;  %s689_s4 = inlined_call_operand.vmem [shape: bf16[4,128], index: 4, kind: input, shape index: {}]   ;;  %s690_s5 = inlined_call_operand.vmem [shape: bf16[1,128], index: 5, kind: input, shape index: {}]   ;;  %s691_s6 = inlined_call_operand.vmem [shape: bf16[1,128], index: 6, kind: input, shape index: {}]   ;;  %s692_s7 = inlined_call_operand.vmem [shape: bf16[128,128], index: 7, kind: input, shape index: {}]   ;;  %s693_s8 = inlined_call_operand.<no memory space> [shape: f32[1], index: 8, kind: input, shape index: {}]   ;;  %s694_s9 = inlined_call_operand.hbm [shape: f32[2,4], index: 9, kind: output, shape index: {}]  }
   0x1   :  { %v171_v0 = vld [vmem:[%s689_s4] sm:$0x3] }
   0x2   :  { %v35_v1 = vld [vmem:[%s685_s0] sm:$0x1]  ;;  %v172_v2 = vunpack.c.l.bf16 %v171_v0 }
   0x3   :  { %v36_v3 = vunpack.c.l.bf16 %v35_v1 }
   0x4   :  { %v178_v4 = vsel %vm177_vm0, %v172_v2, 0.0 }
   0x5   :  { %v42_v5 = vsel %vm41_vm1, %v36_v3, 0.0  ;;  %179 = vadd.xlane.f32.xlu0 %v178_v4 }
   0x9   :  { %43 = vadd.xlane.f32.xlu0 %v42_v5 }
   0xa   :  { %15 = vsyncpa [#allocation4], 0  ;;  %v464_v6 = vld [vmem:[%s692_s7] sm:$0xff]   ;;  %v512_v8 = vmov 0.0   ;;  %v466_v9 = vld [vmem:[%s692_s7 + $0x8] sm:$0xff]   ;;  %vm513_vm2 = vmmov 0   ;;  %v56_v35 = vlaneseq }
   0xb   :  { %v465_v7 = vld [vmem:[%s688_s3] sm:$0xff]   ;;  %435 = vmatprep.subr.bf16.mxu1 %v512_v8  ;;  %415 = vmatprep.subr.bf16.mxu0 %v512_v8  ;;  %v467_v20 = vld [vmem:[%s688_s3 + $0x8] sm:$0xff]   ;;  %v468_v21 = vld [vmem:[%s692_s7 + $0x10] sm:$0xff]   ;;  %vm363_vm3 = vcmask 25600  }
   0xc   :  { %436 = vmatpush3.bf16.msra.mxu1 %v464_v6  ;;  %416 = vmatpush3.bf16.msra.mxu0 %v465_v7  ;;  %v469_v22 = vld [vmem:[%s688_s3 + $0x10] sm:$0xff]   ;;  %v470_v23 = vld [vmem:[%s692_s7 + $0x18] sm:$0xff]   ;;  %v472_v25 = vld [vmem:[%s692_s7 + $0x20] sm:$0xff]   ;;  %v57_v39 = vshrl.u32 %v56_v35, 7 }
   0xd   :  { %437 = vmatprep.subr.bf16.mxu1 %v512_v8  ;;  %417 = vmatprep.subr.bf16.mxu0 %v512_v8  ;;  %v471_v24 = vld [vmem:[%s688_s3 + $0x18] sm:$0xff]   ;;  %v473_v26 = vld [vmem:[%s688_s3 + $0x20] sm:$0xff]   ;;  %v474_v27 = vld [vmem:[%s692_s7 + $0x28] sm:$0xff]  }
   0xe   :  { %451 = vmatprep.mubr.msk.bf16.mxu1 %vm513_vm2, %v512_v8  ;;  %431 = vmatprep.mubr.msk.bf16.mxu0 %vm513_vm2, %v512_v8  ;;  %v475_v28 = vld [vmem:[%s688_s3 + $0x28] sm:$0xff]   ;;  %v476_v29 = vld [vmem:[%s692_s7 + $0x30] sm:$0xff]   ;;  %v478_v31 = vld [vmem:[%s692_s7 + $0x38] sm:$0xff]   ;;  %v58_v43 = vsub.s32 0, %v57_v39 }
   0xf   :  { %v477_v30 = vld [vmem:[%s688_s3 + $0x30] sm:$0xff]   ;;  %v479_v32 = vld [vmem:[%s688_s3 + $0x38] sm:$0xff]   ;;  %v173_v41 = vld [vmem:[%s690_s5] sm:$0x1]  ;;  %s514_s5 = smov [#allocation3]  }
  0x10   :  { %438 = vmatpush3.bf16.msra.mxu1 %v466_v9  ;;  %418 = vmatpush3.bf16.msra.mxu0 %v467_v20  ;;  %v174_v42 = vld [vmem:[%s691_s6] sm:$0x1]  ;;  %v175_v44 = vunpack.c.l.bf16 %v173_v41  ;;  %v361_v20 = vstv %s693_s8  ;;  %s371_s6 = sshll.u32 %s514_s5, 4  ;;  %s372_s6 = int_to_ptr.vmem [resolvable:$true] %s371_s6 }
  0x11   :  { %439 = vmatprep.subr.bf16.mxu1 %v512_v8  ;;  %419 = vmatprep.subr.bf16.mxu0 %v512_v8  ;;  %v37_v45 = vld [vmem:[%s686_s1] sm:$0x1]  ;;  %v176_v46 = vunpack.c.l.bf16 %v174_v42  ;;  %s488_s26 = scalar_lea.vmem %s372_s6, 32  ;;  %p493_p1 = scmp.lt.s32.totalorder %s372_s6, %s372_s6 }
  0x12   :  { %v38_v47 = vld [vmem:[%s687_s2] sm:$0x1]  ;;  %v194_v48 = vrot.slane %v175_v44, %v58_v43  ;;  %v39_v49 = vunpack.c.l.bf16 %v37_v45  ;;  %p489_p0 = scmp.ne.s32.totalorder %s372_s6, %s488_s26  ;;  %p494_p2 = scmp.lt.s32.totalorder %s488_s26, %s488_s26 }
  0x13   :  { %v199_v52 = vrot.slane %v176_v46, %v58_v43  ;;  %v40_v53 = vunpack.c.l.bf16 %v38_v47 }
  0x14   :  { %440 = vmatpush3.bf16.msra.mxu1 %v468_v21  ;;  %420 = vmatpush3.bf16.msra.mxu0 %v469_v22  ;;  %v59_v55 = vrot.slane %v39_v49, %v58_v43  ;;  %p495_p3 = por %p494_p2, %p493_p1 }
  0x15   :  { %441 = vmatprep.subr.bf16.mxu1 %v512_v8  ;;  %421 = vmatprep.subr.bf16.mxu0 %v512_v8  ;;  %v64_v59 = vrot.slane %v40_v53, %v58_v43 }
  0x16   :  { %p496_p4 = pnand %p495_p3, %p489_p0 }
  0x18   :  { %442 = vmatpush3.bf16.msra.mxu1 %v470_v23  ;;  %422 = vmatpush3.bf16.msra.mxu0 %v471_v24 }
  0x19   :  { %443 = vmatprep.subr.bf16.mxu1 %v512_v8  ;;  %423 = vmatprep.subr.bf16.mxu0 %v512_v8 }
  0x1c   :  { %444 = vmatpush3.bf16.msra.mxu1 %v472_v25  ;;  %424 = vmatpush3.bf16.msra.mxu0 %v473_v26 }
  0x1d   :  { %445 = vmatprep.subr.bf16.mxu1 %v512_v8  ;;  %425 = vmatprep.subr.bf16.mxu0 %v512_v8 }
  0x20   :  { %446 = vmatpush3.bf16.msra.mxu1 %v474_v27  ;;  %426 = vmatpush3.bf16.msra.mxu0 %v475_v28 }
  0x21   :  { %447 = vmatprep.subr.bf16.mxu1 %v512_v8  ;;  %427 = vmatprep.subr.bf16.mxu0 %v512_v8 }
  0x24   :  { %448 = vmatpush3.bf16.msra.mxu1 %v476_v29  ;;  %428 = vmatpush3.bf16.msra.mxu0 %v477_v30 }
  0x25   :  { %449 = vmatprep.subr.bf16.mxu1 %v512_v8  ;;  %429 = vmatprep.subr.bf16.mxu0 %v512_v8 }
  0x28   :  { %450 = vmatpush3.bf16.msra.mxu1 %v478_v31  ;;  %430 = vmatpush3.bf16.msra.mxu0 %v479_v32 }
  0x29   :  { %455 = vmatprep.subr.bf16.mxu0 %v512_v8 }
  0x92   :  { %v180_v10 = vpop.xlane.xlu0 %179 }
  0x93   :  { %v181_v11 = vmul.f32 0.0078125, %v180_v10 }
  0x95   :  { %v587_v12 = vsub.f32 %v172_v2, %v181_v11 }
  0x96   :  { %v44_v13 = vpop.xlane.xlu0 %43 }
  0x97   :  { %v46_v14 = vmul.f32 0.0078125, %v44_v13  ;;  %v183_v15 = vmul.f32 %v587_v12, %v587_v12 }
  0x99   :  { %v591_v16 = vsub.f32 %v36_v3, %v46_v14  ;;  %v184_v17 = vsel %vm177_vm0, %v183_v15, 0.0 }
  0x9a   :  { %185 = vadd.xlane.f32.xlu1 %v184_v17 }
  0x9b   :  { %v48_v18 = vmul.f32 %v591_v16, %v591_v16 }
  0x9d   :  { %v49_v19 = vsel %vm41_vm1, %v48_v18, 0.0 }
  0x9e   :  { %50 = vadd.xlane.f32.xlu1 %v49_v19 }
 0x127   :  { %v186_v33 = vpop.xlane.xlu1 %185 }
 0x128   :  { %v187_v34 = vmul.f32 0.0078125, %v186_v33 }
 0x12a   :  { %v188_v36 = vadd.f32 1e-05, %v187_v34 }
 0x12b   :  { %v51_v37 = vpop.xlane.xlu1 %50 }
 0x12c   :  { %480 = vrsqrt.f32 %v188_v36  ;;  %v52_v38 = vmul.f32 0.0078125, %v51_v37 }
 0x12e   :  { %v53_v40 = vadd.f32 1e-05, %v52_v38 }
 0x130   :  { %482 = vrsqrt.f32 %v53_v40 }
 0x136   :  { %v481_v50 = vpop.eup %480 }
 0x137   :  { %v190_v51 = vmul.f32 %v481_v50, %v587_v12 }
 0x139   :  { %v195_v54 = vmul.f32 %v194_v48, %v190_v51 }
 0x13a   :  { %v483_v56 = vpop.eup %482 }
 0x13b   :  { %v200_v57 = vadd.f32 %v199_v52, %v195_v54  ;;  %v55_v58 = vmul.f32 %v483_v56, %v591_v16 }
 0x13d   :  { %v217_v60 = vpack.c.bf16 %v200_v57, %v200_v57  ;;  %v60_v61 = vmul.f32 %v59_v55, %v55_v58 }
 0x13f   :  { %452 = vmatmul.mubr.bf16.vlgmr.msra.gmra.mrb[0].mxu1 %v217_v60  ;;  %v65_v62 = vadd.f32 %v64_v59, %v60_v61 }
 0x141   :  { %v82_v63 = vpack.c.bf16 %v65_v62, %v65_v62 }
 0x143   :  { %432 = vmatmul.mubr.bf16.vlgmr.msra.gmra.mrb[0].mxu0 %v82_v63 }
 0x144   :  { %457 = vmatprep.mubr.msk.bf16.mxu0 %vm513_vm2, %v512_v8 }
 0x212   :  { %v300_v0 = vpop.f32.mrb[0].mxu1 }
 0x213   :  { %v312_v1 = vmul.f32 %v300_v0, %v300_v0  ;;  %v453_v2 = vpop.f32.mrb[1].mxu1 }
 0x214   :  { %v303_v3 = vpop.f32.mrb[2].mxu1 }
 0x215   :  { %v454_v4 = vpop.f32.mrb[3].mxu1  ;;  %v313_v5 = vsel %vm177_vm0, %v312_v1, 0.0 }
 0x216   :  { %314 = vadd.xlane.f32.xlu0 %v313_v5  ;;  %v165_v6 = vpop.f32.mrb[0].mxu0 }
 0x217   :  { %v306_v7 = vmul.f32 %v165_v6, %v165_v6  ;;  %v433_v9 = vpop.f32.mrb[1].mxu0 }
 0x218   :  { %v168_v10 = vpop.f32.mrb[2].mxu0 }
 0x219   :  { %v434_v11 = vpop.f32.mrb[3].mxu0  ;;  %v307_v12 = vsel %vm41_vm1, %v306_v7, 0.0 }
 0x21a   :  { %308 = vadd.xlane.f32.xlu1 %v307_v12 }
 0x2a3   :  { %v315_v13 = vpop.xlane.xlu0 %314 }
 0x2a4   :  { %484 = vrsqrt.f32 %v315_v13 }
 0x2a7   :  { %v309_v14 = vpop.xlane.xlu1 %308 }
 0x2a8   :  { %486 = vrsqrt.f32 %v309_v14 }
 0x2ae   :  { %v485_v8 = vpop.eup %484 }
 0x2af   :  { %v317_v15 = vmul.f32 %v485_v8, %v300_v0 }
 0x2b1   :  { %v319_v16 = vpack.c.bf16 %v317_v15, %v317_v15 }
 0x2b2   :  { %v487_v17 = vpop.eup %486 }
 0x2b3   :  { %456 = vmatpush3.bf16.xpose.msra.mxu0 %v319_v16  ;;  %v311_v18 = vmul.f32 %v487_v17, %v165_v6 }
 0x2b5   :  { %v318_v19 = vpack.c.bf16 %v311_v18, %v311_v18 }
 0x2ba   :  { %458 = vmatmul.mubr.bf16.vlgmr.msra.gmra.mrb[4].mxu0 %v318_v19 }
 0x38d   :  { %v354_v21 = vpop.f32.mrb[4].mxu0 }
 0x38e   :  { %v362_v22 = vmul.f32 %v361_v20, %v354_v21  ;;  %v459_v23 = vpop.f32.mrb[5].mxu0 }
 0x38f   :  { %v357_v24 = vpop.f32.mrb[6].mxu0 }
 0x390   :  { %v460_v25 = vpop.f32.mrb[7].mxu0  ;;  %364 = vst.msk [vmem:[#allocation3] sm:$0x3] %vm363_vm3, %v362_v22 }
 0x391   :  { %499 = shalt.err (!%p496_p4)
}
 0x392   :  { %s500_s8 = scalar_lea.hbm %s694_s9, 32 }
 0x393   :  { %p501_p5 = scmp.ne.s32.totalorder %s694_s9, %s500_s8  ;;  %p504_p6 = scmp.lt.u32.totalorder %s500_s8, %s694_s9 }
 0x395   :  { %p506_p7 = pnand %p504_p6, %p501_p5 }
 0x397   :  { %509 = shalt.err (!%p506_p7)
}
 0x398   :  { %374 = dma.vmem_to_hbm [thread:$0]  %s372_s6, 32, %s694_s9, [#allocation4]  }
 0x399   :  { %510 = dma.done.wait [#allocation4], 32  }
 0x39a   :  { %511 = vsyncadd [#allocation4], 4294967264 }
 0x39b   :  { %378 = vsyncpa [#allocation4], 1 }

// kernel: custom_clip_forward.6
= control target key start
LH: loop header
LB: loop body
LE: loop exit
PB: predicated region body
PF: predicated region fallthrough
CT: control target
= control target key end

     0   :  { %s5837_s29 = smov 0   ;;  %s7244_s0 = inlined_call_operand.vmem [shape: bf16[64,128], index: 0, kind: input, shape index: {}]   ;;  %s7245_s1 = inlined_call_operand.vmem [shape: bf16[2,8,128], index: 1, kind: input, shape index: {}]   ;;  %s7246_s2 = inlined_call_operand.vmem [shape: bf16[2,1,128], index: 2, kind: input, shape index: {}]   ;;  %s7247_s3 = inlined_call_operand.vmem [shape: bf16[2,1,128], index: 3, kind: input, shape index: {}]   ;;  %s7248_s4 = inlined_call_operand.vmem [shape: bf16[2,128,384], index: 4, kind: input, shape index: {}]   ;;  %s7249_s5 = inlined_call_operand.vmem [shape: bf16[2,1,384], index: 5, kind: input, shape index: {}]   ;;  %s7250_s6 = inlined_call_operand.vmem [shape: bf16[2,128,128], index: 6, kind: input, shape index: {}]   ;;  %s7251_s7 = inlined_call_operand.vmem [shape: bf16[2,1,128], index: 7, kind: input, shape index: {}]   ;;  %s7252_s8 = inlined_call_operand.vmem [shape: bf16[2,1,128], index: 8, kind: input, shape index: {}]   ;;  %s7253_s9 = inlined_call_operand.vmem [shape: bf16[2,1,128], index: 9, kind: input, shape index: {}]   ;;  %s7254_s10 = inlined_call_operand.vmem [shape: bf16[2,128,512], index: 10, kind: input, shape index: {}]   ;;  %s7255_s11 = inlined_call_operand.vmem [shape: bf16[2,1,512], index: 11, kind: input, shape index: {}]   ;;  %s7256_s12 = inlined_call_operand.vmem [shape: bf16[2,512,128], index: 12, kind: input, shape index: {}]   ;;  %s7257_s13 = inlined_call_operand.vmem [shape: bf16[2,1,128], index: 13, kind: input, shape index: {}]   ;;  %s7258_s14 = inlined_call_operand.vmem [shape: bf16[64,128], index: 14, kind: output, shape index: {}]  }
   0x1   :  { %7280 = sst [smem:[#allocation11_spill]] %s7244_s0 }
   0x2   :  { %7281 = sst [smem:[#allocation12_spill]] %s7245_s1 }
   0x3   :  { %7282 = sst [smem:[#allocation13_spill]] %s7246_s2 }
   0x4   :  { %7283 = sst [smem:[#allocation14_spill]] %s7247_s3 }
   0x5   :  { %7284 = sst [smem:[#allocation15_spill]] %s7248_s4 }
   0x6   :  { %7285 = sst [smem:[#allocation16_spill]] %s7250_s6 }
   0x7   :  { %7286 = sst [smem:[#allocation17_spill]] %s7258_s14 }
   0x8 LB: > { %7287 = sst [smem:[#allocation2_spill]] %s5754_s29  ;;  %s5843_s30 = sadd.s32 4294967295, %s5754_s29   ;;  %s5754_s29 = sphi %s5837_s29, %s24_s29  }
   0x9   : > { %p4702_p0 = scmp.ge.s32.totalorder %s5754_s29, 1  ;;  %p512_p1 = scmp.lt.s32.totalorder %s5754_s29, 3 }
   0xb   : > { %p513_p2 = pnand %p4702_p0, %p512_p1 }
   0xd   : > { %516 = sbr.rel (%p513_p2) target bundleno = 2829 (0xb0d), region = 76 }
  0x14   : > { %p598_p3 = scmp.lt.s32.totalorder %s5843_s30, 1  ;;  %s7289_s1 = sld [smem:[#allocation12_spill]] }
  0x15   : > { %s7291_s6 = sld [smem:[#allocation16_spill]]  ;;  %s7292_s4 = sld [smem:[#allocation15_spill]] }
  0x16   : > { %s5849_s15 = scalar_select %p598_p3, %s5843_s30, 1 }
  0x17   : > { %p4712_p4 = scmp.ne.s32.totalorder %s5843_s30, 0 }
  0x18   : > { %s4703_s16 = sshll.u32 %s5849_s15, 2  ;;  %s5328_s26 = smul.u32 192, %s5849_s15 }
  0x19   : > { %s4851_s27 = sshll.u32 %s5849_s15, 6  ;;  %s5329_s28 = smul.u32 3, %s5849_s15 }
  0x1a   : > { %s5859_s22 = scalar_lea.vmem %s7289_s1, %s4703_s16  ;;  %s4852_s17 = sshll.u32 %s5849_s15, 8 }
  0x1b   : > { %s5871_s0 = scalar_lea.vmem %s7291_s6, %s4851_s27  ;;  %s5876_s19 = scalar_lea.vmem %s7292_s4, %s5328_s26 }
  0x1c   : > { %s5885_s24 = scalar_lea.vmem %s7249_s5, %s5329_s28  ;;  %s5899_s4 = scalar_lea.vmem %s7254_s10, %s4852_s17 }
  0x1d   : > { %s5904_s2 = scalar_lea.vmem %s7255_s11, %s4703_s16  ;;  %s5909_s3 = scalar_lea.vmem %s7256_s12, %s4852_s17 }
  0x1e   : > { %652 = sbr.rel (%p4712_p4) target bundleno = 39 (0x27), region = 80  ;;  %s7293_s18 = sld [smem:[#allocation11_spill]] (!%p4712_p4) }
  0x1f   : > { %s7294_s23 = sld [smem:[#allocation17_spill]] (!%p4712_p4) }
  0x24   : > { %v653_v0 = vld [vmem:[%s7293_s18] sm:$0xff] (!%p4712_p4)   ;;  %v655_v1 = vld [vmem:[%s7293_s18 + $0x8] sm:$0xff] (!%p4712_p4)   ;;  %v657_v2 = vld [vmem:[%s7293_s18 + $0x10] sm:$0xff] (!%p4712_p4)  }
  0x25   : > { %661 = vst [vmem:[%s7294_s23] sm:$0xff] %v653_v0   ;;  %663 = vst [vmem:[%s7294_s23 + $0x8] sm:$0xff] %v655_v1   ;;  %v659_v3 = vld [vmem:[%s7293_s18 + $0x18] sm:$0xff]  }
  0x26   : > { %665 = vst [vmem:[%s7294_s23 + $0x10] sm:$0xff] %v657_v2   ;;  %667 = vst [vmem:[%s7294_s23 + $0x18] sm:$0xff] %v659_v3  }
  0x27 PF: > { %p669_p5 = scmp.gt.s32.totalorder %s5843_s30, 0  ;;  %p670_p6 = scmp.le.s32.totalorder %s5843_s30, 1 }
  0x29   : > { %p671_p7 = pnand %p670_p6, %p669_p5 }
  0x2a   : > { %v675_v4 = vld [vmem:[%s5859_s22] sm:$0xf] (!%p671_p7)  ;;  %vm686_vm0 = vcmask (!%p671_p7), 1043456   ;;  %vm687_vm1 = vsmask.f32 (!%p671_p7), 7938  ;;  %vm692_vm2 = vcmask (!%p671_p7), 1040384  }
  0x2b   : > { %674 = sbr.rel (%p671_p7) target bundleno = 56 (0x38), region = 84  ;;  %v677_v5 = vshrl.u32 (!%p671_p7), %v675_v4, 16  ;;  %v680_v6 = vshll.u32 (!%p671_p7), %v675_v4, 16  ;;  %vm693_vm3 = vsmask.f32 (!%p671_p7), 256  ;;  %vm5943_vm4 = vmand (!%p671_p7), %vm686_vm0, %vm687_vm1  ;;  %s7297_s16 = sld [smem:[#allocation17_spill]] (!%p671_p7) }
  0x2c   : > { %vm5950_vm5 = vmand (!%p671_p7), %vm692_vm2, %vm693_vm3 }
  0x2d   : > { %v679_v9 = vrot.slane (!%p671_p7), %v677_v5, 7 }
  0x2f   : > { %v682_v16 = vor.u32 (!%p671_p7), %v680_v6, %v679_v9  ;;  %v683_v17 = vrot.slane (!%p671_p7), %v679_v9, 4 }
  0x31   : > { %v689_v8 = vld [vmem:[%s7297_s16] sm:$0xf] (!%p671_p7)  ;;  %v695_v11 = vld [vmem:[%s7297_s16 + $0x4] sm:$0x1] (!%p671_p7)  ;;  %v698_v12 = vld [vmem:[%s7297_s16 + $0x8] sm:$0xf] (!%p671_p7) }
  0x32   : > { %v701_v13 = vld [vmem:[%s7297_s16 + $0xc] sm:$0x1]  ;;  %v704_v14 = vld [vmem:[%s7297_s16 + $0x10] sm:$0xf]  ;;  %v707_v15 = vld [vmem:[%s7297_s16 + $0x14] sm:$0x1]  ;;  %v690_v20 = vsel %vm5943_vm4, %v682_v16, %v689_v8  ;;  %v696_v21 = vsel %vm5950_vm5, %v683_v17, %v695_v11  ;;  %v699_v22 = vsel %vm5943_vm4, %v682_v16, %v698_v12 }
  0x33   : > { %v710_v18 = vld [vmem:[%s7297_s16 + $0x18] sm:$0xf]  ;;  %v713_v19 = vld [vmem:[%s7297_s16 + $0x1c] sm:$0x1]  ;;  %v702_v23 = vsel %vm5950_vm5, %v683_v17, %v701_v13  ;;  %691 = vst [vmem:[%s7297_s16] sm:$0xf] %v690_v20  ;;  %v705_v24 = vsel %vm5943_vm4, %v682_v16, %v704_v14  ;;  %v708_v25 = vsel %vm5950_vm5, %v683_v17, %v707_v15 }
  0x34   : > { %697 = vst [vmem:[%s7297_s16 + $0x4] sm:$0x1] %v696_v21  ;;  %700 = vst [vmem:[%s7297_s16 + $0x8] sm:$0xf] %v699_v22  ;;  %v711_v26 = vsel %vm5943_vm4, %v682_v16, %v710_v18  ;;  %v714_v27 = vsel %vm5950_vm5, %v683_v17, %v713_v19 }
  0x35   : > { %703 = vst [vmem:[%s7297_s16 + $0xc] sm:$0x1] %v702_v23  ;;  %706 = vst [vmem:[%s7297_s16 + $0x10] sm:$0xf] %v705_v24 }
  0x36   : > { %709 = vst [vmem:[%s7297_s16 + $0x14] sm:$0x1] %v708_v25  ;;  %712 = vst [vmem:[%s7297_s16 + $0x18] sm:$0xf] %v711_v26 }
  0x37   : > { %715 = vst [vmem:[%s7297_s16 + $0x1c] sm:$0x1] %v714_v27 }
  0x38 PF: > { %s7300_s28 = sld [smem:[#allocation17_spill]]  ;;  %v5404_v37 = vld [vmem:[%s5876_s19 + $0x4] ss:$12 sps:$4 sm:$0xff]   ;;  %v5406_v38 = vld [vmem:[%s5876_s19] ss:$12 sps:$4 sm:$0xff]   ;;  %v7266_v22 = vmov 0   ;;  %s7309_s25 = scalar_lea.vmem %s7251_s7, %s5849_s15 }
  0x39   : > { %v5407_v39 = vld [vmem:[%s5876_s19 + $0x1c] ss:$12 sps:$4 sm:$0xff]   ;;  %1043 = vmatprep.subr.bf16.mxu0 %v5404_v37  ;;  %v5409_v3 = vld [vmem:[%s5876_s19 + $0x18] ss:$12 sps:$4 sm:$0xff]   ;;  %v5410_v4 = vld [vmem:[%s5876_s19 + $0x34] ss:$12 sps:$4 sm:$0xff]   ;;  %1075 = vmatprep.mubr.bf16.mxu0 %v7266_v22  ;;  %s7318_s16 = scalar_lea.vmem %s7252_s8, %s5849_s15  ;;  %s7319_s6 = scalar_lea.vmem %s7253_s9, %s5849_s15 }
  0x3a   : > { %1044 = vmatpush1.bf16.msra.mxu0 %v5406_v38  ;;  %v5412_v5 = vld [vmem:[%s5876_s19 + $0x8] ss:$12 sps:$4 sm:$0xff]   ;;  %v5413_v6 = vld [vmem:[%s5876_s19 + $0x30] ss:$12 sps:$4 sm:$0xff]   ;;  %v5414_v7 = vld [vmem:[%s5876_s19 + $0x4c] ss:$12 sps:$4 sm:$0xff]  }
  0x3b   : > { %1045 = vmatprep.subr.bf16.mxu0 %v5407_v39  ;;  %5072 = vmatprep.subr.bf16.mxu1 %v5412_v5  ;;  %v5416_v8 = vld [vmem:[%s5876_s19 + $0x20] ss:$12 sps:$4 sm:$0xff]   ;;  %v5417_v9 = vld [vmem:[%s5876_s19 + $0x48] ss:$12 sps:$4 sm:$0xff]   ;;  %v5418_v10 = vld [vmem:[%s5876_s19 + $0x64] ss:$12 sps:$4 sm:$0xff]  }
  0x3c   : > { %5073 = vmatpush3.bf16.msra.mxu1 %v5412_v5  ;;  %v5420_v11 = vld [vmem:[%s5876_s19 + $0x38] ss:$12 sps:$4 sm:$0xff]   ;;  %v5421_v12 = vld [vmem:[%s5876_s19 + $0x60] ss:$12 sps:$4 sm:$0xff]   ;;  %v5422_v13 = vld [vmem:[%s5876_s19 + $0x7c] ss:$12 sps:$4 sm:$0xff]  }
  0x3d   : > { %5074 = vmatprep.subr.bf16.mxu1 %v5416_v8  ;;  %v5424_v14 = vld [vmem:[%s5876_s19 + $0x50] ss:$12 sps:$4 sm:$0xff]   ;;  %v5425_v15 = vld [vmem:[%s5876_s19 + $0x78] ss:$12 sps:$4 sm:$0xff]   ;;  %v5426_v16 = vld [vmem:[%s5876_s19 + $0x94] ss:$12 sps:$4 sm:$0xff]  }
  0x3e   : > { %v4863_v28 = vld [vmem:[%s7300_s28] sm:$0xff]   ;;  %v4898_v29 = vld [vmem:[%s7300_s28 + $0x8] sm:$0xff]   ;;  %v4899_v32 = vld [vmem:[%s7300_s28 + $0x10] sm:$0xff]   ;;  %1046 = vmatpush1.bf16.msra.mxu0 %v5409_v3  ;;  %s7303_s20 = sld [smem:[#allocation13_spill]]  ;;  %s7305_s22 = sld [smem:[#allocation14_spill]]  ;;  %vm5758_vm6 = vmmov 0  }
  0x3f   : > { %v6021_v30 = vunpack.c.l.bf16 %v4863_v28  ;;  %v6023_v31 = vunpack.c.l.bf16 %v4898_v29  ;;  %v6029_v33 = vunpack.c.h.bf16 %v4863_v28  ;;  %v6032_v34 = vunpack.c.h.bf16 %v4898_v29  ;;  %v4900_v46 = vld [vmem:[%s7300_s28 + $0x18] sm:$0xff]   ;;  %1047 = vmatprep.subr.bf16.mxu0 %v5410_v4  ;;  %v5428_v17 = vld [vmem:[%s5876_s19 + $0x68] ss:$12 sps:$4 sm:$0xff]   ;;  %v5432_v20 = vld [vmem:[%s5876_s19 + $0x80] ss:$12 sps:$4 sm:$0xff]   ;;  %s5760_s17 = smov 64  }
  0x40   : > { %v6036_v35 = vunpack.c.l.bf16 %v4899_v32  ;;  %v6038_v36 = vunpack.c.h.bf16 %v4899_v32  ;;  %v6053_v50 = vunpack.c.l.bf16 %v4900_v46  ;;  %v6063_v58 = vunpack.c.h.bf16 %v4900_v46  ;;  %5075 = vmatpush3.bf16.msra.mxu1 %v5416_v8  ;;  %v5429_v18 = vld [vmem:[%s5876_s19 + $0x90] ss:$12 sps:$4 sm:$0xff]   ;;  %v5430_v19 = vld [vmem:[%s5876_s19 + $0xac] ss:$12 sps:$4 sm:$0xff]   ;;  %v5433_v21 = vld [vmem:[%s5876_s19 + $0xa8] ss:$12 sps:$4 sm:$0xff]  }
  0x41   : > { %736 = vadd.xlane.f32.xlu0 %v6021_v30  ;;  %740 = vadd.xlane.f32.xlu1 %v6023_v31  ;;  %v5434_v23 = vld [vmem:[%s5876_s19 + $0x98] ss:$12 sps:$4 sm:$0xff]   ;;  %v5435_v24 = vld [vmem:[%s5876_s19 + $0xb0] ss:$12 sps:$4 sm:$0xff]   ;;  %v825_v32 = vlaneseq  ;;  %vm1184_vm7 = vcmask 261120   ;;  %s5761_s23 = smov 32  }
  0x42   : > { %7301 = vst [vmem:[#allocation3_spill] sm:$0xff] %v6063_v58  ;;  %1048 = vmatpush1.bf16.msra.mxu0 %v5413_v6  ;;  %5076 = vmatprep.subr.bf16.mxu1 %v5420_v11  ;;  %vm1234_vm8 = vcmask 130048   ;;  %vm1700_vm9 = vcmask 523264   ;;  %vm1703_vm10 = vcmask 785408  }
  0x43   : > { %1049 = vmatprep.subr.bf16.mxu0 %v5414_v7 }
  0x44   : > { %5077 = vmatpush3.bf16.msra.mxu1 %v5420_v11  ;;  %s7304_s1 = scalar_lea.vmem %s7303_s20, %s5849_s15  ;;  %s7306_s21 = scalar_lea.vmem %s7305_s22, %s5849_s15 }
  0x45   : > { %738 = vadd.xlane.f32.xlu0 %v6029_v33  ;;  %742 = vadd.xlane.f32.xlu1 %v6032_v34  ;;  %s7323_s20 = scalar_lea.vmem %s7257_s13, %s5849_s15 }
  0x46   : > { %1050 = vmatpush1.bf16.msra.mxu0 %v5417_v9  ;;  %5078 = vmatprep.subr.bf16.mxu1 %v5424_v14 }
  0x47   : > { %1051 = vmatprep.subr.bf16.mxu0 %v5418_v10 }
  0x48   : > { %5079 = vmatpush3.bf16.msra.mxu1 %v5424_v14 }
  0x49   : > { %744 = vadd.xlane.f32.xlu0 %v6036_v35  ;;  %746 = vadd.xlane.f32.xlu1 %v6038_v36 }
  0x4a   : > { %1052 = vmatpush1.bf16.msra.mxu0 %v5421_v12  ;;  %5080 = vmatprep.subr.bf16.mxu1 %v5428_v17 }
  0x4b   : > { %1053 = vmatprep.subr.bf16.mxu0 %v5422_v13 }
  0x4c   : > { %5081 = vmatpush3.bf16.msra.mxu1 %v5428_v17 }
  0x4d   : > { %5082 = vmatprep.subr.bf16.mxu1 %v5432_v20 }
  0x4e   : > { %1054 = vmatpush1.bf16.msra.mxu0 %v5425_v15 }
  0x4f   : > { %1055 = vmatprep.subr.bf16.mxu0 %v5426_v16 }
  0x50   : > { %5083 = vmatpush3.bf16.msra.mxu1 %v5432_v20 }
  0x51   : > { %5084 = vmatprep.subr.bf16.mxu1 %v5434_v23 }
  0x52   : > { %1056 = vmatpush1.bf16.msra.mxu0 %v5429_v18 }
  0x53   : > { %1057 = vmatprep.subr.bf16.mxu0 %v5430_v19 }
  0x54   : > { %5085 = vmatpush3.bf16.msra.mxu1 %v5434_v23 }
  0x55   : > { %5086 = vmatprep.subr.bf16.mxu1 %v5435_v24 }
  0x56   : > { %1058 = vmatpush1.bf16.msra.mxu0 %v5433_v21 }
  0x58   : > { %5087 = vmatpush3.bf16.msra.mxu1 %v5435_v24 }
  0xce   : > { %v737_v40 = vpop.xlane.xlu0 %736  ;;  %v741_v41 = vpop.xlane.xlu1 %740 }
  0xcf   : > { %v753_v42 = vmul.f32 0.0078125, %v737_v40  ;;  %v755_v44 = vmul.f32 0.0078125, %v741_v41 }
  0xd1   : > { %v6046_v43 = vsub.f32 %v6021_v30, %v753_v42  ;;  %v6059_v53 = vsub.f32 %v6023_v31, %v755_v44  ;;  %v6109_v44 = vshrl.u32 %v825_v32, 7 }
  0xd2   : > { %v739_v45 = vpop.xlane.xlu0 %738  ;;  %v743_v47 = vpop.xlane.xlu1 %742 }
  0xd3   : > { %v754_v48 = vmul.f32 0.0078125, %v739_v45  ;;  %v769_v49 = vmul.f32 %v6046_v43, %v6046_v43  ;;  %v756_v52 = vmul.f32 0.0078125, %v743_v47  ;;  %v771_v59 = vmul.f32 %v6059_v53, %v6059_v53  ;;  %7302 = vst [vmem:[#allocation4_spill] sm:$0xff] %v6109_v44 }
  0xd5   : > { %777 = vadd.xlane.f32.xlu0 %v769_v49  ;;  %v6056_v51 = vsub.f32 %v6029_v33, %v754_v48  ;;  %v6069_v61 = vsub.f32 %v6032_v34, %v756_v52  ;;  %v732_v48 = vld [vmem:[%s7304_s1] sm:$0x1] }
  0xd6   : > { %v745_v54 = vpop.xlane.xlu0 %744  ;;  %v747_v55 = vpop.xlane.xlu1 %746 }
  0xd7   : > { %v770_v56 = vmul.f32 %v6056_v51, %v6056_v51  ;;  %v757_v57 = vmul.f32 0.0078125, %v745_v54  ;;  %v758_v60 = vmul.f32 0.0078125, %v747_v55  ;;  %v772_v63 = vmul.f32 %v6069_v61, %v6069_v61 }
  0xd9   : > { %748 = vadd.xlane.f32.xlu0 %v6053_v50  ;;  %779 = vadd.xlane.f32.xlu1 %v770_v56  ;;  %v6072_v62 = vsub.f32 %v6036_v35, %v757_v57  ;;  %v6080_v1 = vsub.f32 %v6038_v36, %v758_v60  ;;  %v734_v56 = vunpack.c.l.bf16 %v732_v48  ;;  %v6122_v57 = vsub.s32 0, %v6109_v44 }
  0xdb   : > { %v773_v0 = vmul.f32 %v6072_v62, %v6072_v62  ;;  %v774_v2 = vmul.f32 %v6080_v1, %v6080_v1  ;;  %v828_v8 = vrot.slane %v734_v56, %v6122_v57 }
  0xdd   : > { %781 = vadd.xlane.f32.xlu0 %v771_v59  ;;  %750 = vadd.xlane.f32.xlu1 %v6063_v58 }
  0xe1   : > { %783 = vadd.xlane.f32.xlu1 %v772_v63  ;;  %785 = vadd.xlane.f32.xlu0 %v773_v0  ;;  %v733_v0 = vld [vmem:[%s7306_s21] sm:$0x1] }
  0xe2   : > { %v735_v6 = vunpack.c.l.bf16 %v733_v0 }
  0xe4   : > { %v840_v14 = vrot.slane %v735_v6, %v6122_v57  ;;  %v7265_v6 = vsub.s32 4, %v6109_v44 }
  0xe5   : > { %787 = vadd.xlane.f32.xlu1 %v774_v2 }
 0x162   : > { %v778_v25 = vpop.xlane.xlu0 %777 }
 0x163   : > { %v793_v26 = vmul.f32 0.0078125, %v778_v25 }
 0x165   : > { %v801_v27 = vadd.f32 1e-05, %v793_v26 }
 0x166   : > { %v780_v28 = vpop.xlane.xlu1 %779  ;;  %v749_v29 = vpop.xlane.xlu0 %748 }
 0x167   : > { %5524 = vrsqrt.f32 %v801_v27  ;;  %v794_v37 = vmul.f32 0.0078125, %v780_v28  ;;  %v759_v38 = vmul.f32 0.0078125, %v749_v29 }
 0x169   : > { %v802_v39 = vadd.f32 1e-05, %v794_v37  ;;  %v6107_v40 = vsub.f32 %v6053_v50, %v759_v38 }
 0x16a   : > { %v751_v41 = vpop.xlane.xlu1 %750  ;;  %v782_v42 = vpop.xlane.xlu0 %781 }
 0x16b   : > { %5526 = vrsqrt.f32 %v802_v39  ;;  %v760_v45 = vmul.f32 0.0078125, %v751_v41  ;;  %v795_v46 = vmul.f32 0.0078125, %v782_v42  ;;  %v775_v47 = vmul.f32 %v6107_v40, %v6107_v40 }
 0x16d   : > { %v803_v49 = vadd.f32 1e-05, %v795_v46  ;;  %789 = vadd.xlane.f32.xlu0 %v775_v47  ;;  %v6119_v52 = vsub.f32 %v6063_v58, %v760_v45 }
 0x16e   : > { %v784_v54 = vpop.xlane.xlu1 %783  ;;  %v786_v55 = vpop.xlane.xlu0 %785 }
 0x16f   : > { %5528 = vrsqrt.f32 %v803_v49  ;;  %v796_v59 = vmul.f32 0.0078125, %v784_v54  ;;  %v797_v60 = vmul.f32 0.0078125, %v786_v55  ;;  %v776_v63 = vmul.f32 %v6119_v52, %v6119_v52 }
 0x171   : > { %v5525_v2 = vpop.eup %5524  ;;  %v804_v3 = vadd.f32 1e-05, %v796_v59  ;;  %v805_v4 = vadd.f32 1e-05, %v797_v60  ;;  %791 = vadd.xlane.f32.xlu1 %v776_v63 }
 0x172   : > { %v788_v5 = vpop.xlane.xlu1 %787  ;;  %v817_v7 = vmul.f32 %v5525_v2, %v6046_v43  ;;  %v885_v2 = vld [vmem:[%s5885_s24] sm:$0x7]  ;;  %s5759_s24 = smov 96  }
 0x173   : > { %5530 = vrsqrt.f32 %v804_v3  ;;  %v798_v9 = vmul.f32 0.0078125, %v788_v5  ;;  %v886_v3 = vunpack.c.l.bf16 %v885_v2 }
 0x174   : > { %5532 = vrsqrt.f32 %v805_v4  ;;  %v829_v13 = vmul.f32 %v828_v8, %v817_v7 }
 0x175   : > { %v5527_v10 = vpop.eup %5526  ;;  %v806_v11 = vadd.f32 1e-05, %v798_v9 }
 0x176   : > { %v818_v12 = vmul.f32 %v5527_v10, %v6056_v51  ;;  %v841_v17 = vadd.f32 %v840_v14, %v829_v13 }
 0x177   : > { %5534 = vrsqrt.f32 %v806_v11 }
 0x178   : > { %v830_v15 = vmul.f32 %v828_v8, %v818_v12 }
 0x179   : > { %v5529_v16 = vpop.eup %5528 }
 0x17a   : > { %v842_v18 = vadd.f32 %v840_v14, %v830_v15  ;;  %v819_v19 = vmul.f32 %v5529_v16, %v6059_v53 }
 0x17c   : > { %v881_v43 = vpack.c.bf16 %v842_v18, %v841_v17  ;;  %v831_v24 = vmul.f32 %v828_v8, %v819_v19 }
 0x17d   : > { %v5531_v20 = vpop.eup %5530 }
 0x17e   : > { %v5533_v21 = vpop.eup %5532  ;;  %1076 = vmatmul.mubr.bf16.vlgmr.msra.gmra.mrb[0].mxu0 %v881_v43  ;;  %5088 = vmatprep.mubr.bf16.mxu1 %v881_v43  ;;  %v820_v23 = vmul.f32 %v5531_v20, %v6069_v61  ;;  %v843_v27 = vadd.f32 %v840_v14, %v831_v24 }
 0x17f   : > { %1085 = vmatprep.mubr.bf16.mxu0 %v7266_v22  ;;  %v821_v51 = vmul.f32 %v5533_v21, %v6072_v62  ;;  %v7268_v62 = vmov 0.0  }
 0x180   : > { %v832_v25 = vmul.f32 %v828_v8, %v820_v23  ;;  %5096 = vmatprep.subr.bf16.mxu1 %v7268_v62  ;;  %5108 = vmatprep.subr.bf16.mxu0 %v7268_v62 }
 0x181   : > { %v5535_v26 = vpop.eup %5534  ;;  %v833_v32 = vmul.f32 %v828_v8, %v821_v51 }
 0x182   : > { %v844_v28 = vadd.f32 %v840_v14, %v832_v25  ;;  %v822_v29 = vmul.f32 %v5535_v26, %v6080_v1 }
 0x183   : > { %v845_v38 = vadd.f32 %v840_v14, %v833_v32 }
 0x184   : > { %v882_v53 = vpack.c.bf16 %v844_v28, %v843_v27  ;;  %v834_v37 = vmul.f32 %v828_v8, %v822_v29 }
 0x186   : > { %1086 = vmatmul.mubr.bf16.gmra.mrb[4].mxu0 %v882_v53  ;;  %5089 = vmatmul.mubr.bf16.vlgmr.msra.gmra.mrb[0].mxu1 %v882_v53  ;;  %v846_v39 = vadd.f32 %v840_v14, %v834_v37 }
 0x187   : > { %1095 = vmatprep.mubr.bf16.mxu0 %v7266_v22 }
 0x188   : > { %v883_v61 = vpack.c.bf16 %v846_v39, %v845_v38 }
 0x18a   : > { %5092 = vmatprep.mubr.bf16.mxu1 %v883_v61 }
 0x18e   : > { %1096 = vmatmul.mubr.bf16.gmra.mrb[8].mxu0 %v883_v61 }
 0x18f   : > { %1105 = vmatprep.mubr.bf16.mxu0 %v7266_v22 }
 0x1fa   : > { %v790_v1 = vpop.xlane.xlu0 %789 }
 0x1fb   : > { %v799_v41 = vmul.f32 0.0078125, %v790_v1 }
 0x1fd   : > { %v807_v42 = vadd.f32 1e-05, %v799_v41 }
 0x1fe   : > { %v792_v45 = vpop.xlane.xlu1 %791 }
 0x1ff   : > { %5536 = vrsqrt.f32 %v807_v42  ;;  %v800_v46 = vmul.f32 0.0078125, %v792_v45 }
 0x201   : > { %v808_v47 = vadd.f32 1e-05, %v800_v46 }
 0x203   : > { %5538 = vrsqrt.f32 %v808_v47 }
 0x209   : > { %v5537_v48 = vpop.eup %5536 }
 0x20a   : > { %v823_v49 = vmul.f32 %v5537_v48, %v6107_v40  ;;  %v7264_v40 = vsub.s32 2, %v6109_v44 }
 0x20c   : > { %v835_v56 = vmul.f32 %v828_v8, %v823_v49  ;;  %v895_v4 = vrot.slane %v886_v3, %v7264_v40 }
 0x20d   : > { %v5539_v54 = vpop.eup %5538 }
 0x20e   : > { %v824_v55 = vmul.f32 %v5539_v54, %v6119_v52  ;;  %v847_v60 = vadd.f32 %v840_v14, %v835_v56  ;;  %v891_v52 = vrot.slane %v886_v3, %v6122_v57 }
 0x210   : > { %v836_v59 = vmul.f32 %v828_v8, %v824_v55  ;;  %v6156_v5 = vrot.slane %v891_v52, %v6122_v57  ;;  %v6160_v8 = vrot.slane %v895_v4, %v6122_v57 }
 0x212   : > { %v848_v63 = vadd.f32 %v840_v14, %v836_v59  ;;  %v899_v14 = vrot.slane %v886_v3, %v7265_v6 }
 0x214   : > { %v884_v0 = vpack.c.bf16 %v848_v63, %v847_v60  ;;  %v6170_v19 = vrot.slane %v899_v14, %v6122_v57 }
 0x216   : > { %1106 = vmatmul.mubr.bf16.gmra.mrb[12].mxu0 %v884_v0  ;;  %5093 = vmatmul.mubr.bf16.gmra.mrb[4].mxu1 %v884_v0 }
 0x217   : > { %5098 = vmatprep.mubr.msk.bf16.mxu1 %vm5758_vm6, %v7268_v62  ;;  %5110 = vmatprep.mubr.msk.bf16.mxu0 %vm5758_vm6, %v7268_v62 }
 0x251   : > { %v1077_v7 = vpop.f32.mrb[0].mxu0 }
 0x252   : > { %v1079_v9 = vpop.f32.mrb[1].mxu0  ;;  %v1078_v11 = vadd.f32 %v1077_v7, %v6156_v5 }
 0x253   : > { %v1081_v10 = vpop.f32.mrb[2].mxu0  ;;  %v1080_v15 = vadd.f32 %v1079_v9, %v6160_v8 }
 0x254   : > { %v1082_v12 = vadd.f32 %v1081_v10, %v6156_v5  ;;  %v1083_v13 = vpop.f32.mrb[3].mxu0 }
 0x255   : > { %v1084_v16 = vadd.f32 %v1083_v13, %v6160_v8 }
 0x256   : > { %v1181_v17 = vpack.c.bf16 %v1082_v12, %v1078_v11 }
 0x257   : > { %v1182_v18 = vpack.c.bf16 %v1084_v16, %v1080_v15 }
 0x258   : > { %1303 = vrot.lane.b32.xlu1 %v1181_v17, %s5759_s24 }
 0x259   : > { %1306 = vrot.lane.b32.xlu0 %v1182_v18, %s5759_s24  ;;  %v1087_v43 = vpop.f32.mrb[4].mxu0  ;;  %v5090_v20 = vpop.f32.mrb[0].mxu1  ;;  %v1189_v21 = vsel %vm1184_vm7, %v1182_v18, 0 }
 0x25a   : > { %v1089_v23 = vpop.f32.mrb[5].mxu0  ;;  %v1150_v24 = vpop.f32.mrb[1].mxu1  ;;  %5097 = vmatpush3.bf16.xpose.msra.mxu1 %v1189_v21  ;;  %v1088_v26 = vadd.f32 %v1087_v43, %v6156_v5  ;;  %v1159_v27 = vadd.f32 %v5090_v20, %v6170_v19 }
 0x25b   : > { %v1091_v51 = vpop.f32.mrb[6].mxu0  ;;  %v5091_v25 = vpop.f32.mrb[2].mxu1  ;;  %5102 = vmatprep.subr.bf16.mxu1 %v7268_v62  ;;  %v1090_v37 = vadd.f32 %v1089_v23, %v6160_v8  ;;  %v1151_v38 = vadd.f32 %v1150_v24, %v6170_v19 }
 0x25c   : > { %v1092_v28 = vadd.f32 %v1091_v51, %v6156_v5  ;;  %v1162_v29 = vadd.f32 %v5091_v25, %v6170_v19  ;;  %1430 = vrot.lane.b32.xlu1 %v1182_v18, %s5760_s17  ;;  %v1093_v32 = vpop.f32.mrb[7].mxu0  ;;  %v1153_v53 = vpop.f32.mrb[3].mxu1 }
 0x25d   : > { %v1094_v39 = vadd.f32 %v1093_v32, %v6160_v8  ;;  %v1154_v61 = vadd.f32 %v1153_v53, %v6170_v19  ;;  %1553 = vrot.lane.b32.xlu0 %v1182_v18, %s5761_s23 }
 0x25e   : > { %v6185_v1 = vpack.c.bf16 %v1092_v28, %v1088_v26  ;;  %v6187_v41 = vpack.c.bf16 %v1162_v29, %v1159_v27 }
 0x25f   : > { %v1707_v42 = vpack.c.bf16 %v1094_v39, %v1090_v37  ;;  %v6189_v45 = vpack.c.bf16 %v1154_v61, %v1151_v38 }
 0x260   : > { %1428 = vrot.lane.b32.xlu1 %v1181_v17, %s5760_s17 }
 0x261   : > { %1829 = vrot.lane.b32.xlu0 %v1707_v42, %s5759_s24  ;;  %v1097_v46 = vpop.f32.mrb[8].mxu0  ;;  %5099 = vmatmul.mubr.msk.bf16.vlgmr.msra.gmra.mrb[8].mxu1 %vm1184_vm7, %v1181_v17  ;;  %v1713_v12 = vsel %vm1184_vm7, %v1707_v42, 0 }
 0x262   : > { %v1099_v47 = vpop.f32.mrb[9].mxu0  ;;  %5103 = vmatpush3.bf16.msra.mxu1 %v6189_v45  ;;  %5104 = vmatprep.mubr.msk.bf16.mxu1 %vm5758_vm6, %v7268_v62  ;;  %v1098_v49 = vadd.f32 %v1097_v46, %v6156_v5 }
 0x263   : > { %v1101_v48 = vpop.f32.mrb[10].mxu0  ;;  %5114 = vmatprep.subr.bf16.mxu1 %v7268_v62  ;;  %v1100_v56 = vadd.f32 %v1099_v47, %v6160_v8 }
 0x264   : > { %v1102_v54 = vadd.f32 %v1101_v48, %v6156_v5  ;;  %1551 = vrot.lane.b32.xlu1 %v1181_v17, %s5761_s23  ;;  %v1103_v55 = vpop.f32.mrb[11].mxu0 }
 0x265   : > { %v1104_v59 = vadd.f32 %v1103_v55, %v6160_v8  ;;  %1953 = vrot.lane.b32.xlu0 %v1707_v42, %s5760_s17 }
 0x266   : > { %v6204_v60 = vpack.c.bf16 %v1102_v54, %v1098_v49 }
 0x267   : > { %v6206_v63 = vpack.c.bf16 %v1104_v59, %v1100_v56 }
 0x268   : > { %1826 = vrot.lane.b32.xlu1 %v6185_v1, %s5759_s24 }
 0x269   : > { %2076 = vrot.lane.b32.xlu0 %v1707_v42, %s5761_s23  ;;  %v2234_v47 = vsel %vm1184_vm7, %v6206_v63, 0 }
 0x26c   : > { %1951 = vrot.lane.b32.xlu1 %v6185_v1, %s5760_s17 }
 0x26d   : > { %2350 = vrot.lane.b32.xlu0 %v6206_v63, %s5759_s24 }
 0x270   : > { %2074 = vrot.lane.b32.xlu1 %v6185_v1, %s5761_s23 }
 0x271   : > { %2474 = vrot.lane.b32.xlu0 %v6206_v63, %s5760_s17 }
 0x274   : > { %2347 = vrot.lane.b32.xlu1 %v6204_v60, %s5759_s24 }
 0x275   : > { %2597 = vrot.lane.b32.xlu0 %v6206_v63, %s5761_s23 }
 0x278   : > { %2472 = vrot.lane.b32.xlu1 %v6204_v60, %s5760_s17 }
 0x27c   : > { %2595 = vrot.lane.b32.xlu1 %v6204_v60, %s5761_s23 }
 0x2ca   : > { %v1304_v0 = vpop.permute.xlu1 %1303 }
 0x2cb   : > { %v1307_v2 = vpop.permute.xlu0 %1306 }
 0x2cc   : > { %v1312_v3 = vsel %vm1184_vm7, %v1307_v2, 0 }
 0x2cd   : > { %5109 = vmatpush3.bf16.xpose.msra.mxu0 %v1312_v3 }
 0x2ce   : > { %5120 = vmatprep.subr.bf16.mxu0 %v7268_v62  ;;  %v1431_v52 = vpop.permute.xlu1 %1430 }
 0x2cf   : > { %v1436_v4 = vsel %vm1184_vm7, %v1431_v52, 0  ;;  %v1554_v7 = vpop.permute.xlu0 %1553 }
 0x2d0   : > { %v1559_v10 = vsel %vm1184_vm7, %v1554_v7, 0 }
 0x2d2   : > { %v1429_v9 = vpop.permute.xlu1 %1428 }
 0x2d3   : > { %v1830_v13 = vpop.permute.xlu0 %1829 }
 0x2d4   : > { %5111 = vmatmul.mubr.msk.bf16.vlgmr.msra.gmra.mrb[16].mxu0 %vm1184_vm7, %v1304_v0  ;;  %v1835_v43 = vsel %vm1184_vm7, %v1830_v13, 0 }
 0x2d5   : > { %5121 = vmatpush3.bf16.xpose.msra.mxu0 %v1436_v4  ;;  %5122 = vmatprep.mubr.msk.bf16.mxu0 %vm5758_vm6, %v7268_v62 }
 0x2d6   : > { %5132 = vmatprep.subr.bf16.mxu0 %v7268_v62  ;;  %v1552_v11 = vpop.permute.xlu1 %1551 }
 0x2da   : > { %v1827_v39 = vpop.permute.xlu1 %1826 }
 0x2dc   : > { %5123 = vmatmul.mubr.msk.bf16.vlgmr.msra.gmra.mrb[20].mxu0 %vm1184_vm7, %v1429_v9 }
 0x2dd   : > { %5133 = vmatpush3.bf16.xpose.msra.mxu0 %v1559_v10  ;;  %5134 = vmatprep.mubr.msk.bf16.mxu0 %vm5758_vm6, %v7268_v62 }
 0x2de   : > { %5144 = vmatprep.subr.bf16.mxu0 %v7268_v62 }
 0x2e4   : > { %5135 = vmatmul.mubr.msk.bf16.vlgmr.msra.gmra.mrb[24].mxu0 %vm1184_vm7, %v1552_v11 }
 0x2e5   : > { %5145 = vmatpush3.bf16.xpose.msra.mxu0 %v1713_v12  ;;  %5146 = vmatprep.mubr.msk.bf16.mxu0 %vm5758_vm6, %v7268_v62 }
 0x2e6   : > { %5156 = vmatprep.subr.bf16.mxu0 %v7268_v62 }
 0x2e9   : > { %v1107_v14 = vpop.f32.mrb[12].mxu0  ;;  %v5094_v15 = vpop.f32.mrb[4].mxu1 }
 0x2ea   : > { %v1109_v16 = vpop.f32.mrb[13].mxu0  ;;  %v1166_v17 = vpop.f32.mrb[5].mxu1  ;;  %v1108_v20 = vadd.f32 %v1107_v14, %v6156_v5  ;;  %v1175_v21 = vadd.f32 %v5094_v15, %v6170_v19 }
 0x2eb   : > { %v1111_v18 = vpop.f32.mrb[14].mxu0  ;;  %v5095_v24 = vpop.f32.mrb[6].mxu1  ;;  %v1110_v25 = vadd.f32 %v1109_v16, %v6160_v8  ;;  %v1167_v29 = vadd.f32 %v1166_v17, %v6170_v19 }
 0x2ec   : > { %v1112_v23 = vadd.f32 %v1111_v18, %v6156_v5  ;;  %v1113_v51 = vpop.f32.mrb[15].mxu0  ;;  %5147 = vmatmul.mubr.msk.bf16.vlgmr.msra.gmra.mrb[28].mxu0 %vm1184_vm7, %v6185_v1  ;;  %v1178_v26 = vadd.f32 %v5095_v24, %v6170_v19  ;;  %v1169_v28 = vpop.f32.mrb[7].mxu1 }
 0x2ed   : > { %v1114_v27 = vadd.f32 %v1113_v51, %v6160_v8  ;;  %5157 = vmatpush3.bf16.xpose.msra.mxu0 %v1835_v43  ;;  %5158 = vmatprep.mubr.msk.bf16.mxu0 %vm5758_vm6, %v7268_v62  ;;  %v1170_v5 = vadd.f32 %v1169_v28, %v6170_v19  ;;  %v1954_v8 = vpop.permute.xlu0 %1953  ;;  %v1952_v1 = vpop.permute.xlu1 %1951 }
 0x2ee   : > { %v6256_v32 = vpack.c.bf16 %v1112_v23, %v1108_v20  ;;  %5168 = vmatprep.subr.bf16.mxu0 %v7268_v62  ;;  %v6260_v53 = vpack.c.bf16 %v1178_v26, %v1175_v21  ;;  %v1959_v61 = vsel %vm1184_vm7, %v1954_v8, 0 }
 0x2ef   : > { %v2749_v37 = vpack.c.bf16 %v1114_v27, %v1110_v25  ;;  %v6262_v38 = vpack.c.bf16 %v1170_v5, %v1167_v29 }
 0x2f0   : > { %2868 = vrot.lane.b32.xlu1 %v6256_v32, %s5759_s24 }
 0x2f1   : > { %2871 = vrot.lane.b32.xlu0 %v2749_v37, %s5759_s24  ;;  %v2077_v19 = vpop.permute.xlu0 %2076  ;;  %v2075_v46 = vpop.permute.xlu1 %2074  ;;  %v2755_v0 = vsel %vm1184_vm7, %v2749_v37, 0 }
 0x2f2   : > { %v2082_v42 = vsel %vm1184_vm7, %v2077_v19, 0 }
 0x2f4   : > { %2993 = vrot.lane.b32.xlu1 %v6256_v32, %s5760_s17  ;;  %5159 = vmatmul.mubr.msk.bf16.vlgmr.msra.gmra.mrb[32].mxu0 %vm1184_vm7, %v1827_v39 }
 0x2f5   : > { %2995 = vrot.lane.b32.xlu0 %v2749_v37, %s5760_s17  ;;  %5169 = vmatpush3.bf16.xpose.msra.mxu0 %v1959_v61  ;;  %v2351_v48 = vpop.permute.xlu0 %2350  ;;  %v2348_v54 = vpop.permute.xlu1 %2347 }
 0x2f6   : > { %5170 = vmatprep.mubr.msk.bf16.mxu0 %vm5758_vm6, %v7268_v62  ;;  %5180 = vmatprep.subr.bf16.mxu0 %v7268_v62 }
 0x2f8   : > { %3116 = vrot.lane.b32.xlu1 %v6256_v32, %s5761_s23 }
 0x2f9   : > { %3118 = vrot.lane.b32.xlu0 %v2749_v37, %s5761_s23  ;;  %v2475_v49 = vpop.permute.xlu0 %2474  ;;  %v2473_v59 = vpop.permute.xlu1 %2472 }
 0x2fa   : > { %v2480_v55 = vsel %vm1184_vm7, %v2475_v49, 0 }
 0x2fc   : > { %1504 = vrot.lane.b32.xlu1 %v6189_v45, %s5760_s17  ;;  %5171 = vmatmul.mubr.msk.bf16.vlgmr.msra.gmra.mrb[36].mxu0 %vm1184_vm7, %v1952_v1 }
 0x2fd   : > { %1381 = vrot.lane.b32.xlu0 %v6189_v45, %s5759_s24  ;;  %5181 = vmatpush3.bf16.xpose.msra.mxu0 %v2082_v42  ;;  %v2598_v56 = vpop.permute.xlu0 %2597  ;;  %v2596_v63 = vpop.permute.xlu1 %2595 }
 0x2fe   : > { %5182 = vmatprep.mubr.msk.bf16.mxu0 %vm5758_vm6, %v7268_v62  ;;  %5192 = vmatprep.subr.bf16.mxu0 %v7268_v62 }
 0x300   : > { %2027 = vrot.lane.b32.xlu1 %v6187_v41, %s5760_s17 }
 0x301   : > { %1627 = vrot.lane.b32.xlu0 %v6189_v45, %s5761_s23  ;;  %v2356_v45 = vsel %vm1184_vm7, %v2351_v48, 0 }
 0x304   : > { %5183 = vmatmul.mubr.msk.bf16.vlgmr.msra.gmra.mrb[40].mxu0 %vm1184_vm7, %v2075_v46 }
 0x305   : > { %1904 = vrot.lane.b32.xlu0 %v6187_v41, %s5759_s24  ;;  %5193 = vmatpush3.bf16.xpose.msra.mxu0 %v2234_v47 }
 0x306   : > { %5194 = vmatprep.mubr.msk.bf16.mxu0 %vm5758_vm6, %v7268_v62  ;;  %5204 = vmatprep.subr.bf16.mxu0 %v7268_v62 }
 0x309   : > { %2150 = vrot.lane.b32.xlu0 %v6187_v41, %s5761_s23 }
 0x30c   : > { %5195 = vmatmul.mubr.msk.bf16.vlgmr.msra.gmra.mrb[44].mxu0 %vm1184_vm7, %v6204_v60  ;;  %v2603_v60 = vsel %vm1184_vm7, %v2598_v56, 0 }
 0x30d   : > { %5205 = vmatpush3.bf16.xpose.msra.mxu0 %v2356_v45  ;;  %5206 = vmatprep.mubr.msk.bf16.mxu0 %vm5758_vm6, %v7268_v62 }
 0x30e   : > { %5216 = vmatprep.subr.bf16.mxu0 %v7268_v62 }
 0x314   : > { %5207 = vmatmul.mubr.msk.bf16.vlgmr.msra.gmra.mrb[48].mxu0 %vm1184_vm7, %v2348_v54 }
 0x315   : > { %5217 = vmatpush3.bf16.xpose.msra.mxu0 %v2480_v55  ;;  %5218 = vmatprep.mubr.msk.bf16.mxu0 %vm5758_vm6, %v7268_v62 }
 0x316   : > { %5228 = vmatprep.subr.bf16.mxu0 %v7268_v62 }
 0x31c   : > { %5219 = vmatmul.mubr.msk.bf16.vlgmr.msra.gmra.mrb[52].mxu0 %vm1184_vm7, %v2473_v59 }
 0x31d   : > { %5229 = vmatpush3.bf16.xpose.msra.mxu0 %v2603_v60  ;;  %5230 = vmatprep.mubr.msk.bf16.mxu0 %vm5758_vm6, %v7268_v62 }
 0x31e   : > { %5240 = vmatprep.subr.bf16.mxu0 %v7268_v62 }
 0x324   : > { %5231 = vmatmul.mubr.msk.bf16.vlgmr.msra.gmra.mrb[56].mxu0 %vm1184_vm7, %v2596_v63 }
 0x325   : > { %5241 = vmatpush3.bf16.xpose.msra.mxu0 %v2755_v0  ;;  %5242 = vmatprep.mubr.msk.bf16.mxu0 %vm5758_vm6, %v7268_v62 }
 0x326   : > { %5252 = vmatprep.subr.bf16.mxu0 %v7268_v62 }
 0x32c   : > { %5243 = vmatmul.mubr.msk.bf16.vlgmr.msra.gmra.mrb[60].mxu0 %vm1184_vm7, %v6256_v32 }
 0x32d   : > { %5254 = vmatprep.mubr.msk.bf16.mxu0 %vm5758_vm6, %v7268_v62 }
 0x334   : > { %v1225_v2 = vpop.f32.mrb[8].mxu1 }
 0x335   : > { %v6326_v3 = vmul.f32 0.17677669, %v1225_v2  ;;  %v5100_v52 = vpop.f32.mrb[9].mxu1 }
 0x336   : > { %v1228_v4 = vpop.f32.mrb[10].mxu1 }
 0x337   : > { %v6328_v7 = vmul.f32 0.17677669, %v1228_v4  ;;  %v5101_v9 = vpop.f32.mrb[11].mxu1  ;;  %v1235_v10 = vsel %vm1234_vm8, %v6326_v3, -inf }
 0x338   : > { %1236 = vmax.xlane.f32.xlu0 %v1235_v10 }
 0x339   : > { %v1238_v11 = vsel %vm1234_vm8, %v6328_v7, -inf }
 0x33a   : > { %1239 = vmax.xlane.f32.xlu1 %v1238_v11 }
 0x362   : > { %v2869_v15 = vpop.permute.xlu1 %2868 }
 0x363   : > { %v2872_v12 = vpop.permute.xlu0 %2871 }
 0x364   : > { %v2877_v13 = vsel %vm1184_vm7, %v2872_v12, 0 }
 0x365   : > { %5253 = vmatpush3.bf16.xpose.msra.mxu0 %v2877_v13 }
 0x366   : > { %5264 = vmatprep.subr.bf16.mxu0 %v7268_v62  ;;  %v2994_v18 = vpop.permute.xlu1 %2993 }
 0x367   : > { %v2996_v14 = vpop.permute.xlu0 %2995 }
 0x368   : > { %v3001_v16 = vsel %vm1184_vm7, %v2996_v14, 0 }
 0x36a   : > { %v3117_v20 = vpop.permute.xlu1 %3116 }
 0x36b   : > { %v3119_v17 = vpop.permute.xlu0 %3118 }
 0x36c   : > { %5255 = vmatmul.mubr.msk.bf16.vlgmr.msra.gmra.mrb[64].mxu0 %vm1184_vm7, %v2869_v15  ;;  %v3124_v43 = vsel %vm1184_vm7, %v3119_v17, 0 }
 0x36d   : > { %5265 = vmatpush3.bf16.xpose.msra.mxu0 %v3001_v16  ;;  %5266 = vmatprep.mubr.msk.bf16.mxu0 %vm5758_vm6, %v7268_v62 }
 0x36e   : > { %5276 = vmatprep.subr.bf16.mxu0 %v7268_v62 }
 0x36f   : > { %v6354_v29 = vpop.permute.xlu0 %1381 }
 0x373   : > { %v6364_v42 = vpop.permute.xlu0 %1627 }
 0x374   : > { %5267 = vmatmul.mubr.msk.bf16.vlgmr.msra.gmra.mrb[68].mxu0 %vm1184_vm7, %v2994_v18 }
 0x375   : > { %5277 = vmatpush3.bf16.xpose.msra.mxu0 %v3124_v43  ;;  %5278 = vmatprep.mubr.msk.bf16.mxu0 %vm5758_vm6, %v7268_v62 }
 0x377   : > { %v6372_v56 = vpop.permute.xlu0 %1904 }
 0x37b   : > { %v6378_v2 = vpop.permute.xlu0 %2150 }
 0x37c   : > { %5279 = vmatmul.mubr.msk.bf16.vlgmr.msra.gmra.mrb[72].mxu0 %vm1184_vm7, %v3117_v20 }
 0x3a7   : > { %v1348_v21 = vpop.f32.mrb[16].mxu0 }
 0x3a8   : > { %v6346_v23 = vmul.f32 0.17677669, %v1348_v21  ;;  %v5112_v24 = vpop.f32.mrb[17].mxu0 }
 0x3a9   : > { %v1351_v51 = vpop.f32.mrb[18].mxu0 }
 0x3aa   : > { %v6348_v25 = vmul.f32 0.17677669, %v1351_v51  ;;  %v5113_v26 = vpop.f32.mrb[19].mxu0  ;;  %v1357_v27 = vsel %vm1234_vm8, %v6346_v23, -inf }
 0x3ab   : > { %1358 = vmax.xlane.f32.xlu0 %v1357_v27 }
 0x3ac   : > { %v1360_v28 = vsel %vm1234_vm8, %v6348_v25, -inf }
 0x3af   : > { %1361 = vmax.xlane.f32.xlu0 %v1360_v28  ;;  %v1472_v32 = vpop.f32.mrb[20].mxu0 }
 0x3b0   : > { %v6356_v5 = vmul.f32 0.17677669, %v1472_v32  ;;  %v5124_v37 = vpop.f32.mrb[21].mxu0 }
 0x3b1   : > { %v1475_v8 = vpop.f32.mrb[22].mxu0 }
 0x3b2   : > { %v6358_v39 = vmul.f32 0.17677669, %v1475_v8  ;;  %v5125_v61 = vpop.f32.mrb[23].mxu0  ;;  %v1481_v19 = vsel %vm1234_vm8, %v6356_v5, -inf }
 0x3b3   : > { %1482 = vmax.xlane.f32.xlu0 %v1481_v19 }
 0x3b4   : > { %v1484_v1 = vsel %vm1234_vm8, %v6358_v39, -inf }
 0x3b5   : > { %1485 = vmax.xlane.f32.xlu1 %v1484_v1 }
 0x3b7   : > { %v1595_v46 = vpop.f32.mrb[24].mxu0 }
 0x3b8   : > { %v6366_v47 = vmul.f32 0.17677669, %v1595_v46  ;;  %v5136_v48 = vpop.f32.mrb[25].mxu0 }
 0x3b9   : > { %v1598_v45 = vpop.f32.mrb[26].mxu0  ;;  %v6405_v48 = vpop.permute.xlu1 %1504 }
 0x3ba   : > { %v6368_v49 = vmul.f32 0.17677669, %v1598_v45  ;;  %v5137_v54 = vpop.f32.mrb[27].mxu0  ;;  %v1604_v55 = vsel %vm1234_vm8, %v6366_v47, -inf }
 0x3bb   : > { %1605 = vmax.xlane.f32.xlu0 %v1604_v55 }
 0x3bc   : > { %v1607_v59 = vsel %vm1234_vm8, %v6368_v49, -inf }
 0x3bd   : > { %1608 = vmax.xlane.f32.xlu1 %v1607_v59 }
 0x3bf   : > { %v1749_v60 = vpop.f32.mrb[28].mxu0 }
 0x3c0   : > { %v6376_v63 = vmul.f32 0.17677669, %v1749_v60  ;;  %v5148_v0 = vpop.f32.mrb[29].mxu0 }
 0x3c1   : > { %v1752_v52 = vpop.f32.mrb[30].mxu0 }
 0x3c2   : > { %v6380_v4 = vmul.f32 0.17677669, %v1752_v52  ;;  %v5149_v9 = vpop.f32.mrb[31].mxu0  ;;  %v1758_v10 = vsel %vm1234_vm8, %v6376_v63, -inf  ;;  %v6411_v52 = vpop.permute.xlu1 %2027 }
 0x3c3   : > { %1759 = vmax.xlane.f32.xlu0 %v1758_v10 }
 0x3c4   : > { %v1761_v11 = vsel %vm1234_vm8, %v6380_v4, -inf }
 0x3c5   : > { %1762 = vmax.xlane.f32.xlu1 %v1761_v11  ;;  %v1237_v12 = vpop.xlane.xlu0 %1236 }
 0x3c6   : > { %v1241_v13 = vsub.f32 %v6326_v3, %v1237_v12 }
 0x3c7   : > { %v1871_v14 = vpop.f32.mrb[32].mxu0  ;;  %v1240_v12 = vpop.xlane.xlu1 %1239 }
 0x3c8   : > { %v1243_v15 = vmul.f32 1.442695, %v1241_v13  ;;  %v6387_v16 = vmul.f32 0.17677669, %v1871_v14  ;;  %v5160_v17 = vpop.f32.mrb[33].mxu0 }
 0x3c9   : > { %v1874_v18 = vpop.f32.mrb[34].mxu0  ;;  %v1242_v17 = vsub.f32 %v6328_v7, %v1240_v12 }
 0x3ca   : > { %5540 = vpow2.f32 %v1243_v15  ;;  %v5161_v43 = vpop.f32.mrb[35].mxu0  ;;  %v1880_v20 = vsel %vm1234_vm8, %v6387_v16, -inf }
 0x3cb   : > { %1881 = vmax.xlane.f32.xlu0 %v1880_v20  ;;  %v1245_v20 = vmul.f32 1.442695, %v1242_v17 }
 0x3cd   : > { %5542 = vpow2.f32 %v1245_v20 }
 0x3cf   : > { %v1995_v21 = vpop.f32.mrb[36].mxu0 }
 0x3d0   : > { %v6391_v24 = vmul.f32 0.17677669, %v1995_v21  ;;  %v5172_v51 = vpop.f32.mrb[37].mxu0 }
 0x3d1   : > { %v1998_v26 = vpop.f32.mrb[38].mxu0 }
 0x3d2   : > { %v5173_v27 = vpop.f32.mrb[39].mxu0  ;;  %v2004_v3 = vsel %vm1234_vm8, %v6391_v24, -inf }
 0x3d3   : > { %2005 = vmax.xlane.f32.xlu0 %v2004_v3 }
 0x3d4   : > { %v6395_v28 = vpop.eup %5540 }
 0x3d5   : > { %v1247_v32 = vsel %vm1234_vm8, %v6395_v28, 0.0 }
 0x3d6   : > { %2425 = vrot.lane.b32.xlu1 %v6262_v38, %s5759_s24 }
 0x3d7   : > { %v2118_v37 = vpop.f32.mrb[40].mxu0  ;;  %1248 = vadd.xlane.f32.xlu0 %v1247_v32 }
 0x3d8   : > { %v6401_v8 = vmul.f32 0.17677669, %v2118_v37  ;;  %v5184_v61 = vpop.f32.mrb[41].mxu0  ;;  %v6422_v37 = vmul.f32 0.17677669, %v1874_v18 }
 0x3d9   : > { %v2121_v19 = vpop.f32.mrb[42].mxu0 }
 0x3da   : > { %v5185_v1 = vpop.f32.mrb[43].mxu0  ;;  %v2127_v46 = vsel %vm1234_vm8, %v6401_v8, -inf }
 0x3db   : > { %2128 = vmax.xlane.f32.xlu0 %v2127_v46 }
 0x3df   : > { %v2270_v45 = vpop.f32.mrb[44].mxu0 }
 0x3e0   : > { %v6407_v54 = vmul.f32 0.17677669, %v2270_v45  ;;  %v5196_v55 = vpop.f32.mrb[45].mxu0  ;;  %v6426_v45 = vmul.f32 0.17677669, %v1998_v26 }
 0x3e1   : > { %v2273_v59 = vpop.f32.mrb[46].mxu0  ;;  %v1883_v55 = vsel %vm1234_vm8, %v6422_v37, -inf }
 0x3e2   : > { %v5197_v60 = vpop.f32.mrb[47].mxu0  ;;  %v2279_v0 = vsel %vm1234_vm8, %v6407_v54, -inf  ;;  %v2007_v18 = vsel %vm1234_vm8, %v6426_v45, -inf }
 0x3e3   : > { %2280 = vmax.xlane.f32.xlu0 %v2279_v0 }
 0x3e7   : > { %v2392_v9 = vpop.f32.mrb[48].mxu0 }
 0x3e8   : > { %v6413_v10 = vmul.f32 0.17677669, %v2392_v9  ;;  %v5208_v11 = vpop.f32.mrb[49].mxu0  ;;  %v6434_v9 = vpop.eup %5542 }
 0x3e9   : > { %v2395_v13 = vpop.f32.mrb[50].mxu0  ;;  %v1250_v17 = vsel %vm1234_vm8, %v6434_v9, 0.0 }
 0x3ea   : > { %v5209_v14 = vpop.f32.mrb[51].mxu0  ;;  %v2401_v15 = vsel %vm1234_vm8, %v6413_v10, -inf }
 0x3eb   : > { %2402 = vmax.xlane.f32.xlu0 %v2401_v15  ;;  %v6438_v14 = vmul.f32 0.17677669, %v2121_v19 }
 0x3ef   : > { %v2516_v43 = vpop.f32.mrb[52].mxu0 }
 0x3f0   : > { %v6418_v21 = vmul.f32 0.17677669, %v2516_v43  ;;  %v5220_v51 = vpop.f32.mrb[53].mxu0 }
 0x3f1   : > { %v2519_v27 = vpop.f32.mrb[54].mxu0  ;;  %v6444_v51 = vmul.f32 0.17677669, %v2273_v59 }
 0x3f2   : > { %v5221_v3 = vpop.f32.mrb[55].mxu0  ;;  %v2525_v32 = vsel %vm1234_vm8, %v6418_v21, -inf }
 0x3f3   : > { %2526 = vmax.xlane.f32.xlu0 %v2525_v32  ;;  %v2130_v3 = vsel %vm1234_vm8, %v6438_v14, -inf  ;;  %v6448_v32 = vmul.f32 0.17677669, %v2395_v13  ;;  %v2282_v19 = vsel %vm1234_vm8, %v6444_v51, -inf }
 0x3f7   : > { %v2639_v61 = vpop.f32.mrb[56].mxu0 }
 0x3f8   : > { %v6424_v1 = vmul.f32 0.17677669, %v2639_v61  ;;  %v5232_v46 = vpop.f32.mrb[57].mxu0  ;;  %v6452_v61 = vmul.f32 0.17677669, %v2519_v27 }
 0x3f9   : > { %v2642_v7 = vpop.f32.mrb[58].mxu0  ;;  %v2404_v46 = vsel %vm1234_vm8, %v6448_v32, -inf }
 0x3fa   : > { %1884 = vmax.xlane.f32.xlu1 %v1883_v55  ;;  %v5233_v60 = vpop.f32.mrb[59].mxu0  ;;  %v2648_v0 = vsel %vm1234_vm8, %v6424_v1, -inf  ;;  %v6456_v55 = vmul.f32 0.17677669, %v2642_v7  ;;  %v2528_v59 = vsel %vm1234_vm8, %v6452_v61, -inf }
 0x3fb   : > { %2649 = vmax.xlane.f32.xlu0 %v2648_v0 }
 0x3fc   : > { %v2651_v13 = vsel %vm1234_vm8, %v6456_v55, -inf }
 0x3fe   : > { %2008 = vmax.xlane.f32.xlu1 %v2007_v18 }
 0x3ff   : > { %v2791_v11 = vpop.f32.mrb[60].mxu0 }
 0x400   : > { %v6436_v12 = vmul.f32 0.17677669, %v2791_v11  ;;  %v5244_v26 = vpop.f32.mrb[61].mxu0 }
 0x401   : > { %v2794_v15 = vpop.f32.mrb[62].mxu0 }
 0x402   : > { %1251 = vadd.xlane.f32.xlu1 %v1250_v17  ;;  %v5245_v43 = vpop.f32.mrb[63].mxu0  ;;  %v2800_v20 = vsel %vm1234_vm8, %v6436_v12, -inf  ;;  %v6460_v60 = vmul.f32 0.17677669, %v2794_v15 }
 0x403   : > { %2801 = vmax.xlane.f32.xlu0 %v2800_v20 }
 0x404   : > { %v2803_v27 = vsel %vm1234_vm8, %v6460_v60, -inf }
 0x406   : > { %2131 = vmax.xlane.f32.xlu1 %v2130_v3 }
 0x40a   : > { %2283 = vmax.xlane.f32.xlu1 %v2282_v19 }
 0x40e   : > { %2405 = vmax.xlane.f32.xlu1 %v2404_v46 }
 0x412   : > { %2529 = vmax.xlane.f32.xlu1 %v2528_v59 }
 0x416   : > { %2652 = vmax.xlane.f32.xlu1 %v2651_v13 }
 0x41a   : > { %2804 = vmax.xlane.f32.xlu1 %v2803_v27 }
 0x438   : > { %v1359_v0 = vpop.xlane.xlu0 %1358 }
 0x439   : > { %v1363_v17 = vsub.f32 %v6346_v23, %v1359_v0 }
 0x43b   : > { %v1365_v27 = vmul.f32 1.442695, %v1363_v17 }
 0x43c   : > { %v1362_v18 = vpop.xlane.xlu0 %1361 }
 0x43d   : > { %v1364_v46 = vsub.f32 %v6348_v25, %v1362_v18  ;;  %5544 = vpow2.f32 %v1365_v27 }
 0x43f   : > { %v2913_v11 = vpop.f32.mrb[64].mxu0  ;;  %v1367_v23 = vmul.f32 1.442695, %v1364_v46 }
 0x440   : > { %v6466_v26 = vmul.f32 0.17677669, %v2913_v11  ;;  %v5256_v7 = vpop.f32.mrb[65].mxu0  ;;  %v1483_v20 = vpop.xlane.xlu0 %1482 }
 0x441   : > { %v2916_v43 = vpop.f32.mrb[66].mxu0  ;;  %v1487_v11 = vsub.f32 %v6356_v5, %v1483_v20  ;;  %5546 = vpow2.f32 %v1367_v23 }
 0x442   : > { %v6469_v15 = vmul.f32 0.17677669, %v2916_v43  ;;  %v5257_v3 = vpop.f32.mrb[67].mxu0  ;;  %v2922_v19 = vsel %vm1234_vm8, %v6466_v26, -inf  ;;  %v1486_v59 = vpop.xlane.xlu1 %1485 }
 0x443   : > { %2923 = vmax.xlane.f32.xlu0 %v2922_v19  ;;  %v1488_v0 = vsub.f32 %v6358_v39, %v1486_v59  ;;  %v1489_v6 = vmul.f32 1.442695, %v1487_v11 }
 0x444   : > { %v2925_v13 = vsel %vm1234_vm8, %v6469_v15, -inf }
 0x445   : > { %2926 = vmax.xlane.f32.xlu1 %v2925_v13  ;;  %v1491_v20 = vmul.f32 1.442695, %v1488_v0  ;;  %5548 = vpow2.f32 %v1489_v6 }
 0x447   : > { %v3037_v7 = vpop.f32.mrb[68].mxu0  ;;  %5550 = vpow2.f32 %v1491_v20 }
 0x448   : > { %v6478_v43 = vmul.f32 0.17677669, %v3037_v7  ;;  %v5268_v3 = vpop.f32.mrb[69].mxu0  ;;  %v1606_v40 = vpop.xlane.xlu0 %1605 }
 0x449   : > { %v1610_v25 = vsub.f32 %v6366_v47, %v1606_v40  ;;  %v3040_v18 = vpop.f32.mrb[70].mxu0  ;;  %v6495_v3 = vpop.eup %5544 }
 0x44a   : > { %v6481_v19 = vmul.f32 0.17677669, %v3040_v18  ;;  %v1609_v22 = vpop.xlane.xlu1 %1608  ;;  %v5269_v17 = vpop.f32.mrb[71].mxu0  ;;  %v3046_v5 = vsel %vm1234_vm8, %v6478_v43, -inf  ;;  %v1369_v20 = vsel %vm1234_vm8, %v6495_v3, 0.0 }
 0x44b   : > { %v1611_v39 = vsub.f32 %v6368_v49, %v1609_v22  ;;  %3047 = vmax.xlane.f32.xlu0 %v3046_v5  ;;  %v1612_v59 = vmul.f32 1.442695, %v1610_v25  ;;  %v6500_v5 = vpop.eup %5546 }
 0x44c   : > { %v3049_v46 = vsel %vm1234_vm8, %v6481_v19, -inf }
 0x44d   : > { %3050 = vmax.xlane.f32.xlu1 %v3049_v46  ;;  %v1614_v40 = vmul.f32 1.442695, %v1611_v39  ;;  %5552 = vpow2.f32 %v1612_v59 }
 0x44f   : > { %v3160_v47 = vpop.f32.mrb[72].mxu0  ;;  %5554 = vpow2.f32 %v1614_v40  ;;  %v6504_v39 = vpop.eup %5548 }
 0x450   : > { %v6488_v13 = vmul.f32 0.17677669, %v3160_v47  ;;  %v5280_v27 = vpop.f32.mrb[73].mxu0  ;;  %v1760_v11 = vpop.xlane.xlu0 %1759  ;;  %v1493_v47 = vsel %vm1234_vm8, %v6504_v39, 0.0 }
 0x451   : > { %v1764_v23 = vsub.f32 %v6376_v63, %v1760_v11  ;;  %v3163_v0 = vpop.f32.mrb[74].mxu0  ;;  %v6508_v59 = vpop.eup %5550 }
 0x452   : > { %v6491_v7 = vmul.f32 0.17677669, %v3163_v0  ;;  %v1763_v22 = vpop.xlane.xlu1 %1762  ;;  %v5281_v49 = vpop.f32.mrb[75].mxu0  ;;  %v3169_v6 = vsel %vm1234_vm8, %v6488_v13, -inf }
 0x453   : > { %v1766_v25 = vmul.f32 1.442695, %v1764_v23  ;;  %v1765_v18 = vsub.f32 %v6380_v4, %v1763_v22  ;;  %3170 = vmax.xlane.f32.xlu0 %v3169_v6  ;;  %v1372_v4 = vsel %vm1234_vm8, %v6500_v5, 0.0  ;;  %v1496_v23 = vsel %vm1234_vm8, %v6508_v59, 0.0 }
 0x454   : > { %v3172_v17 = vsel %vm1234_vm8, %v6491_v7, -inf }
 0x455   : > { %5556 = vpow2.f32 %v1766_v25  ;;  %v1768_v63 = vmul.f32 1.442695, %v1765_v18  ;;  %3173 = vmax.xlane.f32.xlu1 %v3172_v17 }
 0x457   : > { %5558 = vpow2.f32 %v1768_v63  ;;  %1370 = vadd.xlane.f32.xlu0 %v1369_v20  ;;  %v6513_v27 = vpop.eup %5552 }
 0x458   : > { %v1882_v46 = vpop.xlane.xlu0 %1881  ;;  %v1616_v22 = vsel %vm1234_vm8, %v6513_v27, 0.0 }
 0x459   : > { %v1886_v40 = vsub.f32 %v6387_v16, %v1882_v46  ;;  %1373 = vadd.xlane.f32.xlu1 %v1372_v4  ;;  %v6517_v0 = vpop.eup %5554 }
 0x45a   : > { %v1619_v16 = vsel %vm1234_vm8, %v6517_v0, 0.0 }
 0x45b   : > { %v1888_v11 = vmul.f32 1.442695, %v1886_v40  ;;  %1494 = vadd.xlane.f32.xlu0 %v1493_v47  ;;  %v6538_v40 = vpop.permute.xlu1 %2425 }
 0x45d   : > { %5560 = vpow2.f32 %v1888_v11  ;;  %1497 = vadd.xlane.f32.xlu1 %v1496_v23 }
 0x45f   : > { %v6521_v49 = vpop.eup %5556  ;;  %1617 = vadd.xlane.f32.xlu0 %v1616_v22 }
 0x460   : > { %v1770_v25 = vsel %vm1234_vm8, %v6521_v49, 0.0  ;;  %v2006_v20 = vpop.xlane.xlu0 %2005 }
 0x461   : > { %v6525_v6 = vpop.eup %5558  ;;  %1620 = vadd.xlane.f32.xlu1 %v1619_v16  ;;  %v2010_v4 = vsub.f32 %v6391_v24, %v2006_v20 }
 0x462   : > { %v1773_v18 = vsel %vm1234_vm8, %v6525_v6, 0.0 }
 0x463   : > { %1771 = vadd.xlane.f32.xlu0 %v1770_v25  ;;  %v2012_v47 = vmul.f32 1.442695, %v2010_v4 }
 0x464   : > { %v1249_v46 = vpop.xlane.xlu0 %1248 }
 0x465   : > { %1774 = vadd.xlane.f32.xlu1 %v1773_v18  ;;  %5562 = vpow2.f32 %v2012_v47 }
 0x467   : > { %v6531_v17 = vpop.eup %5560 }
 0x468   : > { %v1892_v63 = vsel %vm1234_vm8, %v6531_v17, 0.0  ;;  %v2129_v11 = vpop.xlane.xlu0 %2128 }
 0x469   : > { %1893 = vadd.xlane.f32.xlu1 %v1892_v63  ;;  %v2133_v16 = vsub.f32 %v6401_v8, %v2129_v11 }
 0x46b   : > { %v2135_v62 = vmul.f32 1.442695, %v2133_v16 }
 0x470   : > { %v2281_v58 = vpop.xlane.xlu0 %2280 }
 0x471   : > { %v2285_v20 = vsub.f32 %v6407_v54, %v2281_v58 }
 0x473   : > { %v2287_v11 = vmul.f32 1.442695, %v2285_v20 }
 0x479   : > { %2548 = vrot.lane.b32.xlu0 %v6262_v38, %s5760_s17 }
 0x487   : > { %v1885_v23 = vpop.xlane.xlu1 %1884 }
 0x488   : > { %v1887_v22 = vsub.f32 %v6422_v37, %v1885_v23  ;;  %v6544_v37 = vpop.eup %5562  ;;  %v2403_v23 = vpop.xlane.xlu0 %2402 }
 0x489   : > { %v2407_v54 = vsub.f32 %v6413_v10, %v2403_v23 }
 0x48a   : > { %v1890_v25 = vmul.f32 1.442695, %v1887_v22 }
 0x48b   : > { %v2009_v18 = vpop.xlane.xlu1 %2008  ;;  %v2409_v10 = vmul.f32 1.442695, %v2407_v54 }
 0x48c   : > { %5564 = vpow2.f32 %v1890_v25  ;;  %v2011_v63 = vsub.f32 %v6426_v45, %v2009_v18  ;;  %v2527_v18 = vpop.xlane.xlu0 %2526 }
 0x48d   : > { %5566 = vrcp.f32 %v1249_v46  ;;  %v2531_v23 = vsub.f32 %v6418_v21, %v2527_v18 }
 0x48e   : > { %v2014_v44 = vmul.f32 1.442695, %v2011_v63 }
 0x48f   : > { %v1252_v24 = vpop.xlane.xlu1 %1251 }
 0x490   : > { %5568 = vpow2.f32 %v2014_v44  ;;  %v2016_v44 = vsel %vm1234_vm8, %v6544_v37, 0.0 }
 0x491   : > { %5570 = vrcp.f32 %v1252_v24 }
 0x492   : > { %5572 = vpow2.f32 %v2135_v62 }
 0x493   : > { %v2132_v4 = vpop.xlane.xlu1 %2131 }
 0x494   : > { %v2134_v8 = vsub.f32 %v6438_v14, %v2132_v4 }
 0x496   : > { %v6547_v47 = vpop.eup %5564  ;;  %v2137_v45 = vmul.f32 1.442695, %v2134_v8 }
 0x497   : > { %v2284_v22 = vpop.xlane.xlu1 %2283  ;;  %v1895_v46 = vsel %vm1234_vm8, %v6547_v47, 0.0  ;;  %v5567_v62 = vpop.eup %5566 }
 0x498   : > { %5574 = vpow2.f32 %v2137_v45  ;;  %v2286_v58 = vsub.f32 %v6444_v51, %v2284_v22  ;;  %1896 = vadd.xlane.f32.xlu1 %v1895_v46  ;;  %2017 = vadd.xlane.f32.xlu0 %v2016_v44  ;;  %v1254_v4 = vmul.f32 %v5567_v62, %v6395_v28  ;;  %v2650_v22 = vpop.xlane.xlu0 %2649  ;;  %v7307_v28 = vmov 0.0  }
 0x499   : > { %5576 = vpow2.f32 %v2287_v11 }
 0x49a   : > { %v6555_v14 = vpop.eup %5568  ;;  %v2289_v16 = vmul.f32 1.442695, %v2286_v58 }
 0x49b   : > { %v5571_v25 = vpop.eup %5570  ;;  %v2406_v63 = vpop.xlane.xlu1 %2405  ;;  %v2019_v24 = vsel %vm1234_vm8, %v6555_v14, 0.0 }
 0x49c   : > { %v6559_v20 = vpop.eup %5572  ;;  %v1256_v51 = vmul.f32 %v5571_v25, %v6434_v9  ;;  %v2408_v8 = vsub.f32 %v6448_v32, %v2406_v63  ;;  %2020 = vadd.xlane.f32.xlu1 %v2019_v24  ;;  %5578 = vpow2.f32 %v2289_v16  ;;  %v2533_v9 = vmul.f32 1.442695, %v2531_v23  ;;  %v2802_v54 = vpop.xlane.xlu0 %2801 }
 0x49d   : > { %v2139_v44 = vsel %vm1234_vm8, %v6559_v20, 0.0  ;;  %v2654_v32 = vsub.f32 %v6424_v1, %v2650_v22  ;;  %v2806_v63 = vsub.f32 %v6436_v12, %v2802_v54 }
 0x49e   : > { %v2411_v11 = vmul.f32 1.442695, %v2408_v8  ;;  %v1257_v45 = vpack.c.bf16 %v1256_v51, %v1254_v4 }
 0x49f   : > { %v2530_v46 = vpop.xlane.xlu1 %2529  ;;  %v2656_v18 = vmul.f32 1.442695, %v2654_v32 }
 0x4a0   : > { %5580 = vpow2.f32 %v2411_v11  ;;  %v2532_v58 = vsub.f32 %v6452_v61, %v2530_v46  ;;  %5105 = vmatmul.mubr.msk.bf16.vlgmr.msra.gmra.mrb[12].mxu1 %vm1234_vm8, %v1257_v45  ;;  %2140 = vadd.xlane.f32.xlu1 %v2139_v44 }
 0x4a1   : > { %5115 = vmatpush3.bf16.msra.mxu1 %v6354_v29  ;;  %5116 = vmatprep.mubr.msk.bf16.mxu1 %vm5758_vm6, %v7307_v28  ;;  %5582 = vpow2.f32 %v2409_v10  ;;  %v2808_v10 = vmul.f32 1.442695, %v2806_v63 }
 0x4a2   : > { %v6572_v21 = vpop.eup %5574  ;;  %v2535_v62 = vmul.f32 1.442695, %v2532_v58  ;;  %5126 = vmatprep.subr.bf16.mxu1 %v7307_v28 }
 0x4a3   : > { %v2653_v16 = vpop.xlane.xlu1 %2652  ;;  %v2142_v61 = vsel %vm1234_vm8, %v6572_v21, 0.0  ;;  %v6578_v25 = vpop.eup %5576 }
 0x4a4   : > { %5584 = vpow2.f32 %v2535_v62  ;;  %v2655_v29 = vsub.f32 %v6456_v55, %v2653_v16  ;;  %2143 = vadd.xlane.f32.xlu1 %v2142_v61  ;;  %v2291_v4 = vsel %vm1234_vm8, %v6578_v25, 0.0 }
 0x4a5   : > { %5586 = vpow2.f32 %v2533_v9 }
 0x4a6   : > { %v2658_v24 = vmul.f32 1.442695, %v2655_v29  ;;  %v6584_v51 = vpop.eup %5578 }
 0x4a7   : > { %v2805_v1 = vpop.xlane.xlu1 %2804  ;;  %v2294_v12 = vsel %vm1234_vm8, %v6584_v51, 0.0 }
 0x4a8   : > { %5588 = vpow2.f32 %v2658_v24  ;;  %2292 = vadd.xlane.f32.xlu1 %v2291_v4  ;;  %v2807_v55 = vsub.f32 %v6460_v60, %v2805_v1 }
 0x4a9   : > { %5590 = vpow2.f32 %v2656_v18 }
 0x4aa   : > { %v6586_v8 = vpop.eup %5580  ;;  %5592 = vpow2.f32 %v2808_v10  ;;  %v2810_v22 = vmul.f32 1.442695, %v2807_v55 }
 0x4ab   : > { %v2416_v23 = vsel %vm1234_vm8, %v6586_v8, 0.0  ;;  %v6593_v11 = vpop.eup %5582 }
 0x4ac   : > { %2417 = vadd.xlane.f32.xlu0 %v2416_v23  ;;  %2295 = vadd.xlane.f32.xlu1 %v2294_v12  ;;  %v2413_v60 = vsel %vm1234_vm8, %v6593_v11, 0.0  ;;  %5594 = vpow2.f32 %v2810_v22 }
 0x4ae   : > { %v6595_v45 = vpop.eup %5584 }
 0x4af   : > { %v2540_v46 = vsel %vm1234_vm8, %v6595_v45, 0.0  ;;  %v6601_v44 = vpop.eup %5586 }
 0x4b0   : > { %2541 = vadd.xlane.f32.xlu0 %v2540_v46  ;;  %2414 = vadd.xlane.f32.xlu1 %v2413_v60  ;;  %v2537_v32 = vsel %vm1234_vm8, %v6601_v44, 0.0 }
 0x4b2   : > { %v6603_v58 = vpop.eup %5588 }
 0x4b3   : > { %v2663_v9 = vsel %vm1234_vm8, %v6603_v58, 0.0  ;;  %v6609_v62 = vpop.eup %5590 }
 0x4b4   : > { %2664 = vadd.xlane.f32.xlu0 %v2663_v9  ;;  %2538 = vadd.xlane.f32.xlu1 %v2537_v32  ;;  %v2660_v54 = vsel %vm1234_vm8, %v6609_v62, 0.0  ;;  %v6613_v16 = vpop.eup %5592 }
 0x4b5   : > { %v2812_v61 = vsel %vm1234_vm8, %v6613_v16, 0.0 }
 0x4b6   : > { %v6617_v29 = vpop.eup %5594 }
 0x4b7   : > { %v2815_v18 = vsel %vm1234_vm8, %v6617_v29, 0.0 }
 0x4b8   : > { %2661 = vadd.xlane.f32.xlu1 %v2660_v54 }
 0x4bc   : > { %2813 = vadd.xlane.f32.xlu1 %v2812_v61 }
 0x4c0   : > { %2816 = vadd.xlane.f32.xlu1 %v2815_v18 }
 0x4d0   : > { %v2924_v63 = vpop.xlane.xlu0 %2923 }
 0x4d1   : > { %v2928_v24 = vsub.f32 %v6466_v26, %v2924_v63 }
 0x4d2   : > { %v2927_v1 = vpop.xlane.xlu1 %2926 }
 0x4d3   : > { %v2930_v4 = vmul.f32 1.442695, %v2928_v24  ;;  %v2929_v10 = vsub.f32 %v6469_v15, %v2927_v1 }
 0x4d5   : > { %5596 = vpow2.f32 %v2930_v4  ;;  %v2932_v55 = vmul.f32 1.442695, %v2929_v10 }
 0x4d7   : > { %5598 = vpow2.f32 %v2932_v55 }
 0x4d8   : > { %v3048_v23 = vpop.xlane.xlu0 %3047 }
 0x4d9   : > { %v3052_v12 = vsub.f32 %v6478_v43, %v3048_v23 }
 0x4da   : > { %v3051_v22 = vpop.xlane.xlu1 %3050 }
 0x4db   : > { %v3054_v46 = vmul.f32 1.442695, %v3052_v12  ;;  %v3053_v60 = vsub.f32 %v6481_v19, %v3051_v22 }
 0x4dd   : > { %5600 = vpow2.f32 %v3054_v46  ;;  %v3056_v9 = vmul.f32 1.442695, %v3053_v60 }
 0x4df   : > { %v6625_v32 = vpop.eup %5596  ;;  %5602 = vpow2.f32 %v3056_v9 }
 0x4e0   : > { %v6627_v26 = vpop.xlane.xlu0 %3170  ;;  %v2934_v15 = vsel %vm1234_vm8, %v6625_v32, 0.0 }
 0x4e1   : > { %v6631_v54 = vpop.eup %5598  ;;  %2935 = vadd.xlane.f32.xlu1 %v2934_v15 }
 0x4e2   : > { %v6633_v61 = vpop.xlane.xlu1 %3173  ;;  %v2937_v43 = vsel %vm1234_vm8, %v6631_v54, 0.0 }
 0x4e3   : > { %2938 = vadd.xlane.f32.xlu0 %v2937_v43 }
 0x4e4   : > { %v1371_v19 = vpop.xlane.xlu0 %1370 }
 0x4e5   : > { %5604 = vrcp.f32 %v1371_v19 }
 0x4e6   : > { %v1374_v18 = vpop.xlane.xlu1 %1373 }
 0x4e7   : > { %v6637_v63 = vpop.eup %5600  ;;  %5606 = vrcp.f32 %v1374_v18 }
 0x4e8   : > { %v3058_v24 = vsel %vm1234_vm8, %v6637_v63, 0.0  ;;  %v1495_v55 = vpop.xlane.xlu0 %1494 }
 0x4e9   : > { %v6641_v1 = vpop.eup %5602  ;;  %3059 = vadd.xlane.f32.xlu0 %v3058_v24 }
 0x4ea   : > { %v1498_v4 = vpop.xlane.xlu1 %1497  ;;  %v3061_v10 = vsel %vm1234_vm8, %v6641_v1, 0.0 }
 0x4eb   : > { %3062 = vadd.xlane.f32.xlu1 %v3061_v10  ;;  %5608 = vrcp.f32 %v1498_v4 }
 0x4ec   : > { %5610 = vrcp.f32 %v1495_v55  ;;  %v1618_v9 = vpop.xlane.xlu0 %1617 }
 0x4ee   : > { %v1621_v12 = vpop.xlane.xlu1 %1620 }
 0x4ef   : > { %v5605_v23 = vpop.eup %5604  ;;  %5612 = vrcp.f32 %v1621_v12 }
 0x4f0   : > { %v1376_v46 = vmul.f32 %v5605_v23, %v6495_v3  ;;  %5614 = vrcp.f32 %v1618_v9 }
 0x4f1   : > { %v5607_v22 = vpop.eup %5606 }
 0x4f2   : > { %v1378_v60 = vmul.f32 %v5607_v22, %v6500_v5  ;;  %v1775_v24 = vpop.xlane.xlu1 %1774  ;;  %v1772_v5 = vpop.xlane.xlu0 %1771  ;;  %v3176_v22 = vsub.f32 %v6491_v7, %v6633_v61 }
 0x4f3   : > { %5616 = vrcp.f32 %v1775_v24 }
 0x4f4   : > { %v1379_v15 = vpack.c.bf16 %v1378_v60, %v1376_v46  ;;  %5618 = vrcp.f32 %v1772_v5 }
 0x4f5   : > { %v5609_v43 = vpop.eup %5608 }
 0x4f6   : > { %5117 = vmatmul.mubr.msk.bf16.vlgmr.msra.gmra.mrb[16].mxu1 %vm1234_vm8, %v1379_v15  ;;  %v5611_v19 = vpop.eup %5610  ;;  %v1502_v18 = vmul.f32 %v5609_v43, %v6508_v59 }
 0x4f7   : > { %5127 = vmatpush3.bf16.msra.mxu1 %v6405_v48  ;;  %5128 = vmatprep.mubr.msk.bf16.mxu1 %vm5758_vm6, %v7307_v28  ;;  %v1500_v3 = vmul.f32 %v5611_v19, %v6504_v39 }
 0x4f8   : > { %5138 = vmatprep.subr.bf16.mxu1 %v7307_v28 }
 0x4f9   : > { %v1503_v4 = vpack.c.bf16 %v1502_v18, %v1500_v3  ;;  %v5613_v10 = vpop.eup %5612 }
 0x4fa   : > { %v5615_v48 = vpop.eup %5614  ;;  %v1625_v39 = vmul.f32 %v5613_v10, %v6517_v0 }
 0x4fb   : > { %v1623_v59 = vmul.f32 %v5615_v48, %v6513_v27  ;;  %v3175_v27 = vsub.f32 %v6488_v13, %v6627_v26 }
 0x4fc   : > { %2671 = vrot.lane.b32.xlu1 %v6262_v38, %s5761_s23 }
 0x4fd   : > { %v1626_v55 = vpack.c.bf16 %v1625_v39, %v1623_v59  ;;  %v5617_v23 = vpop.eup %5616  ;;  %v3177_v60 = vmul.f32 1.442695, %v3175_v27 }
 0x4fe   : > { %5129 = vmatmul.mubr.msk.bf16.vlgmr.msra.gmra.mrb[20].mxu1 %vm1234_vm8, %v1503_v4  ;;  %v5619_v12 = vpop.eup %5618 }
 0x4ff   : > { %2946 = vrot.lane.b32.xlu0 %v6260_v53, %s5759_s24  ;;  %5139 = vmatpush3.bf16.msra.mxu1 %v6364_v42  ;;  %v1779_v42 = vmul.f32 %v5617_v23, %v6525_v6  ;;  %v1777_v0 = vmul.f32 %v5619_v12, %v6521_v49  ;;  %5620 = vpow2.f32 %v3177_v60  ;;  %v1894_v6 = vpop.xlane.xlu1 %1893 }
 0x500   : > { %5140 = vmatprep.mubr.msk.bf16.mxu1 %vm5758_vm6, %v7307_v28  ;;  %5150 = vmatprep.subr.bf16.mxu1 %v7307_v28 }
 0x501   : > { %v1780_v46 = vpack.c.bf16 %v1779_v42, %v1777_v0 }
 0x503   : > { %3069 = vrot.lane.b32.xlu0 %v6260_v53, %s5760_s17 }
 0x506   : > { %5141 = vmatmul.mubr.msk.bf16.vlgmr.msra.gmra.mrb[24].mxu1 %vm1234_vm8, %v1626_v55 }
 0x507   : > { %5151 = vmatpush3.bf16.msra.mxu1 %v6187_v41  ;;  %5152 = vmatprep.mubr.msk.bf16.mxu1 %vm5758_vm6, %v7307_v28  ;;  %v3179_v41 = vmul.f32 1.442695, %v3176_v22 }
 0x508   : > { %5162 = vmatprep.subr.bf16.mxu1 %v7307_v28 }
 0x509   : > { %5622 = vpow2.f32 %v3179_v41  ;;  %v6683_v13 = vpop.eup %5620 }
 0x50a   : > { %v3181_v7 = vsel %vm1234_vm8, %v6683_v13, 0.0  ;;  %5624 = vrcp.f32 %v1894_v6 }
 0x50e   : > { %5153 = vmatmul.mubr.msk.bf16.vlgmr.msra.gmra.mrb[28].mxu1 %vm1234_vm8, %v1780_v46 }
 0x50f   : > { %5163 = vmatpush3.bf16.msra.mxu1 %v6372_v56  ;;  %5164 = vmatprep.mubr.msk.bf16.mxu1 %vm5758_vm6, %v7307_v28  ;;  %v6691_v56 = vpop.permute.xlu0 %2548 }
 0x510   : > { %5174 = vmatprep.subr.bf16.mxu1 %v7307_v28 }
 0x513   : > { %v6685_v49 = vpop.eup %5622 }
 0x514   : > { %v3184_v26 = vsel %vm1234_vm8, %v6685_v49, 0.0  ;;  %v5625_v19 = vpop.eup %5624 }
 0x515   : > { %v1899_v24 = vmul.f32 %v5625_v19, %v6531_v17 }
 0x520   : > { %3182 = vadd.xlane.f32.xlu1 %v3181_v7 }
 0x522   : > { %3185 = vadd.xlane.f32.xlu0 %v3184_v26 }
 0x525   : > { %v1897_v61 = vpop.xlane.xlu1 %1896  ;;  %v2018_v9 = vpop.xlane.xlu0 %2017 }
 0x526   : > { %5626 = vrcp.f32 %v1897_v61 }
 0x529   : > { %v2021_v15 = vpop.xlane.xlu1 %2020 }
 0x52a   : > { %5628 = vrcp.f32 %v2021_v15 }
 0x52b   : > { %5630 = vrcp.f32 %v2018_v9 }
 0x52d   : > { %v2141_v43 = vpop.xlane.xlu1 %2140 }
 0x530   : > { %v5627_v18 = vpop.eup %5626 }
 0x531   : > { %v1901_v3 = vmul.f32 %v5627_v18, %v6547_v47  ;;  %v2144_v5 = vpop.xlane.xlu1 %2143 }
 0x532   : > { %5632 = vrcp.f32 %v2144_v5 }
 0x533   : > { %v1902_v4 = vpack.c.bf16 %v1901_v3, %v1899_v24  ;;  %5634 = vrcp.f32 %v2141_v43 }
 0x534   : > { %v5629_v10 = vpop.eup %5628 }
 0x535   : > { %v2293_v48 = vpop.xlane.xlu1 %2292  ;;  %5165 = vmatmul.mubr.msk.bf16.vlgmr.msra.gmra.mrb[32].mxu1 %vm1234_vm8, %v1902_v4  ;;  %v5631_v39 = vpop.eup %5630  ;;  %v2025_v59 = vmul.f32 %v5629_v10, %v6555_v14 }
 0x536   : > { %5175 = vmatpush3.bf16.msra.mxu1 %v6411_v52  ;;  %5176 = vmatprep.mubr.msk.bf16.mxu1 %vm5758_vm6, %v7307_v28  ;;  %v2023_v17 = vmul.f32 %v5631_v39, %v6544_v37 }
 0x537   : > { %5186 = vmatprep.subr.bf16.mxu1 %v7307_v28 }
 0x538   : > { %3192 = vrot.lane.b32.xlu0 %v6260_v53, %s5761_s23  ;;  %v2026_v55 = vpack.c.bf16 %v2025_v59, %v2023_v17 }
 0x539   : > { %v2296_v47 = vpop.xlane.xlu1 %2295  ;;  %v2418_v42 = vpop.xlane.xlu0 %2417 }
 0x53a   : > { %5636 = vrcp.f32 %v2296_v47 }
 0x53b   : > { %5638 = vrcp.f32 %v2293_v48 }
 0x53c   : > { %v5633_v23 = vpop.eup %5632 }
 0x53d   : > { %5177 = vmatmul.mubr.msk.bf16.vlgmr.msra.gmra.mrb[36].mxu1 %vm1234_vm8, %v2026_v55  ;;  %v5635_v52 = vpop.eup %5634  ;;  %v2148_v14 = vmul.f32 %v5633_v23, %v6572_v21  ;;  %v2415_v12 = vpop.xlane.xlu1 %2414 }
 0x53e   : > { %5187 = vmatpush3.bf16.msra.mxu1 %v6378_v2  ;;  %5188 = vmatprep.mubr.msk.bf16.mxu1 %vm5758_vm6, %v7307_v28  ;;  %v2146_v37 = vmul.f32 %v5635_v52, %v6559_v20  ;;  %5640 = vrcp.f32 %v2415_v12  ;;  %v2542_v46 = vpop.xlane.xlu0 %2541 }
 0x53f   : > { %5198 = vmatprep.subr.bf16.mxu1 %v7307_v28  ;;  %5642 = vrcp.f32 %v2418_v42 }
 0x540   : > { %v2149_v27 = vpack.c.bf16 %v2148_v14, %v2146_v37 }
 0x541   : > { %v2539_v21 = vpop.xlane.xlu1 %2538 }
 0x542   : > { %5644 = vrcp.f32 %v2539_v21  ;;  %v2665_v15 = vpop.xlane.xlu0 %2664 }
 0x543   : > { %5646 = vrcp.f32 %v2542_v46 }
 0x544   : > { %v5637_v0 = vpop.eup %5636 }
 0x545   : > { %5189 = vmatmul.mubr.msk.bf16.vlgmr.msra.gmra.mrb[40].mxu1 %vm1234_vm8, %v2149_v27  ;;  %v5639_v22 = vpop.eup %5638  ;;  %v2300_v2 = vmul.f32 %v5637_v0, %v6584_v51 }
 0x546   : > { %5199 = vmatpush3.bf16.msra.mxu1 %v6262_v38  ;;  %5200 = vmatprep.mubr.msk.bf16.mxu1 %vm5758_vm6, %v7307_v28  ;;  %v2298_v20 = vmul.f32 %v5639_v22, %v6578_v25 }
 0x547   : > { %5210 = vmatprep.subr.bf16.mxu1 %v7307_v28 }
 0x548   : > { %v2301_v60 = vpack.c.bf16 %v2300_v2, %v2298_v20  ;;  %v5641_v41 = vpop.eup %5640 }
 0x549   : > { %v5643_v7 = vpop.eup %5642  ;;  %v2420_v38 = vmul.f32 %v5641_v41, %v6593_v11 }
 0x54a   : > { %v2422_v51 = vmul.f32 %v5643_v7, %v6586_v8  ;;  %v2662_v8 = vpop.xlane.xlu1 %2661 }
 0x54b   : > { %5648 = vrcp.f32 %v2662_v8 }
 0x54c   : > { %v2423_v25 = vpack.c.bf16 %v2422_v51, %v2420_v38  ;;  %v5645_v6 = vpop.eup %5644  ;;  %5650 = vrcp.f32 %v2665_v15 }
 0x54d   : > { %5201 = vmatmul.mubr.msk.bf16.vlgmr.msra.gmra.mrb[44].mxu1 %vm1234_vm8, %v2301_v60  ;;  %v5647_v26 = vpop.eup %5646 }
 0x54e   : > { %5211 = vmatpush3.bf16.msra.mxu1 %v6538_v40  ;;  %5212 = vmatprep.mubr.msk.bf16.mxu1 %vm5758_vm6, %v7307_v28  ;;  %v2544_v40 = vmul.f32 %v5645_v6, %v6601_v44  ;;  %v2546_v11 = vmul.f32 %v5647_v26, %v6595_v45  ;;  %v2814_v9 = vpop.xlane.xlu1 %2813 }
 0x54f   : > { %5222 = vmatprep.subr.bf16.mxu1 %v7307_v28 }
 0x550   : > { %v2547_v61 = vpack.c.bf16 %v2546_v11, %v2544_v40 }
 0x555   : > { %5213 = vmatmul.mubr.msk.bf16.vlgmr.msra.gmra.mrb[48].mxu1 %vm1234_vm8, %v2423_v25  ;;  %v5649_v24 = vpop.eup %5648 }
 0x556   : > { %5223 = vmatpush3.bf16.msra.mxu1 %v6691_v56  ;;  %5224 = vmatprep.mubr.msk.bf16.mxu1 %vm5758_vm6, %v7307_v28  ;;  %v2817_v56 = vpop.xlane.xlu1 %2816  ;;  %v5651_v5 = vpop.eup %5650  ;;  %v2667_v4 = vmul.f32 %v5649_v24, %v6609_v62  ;;  %v5436_v24 = vld [vmem:[%s5871_s0] sm:$0xff]  }
 0x557   : > { %5234 = vmatprep.subr.bf16.mxu1 %v7307_v28  ;;  %5652 = vrcp.f32 %v2817_v56  ;;  %v2669_v48 = vmul.f32 %v5651_v5, %v6603_v58  ;;  %5288 = vmatprep.subr.bf16.mxu0 %v5436_v24  ;;  %v5438_v5 = vld [vmem:[%s5871_s0 + $0x10] sm:$0xff]  }
 0x558   : > { %5654 = vrcp.f32 %v2814_v9  ;;  %5289 = vmatpush3.bf16.msra.mxu0 %v5436_v24 }
 0x559   : > { %v2670_v59 = vpack.c.bf16 %v2669_v48, %v2667_v4  ;;  %v5439_v4 = vld [vmem:[%s5871_s0 + $0x18] sm:$0xff]  }
 0x55d   : > { %5225 = vmatmul.mubr.msk.bf16.vlgmr.msra.gmra.mrb[52].mxu1 %vm1234_vm8, %v2547_v61 }
 0x55e   : > { %5236 = vmatprep.mubr.msk.bf16.mxu1 %vm5758_vm6, %v7307_v28 }
 0x561   : > { %v5653_v17 = vpop.eup %5652 }
 0x562   : > { %v5655_v47 = vpop.eup %5654  ;;  %v2821_v62 = vmul.f32 %v5653_v17, %v6617_v29 }
 0x563   : > { %v2819_v58 = vmul.f32 %v5655_v47, %v6613_v16  ;;  %v5442_v47 = vld [vmem:[%s5871_s0 + $0x30] sm:$0xff]  }
 0x565   : > { %v2822_v23 = vpack.c.bf16 %v2821_v62, %v2819_v58 }
 0x56e   : > { %v2936_v19 = vpop.xlane.xlu1 %2935 }
 0x570   : > { %v2939_v10 = vpop.xlane.xlu0 %2938 }
 0x571   : > { %5656 = vrcp.f32 %v2939_v10  ;;  %v5440_v10 = vld [vmem:[%s5871_s0 + $0x20] sm:$0xff]  }
 0x572   : > { %5658 = vrcp.f32 %v2936_v19 }
 0x573   : > { %v6735_v43 = vpop.f32.mrb[12].mxu1 }
 0x574   : > { %v5106_v44 = vpop.f32.mrb[13].mxu1 }
 0x575   : > { %v6737_v18 = vpop.f32.mrb[14].mxu1 }
 0x576   : > { %v5107_v45 = vpop.f32.mrb[15].mxu1  ;;  %v3060_v55 = vpop.xlane.xlu0 %3059 }
 0x578   : > { %v3063_v3 = vpop.xlane.xlu1 %3062 }
 0x579   : > { %5660 = vrcp.f32 %v3063_v3  ;;  %v5437_v3 = vld [vmem:[%s5871_s0 + $0x8] sm:$0xff]  }
 0x57a   : > { %5662 = vrcp.f32 %v3060_v55  ;;  %v2947_v14 = vpop.permute.xlu0 %2946  ;;  %5290 = vmatprep.subr.bf16.mxu0 %v5437_v3 }
 0x57b   : > { %v5657_v52 = vpop.eup %5656  ;;  %5291 = vmatpush3.bf16.msra.mxu0 %v5437_v3 }
 0x57c   : > { %v2672_v39 = vpop.permute.xlu1 %2671  ;;  %v5659_v12 = vpop.eup %5658  ;;  %5292 = vmatprep.subr.bf16.mxu0 %v5438_v5 }
 0x57d   : > { %5235 = vmatpush3.bf16.msra.mxu1 %v2672_v39  ;;  %v2941_v29 = vmul.f32 %v5659_v12, %v6625_v32 }
 0x57e   : > { %5246 = vmatprep.subr.bf16.mxu1 %v7307_v28  ;;  %v3070_v42 = vpop.permute.xlu0 %3069 }
 0x57f   : > { %5293 = vmatpush3.bf16.msra.mxu0 %v5438_v5 }
 0x580   : > { %5237 = vmatmul.mubr.msk.bf16.vlgmr.msra.gmra.mrb[56].mxu1 %vm1234_vm8, %v2670_v59  ;;  %5294 = vmatprep.subr.bf16.mxu0 %v5439_v4  ;;  %v5441_v59 = vld [vmem:[%s5871_s0 + $0x28] sm:$0xff]  }
 0x581   : > { %5247 = vmatpush3.bf16.msra.mxu1 %v6260_v53  ;;  %5248 = vmatprep.mubr.msk.bf16.mxu1 %vm5758_vm6, %v7307_v28  ;;  %v2943_v53 = vmul.f32 %v5657_v52, %v6631_v54  ;;  %v5443_v52 = vld [vmem:[%s5871_s0 + $0x38] sm:$0xff]  }
 0x582   : > { %5258 = vmatprep.subr.bf16.mxu1 %v7307_v28 }
 0x583   : > { %v2944_v37 = vpack.c.bf16 %v2943_v53, %v2941_v29  ;;  %v5661_v16 = vpop.eup %5660  ;;  %5295 = vmatpush3.bf16.msra.mxu0 %v5439_v4 }
 0x584   : > { %v5663_v27 = vpop.eup %5662  ;;  %v3067_v0 = vmul.f32 %v5661_v16, %v6641_v1  ;;  %5296 = vmatprep.subr.bf16.mxu0 %v5440_v10 }
 0x585   : > { %v3065_v54 = vmul.f32 %v5663_v27, %v6637_v63  ;;  %v7308_v63 = vmov 0  }
 0x587   : > { %v3068_v22 = vpack.c.bf16 %v3067_v0, %v3065_v54  ;;  %5297 = vmatpush3.bf16.msra.mxu0 %v5440_v10 }
 0x588   : > { %5249 = vmatmul.mubr.msk.bf16.vlgmr.msra.gmra.mrb[60].mxu1 %vm1234_vm8, %v2822_v23  ;;  %5298 = vmatprep.subr.bf16.mxu0 %v5441_v59 }
 0x589   : > { %5259 = vmatpush3.bf16.msra.mxu1 %v2947_v14  ;;  %5260 = vmatprep.mubr.msk.bf16.mxu1 %vm5758_vm6, %v7307_v28 }
 0x58a   : > { %5270 = vmatprep.subr.bf16.mxu1 %v7307_v28 }
 0x58b   : > { %5299 = vmatpush3.bf16.msra.mxu0 %v5441_v59 }
 0x58c   : > { %5300 = vmatprep.subr.bf16.mxu0 %v5442_v47 }
 0x58f   : > { %5301 = vmatpush3.bf16.msra.mxu0 %v5442_v47 }
 0x590   : > { %5261 = vmatmul.mubr.msk.bf16.vlgmr.msra.gmra.mrb[64].mxu1 %vm1234_vm8, %v2944_v37  ;;  %5302 = vmatprep.subr.bf16.mxu0 %v5443_v52 }
 0x591   : > { %5271 = vmatpush3.bf16.msra.mxu1 %v3070_v42  ;;  %5272 = vmatprep.mubr.msk.bf16.mxu1 %vm5758_vm6, %v7307_v28 }
 0x592   : > { %5282 = vmatprep.subr.bf16.mxu1 %v7307_v28 }
 0x593   : > { %5303 = vmatpush3.bf16.msra.mxu0 %v5443_v52 }
 0x598   : > { %5273 = vmatmul.mubr.msk.bf16.vlgmr.msra.gmra.mrb[68].mxu1 %vm1234_vm8, %v3068_v22 }
 0x599   : > { %5284 = vmatprep.mubr.msk.bf16.mxu1 %vm5758_vm6, %v7307_v28 }
 0x5ad   : > { %v3183_v32 = vpop.xlane.xlu1 %3182 }
 0x5ae   : > { %5664 = vrcp.f32 %v3183_v32 }
 0x5af   : > { %v3186_v2 = vpop.xlane.xlu0 %3185 }
 0x5b0   : > { %5666 = vrcp.f32 %v3186_v2 }
 0x5b3   : > { %v3193_v21 = vpop.permute.xlu0 %3192 }
 0x5b4   : > { %5283 = vmatpush3.bf16.msra.mxu1 %v3193_v21 }
 0x5b8   : > { %v5665_v20 = vpop.eup %5664 }
 0x5b9   : > { %v3188_v1 = vmul.f32 %v5665_v20, %v6683_v13 }
 0x5ba   : > { %v5667_v46 = vpop.eup %5666 }
 0x5bb   : > { %v3190_v60 = vmul.f32 %v5667_v46, %v6685_v49 }
 0x5bd   : > { %v3191_v41 = vpack.c.bf16 %v3190_v60, %v3188_v1 }
 0x5bf   : > { %5285 = vmatmul.mubr.msk.bf16.vlgmr.msra.gmra.mrb[72].mxu1 %vm1234_vm8, %v3191_v41 }
 0x5c0   : > { %3807 = vmatprep.mubr.bf16.mxu1 %v7308_v63 }
 0x5c9   : > { %v1421_v7 = vpop.f32.mrb[16].mxu1 }
 0x5ca   : > { %v5118_v38 = vpop.f32.mrb[17].mxu1 }
 0x5cb   : > { %v1424_v28 = vpop.f32.mrb[18].mxu1 }
 0x5cc   : > { %v5344_v51 = vpack.i.bf16 %v1424_v28, %v1421_v7  ;;  %v5119_v25 = vpop.f32.mrb[19].mxu1 }
 0x5ce   : > { %5345 = vrot.lane.b32.xlu1 %v5344_v51, %s5761_s23 }
 0x5d1   : > { %v1544_v6 = vpop.f32.mrb[20].mxu1 }
 0x5d2   : > { %v5130_v26 = vpop.f32.mrb[21].mxu1 }
 0x5d3   : > { %v1547_v40 = vpop.f32.mrb[22].mxu1 }
 0x5d4   : > { %v5349_v13 = vpack.i.bf16 %v1547_v40, %v1544_v6  ;;  %v5131_v11 = vpop.f32.mrb[23].mxu1 }
 0x5d6   : > { %5350 = vrot.lane.b32.xlu0 %v5349_v13, %s5760_s17 }
 0x5d9   : > { %v1667_v49 = vpop.f32.mrb[24].mxu1 }
 0x5da   : > { %v5142_v61 = vpop.f32.mrb[25].mxu1 }
 0x5db   : > { %v1670_v8 = vpop.f32.mrb[26].mxu1 }
 0x5dc   : > { %v5354_v9 = vpack.i.bf16 %v1670_v8, %v1667_v49  ;;  %v5143_v15 = vpop.f32.mrb[27].mxu1 }
 0x5de   : > { %5355 = vrot.lane.b32.xlu0 %v5354_v9, %s5759_s24 }
 0x5e1   : > { %v6771_v56 = vpop.f32.mrb[28].mxu1 }
 0x5e2   : > { %v5154_v19 = vpop.f32.mrb[29].mxu1 }
 0x5e3   : > { %v6773_v44 = vpop.f32.mrb[30].mxu1 }
 0x5e4   : > { %v5155_v45 = vpop.f32.mrb[31].mxu1 }
 0x608   : > { %v1944_v48 = vpop.f32.mrb[32].mxu1 }
 0x609   : > { %v5166_v39 = vpop.f32.mrb[33].mxu1 }
 0x60a   : > { %v1947_v17 = vpop.f32.mrb[34].mxu1 }
 0x60b   : > { %v5359_v62 = vpack.i.bf16 %v1947_v17, %v1944_v48  ;;  %v5167_v55 = vpop.f32.mrb[35].mxu1 }
 0x60d   : > { %5360 = vrot.lane.b32.xlu0 %v5359_v62, %s5761_s23 }
 0x610   : > { %v2067_v58 = vpop.f32.mrb[36].mxu1 }
 0x611   : > { %v5178_v23 = vpop.f32.mrb[37].mxu1 }
 0x612   : > { %v2070_v14 = vpop.f32.mrb[38].mxu1 }
 0x613   : > { %v5364_v12 = vpack.i.bf16 %v2070_v14, %v2067_v58  ;;  %v5179_v53 = vpop.f32.mrb[39].mxu1 }
 0x615   : > { %5365 = vrot.lane.b32.xlu0 %v5364_v12, %s5760_s17 }
 0x618   : > { %v2190_v29 = vpop.f32.mrb[40].mxu1 }
 0x619   : > { %v5190_v37 = vpop.f32.mrb[41].mxu1 }
 0x61a   : > { %v2193_v16 = vpop.f32.mrb[42].mxu1 }
 0x61b   : > { %v5369_v42 = vpack.i.bf16 %v2193_v16, %v2190_v29  ;;  %v5191_v27 = vpop.f32.mrb[43].mxu1 }
 0x61d   : > { %5370 = vrot.lane.b32.xlu1 %v5369_v42, %s5759_s24 }
 0x620   : > { %v6786_v0 = vpop.f32.mrb[44].mxu1 }
 0x621   : > { %v5202_v54 = vpop.f32.mrb[45].mxu1 }
 0x622   : > { %v6788_v22 = vpop.f32.mrb[46].mxu1 }
 0x623   : > { %v5203_v32 = vpop.f32.mrb[47].mxu1 }
 0x628   : > { %v2465_v2 = vpop.f32.mrb[48].mxu1 }
 0x629   : > { %v5214_v21 = vpop.f32.mrb[49].mxu1 }
 0x62a   : > { %v2468_v20 = vpop.f32.mrb[50].mxu1 }
 0x62b   : > { %v5374_v46 = vpack.i.bf16 %v2468_v20, %v2465_v2  ;;  %v5215_v1 = vpop.f32.mrb[51].mxu1 }
 0x62d   : > { %5375 = vrot.lane.b32.xlu0 %v5374_v46, %s5761_s23 }
 0x630   : > { %v2588_v60 = vpop.f32.mrb[52].mxu1 }
 0x631   : > { %v5226_v41 = vpop.f32.mrb[53].mxu1 }
 0x632   : > { %v2591_v7 = vpop.f32.mrb[54].mxu1 }
 0x633   : > { %v5379_v38 = vpack.i.bf16 %v2591_v7, %v2588_v60  ;;  %v5227_v28 = vpop.f32.mrb[55].mxu1 }
 0x635   : > { %5380 = vrot.lane.b32.xlu1 %v5379_v38, %s5760_s17 }
 0x640   : > { %v5346_v51 = vpop.permute.xlu1 %5345 }
 0x641   : > { %v5348_v6 = vunpack.i.h.bf16 %v5346_v51  ;;  %v5347_v26 = vunpack.i.l.bf16 %v5346_v51 }
 0x643   : > { %v1699_v49 = vsel %vm1184_vm7, %v6737_v18, %v5348_v6  ;;  %v1698_v61 = vsel %vm1184_vm7, %v6735_v43, %v5347_v26 }
 0x648   : > { %v5351_v25 = vpop.permute.xlu0 %5350 }
 0x649   : > { %v5353_v40 = vunpack.i.h.bf16 %v5351_v25  ;;  %v5352_v13 = vunpack.i.l.bf16 %v5351_v25 }
 0x64b   : > { %v1702_v15 = vsel %vm1700_vm9, %v1699_v49, %v5353_v40  ;;  %v1701_v19 = vsel %vm1700_vm9, %v1698_v61, %v5352_v13 }
 0x650   : > { %v5356_v11 = vpop.permute.xlu0 %5355 }
 0x651   : > { %v5358_v8 = vunpack.i.h.bf16 %v5356_v11  ;;  %v5357_v9 = vunpack.i.l.bf16 %v5356_v11 }
 0x653   : > { %v2711_v45 = vpop.f32.mrb[56].mxu1  ;;  %v1704_v3 = vsel %vm1703_vm10, %v1701_v19, %v5357_v9  ;;  %v1705_v5 = vsel %vm1703_vm10, %v1702_v15, %v5358_v8 }
 0x654   : > { %v5238_v24 = vpop.f32.mrb[57].mxu1  ;;  %v3285_v10 = vpack.c.bf16 %v1705_v5, %v1704_v3 }
 0x655   : > { %v2714_v4 = vpop.f32.mrb[58].mxu1 }
 0x656   : > { %v5384_v48 = vpack.i.bf16 %v2714_v4, %v2711_v45  ;;  %v5239_v39 = vpop.f32.mrb[59].mxu1  ;;  %5304 = vmatprep.mubr.bf16.mxu0 %v3285_v10 }
 0x658   : > { %5385 = vrot.lane.b32.xlu1 %v5384_v48, %s5759_s24 }
 0x65b   : > { %v6801_v43 = vpop.f32.mrb[60].mxu1 }
 0x65c   : > { %v5250_v18 = vpop.f32.mrb[61].mxu1 }
 0x65d   : > { %v2863_v59 = vpop.f32.mrb[62].mxu1 }
 0x65e   : > { %v5251_v17 = vpop.f32.mrb[63].mxu1 }
 0x663   : > { %v2986_v47 = vpop.f32.mrb[64].mxu1 }
 0x664   : > { %v5262_v62 = vpop.f32.mrb[65].mxu1 }
 0x665   : > { %v2989_v55 = vpop.f32.mrb[66].mxu1 }
 0x666   : > { %v5389_v58 = vpack.i.bf16 %v2989_v55, %v2986_v47  ;;  %v5263_v23 = vpop.f32.mrb[67].mxu1 }
 0x668   : > { %5390 = vrot.lane.b32.xlu0 %v5389_v58, %s5761_s23 }
 0x66b   : > { %v3109_v52 = vpop.f32.mrb[68].mxu1 }
 0x66c   : > { %v5274_v14 = vpop.f32.mrb[69].mxu1 }
 0x66d   : > { %v3112_v12 = vpop.f32.mrb[70].mxu1 }
 0x66e   : > { %v5394_v53 = vpack.i.bf16 %v3112_v12, %v3109_v52  ;;  %v5275_v29 = vpop.f32.mrb[71].mxu1 }
 0x670   : > { %5395 = vrot.lane.b32.xlu0 %v5394_v53, %s5760_s17 }
 0x67f   : > { %v5361_v37 = vpop.permute.xlu0 %5360 }
 0x680   : > { %v5363_v42 = vunpack.i.h.bf16 %v5361_v37  ;;  %v5362_v27 = vunpack.i.l.bf16 %v5361_v37 }
 0x682   : > { %v2222_v21 = vsel %vm1184_vm7, %v6773_v44, %v5363_v42  ;;  %v2221_v20 = vsel %vm1184_vm7, %v6771_v56, %v5362_v27 }
 0x687   : > { %v5366_v16 = vpop.permute.xlu0 %5365 }
 0x688   : > { %v5368_v54 = vunpack.i.h.bf16 %v5366_v16  ;;  %v5367_v32 = vunpack.i.l.bf16 %v5366_v16 }
 0x68a   : > { %v2223_v60 = vsel %vm1700_vm9, %v2221_v20, %v5367_v32  ;;  %v2224_v41 = vsel %vm1700_vm9, %v2222_v21, %v5368_v54 }
 0x68f   : > { %v5371_v2 = vpop.permute.xlu1 %5370 }
 0x690   : > { %v5373_v46 = vunpack.i.h.bf16 %v5371_v2  ;;  %v5372_v1 = vunpack.i.l.bf16 %v5371_v2 }
 0x692   : > { %v2225_v7 = vsel %vm1703_vm10, %v2223_v60, %v5372_v1  ;;  %v2226_v38 = vsel %vm1703_vm10, %v2224_v41, %v5373_v46  ;;  %v3232_v28 = vpop.f32.mrb[72].mxu1 }
 0x693   : > { %v3286_v51 = vpack.c.bf16 %v2226_v38, %v2225_v7  ;;  %v5286_v25 = vpop.f32.mrb[73].mxu1 }
 0x694   : > { %v3235_v6 = vpop.f32.mrb[74].mxu1  ;;  %v7314_v25 = vld [vmem:[#allocation3_spill] sm:$0xff] }
 0x695   : > { %v5399_v26 = vpack.i.bf16 %v3235_v6, %v3232_v28  ;;  %v5287_v40 = vpop.f32.mrb[75].mxu1  ;;  %5305 = vmatmul.mubr.bf16.vlgmr.msra.gmra.mrb[76].mxu0 %v3286_v51 }
 0x697   : > { %5400 = vrot.lane.b32.xlu1 %v5399_v26, %s5759_s24 }
 0x69f   : > { %v5376_v56 = vpop.permute.xlu0 %5375 }
 0x6a0   : > { %v5378_v13 = vunpack.i.h.bf16 %v5376_v56  ;;  %v5377_v11 = vunpack.i.l.bf16 %v5376_v56 }
 0x6a2   : > { %v2743_v9 = vsel %vm1184_vm7, %v6788_v22, %v5378_v13  ;;  %v2742_v15 = vsel %vm1184_vm7, %v6786_v0, %v5377_v11 }
 0x6a7   : > { %v5381_v44 = vpop.permute.xlu1 %5380 }
 0x6a8   : > { %v5383_v49 = vunpack.i.h.bf16 %v5381_v44  ;;  %v5382_v61 = vunpack.i.l.bf16 %v5381_v44 }
 0x6aa   : > { %v2744_v24 = vsel %vm1700_vm9, %v2742_v15, %v5382_v61  ;;  %v2745_v3 = vsel %vm1700_vm9, %v2743_v9, %v5383_v49 }
 0x6ca   : > { %v5386_v8 = vpop.permute.xlu1 %5385 }
 0x6cb   : > { %v5388_v19 = vunpack.i.h.bf16 %v5386_v8  ;;  %v5387_v45 = vunpack.i.l.bf16 %v5386_v8 }
 0x6cd   : > { %v2746_v5 = vsel %vm1703_vm10, %v2744_v24, %v5387_v45  ;;  %v2747_v4 = vsel %vm1703_vm10, %v2745_v3, %v5388_v19  ;;  %v5444_v19 = vld [vmem:[%s5899_s4] ss:$16 sps:$4 sm:$0xff]   ;;  %v5446_v45 = vld [vmem:[%s5899_s4 + $0x4] ss:$16 sps:$4 sm:$0xff]   ;;  %v5447_v24 = vld [vmem:[%s5899_s4 + $0x8] ss:$16 sps:$4 sm:$0xff]  }
 0x6ce   : > { %v3287_v10 = vpack.c.bf16 %v2747_v4, %v2746_v5  ;;  %v5449_v5 = vld [vmem:[%s5899_s4 + $0xc] ss:$16 sps:$4 sm:$0xff]   ;;  %v5452_v4 = vld [vmem:[%s5899_s4 + $0x24] ss:$16 sps:$4 sm:$0xff]   ;;  %3775 = vmatprep.subr.bf16.mxu1 %v5446_v45 }
 0x6cf   : > { %3848 = vmatprep.subr.bf16.mxu0 %v5449_v5  ;;  %3776 = vmatpush1.bf16.msra.mxu1 %v5444_v19 }
 0x6d0   : > { %5308 = vmatprep.mubr.bf16.mxu0 %v3287_v10  ;;  %3849 = vmatpush1.bf16.msra.mxu0 %v5447_v24 }
 0x6d1   : > { %3777 = vmatprep.subr.bf16.mxu1 %v5452_v4 }
 0x6da   : > { %v5391_v48 = vpop.permute.xlu0 %5390 }
 0x6db   : > { %v5393_v18 = vunpack.i.h.bf16 %v5391_v48  ;;  %v5392_v22 = vunpack.i.l.bf16 %v5391_v48 }
 0x6dd   : > { %v3264_v62 = vsel %vm1184_vm7, %v2863_v59, %v5393_v18  ;;  %v3263_v55 = vsel %vm1184_vm7, %v6801_v43, %v5392_v22  ;;  %v3410_v59 = vld [vmem:[%s7309_s25] sm:$0x1] }
 0x6de   : > { %v3411_v43 = vunpack.c.l.bf16 %v3410_v59  ;;  %v5450_v18 = vld [vmem:[%s5899_s4 + $0x20] ss:$16 sps:$4 sm:$0xff]  }
 0x6df   : > { %3778 = vmatpush1.bf16.msra.mxu1 %v5450_v18  ;;  %v5468_v59 = vld [vmem:[%s5899_s4 + $0x80] ss:$16 sps:$4 sm:$0xff]  }
 0x6e0   : > { %v3415_v16 = vrot.slane %v3411_v43, %v6122_v57  ;;  %v5471_v43 = vld [vmem:[%s5899_s4 + $0x88] ss:$16 sps:$4 sm:$0xff]  }
 0x6e2   : > { %v5396_v39 = vpop.permute.xlu0 %5395 }
 0x6e3   : > { %v5398_v17 = vunpack.i.h.bf16 %v5396_v39  ;;  %v5397_v47 = vunpack.i.l.bf16 %v5396_v39  ;;  %v5455_v39 = vld [vmem:[%s5899_s4 + $0x2c] ss:$16 sps:$4 sm:$0xff]  }
 0x6e4   : > { %3850 = vmatprep.subr.bf16.mxu0 %v5455_v39 }
 0x6e5   : > { %v3265_v52 = vsel %vm1700_vm9, %v3263_v55, %v5397_v47  ;;  %v3266_v14 = vsel %vm1700_vm9, %v3264_v62, %v5398_v17  ;;  %v5453_v17 = vld [vmem:[%s5899_s4 + $0x28] ss:$16 sps:$4 sm:$0xff]   ;;  %v5461_v62 = vld [vmem:[%s5899_s4 + $0x4c] ss:$16 sps:$4 sm:$0xff]   ;;  %v5456_v55 = vld [vmem:[%s5899_s4 + $0x40] ss:$16 sps:$4 sm:$0xff]  }
 0x6e6   : > { %3851 = vmatpush1.bf16.msra.mxu0 %v5453_v17 }
 0x6e7   : > { %3852 = vmatprep.subr.bf16.mxu0 %v5461_v62 }
 0x709   : > { %v5401_v0 = vpop.permute.xlu1 %5400 }
 0x70a   : > { %v5403_v58 = vunpack.i.h.bf16 %v5401_v0  ;;  %v5402_v23 = vunpack.i.l.bf16 %v5401_v0  ;;  %v5458_v0 = vld [vmem:[%s5899_s4 + $0x44] ss:$16 sps:$4 sm:$0xff]  }
 0x70b   : > { %3779 = vmatprep.subr.bf16.mxu1 %v5458_v0 }
 0x70c   : > { %v3267_v12 = vsel %vm1703_vm10, %v3265_v52, %v5402_v23  ;;  %v3268_v53 = vsel %vm1703_vm10, %v3266_v14, %v5403_v58  ;;  %v5459_v58 = vld [vmem:[%s5899_s4 + $0x48] ss:$16 sps:$4 sm:$0xff]   ;;  %3780 = vmatpush1.bf16.msra.mxu1 %v5456_v55  ;;  %v5464_v23 = vld [vmem:[%s5899_s4 + $0x64] ss:$16 sps:$4 sm:$0xff]   ;;  %v5467_v52 = vld [vmem:[%s5899_s4 + $0x6c] ss:$16 sps:$4 sm:$0xff]  }
 0x70d   : > { %v3288_v29 = vpack.c.bf16 %v3268_v53, %v3267_v12  ;;  %3853 = vmatpush1.bf16.msra.mxu0 %v5459_v58  ;;  %v5462_v14 = vld [vmem:[%s5899_s4 + $0x60] ss:$16 sps:$4 sm:$0xff]   ;;  %v5465_v12 = vld [vmem:[%s5899_s4 + $0x68] ss:$16 sps:$4 sm:$0xff]   ;;  %3781 = vmatprep.subr.bf16.mxu1 %v5464_v23  ;;  %v5470_v53 = vld [vmem:[%s5899_s4 + $0x84] ss:$16 sps:$4 sm:$0xff]  }
 0x70e   : > { %3854 = vmatprep.subr.bf16.mxu0 %v5467_v52  ;;  %v3425_v23 = vld [vmem:[%s7319_s6] sm:$0x1] }
 0x70f   : > { %5309 = vmatmul.mubr.bf16.gmra.mrb[80].mxu0 %v3288_v29  ;;  %v5473_v29 = vld [vmem:[%s5899_s4 + $0x8c] ss:$16 sps:$4 sm:$0xff]   ;;  %v3427_v52 = vunpack.c.l.bf16 %v3425_v23 }
 0x710   : > { %3880 = vmatprep.mubr.bf16.mxu0 %v7308_v63  ;;  %3782 = vmatpush1.bf16.msra.mxu1 %v5462_v14  ;;  %v5512_v23 = vld [vmem:[%s5909_s3 + $0x68] sm:$0xff]  }
 0x711   : > { %3855 = vmatpush1.bf16.msra.mxu0 %v5465_v12  ;;  %3783 = vmatprep.subr.bf16.mxu1 %v5470_v53 }
 0x712   : > { %3856 = vmatprep.subr.bf16.mxu0 %v5473_v29 }
 0x714   : > { %3784 = vmatpush1.bf16.msra.mxu1 %v5468_v59 }
 0x715   : > { %3857 = vmatpush1.bf16.msra.mxu0 %v5471_v43 }
 0x768   : > { %v5306_v37 = vpop.f32.mrb[76].mxu0 }
 0x769   : > { %v3371_v42 = vpop.f32.mrb[77].mxu0  ;;  %v3404_v2 = vadd.f32 %v5306_v37, %v6023_v31  ;;  %v5476_v37 = vld [vmem:[%s5899_s4 + $0xa4] ss:$16 sps:$4 sm:$0xff]  }
 0x76a   : > { %v3402_v27 = vadd.f32 %v6021_v30, %v3371_v42  ;;  %v5307_v54 = vpop.f32.mrb[78].mxu0  ;;  %v5474_v42 = vld [vmem:[%s5899_s4 + $0xa0] ss:$16 sps:$4 sm:$0xff]   ;;  %3785 = vmatprep.subr.bf16.mxu1 %v5476_v37  ;;  %v6957_v37 = vrot.slane %v3427_v52, %v6122_v57  ;;  %v7024_v52 = vld [vmem:[%s5909_s3 + $0xe8] sm:$0xff]  }
 0x76b   : > { %v3374_v32 = vpop.f32.mrb[79].mxu0  ;;  %v6844_v1 = vadd.f32 %v3415_v16, %v3404_v2  ;;  %v3405_v60 = vadd.f32 %v5307_v54, %v6032_v34  ;;  %3786 = vmatpush1.bf16.msra.mxu1 %v5474_v42  ;;  %v5480_v54 = vld [vmem:[%s5899_s4 + $0xc0] ss:$16 sps:$4 sm:$0xff]   ;;  %v5483_v2 = vld [vmem:[%s5899_s4 + $0xc8] ss:$16 sps:$4 sm:$0xff]  }
 0x76c   : > { %v6838_v21 = vadd.f32 %v3415_v16, %v3402_v27  ;;  %v3403_v20 = vadd.f32 %v6029_v33, %v3374_v32  ;;  %v5477_v27 = vld [vmem:[%s5899_s4 + $0xa8] ss:$16 sps:$4 sm:$0xff]   ;;  %v5482_v32 = vld [vmem:[%s5899_s4 + $0xc4] ss:$16 sps:$4 sm:$0xff]  }
 0x76d   : > { %7311 = vst [vmem:[#allocation6_spill] sm:$0xff] %v6844_v1  ;;  %v6849_v30 = vadd.f32 %v3415_v16, %v3405_v60  ;;  %v5488_v60 = vld [vmem:[%s5899_s4 + $0xe4] ss:$16 sps:$4 sm:$0xff]   ;;  %3787 = vmatprep.subr.bf16.mxu1 %v5482_v32 }
 0x76e   : > { %v6841_v46 = vadd.f32 %v3415_v16, %v3403_v20  ;;  %3428 = vadd.xlane.f32.xlu0 %v6838_v21  ;;  %v5485_v20 = vld [vmem:[%s5899_s4 + $0xcc] ss:$16 sps:$4 sm:$0xff]  }
 0x76f   : > { %7312 = vst [vmem:[#allocation7_spill] sm:$0xff] %v6849_v30  ;;  %3788 = vmatpush1.bf16.msra.mxu1 %v5480_v54 }
 0x770   : > { %7310 = vst [vmem:[#allocation5_spill] sm:$0xff] %v6841_v46  ;;  %3430 = vadd.xlane.f32.xlu1 %v6841_v46  ;;  %3789 = vmatprep.subr.bf16.mxu1 %v5488_v60 }
 0x772   : > { %3432 = vadd.xlane.f32.xlu0 %v6844_v1 }
 0x776   : > { %3434 = vadd.xlane.f32.xlu0 %v6849_v30 }
 0x7e2   : > { %v5310_v31 = vpop.f32.mrb[80].mxu0 }
 0x7e3   : > { %v3387_v41 = vpop.f32.mrb[81].mxu0  ;;  %v3408_v28 = vadd.f32 %v5310_v31, %v6053_v50  ;;  %v5491_v31 = vld [vmem:[%s5899_s4 + $0xec] ss:$16 sps:$4 sm:$0xff]  }
 0x7e4   : > { %v3406_v33 = vadd.f32 %v6036_v35, %v3387_v41  ;;  %v5311_v7 = vpop.f32.mrb[82].mxu0  ;;  %v5486_v41 = vld [vmem:[%s5899_s4 + $0xe0] ss:$16 sps:$4 sm:$0xff]  }
 0x7e5   : > { %v3390_v38 = vpop.f32.mrb[83].mxu0  ;;  %v3409_v6 = vadd.f32 %v5311_v7, %v7314_v25  ;;  %v6861_v40 = vadd.f32 %v3415_v16, %v3408_v28  ;;  %3790 = vmatpush1.bf16.msra.mxu1 %v5486_v41  ;;  %v6971_v41 = vld [vmem:[%s5909_s3 + $0xc0] sm:$0xff]  }
 0x7e6   : > { %v6854_v51 = vadd.f32 %v3415_v16, %v3406_v33  ;;  %v3407_v34 = vadd.f32 %v6038_v36, %v3390_v38  ;;  %v5489_v33 = vld [vmem:[%s5899_s4 + $0xe8] ss:$16 sps:$4 sm:$0xff]  }
 0x7e7   : > { %7316 = vst [vmem:[#allocation9_spill] sm:$0xff] %v6861_v40  ;;  %v6864_v35 = vadd.f32 %v3415_v16, %v3409_v6 }
 0x7e8   : > { %7313 = vst [vmem:[#allocation8_spill] sm:$0xff] %v6854_v51  ;;  %v6858_v26 = vadd.f32 %v3415_v16, %v3407_v34  ;;  %3436 = vadd.xlane.f32.xlu0 %v6854_v51  ;;  %v5479_v16 = vld [vmem:[%s5899_s4 + $0xac] ss:$16 sps:$4 sm:$0xff]  }
 0x7e9   : > { %7317 = vst [vmem:[#allocation10_spill] sm:$0xff] %v6864_v35  ;;  %3858 = vmatprep.subr.bf16.mxu0 %v5479_v16 }
 0x7ea   : > { %7315 = vst [vmem:[#allocation3_spill] sm:$0xff] %v6858_v26  ;;  %3438 = vadd.xlane.f32.xlu1 %v6858_v26  ;;  %3859 = vmatpush1.bf16.msra.mxu0 %v5477_v27 }
 0x7eb   : > { %3860 = vmatprep.subr.bf16.mxu0 %v5485_v20 }
 0x7ec   : > { %3440 = vadd.xlane.f32.xlu0 %v6861_v40 }
 0x7ee   : > { %3442 = vadd.xlane.f32.xlu1 %v6864_v35  ;;  %3861 = vmatpush1.bf16.msra.mxu0 %v5483_v2 }
 0x7ef   : > { %3862 = vmatprep.subr.bf16.mxu0 %v5491_v31 }
 0x7f2   : > { %3863 = vmatpush1.bf16.msra.mxu0 %v5489_v33  ;;  %v5494_v33 = vld [vmem:[%s5909_s3] sm:$0xff]  }
 0x7f3   : > { %5032 = vmatprep.subr.bf16.mxu0 %v6971_v41 }
 0x7fb   : > { %v3429_v36 = vpop.xlane.xlu0 %3428 }
 0x7fc   : > { %v3444_v50 = vmul.f32 0.0078125, %v3429_v36 }
 0x7fd   : > { %v3431_v56 = vpop.xlane.xlu1 %3430 }
 0x7fe   : > { %v6869_v44 = vsub.f32 %v6838_v21, %v3444_v50  ;;  %v3445_v13 = vmul.f32 0.0078125, %v3431_v56 }
 0x7ff   : > { %v3433_v11 = vpop.xlane.xlu0 %3432 }
 0x800   : > { %v6872_v49 = vsub.f32 %v6841_v46, %v3445_v13  ;;  %v3446_v61 = vmul.f32 0.0078125, %v3433_v11  ;;  %v3460_v8 = vmul.f32 %v6869_v44, %v6869_v44 }
 0x802   : > { %v6877_v9 = vsub.f32 %v6844_v1, %v3446_v61  ;;  %3468 = vadd.xlane.f32.xlu0 %v3460_v8  ;;  %v3461_v15 = vmul.f32 %v6872_v49, %v6872_v49 }
 0x803   : > { %v3435_v3 = vpop.xlane.xlu0 %3434 }
 0x804   : > { %v3447_v10 = vmul.f32 0.0078125, %v3435_v3  ;;  %3470 = vadd.xlane.f32.xlu1 %v3461_v15  ;;  %v3462_v48 = vmul.f32 %v6877_v9, %v6877_v9 }
 0x806   : > { %v6891_v22 = vsub.f32 %v6849_v30, %v3447_v10  ;;  %3472 = vadd.xlane.f32.xlu0 %v3462_v48 }
 0x808   : > { %v3463_v47 = vmul.f32 %v6891_v22, %v6891_v22 }
 0x80a   : > { %3474 = vadd.xlane.f32.xlu1 %v3463_v47  ;;  %v3424_v47 = vld [vmem:[%s7318_s16] sm:$0x1] }
 0x80b   : > { %v3426_v55 = vunpack.c.l.bf16 %v3424_v47 }
 0x80d   : > { %v6951_v14 = vrot.slane %v3426_v55, %v6122_v57 }
 0x875   : > { %v3437_v7 = vpop.xlane.xlu0 %3436 }
 0x876   : > { %v3448_v38 = vmul.f32 0.0078125, %v3437_v7  ;;  %v6975_v7 = vld [vmem:[%s5909_s3 + $0x80] sm:$0xff]  }
 0x877   : > { %v3439_v28 = vpop.xlane.xlu1 %3438 }
 0x878   : > { %v6921_v34 = vsub.f32 %v6854_v51, %v3448_v38  ;;  %v3449_v25 = vmul.f32 0.0078125, %v3439_v28  ;;  %v6979_v38 = vld [vmem:[%s5909_s3 + $0xc8] sm:$0xff]  }
 0x879   : > { %v3441_v6 = vpop.xlane.xlu0 %3440 }
 0x87a   : > { %v6924_v36 = vsub.f32 %v6858_v26, %v3449_v25  ;;  %v3450_v50 = vmul.f32 0.0078125, %v3441_v6  ;;  %v3464_v56 = vmul.f32 %v6921_v34, %v6921_v34  ;;  %v5498_v6 = vld [vmem:[%s5909_s3 + $0x8] sm:$0xff]  }
 0x87b   : > { %v3443_v13 = vpop.xlane.xlu1 %3442 }
 0x87c   : > { %v6929_v11 = vsub.f32 %v6861_v40, %v3450_v50  ;;  %v3451_v61 = vmul.f32 0.0078125, %v3443_v13  ;;  %3476 = vadd.xlane.f32.xlu0 %v3464_v56  ;;  %v3465_v8 = vmul.f32 %v6924_v36, %v6924_v36  ;;  %v6987_v50 = vld [vmem:[%s5909_s3 + $0x88] sm:$0xff]   ;;  %v5500_v56 = vld [vmem:[%s5909_s3 + $0x50] sm:$0xff]  }
 0x87d   : > { %v6994_v13 = vld [vmem:[%s5909_s3 + $0xd0] sm:$0xff]  }
 0x87e   : > { %v6934_v15 = vsub.f32 %v6864_v35, %v3451_v61  ;;  %3478 = vadd.xlane.f32.xlu1 %v3465_v8  ;;  %v3466_v19 = vmul.f32 %v6929_v11, %v6929_v11  ;;  %v5502_v61 = vld [vmem:[%s5909_s3 + $0x10] sm:$0xff]  }
 0x87f   : > { %v6999_v8 = vld [vmem:[%s5909_s3 + $0x90] sm:$0xff]  }
 0x880   : > { %3480 = vadd.xlane.f32.xlu0 %v3466_v19  ;;  %v3467_v45 = vmul.f32 %v6934_v15, %v6934_v15  ;;  %v5504_v19 = vld [vmem:[%s5909_s3 + $0x58] sm:$0xff]  }
 0x882   : > { %3482 = vadd.xlane.f32.xlu1 %v3467_v45  ;;  %v7004_v45 = vld [vmem:[%s5909_s3 + $0xd8] sm:$0xff]  }
 0x88f   : > { %v3469_v24 = vpop.xlane.xlu0 %3468 }
 0x890   : > { %v3484_v3 = vmul.f32 0.0078125, %v3469_v24  ;;  %v5506_v24 = vld [vmem:[%s5909_s3 + $0x18] sm:$0xff]  }
 0x891   : > { %v3471_v5 = vpop.xlane.xlu1 %3470 }
 0x892   : > { %v3492_v4 = vadd.f32 1e-05, %v3484_v3  ;;  %v3485_v10 = vmul.f32 0.0078125, %v3471_v5  ;;  %v7008_v3 = vld [vmem:[%s5909_s3 + $0x98] sm:$0xff]   ;;  %v5508_v5 = vld [vmem:[%s5909_s3 + $0x60] sm:$0xff]  }
 0x893   : > { %v3473_v48 = vpop.xlane.xlu0 %3472 }
 0x894   : > { %5668 = vrsqrt.f32 %v3492_v4  ;;  %v3493_v39 = vadd.f32 1e-05, %v3485_v10  ;;  %v3486_v18 = vmul.f32 0.0078125, %v3473_v48  ;;  %v7014_v4 = vld [vmem:[%s5909_s3 + $0xe0] sm:$0xff]  }
 0x896   : > { %5670 = vrsqrt.f32 %v3493_v39  ;;  %v3494_v17 = vadd.f32 1e-05, %v3486_v18  ;;  %v5510_v18 = vld [vmem:[%s5909_s3 + $0x20] sm:$0xff]  }
 0x897   : > { %v3475_v0 = vpop.xlane.xlu1 %3474 }
 0x898   : > { %5672 = vrsqrt.f32 %v3494_v17  ;;  %v3487_v62 = vmul.f32 0.0078125, %v3475_v0  ;;  %v7019_v17 = vld [vmem:[%s5909_s3 + $0xa0] sm:$0xff]  }
 0x89a   : > { %v3495_v58 = vadd.f32 1e-05, %v3487_v62 }
 0x89c   : > { %5674 = vrsqrt.f32 %v3495_v58 }
 0x89e   : > { %v5669_v12 = vpop.eup %5668 }
 0x89f   : > { %v3508_v53 = vmul.f32 %v5669_v12, %v6869_v44 }
 0x8a0   : > { %v5671_v29 = vpop.eup %5670 }
 0x8a1   : > { %v3509_v59 = vmul.f32 %v5671_v29, %v6872_v49  ;;  %v3520_v43 = vmul.f32 %v6951_v14, %v3508_v53  ;;  %v5514_v53 = vld [vmem:[%s5909_s3 + $0x28] sm:$0xff]  }
 0x8a2   : > { %v5673_v16 = vpop.eup %5672  ;;  %v7028_v29 = vld [vmem:[%s5909_s3 + $0xa8] sm:$0xff]  }
 0x8a3   : > { %v3521_v42 = vmul.f32 %v6951_v14, %v3509_v59  ;;  %v3532_v27 = vadd.f32 %v6957_v37, %v3520_v43  ;;  %v3510_v44 = vmul.f32 %v5673_v16, %v6877_v9  ;;  %v5492_v9 = vld [vmem:[%s5909_s3 + $0x40] sm:$0xff]  }
 0x8a4   : > { %4992 = vmatprep.subr.bf16.mxu1 %v5492_v9 }
 0x8a5   : > { %v3533_v54 = vadd.f32 %v6957_v37, %v3521_v42  ;;  %v3522_v20 = vmul.f32 %v6951_v14, %v3510_v44  ;;  %v5516_v42 = vld [vmem:[%s5909_s3 + $0x70] sm:$0xff]  }
 0x8a6   : > { %v5675_v49 = vpop.eup %5674  ;;  %v7038_v44 = vld [vmem:[%s5909_s3 + $0xb0] sm:$0xff]  }
 0x8a7   : > { %v3572_v32 = vpack.c.bf16 %v3533_v54, %v3532_v27  ;;  %v3511_v2 = vmul.f32 %v5675_v49, %v6891_v22  ;;  %v5496_v22 = vld [vmem:[%s5909_s3 + $0x48] sm:$0xff]   ;;  %v3534_v28 = vadd.f32 %v6957_v37, %v3522_v20  ;;  %v7034_v27 = vld [vmem:[%s5909_s3 + $0xf0] sm:$0xff]   ;;  %v5520_v49 = vld [vmem:[%s5909_s3 + $0x78] sm:$0xff]  }
 0x8a8   : > { %v5518_v54 = vld [vmem:[%s5909_s3 + $0x30] sm:$0xff]   ;;  %v7048_v20 = vld [vmem:[%s5909_s3 + $0xb8] sm:$0xff]  }
 0x8a9   : > { %3808 = vmatmul.mubr.bf16.vlgmr.msra.gmra.mrb[76].mxu1 %v3572_v32  ;;  %3881 = vmatmul.mubr.bf16.vlgmr.msra.gmra.mrb[84].mxu0 %v3572_v32  ;;  %v3523_v60 = vmul.f32 %v6951_v14, %v3511_v2  ;;  %v7044_v32 = vld [vmem:[%s5909_s3 + $0xf8] sm:$0xff]  }
 0x8aa   : > { %3817 = vmatprep.mubr.bf16.mxu1 %v7308_v63  ;;  %3890 = vmatprep.mubr.bf16.mxu0 %v7308_v63  ;;  %v5522_v2 = vld [vmem:[%s5909_s3 + $0x38] sm:$0xff]  }
 0x8ab   : > { %v3535_v31 = vadd.f32 %v6957_v37, %v3523_v60  ;;  %4993 = vmatpush3.bf16.msra.mxu1 %v5494_v33  ;;  %5033 = vmatpush3.bf16.msra.mxu0 %v6975_v7 }
 0x8ac   : > { %4994 = vmatprep.subr.bf16.mxu1 %v5496_v22  ;;  %5034 = vmatprep.subr.bf16.mxu0 %v6979_v38 }
 0x8ad   : > { %v3573_v25 = vpack.c.bf16 %v3535_v31, %v3534_v28 }
 0x8af   : > { %4995 = vmatpush3.bf16.msra.mxu1 %v5498_v6  ;;  %5035 = vmatpush3.bf16.msra.mxu0 %v6987_v50 }
 0x8b0   : > { %4996 = vmatprep.subr.bf16.mxu1 %v5500_v56  ;;  %5036 = vmatprep.subr.bf16.mxu0 %v6994_v13 }
 0x8b1   : > { %3818 = vmatmul.mubr.bf16.gmra.mrb[80].mxu1 %v3573_v25  ;;  %3891 = vmatmul.mubr.bf16.gmra.mrb[88].mxu0 %v3573_v25 }
 0x8b2   : > { %3827 = vmatprep.mubr.bf16.mxu1 %v7308_v63  ;;  %3900 = vmatprep.mubr.bf16.mxu0 %v7308_v63 }
 0x8b3   : > { %4997 = vmatpush3.bf16.msra.mxu1 %v5502_v61  ;;  %5037 = vmatpush3.bf16.msra.mxu0 %v6999_v8 }
 0x8b4   : > { %4998 = vmatprep.subr.bf16.mxu1 %v5504_v19  ;;  %5038 = vmatprep.subr.bf16.mxu0 %v7004_v45 }
 0x8b7   : > { %4999 = vmatpush3.bf16.msra.mxu1 %v5506_v24  ;;  %5039 = vmatpush3.bf16.msra.mxu0 %v7008_v3 }
 0x8b8   : > { %5000 = vmatprep.subr.bf16.mxu1 %v5508_v5  ;;  %5040 = vmatprep.subr.bf16.mxu0 %v7014_v4 }
 0x8bb   : > { %5001 = vmatpush3.bf16.msra.mxu1 %v5510_v18  ;;  %5041 = vmatpush3.bf16.msra.mxu0 %v7019_v17 }
 0x8bc   : > { %5002 = vmatprep.subr.bf16.mxu1 %v5512_v23  ;;  %5042 = vmatprep.subr.bf16.mxu0 %v7024_v52 }
 0x8bf   : > { %5003 = vmatpush3.bf16.msra.mxu1 %v5514_v53  ;;  %5043 = vmatpush3.bf16.msra.mxu0 %v7028_v29 }
 0x8c0   : > { %5004 = vmatprep.subr.bf16.mxu1 %v5516_v42  ;;  %5044 = vmatprep.subr.bf16.mxu0 %v7034_v27 }
 0x8c3   : > { %5005 = vmatpush3.bf16.msra.mxu1 %v5518_v54  ;;  %5045 = vmatpush3.bf16.msra.mxu0 %v7038_v44 }
 0x8c4   : > { %5006 = vmatprep.subr.bf16.mxu1 %v5520_v49  ;;  %5046 = vmatprep.subr.bf16.mxu0 %v7044_v32 }
 0x8c7   : > { %5007 = vmatpush3.bf16.msra.mxu1 %v5522_v2  ;;  %5047 = vmatpush3.bf16.msra.mxu0 %v7048_v20 }
 0x8c8   : > { %5312 = vmatprep.subr.bf16.mxu1 %v6971_v41 }
 0x909   : > { %v3477_v10 = vpop.xlane.xlu0 %3476 }
 0x90a   : > { %v3488_v48 = vmul.f32 0.0078125, %v3477_v10 }
 0x90b   : > { %v3479_v39 = vpop.xlane.xlu1 %3478 }
 0x90c   : > { %v3496_v47 = vadd.f32 1e-05, %v3488_v48  ;;  %v3489_v0 = vmul.f32 0.0078125, %v3479_v39  ;;  %v7320_v39 = vld [vmem:[#allocation4_spill] sm:$0xff] }
 0x90d   : > { %v3481_v62 = vpop.xlane.xlu0 %3480  ;;  %v3593_v18 = vsub.s32 6, %v7320_v39 }
 0x90e   : > { %5676 = vrsqrt.f32 %v3496_v47  ;;  %v3497_v55 = vadd.f32 1e-05, %v3489_v0  ;;  %v3490_v58 = vmul.f32 0.0078125, %v3481_v62  ;;  %v7321_v0 = vsub.s32 4, %v7320_v39 }
 0x90f   : > { %v3483_v12 = vpop.xlane.xlu1 %3482  ;;  %v7322_v62 = vsub.s32 2, %v7320_v39 }
 0x910   : > { %5678 = vrsqrt.f32 %v3497_v55  ;;  %v3498_v59 = vadd.f32 1e-05, %v3490_v58  ;;  %v3491_v43 = vmul.f32 0.0078125, %v3483_v12 }
 0x912   : > { %5680 = vrsqrt.f32 %v3498_v59  ;;  %v3499_v16 = vadd.f32 1e-05, %v3491_v43 }
 0x914   : > { %5682 = vrsqrt.f32 %v3499_v16 }
 0x918   : > { %v5677_v60 = vpop.eup %5676 }
 0x919   : > { %v3512_v31 = vmul.f32 %v5677_v60, %v6921_v34 }
 0x91a   : > { %v5679_v9 = vpop.eup %5678 }
 0x91b   : > { %v3513_v33 = vmul.f32 %v5679_v9, %v6924_v36  ;;  %v3524_v22 = vmul.f32 %v6951_v14, %v3512_v31 }
 0x91c   : > { %v5681_v28 = vpop.eup %5680 }
 0x91d   : > { %v3525_v25 = vmul.f32 %v6951_v14, %v3513_v33  ;;  %v3536_v56 = vadd.f32 %v6957_v37, %v3524_v22  ;;  %v3514_v34 = vmul.f32 %v5681_v28, %v6929_v11  ;;  %v3576_v11 = vld [vmem:[%s5904_s2] sm:$0xf] }
 0x91e   : > { %v5683_v6 = vpop.eup %5682 }
 0x91f   : > { %v3537_v61 = vadd.f32 %v6957_v37, %v3525_v25  ;;  %v3515_v19 = vmul.f32 %v5683_v6, %v6934_v15  ;;  %v3526_v36 = vmul.f32 %v6951_v14, %v3514_v34  ;;  %v3577_v15 = vunpack.c.l.bf16 %v3576_v11 }
 0x921   : > { %v3574_v24 = vpack.c.bf16 %v3537_v61, %v3536_v56  ;;  %v3527_v41 = vmul.f32 %v6951_v14, %v3515_v19  ;;  %v3538_v10 = vadd.f32 %v6957_v37, %v3526_v36  ;;  %v3582_v47 = vrot.slane %v3577_v15, %v6122_v57 }
 0x922   : > { %v3590_v14 = vrot.slane %v3577_v15, %v7321_v0  ;;  %v3586_v55 = vrot.slane %v3577_v15, %v7322_v62 }
 0x923   : > { %3828 = vmatmul.mubr.bf16.gmra.mrb[84].mxu1 %v3574_v24  ;;  %3901 = vmatmul.mubr.bf16.gmra.mrb[92].mxu0 %v3574_v24  ;;  %v3539_v5 = vadd.f32 %v6957_v37, %v3527_v41  ;;  %v7075_v58 = vrot.slane %v3582_v47, %v6122_v57 }
 0x924   : > { %3837 = vmatprep.mubr.bf16.mxu1 %v7308_v63  ;;  %3910 = vmatprep.mubr.bf16.mxu0 %v7308_v63  ;;  %v3594_v63 = vrot.slane %v3577_v15, %v3593_v18  ;;  %v7078_v37 = vrot.slane %v3590_v14, %v6122_v57  ;;  %v7081_v23 = vrot.slane %v3586_v55, %v6122_v57 }
 0x925   : > { %v3575_v48 = vpack.c.bf16 %v3539_v5, %v3538_v10 }
 0x926   : > { %v7084_v12 = vrot.slane %v3594_v63, %v6122_v57 }
 0x92b   : > { %3838 = vmatmul.mubr.bf16.gmra.mrb[88].mxu1 %v3575_v48  ;;  %3911 = vmatmul.mubr.bf16.gmra.mrb[96].mxu0 %v3575_v48 }
 0x97c   : > { %v3809_v53 = vpop.f32.mrb[76].mxu1  ;;  %v3882_v59 = vpop.f32.mrb[84].mxu0 }
 0x97d   : > { %v3810_v43 = vadd.f32 %v3809_v53, %v7075_v58  ;;  %v3883_v16 = vadd.f32 %v3882_v59, %v7078_v37  ;;  %v3811_v42 = vpop.f32.mrb[77].mxu1  ;;  %v3884_v54 = vpop.f32.mrb[85].mxu0 }
 0x97e   : > { %v3812_v49 = vadd.f32 %v3811_v42, %v7081_v23  ;;  %v3885_v2 = vadd.f32 %v3884_v54, %v7084_v12  ;;  %v3813_v60 = vpop.f32.mrb[78].mxu1  ;;  %v3886_v31 = vpop.f32.mrb[86].mxu0 }
 0x97f   : > { %v3953_v9 = vmul.f32 0.851, %v3810_v43  ;;  %v3955_v33 = vmul.f32 0.851, %v3883_v16  ;;  %v3814_v25 = vadd.f32 %v3813_v60, %v7075_v58  ;;  %v7092_v6 = vadd.f32 %v3886_v31, %v7078_v37  ;;  %v3815_v56 = vpop.f32.mrb[79].mxu1  ;;  %v3888_v61 = vpop.f32.mrb[87].mxu0 }
 0x980   : > { %v3954_v22 = vmul.f32 0.851, %v3812_v49  ;;  %v3956_v28 = vmul.f32 0.851, %v3885_v2  ;;  %v3816_v34 = vadd.f32 %v3815_v56, %v7081_v23  ;;  %v7096_v19 = vadd.f32 %v3888_v61, %v7084_v12 }
 0x981   : > { %5684 = vtanh.f32 %v3953_v9  ;;  %v3957_v24 = vmul.f32 0.851, %v3814_v25  ;;  %v3959_v41 = vmul.f32 0.851, %v7092_v6 }
 0x982   : > { %5686 = vtanh.f32 %v3955_v33  ;;  %v3958_v36 = vmul.f32 0.851, %v3816_v34  ;;  %v3960_v10 = vmul.f32 0.851, %v7096_v19 }
 0x983   : > { %5688 = vtanh.f32 %v3954_v22 }
 0x984   : > { %5690 = vtanh.f32 %v3956_v28  ;;  %v3819_v5 = vpop.f32.mrb[80].mxu1  ;;  %v3892_v11 = vpop.f32.mrb[88].mxu0 }
 0x985   : > { %5692 = vtanh.f32 %v3957_v24  ;;  %v7101_v48 = vadd.f32 %v3819_v5, %v7075_v58  ;;  %v3821_v15 = vpop.f32.mrb[81].mxu1  ;;  %v7104_v39 = vadd.f32 %v3892_v11, %v7078_v37  ;;  %v3894_v47 = vpop.f32.mrb[89].mxu0  ;;  %v3921_v24 = vmul.f32 0.5, %v3810_v43 }
 0x986   : > { %5694 = vtanh.f32 %v3959_v41  ;;  %v7107_v18 = vadd.f32 %v3821_v15, %v7081_v23  ;;  %v3823_v0 = vpop.f32.mrb[82].mxu1  ;;  %v7111_v62 = vadd.f32 %v3894_v47, %v7084_v12  ;;  %v3896_v55 = vpop.f32.mrb[90].mxu0  ;;  %v3923_v41 = vmul.f32 0.5, %v3883_v16 }
 0x987   : > { %5696 = vtanh.f32 %v3958_v36  ;;  %v3961_v14 = vmul.f32 0.851, %v7101_v48  ;;  %v3825_v63 = vpop.f32.mrb[83].mxu1  ;;  %v3963_v53 = vmul.f32 0.851, %v7104_v39  ;;  %v3898_v59 = vpop.f32.mrb[91].mxu0  ;;  %v3824_v60 = vadd.f32 %v3823_v0, %v7075_v58 }
 0x988   : > { %5698 = vtanh.f32 %v3960_v10  ;;  %v3962_v42 = vmul.f32 0.851, %v7107_v18  ;;  %v3964_v54 = vmul.f32 0.851, %v7111_v62  ;;  %v7118_v31 = vadd.f32 %v3896_v55, %v7078_v37 }
 0x989   : > { %5700 = vtanh.f32 %v3961_v14  ;;  %v7121_v9 = vadd.f32 %v3825_v63, %v7081_v23  ;;  %v3965_v28 = vmul.f32 0.851, %v3824_v60  ;;  %v7124_v56 = vadd.f32 %v3898_v59, %v7084_v12 }
 0x98a   : > { %5702 = vtanh.f32 %v3963_v53  ;;  %v3967_v36 = vmul.f32 0.851, %v7118_v31  ;;  %v3922_v11 = vmul.f32 0.5, %v3812_v49  ;;  %v3924_v14 = vmul.f32 0.5, %v3885_v2 }
 0x98b   : > { %v5685_v33 = vpop.eup %5684  ;;  %5704 = vtanh.f32 %v3962_v42  ;;  %v3966_v15 = vmul.f32 0.851, %v7121_v9  ;;  %v3925_v55 = vmul.f32 0.5, %v3814_v25  ;;  %v3968_v43 = vmul.f32 0.851, %v7124_v56 }
 0x98c   : > { %v5687_v22 = vpop.eup %5686  ;;  %5706 = vtanh.f32 %v3964_v54  ;;  %v4017_v10 = vadd.f32 1.0, %v5685_v33  ;;  %v3927_v54 = vmul.f32 0.5, %v7092_v6  ;;  %v3926_v49 = vmul.f32 0.5, %v3816_v34 }
 0x98d   : > { %v5689_v61 = vpop.eup %5688  ;;  %5708 = vtanh.f32 %v3965_v28  ;;  %v4019_v0 = vadd.f32 1.0, %v5687_v22  ;;  %v3928_v22 = vmul.f32 0.5, %v7096_v19 }
 0x98e   : > { %v5691_v5 = vpop.eup %5690  ;;  %5710 = vtanh.f32 %v3967_v36  ;;  %v4018_v53 = vadd.f32 1.0, %v5689_v61  ;;  %v4049_v35 = vmul.f32 %v4017_v10, %v3921_v24 }
 0x98f   : > { %v5693_v47 = vpop.eup %5692  ;;  %5712 = vtanh.f32 %v3966_v15  ;;  %v4020_v42 = vadd.f32 1.0, %v5691_v5  ;;  %v4051_v2 = vmul.f32 %v4019_v0, %v3923_v41  ;;  %v3929_v41 = vmul.f32 0.5, %v7101_v48 }
 0x990   : > { %v5695_v63 = vpop.eup %5694  ;;  %v4021_v59 = vadd.f32 1.0, %v5693_v47  ;;  %5714 = vtanh.f32 %v3968_v43  ;;  %v4050_v15 = vmul.f32 %v4018_v53, %v3922_v11  ;;  %v3934_v43 = vmul.f32 0.5, %v7121_v9 }
 0x991   : > { %v5697_v16 = vpop.eup %5696  ;;  %v4023_v33 = vadd.f32 1.0, %v5695_v63  ;;  %v4052_v5 = vmul.f32 %v4020_v42, %v3924_v14  ;;  %v3930_v14 = vmul.f32 0.5, %v7107_v18  ;;  %v3936_v18 = vmul.f32 0.5, %v7124_v56 }
 0x992   : > { %v5699_v28 = vpop.eup %5698  ;;  %v4053_v40 = vmul.f32 %v4021_v59, %v3925_v55  ;;  %v4022_v26 = vadd.f32 1.0, %v5697_v16  ;;  %v3931_v59 = vmul.f32 0.5, %v7104_v39 }
 0x993   : > { %v4055_v25 = vmul.f32 %v4023_v33, %v3927_v54  ;;  %v4024_v61 = vadd.f32 1.0, %v5699_v28  ;;  %v5701_v36 = vpop.eup %5700  ;;  %v3932_v54 = vmul.f32 0.5, %v7111_v62 }
 0x994   : > { %v4145_v47 = vpack.c.bf16 %v4053_v40, %v4049_v35  ;;  %v4054_v51 = vmul.f32 %v4022_v26, %v3926_v49  ;;  %v5703_v30 = vpop.eup %5702  ;;  %v4025_v24 = vadd.f32 1.0, %v5701_v36  ;;  %v3933_v40 = vmul.f32 0.5, %v3824_v60 }
 0x995   : > { %v4147_v1 = vpack.c.bf16 %v4055_v25, %v4051_v2  ;;  %v4056_v6 = vmul.f32 %v4024_v61, %v3928_v22  ;;  %v5705_v63 = vpop.eup %5704  ;;  %v4027_v0 = vadd.f32 1.0, %v5703_v30 }
 0x996   : > { %v4146_v34 = vpack.c.bf16 %v4054_v51, %v4050_v15  ;;  %v5707_v46 = vpop.eup %5706  ;;  %v4026_v11 = vadd.f32 1.0, %v5705_v63  ;;  %v3935_v51 = vmul.f32 0.5, %v7118_v31  ;;  %v4057_v30 = vmul.f32 %v4025_v24, %v3929_v41 }
 0x997   : > { %v4148_v10 = vpack.c.bf16 %v4056_v6, %v4052_v5  ;;  %v5709_v55 = vpop.eup %5708  ;;  %v4028_v48 = vadd.f32 1.0, %v5707_v46  ;;  %v4059_v42 = vmul.f32 %v4027_v0, %v3931_v59 }
 0x998   : > { %4385 = vmatprep.mubr.bf16.mxu1 %v4146_v34  ;;  %v5711_v19 = vpop.eup %5710  ;;  %v4029_v26 = vadd.f32 1.0, %v5709_v55  ;;  %v4058_v31 = vmul.f32 %v4026_v11, %v3930_v14 }
 0x999   : > { %4450 = vmatprep.mubr.bf16.mxu0 %v4148_v10  ;;  %4386 = vmatmul.mubr.bf16.vlgmr.msra.gmra.mrb[92].mxu1 %v4145_v47  ;;  %v5713_v35 = vpop.eup %5712  ;;  %v4031_v53 = vadd.f32 1.0, %v5711_v19 }
 0x99a   : > { %4451 = vmatmul.mubr.bf16.vlgmr.msra.gmra.mrb[100].mxu0 %v4147_v1  ;;  %5320 = vmatpush3.bf16.msra.mxu1 %v6975_v7  ;;  %v4061_v16 = vmul.f32 %v4029_v26, %v3933_v40  ;;  %v4030_v39 = vadd.f32 1.0, %v5713_v35  ;;  %v5715_v60 = vpop.eup %5714  ;;  %v4060_v7 = vmul.f32 %v4028_v48, %v3932_v54 }
 0x99b   : > { %5313 = vmatprep.subr.bf16.mxu1 %v6979_v38  ;;  %v4063_v33 = vmul.f32 %v4031_v53, %v3935_v51  ;;  %v4032_v28 = vadd.f32 1.0, %v5715_v60 }
 0x99c   : > { %v4062_v49 = vmul.f32 %v4030_v39, %v3934_v43  ;;  %v4149_v9 = vpack.c.bf16 %v4061_v16, %v4057_v30 }
 0x99d   : > { %v4151_v1 = vpack.c.bf16 %v4063_v33, %v4059_v42  ;;  %v4064_v46 = vmul.f32 %v4032_v28, %v3936_v18 }
 0x99e   : > { %5321 = vmatpush3.bf16.msra.mxu1 %v6987_v50  ;;  %v4150_v2 = vpack.c.bf16 %v4062_v49, %v4058_v31 }
 0x99f   : > { %5314 = vmatprep.subr.bf16.mxu1 %v6994_v13  ;;  %v4152_v38 = vpack.c.bf16 %v4064_v46, %v4060_v7 }
 0x9a0   : > { %4393 = vmatprep.mubr.bf16.mxu1 %v4150_v2 }
 0x9a1   : > { %4394 = vmatmul.mubr.bf16.gmra.mrb[96].mxu1 %v4149_v9  ;;  %4458 = vmatprep.mubr.bf16.mxu0 %v4152_v38 }
 0x9a2   : > { %5322 = vmatpush3.bf16.msra.mxu1 %v6999_v8  ;;  %4459 = vmatmul.mubr.bf16.gmra.mrb[104].mxu0 %v4151_v1 }
 0x9a3   : > { %5315 = vmatprep.subr.bf16.mxu1 %v7004_v45 }
 0x9a6   : > { %5323 = vmatpush3.bf16.msra.mxu1 %v7008_v3 }
 0x9a7   : > { %5316 = vmatprep.subr.bf16.mxu1 %v7014_v4 }
 0x9aa   : > { %5324 = vmatpush3.bf16.msra.mxu1 %v7019_v17 }
 0x9ab   : > { %5317 = vmatprep.subr.bf16.mxu1 %v7024_v52 }
 0x9ae   : > { %5325 = vmatpush3.bf16.msra.mxu1 %v7028_v29 }
 0x9af   : > { %5318 = vmatprep.subr.bf16.mxu1 %v7034_v27 }
 0x9b2   : > { %5326 = vmatpush3.bf16.msra.mxu1 %v7038_v44 }
 0x9b3   : > { %5319 = vmatprep.subr.bf16.mxu1 %v7044_v32 }
 0x9b6   : > { %5327 = vmatpush3.bf16.msra.mxu1 %v7048_v20 }
 0x9f6   : > { %v3829_v50 = vpop.f32.mrb[84].mxu1  ;;  %v3902_v13 = vpop.f32.mrb[92].mxu0 }
 0x9f7   : > { %v3830_v8 = vadd.f32 %v3829_v50, %v7075_v58  ;;  %v3903_v45 = vadd.f32 %v3902_v13, %v7078_v37  ;;  %v3831_v3 = vpop.f32.mrb[85].mxu1  ;;  %v3904_v4 = vpop.f32.mrb[93].mxu0 }
 0x9f8   : > { %v3832_v17 = vadd.f32 %v3831_v3, %v7081_v23  ;;  %v3905_v52 = vadd.f32 %v3904_v4, %v7084_v12  ;;  %v3833_v29 = vpop.f32.mrb[86].mxu1  ;;  %v3906_v27 = vpop.f32.mrb[94].mxu0 }
 0x9f9   : > { %v3969_v62 = vmul.f32 0.851, %v3830_v8  ;;  %v3971_v44 = vmul.f32 0.851, %v3903_v45  ;;  %v3834_v20 = vadd.f32 %v3833_v29, %v7075_v58  ;;  %v7159_v25 = vadd.f32 %v3906_v27, %v7078_v37  ;;  %v3835_v22 = vpop.f32.mrb[87].mxu1  ;;  %v3908_v61 = vpop.f32.mrb[95].mxu0 }
 0x9fa   : > { %v3970_v56 = vmul.f32 0.851, %v3832_v17  ;;  %v3972_v32 = vmul.f32 0.851, %v3905_v52  ;;  %v3836_v36 = vadd.f32 %v3835_v22, %v7081_v23  ;;  %v7163_v15 = vadd.f32 %v3908_v61, %v7084_v12 }
 0x9fb   : > { %5716 = vtanh.f32 %v3969_v62  ;;  %v3973_v47 = vmul.f32 0.851, %v3834_v20  ;;  %v3975_v5 = vmul.f32 0.851, %v7159_v25  ;;  %v3937_v18 = vmul.f32 0.5, %v3830_v8 }
 0x9fc   : > { %5718 = vtanh.f32 %v3971_v44  ;;  %v3974_v6 = vmul.f32 0.851, %v3836_v36  ;;  %v3976_v34 = vmul.f32 0.851, %v7163_v15  ;;  %v3939_v31 = vmul.f32 0.5, %v3903_v45 }
 0x9fd   : > { %5720 = vtanh.f32 %v3970_v56  ;;  %v3938_v28 = vmul.f32 0.5, %v3832_v17  ;;  %v3940_v7 = vmul.f32 0.5, %v3905_v52  ;;  %v3941_v46 = vmul.f32 0.5, %v3834_v20 }
 0x9fe   : > { %5722 = vtanh.f32 %v3972_v32  ;;  %v3839_v63 = vpop.f32.mrb[88].mxu1  ;;  %v3912_v10 = vpop.f32.mrb[96].mxu0  ;;  %v3943_v45 = vmul.f32 0.5, %v7159_v25  ;;  %v3942_v4 = vmul.f32 0.5, %v3836_v36  ;;  %v3944_v56 = vmul.f32 0.5, %v7163_v15 }
 0x9ff   : > { %5724 = vtanh.f32 %v3973_v47  ;;  %v7168_v24 = vadd.f32 %v3839_v63, %v7075_v58  ;;  %v3841_v55 = vpop.f32.mrb[89].mxu1  ;;  %v7171_v41 = vadd.f32 %v3912_v10, %v7078_v37  ;;  %v3914_v19 = vpop.f32.mrb[97].mxu0 }
 0xa00   : > { %5726 = vtanh.f32 %v3975_v5  ;;  %v7174_v0 = vadd.f32 %v3841_v55, %v7081_v23  ;;  %v3843_v59 = vpop.f32.mrb[90].mxu1  ;;  %v7178_v40 = vadd.f32 %v3914_v19, %v7084_v12  ;;  %v3916_v26 = vpop.f32.mrb[98].mxu0 }
 0xa01   : > { %5728 = vtanh.f32 %v3974_v6  ;;  %v3977_v11 = vmul.f32 0.851, %v7168_v24  ;;  %v3845_v35 = vpop.f32.mrb[91].mxu1  ;;  %v3979_v14 = vmul.f32 0.851, %v7171_v41  ;;  %v3918_v51 = vpop.f32.mrb[99].mxu0  ;;  %v3844_v30 = vadd.f32 %v3843_v59, %v7075_v58 }
 0xa02   : > { %5730 = vtanh.f32 %v3976_v34  ;;  %v3978_v53 = vmul.f32 0.851, %v7174_v0  ;;  %v3980_v43 = vmul.f32 0.851, %v7178_v40  ;;  %v7185_v48 = vadd.f32 %v3916_v26, %v7078_v37 }
 0xa03   : > { %5732 = vtanh.f32 %v3977_v11  ;;  %v7188_v16 = vadd.f32 %v3845_v35, %v7081_v23  ;;  %v3981_v42 = vmul.f32 0.851, %v3844_v30  ;;  %v7191_v54 = vadd.f32 %v3918_v51, %v7084_v12 }
 0xa04   : > { %5734 = vtanh.f32 %v3979_v14  ;;  %v3983_v58 = vmul.f32 0.851, %v7185_v48  ;;  %v3945_v11 = vmul.f32 0.5, %v7168_v24  ;;  %v3947_v35 = vmul.f32 0.5, %v7171_v41 }
 0xa05   : > { %v5717_v39 = vpop.eup %5716  ;;  %5736 = vtanh.f32 %v3978_v53  ;;  %v3982_v23 = vmul.f32 0.851, %v7188_v16  ;;  %v3984_v50 = vmul.f32 0.851, %v7191_v54  ;;  %v3949_v51 = vmul.f32 0.5, %v3844_v30 }
 0xa06   : > { %v5719_v60 = vpop.eup %5718  ;;  %5738 = vtanh.f32 %v3980_v43  ;;  %v4033_v37 = vadd.f32 1.0, %v5717_v39  ;;  %v3946_v39 = vmul.f32 0.5, %v7174_v0  ;;  %v3948_v41 = vmul.f32 0.5, %v7178_v40 }
 0xa07   : > { %v5721_v33 = vpop.eup %5720  ;;  %5740 = vtanh.f32 %v3981_v42  ;;  %v4035_v1 = vadd.f32 1.0, %v5719_v60  ;;  %v3951_v60 = vmul.f32 0.5, %v7185_v48  ;;  %v3952_v30 = vmul.f32 0.5, %v7191_v54  ;;  %v4491_v54 = vld [vmem:[%s7323_s20] sm:$0x1] }
 0xa08   : > { %v5723_v49 = vpop.eup %5722  ;;  %5742 = vtanh.f32 %v3983_v58  ;;  %v4034_v12 = vadd.f32 1.0, %v5721_v33  ;;  %v4065_v29 = vmul.f32 %v4033_v37, %v3937_v18  ;;  %v3950_v33 = vmul.f32 0.5, %v7188_v16 }
 0xa09   : > { %v5725_v9 = vpop.eup %5724  ;;  %5744 = vtanh.f32 %v3982_v23  ;;  %v4036_v8 = vadd.f32 1.0, %v5723_v49  ;;  %v4067_v52 = vmul.f32 %v4035_v1, %v3939_v31 }
 0xa0a   : > { %v5727_v2 = vpop.eup %5726  ;;  %v4037_v38 = vadd.f32 1.0, %v5725_v9  ;;  %5746 = vtanh.f32 %v3984_v50  ;;  %v4066_v22 = vmul.f32 %v4034_v12, %v3938_v28 }
 0xa0b   : > { %v5729_v13 = vpop.eup %5728  ;;  %v4039_v3 = vadd.f32 1.0, %v5727_v2  ;;  %v4068_v6 = vmul.f32 %v4036_v8, %v3940_v7 }
 0xa0c   : > { %v5731_v17 = vpop.eup %5730  ;;  %v4069_v27 = vmul.f32 %v4037_v38, %v3941_v46  ;;  %v4038_v62 = vadd.f32 1.0, %v5729_v13 }
 0xa0d   : > { %v4071_v44 = vmul.f32 %v4039_v3, %v3943_v45  ;;  %v4040_v32 = vadd.f32 1.0, %v5731_v17  ;;  %v5733_v20 = vpop.eup %5732  ;;  %v4492_v3 = vunpack.c.l.bf16 %v4491_v54 }
 0xa0e   : > { %v4070_v61 = vmul.f32 %v4038_v62, %v3942_v4  ;;  %v4153_v47 = vpack.c.bf16 %v4069_v27, %v4065_v29  ;;  %v5735_v5 = vpop.eup %5734  ;;  %v4041_v55 = vadd.f32 1.0, %v5733_v20  ;;  %v7324_v20 = vld [vmem:[#allocation5_spill] sm:$0xff] }
 0xa0f   : > { %v4155_v63 = vpack.c.bf16 %v4071_v44, %v4067_v52  ;;  %v4072_v25 = vmul.f32 %v4040_v32, %v3944_v56  ;;  %v5737_v34 = vpop.eup %5736  ;;  %v4043_v26 = vadd.f32 1.0, %v5735_v5  ;;  %v7212_v56 = vrot.slane %v4492_v3, %v6122_v57 }
 0xa10   : > { %v4154_v36 = vpack.c.bf16 %v4070_v61, %v4066_v22  ;;  %v5739_v10 = vpop.eup %5738  ;;  %v4042_v14 = vadd.f32 1.0, %v5737_v34  ;;  %v4073_v18 = vmul.f32 %v4041_v55, %v3945_v11 }
 0xa11   : > { %v4156_v19 = vpack.c.bf16 %v4072_v25, %v4068_v6  ;;  %v5741_v59 = vpop.eup %5740  ;;  %v4044_v31 = vadd.f32 1.0, %v5739_v10  ;;  %v4075_v37 = vmul.f32 %v4043_v26, %v3947_v35 }
 0xa12   : > { %4401 = vmatprep.mubr.bf16.mxu1 %v4154_v36  ;;  %v5743_v15 = vpop.eup %5742  ;;  %v4045_v53 = vadd.f32 1.0, %v5741_v59  ;;  %v4074_v23 = vmul.f32 %v4042_v14, %v3946_v39 }
 0xa13   : > { %4402 = vmatmul.mubr.bf16.gmra.mrb[100].mxu1 %v4153_v47  ;;  %v5745_v43 = vpop.eup %5744  ;;  %v4047_v42 = vadd.f32 1.0, %v5743_v15  ;;  %v4076_v7 = vmul.f32 %v4044_v31, %v3948_v41  ;;  %v7325_v15 = vld [vmem:[#allocation6_spill] sm:$0xff] }
 0xa14   : > { %v4077_v24 = vmul.f32 %v4045_v53, %v3949_v51  ;;  %v4046_v58 = vadd.f32 1.0, %v5745_v43  ;;  %v5747_v49 = vpop.eup %5746  ;;  %v7326_v51 = vld [vmem:[#allocation7_spill] sm:$0xff] }
 0xa15   : > { %v4079_v28 = vmul.f32 %v4047_v42, %v3951_v60  ;;  %v4048_v0 = vadd.f32 1.0, %v5747_v49 }
 0xa16   : > { %v4078_v9 = vmul.f32 %v4046_v58, %v3950_v33  ;;  %v4157_v1 = vpack.c.bf16 %v4077_v24, %v4073_v18 }
 0xa17   : > { %v4159_v48 = vpack.c.bf16 %v4079_v28, %v4075_v37  ;;  %v4080_v46 = vmul.f32 %v4048_v0, %v3952_v30 }
 0xa18   : > { %v4158_v16 = vpack.c.bf16 %v4078_v9, %v4074_v23 }
 0xa19   : > { %v4160_v2 = vpack.c.bf16 %v4080_v46, %v4076_v7 }
 0xa1a   : > { %4409 = vmatprep.mubr.bf16.mxu1 %v4158_v16 }
 0xa1b   : > { %4410 = vmatmul.mubr.bf16.gmra.mrb[104].mxu1 %v4157_v1 }
 0xa1c   : > { %4466 = vmatprep.mubr.bf16.mxu1 %v4156_v19 }
 0xa23   : > { %4467 = vmatmul.mubr.bf16.vlgmr.msra.gmra.mrb[108].mxu1 %v4155_v63 }
 0xa24   : > { %4474 = vmatprep.mubr.bf16.mxu1 %v4160_v2  ;;  %v7327_v2 = vld [vmem:[#allocation8_spill] sm:$0xff] }
 0xa2b   : > { %4475 = vmatmul.mubr.bf16.gmra.mrb[112].mxu1 %v4159_v48 }
 0xa6c   : > { %v5008_v40 = vpop.f32.mrb[92].mxu1 }
 0xa6d   : > { %v5048_v12 = vpop.f32.mrb[100].mxu0  ;;  %v5009_v38 = vpop.f32.mrb[93].mxu1 }
 0xa6e   : > { %v5010_v50 = vadd.f32 %v5009_v38, %v5008_v40  ;;  %v5049_v13 = vpop.f32.mrb[101].mxu0  ;;  %v5011_v8 = vpop.f32.mrb[94].mxu1 }
 0xa6f   : > { %v5050_v45 = vadd.f32 %v5049_v13, %v5048_v12  ;;  %v5051_v4 = vpop.f32.mrb[102].mxu0  ;;  %v5012_v17 = vpop.f32.mrb[95].mxu1  ;;  %v7328_v12 = vld [vmem:[#allocation3_spill] sm:$0xff] }
 0xa70   : > { %v5013_v29 = vadd.f32 %v5012_v17, %v5011_v8  ;;  %v5052_v27 = vpop.f32.mrb[103].mxu0 }
 0xa71   : > { %v4453_v62 = vadd.f32 %v5050_v45, %v5010_v50  ;;  %v5053_v52 = vadd.f32 %v5052_v27, %v5051_v4 }
 0xa73   : > { %v4483_v44 = vadd.f32 %v4453_v62, %v6838_v21  ;;  %v4456_v32 = vadd.f32 %v5053_v52, %v5013_v29  ;;  %v7329_v52 = vld [vmem:[#allocation9_spill] sm:$0xff] }
 0xa74   : > { %v5014_v61 = vpop.f32.mrb[96].mxu1 }
 0xa75   : > { %v4484_v22 = vadd.f32 %v4456_v32, %v7324_v20  ;;  %v5015_v47 = vpop.f32.mrb[97].mxu1  ;;  %v4497_v5 = vadd.f32 %v7212_v56, %v4483_v44  ;;  %v5054_v63 = vpop.f32.mrb[104].mxu0  ;;  %v7330_v20 = vld [vmem:[#allocation10_spill] sm:$0xff] }
 0xa76   : > { %v5016_v25 = vadd.f32 %v5015_v47, %v5014_v61  ;;  %v5017_v34 = vpop.f32.mrb[98].mxu1  ;;  %v5055_v36 = vpop.f32.mrb[105].mxu0 }
 0xa77   : > { %v4498_v6 = vadd.f32 %v7212_v56, %v4484_v22  ;;  %v5018_v10 = vpop.f32.mrb[99].mxu1  ;;  %v5056_v19 = vadd.f32 %v5055_v36, %v5054_v63  ;;  %v5057_v21 = vpop.f32.mrb[106].mxu0 }
 0xa78   : > { %v5019_v59 = vadd.f32 %v5018_v10, %v5017_v34  ;;  %v5058_v57 = vpop.f32.mrb[107].mxu0 }
 0xa79   : > { %v4881_v55 = vpack.c.bf16 %v4498_v6, %v4497_v5  ;;  %v4461_v11 = vadd.f32 %v5056_v19, %v5016_v25  ;;  %v5059_v26 = vadd.f32 %v5058_v57, %v5057_v21 }
 0xa7b   : > { %4882 = vst [vmem:[%s7300_s28] sm:$0xff] %v4881_v55   ;;  %v4485_v35 = vadd.f32 %v4461_v11, %v7325_v15  ;;  %v4464_v14 = vadd.f32 %v5059_v26, %v5019_v59 }
 0xa7d   : > { %v4486_v53 = vadd.f32 %v4464_v14, %v7326_v51  ;;  %v4499_v43 = vadd.f32 %v7212_v56, %v4485_v35 }
 0xa7f   : > { %v4500_v39 = vadd.f32 %v7212_v56, %v4486_v53 }
 0xa81   : > { %v4886_v60 = vpack.c.bf16 %v4500_v39, %v4499_v43 }
 0xa83   : > { %4901 = vst [vmem:[%s7300_s28 + $0x8] sm:$0xff] %v4886_v60  }
 0xae6   : > { %v5020_v42 = vpop.f32.mrb[100].mxu1 }
 0xae7   : > { %v5021_v33 = vpop.f32.mrb[101].mxu1 }
 0xae8   : > { %v5022_v18 = vadd.f32 %v5021_v33, %v5020_v42  ;;  %v5023_v31 = vpop.f32.mrb[102].mxu1 }
 0xae9   : > { %v5024_v24 = vpop.f32.mrb[103].mxu1 }
 0xaea   : > { %v5025_v58 = vadd.f32 %v5024_v24, %v5023_v31 }
 0xaee   : > { %v5026_v49 = vpop.f32.mrb[104].mxu1 }
 0xaef   : > { %v5027_v37 = vpop.f32.mrb[105].mxu1 }
 0xaf0   : > { %v5028_v41 = vadd.f32 %v5027_v37, %v5026_v49  ;;  %v5029_v28 = vpop.f32.mrb[106].mxu1 }
 0xaf1   : > { %v5030_v30 = vpop.f32.mrb[107].mxu1 }
 0xaf2   : > { %v5031_v23 = vadd.f32 %v5030_v30, %v5029_v28 }
 0xaf6   : > { %v5060_v9 = vpop.f32.mrb[108].mxu1 }
 0xaf7   : > { %v5061_v0 = vpop.f32.mrb[109].mxu1 }
 0xaf8   : > { %v5062_v1 = vadd.f32 %v5061_v0, %v5060_v9  ;;  %v5063_v48 = vpop.f32.mrb[110].mxu1 }
 0xaf9   : > { %v5064_v7 = vpop.f32.mrb[111].mxu1 }
 0xafa   : > { %v4469_v46 = vadd.f32 %v5062_v1, %v5022_v18  ;;  %v5065_v16 = vadd.f32 %v5064_v7, %v5063_v48 }
 0xafc   : > { %v4487_v40 = vadd.f32 %v4469_v46, %v7327_v2  ;;  %v4472_v54 = vadd.f32 %v5065_v16, %v5025_v58 }
 0xafe   : > { %v4488_v38 = vadd.f32 %v4472_v54, %v7328_v12  ;;  %v5066_v50 = vpop.f32.mrb[112].mxu1  ;;  %v4501_v8 = vadd.f32 %v7212_v56, %v4487_v40 }
 0xaff   : > { %v5067_v13 = vpop.f32.mrb[113].mxu1 }
 0xb00   : > { %v4502_v45 = vadd.f32 %v7212_v56, %v4488_v38  ;;  %v5068_v3 = vadd.f32 %v5067_v13, %v5066_v50  ;;  %v5069_v4 = vpop.f32.mrb[114].mxu1 }
 0xb01   : > { %v5070_v17 = vpop.f32.mrb[115].mxu1 }
 0xb02   : > { %v4891_v29 = vpack.c.bf16 %v4502_v45, %v4501_v8  ;;  %v4477_v27 = vadd.f32 %v5068_v3, %v5028_v41  ;;  %v5071_v62 = vadd.f32 %v5070_v17, %v5069_v4 }
 0xb04   : > { %4902 = vst [vmem:[%s7300_s28 + $0x10] sm:$0xff] %v4891_v29   ;;  %v4489_v44 = vadd.f32 %v4477_v27, %v7329_v52  ;;  %v4480_v32 = vadd.f32 %v5071_v62, %v5031_v23 }
 0xb06   : > { %v4490_v22 = vadd.f32 %v4480_v32, %v7330_v20  ;;  %v4503_v61 = vadd.f32 %v7212_v56, %v4489_v44 }
 0xb08   : > { %v4504_v47 = vadd.f32 %v7212_v56, %v4490_v22 }
 0xb0a   : > { %v4896_v5 = vpack.c.bf16 %v4504_v47, %v4503_v61 }
 0xb0c   : > { %4903 = vst [vmem:[%s7300_s28 + $0x18] sm:$0xff] %v4896_v5  }
 0xb0d PF: > { %s7331_s23 = sld [smem:[#allocation2_spill]] }
 0xb13   : > { %s24_s29 = sadd.s32 1, %s7331_s23  }
 0xb14   : > { %p21_p8 = scmp.ge.s32.totalorder %s24_s29, 4  }
 0xb16   :  { %23 = sbr.rel (!%p21_p8) target bundleno = 8 (0x8), region = 146 }

</bundles_post_ra>
